<compile_context>
chip_gen: v7x
topology: tpu7x:2x2x1
jax: 0.10.0
libtpu: 0.0.40
codegen_flags: <defaults>
</compile_context>

<pallas_src>
import functools

import jax
import jax.numpy as jnp
from jax.experimental import pallas as pl
from jax.experimental.pallas import tpu as pltpu


def _round_up(v, m):
    return -(-v // m) * m


# ------------------------------- Pallas kernels -------------------------------

def _conv_rows(x_ref, w_ref, shift_ref, res_ref, o_ref, *, k, stride, Ho, Wo, relu):
    """Fused conv (tap-accumulated on the MXU) + BN shift (+ residual) (+ ReLU).

    x_ref:     (s*s, Hph, Wph, Cin)  phase-decomposed padded input of ONE image (bf16)
    w_ref:     (k*k, Cin, Cout)      bf16 weights, BN scale pre-folded
    shift_ref: (1, Cout)             f32 BN shift
    res_ref:   (1, Ho, Wo, Cout) bf16 or None
    o_ref:     (1, Ho, Wo, Cout) bf16
    """
    s = stride
    cout = o_ref.shape[-1]

    def row_body(ho, carry):
        acc = jnp.zeros((Wo, cout), jnp.float32)
        for di in range(k):
            r = ho + (di // s)
            for dj in range(k):
                p = (di % s) * s + (dj % s)
                lhs = x_ref[p, r, pl.ds(dj // s, Wo), :]          # (Wo, Cin) bf16
                acc = acc + jnp.dot(lhs, w_ref[di * k + dj],
                                    preferred_element_type=jnp.float32)
        y = acc + shift_ref[...]
        if res_ref is not None:
            y = y + res_ref[0, ho].astype(jnp.float32)
        if relu:
            y = jnp.maximum(y, 0.0)
        o_ref[0, ho] = y.astype(o_ref.dtype)
        return carry

    jax.lax.fori_loop(0, Ho, row_body, 0)


def _conv_bn_kernel(x_ref, w_ref, shift_ref, o_ref, *, k, stride, Ho, Wo, relu):
    _conv_rows(x_ref, w_ref, shift_ref, None, o_ref,
               k=k, stride=stride, Ho=Ho, Wo=Wo, relu=relu)


def _conv_bn_res_kernel(x_ref, w_ref, shift_ref, res_ref, o_ref, *,
                        k, stride, Ho, Wo, relu):
    _conv_rows(x_ref, w_ref, shift_ref, res_ref, o_ref,
               k=k, stride=stride, Ho=Ho, Wo=Wo, relu=relu)


def _maxpool_kernel(x_ref, o_ref, *, k, stride, Ho, Wo):
    # Max over the k*k taps, read directly as shifted windows of the phase slab
    # (no (9, M, C) stack materialized in HBM).
    s = stride
    out = None
    for di in range(k):
        for dj in range(k):
            p = (di % s) * s + (dj % s)
            v = x_ref[p, pl.ds(di // s, Ho), pl.ds(dj // s, Wo), :]
            out = v if out is None else jnp.maximum(out, v)
    o_ref[0] = out


def _avgpool_kernel(x_ref, o_ref):
    # AdaptiveAvgPool2d((1,1)) + flatten -> (N, C), accumulated in f32.
    o_ref[...] = jnp.mean(x_ref[...].astype(jnp.float32), axis=1)


# ------------------------------- Pallas wrappers -------------------------------

def _make_phases(x, k, stride, pad, cin_pad, pad_value):
    """(N,H,W,C) -> (N*s*s, Hph, Wph, cin_pad) phase-decomposed, padded input.

    Phase p = a*s + b holds xp[:, a::s, b::s, :]; conv tap (di, dj) then reads a
    *contiguous* (Ho, Wo) window of phase ((di%s)*s + dj%s) at offset (di//s, dj//s).
    Total HBM traffic ~1x the activation (vs ~k*k for materialized im2col).
    """
    N, H, W, C = x.shape
    s = stride
    Hp, Wp = H + 2 * pad, W + 2 * pad
    Ho = (Hp - k) // s + 1
    Wo = (Wp - k) // s + 1
    Hp2, Wp2 = _round_up(Hp, s), _round_up(Wp, s)
    xp = jnp.pad(
        x,
        ((0, 0), (pad, Hp2 - H - pad), (pad, Wp2 - W - pad), (0, cin_pad - C)),
        constant_values=pad_value)
    Hph, Wph = Hp2 // s, Wp2 // s
    ph = xp.reshape(N, Hph, s, Wph, s, cin_pad)
    ph = ph.transpose(0, 2, 4, 1, 3, 5)                  # (N, s, s, Hph, Wph, C)
    return ph.reshape(N * s * s, Hph, Wph, cin_pad), Ho, Wo, Hph, Wph


def conv_bn_act(x, w, shift, *, k, stride, pad, relu, residual=None):
    """y = [relu]( conv_{kxk,stride,pad}(x)*bn_scale + bn_shift [+ residual] )

    x: (N,H,W,Cin) bf16 NHWC; w: (k*k, Cin_pad, Cout) bf16 (BN scale folded in);
    returns (N, Ho, Wo, Cout) bf16.
    """
    N, H, W, Cin = x.shape
    kk, cin_pad, cout = w.shape
    s = stride
    phases, Ho, Wo, Hph, Wph = _make_phases(x, k, s, pad, cin_pad, 0.0)

    in_specs = [
        pl.BlockSpec((s * s, Hph, Wph, cin_pad), lambda n: (n, 0, 0, 0)),
        pl.BlockSpec((kk, cin_pad, cout), lambda n: (0, 0, 0)),
        pl.BlockSpec((1, cout), lambda n: (0, 0)),
    ]
    args = [phases, w, shift.reshape(1, cout)]

    if residual is None:
        kernel = functools.partial(_conv_bn_kernel, k=k, stride=s,
                                   Ho=Ho, Wo=Wo, relu=relu)
    else:
        in_specs.append(pl.BlockSpec((1, Ho, Wo, cout), lambda n: (n, 0, 0, 0)))
        args.append(residual)
        kernel = functools.partial(_conv_bn_res_kernel, k=k, stride=s,
                                   Ho=Ho, Wo=Wo, relu=relu)

    flops = 2 * N * Ho * Wo * kk * cin_pad * cout
    bytes_accessed = 2 * (phases.size + w.size + N * Ho * Wo * cout
                          + (residual.size if residual is not None else 0)) + 4 * cout

    return pl.pallas_call(
        kernel,
        out_shape=jax.ShapeDtypeStruct((N, Ho, Wo, cout), jnp.bfloat16),
        grid=(N,),
        in_specs=in_specs,
        out_specs=pl.BlockSpec((1, Ho, Wo, cout), lambda n: (n, 0, 0, 0)),
        compiler_params=pltpu.CompilerParams(
            dimension_semantics=("parallel",),
            vmem_limit_bytes=32 * 1024 * 1024),
        cost_estimate=pl.CostEstimate(flops=flops, transcendentals=0,
                                      bytes_accessed=bytes_accessed),
    )(*args)


def maxpool2d(x, *, k=3, stride=2, pad=1):
    N, H, W, C = x.shape
    s = stride
    phases, Ho, Wo, Hph, Wph = _make_phases(x, k, s, pad, C, -1e30)  # -inf-like pad
    return pl.pallas_call(
        functools.partial(_maxpool_kernel, k=k, stride=s, Ho=Ho, Wo=Wo),
        out_shape=jax.ShapeDtypeStruct((N, Ho, Wo, C), x.dtype),
        grid=(N,),
        in_specs=[pl.BlockSpec((s * s, Hph, Wph, C), lambda n: (n, 0, 0, 0))],
        out_specs=pl.BlockSpec((1, Ho, Wo, C), lambda n: (n, 0, 0, 0)),
        compiler_params=pltpu.CompilerParams(
            dimension_semantics=("parallel",),
            vmem_limit_bytes=32 * 1024 * 1024),
    )(phases)


def global_avgpool(x):
    """AdaptiveAvgPool2d((1,1)) + flatten -> (N, C) in f32."""
    N, H, W, C = x.shape
    xr = x.reshape(N, H * W, C)
    return pl.pallas_call(
        _avgpool_kernel,
        out_shape=jax.ShapeDtypeStruct((N, C), jnp.float32),
        grid=(1,),
        in_specs=[pl.BlockSpec((N, H * W, C), lambda i: (0, 0, 0))],
        out_specs=pl.BlockSpec((N, C), lambda i: (0, 0)),
    )(xr)


# ------------------------------- model definition -------------------------------

def make_params(key, in_channels, blocks_sizes, depths):
    eps = 1e-5
    keys = iter(jax.random.split(key, 64))

    def conv_bn(k, cin, cout):
        fan_in = k * k * cin
        w = jax.random.normal(next(keys), (k, k, cin, cout), jnp.float32)
        w = w * jnp.sqrt(2.0 / fan_in)
        # Eval-mode BatchNorm fold (gamma=1, beta=0, mean=0, var=1, eps=1e-5):
        scale = jnp.full((cout,), 1.0 / jnp.sqrt(1.0 + eps), jnp.float32)
        shift = jnp.zeros((cout,), jnp.float32)
        w = w * scale[None, None, None, :]            # scale folded into weights
        cin_pad = _round_up(cin, 8)                   # align K for clean MXU tiles
        w = jnp.pad(w, ((0, 0), (0, 0), (0, cin_pad - cin), (0, 0)))
        w = w.reshape(k * k, cin_pad, cout).astype(jnp.bfloat16)
        return {"w": w, "shift": shift}

    params = {"gate": conv_bn(7, in_channels, blocks_sizes[0])}

    cfgs = [(blocks_sizes[0], blocks_sizes[0], depths[0], 1)]
    for i in range(len(blocks_sizes) - 1):
        cfgs.append((blocks_sizes[i], blocks_sizes[i + 1], depths[i + 1], 2))

    layers = []
    for cin, cout, depth, stride in cfgs:
        blocks = []
        b_in, b_stride = cin, stride
        for _ in range(depth):
            blocks.append({
                "conv1": conv_bn(3, b_in, cout),
                "conv2": conv_bn(3, cout, cout),
                "stride": b_stride,
                "shortcut": (conv_bn(1, b_in, cout)
                             if (b_stride != 1 or b_in != cout) else None),
            })
            b_in, b_stride = cout, 1
        layers.append(blocks)
    params["layers"] = layers
    return params


def basic_block(x, blk):
    stride = blk["stride"]
    if blk["shortcut"] is not None:
        sc = blk["shortcut"]
        shortcut = conv_bn_act(x, sc["w"], sc["shift"], k=1, stride=stride,
                               pad=0, relu=False)
    else:
        shortcut = x
    c1, c2 = blk["conv1"], blk["conv2"]
    y = conv_bn_act(x, c1["w"], c1["shift"], k=3, stride=stride, pad=1, relu=True)
    y = conv_bn_act(y, c2["w"], c2["shift"], k=3, stride=1, pad=1, relu=True,
                    residual=shortcut)                # residual added before final ReLU
    return y


def resnet_forward(x_nchw, params):
    x = jnp.transpose(x_nchw, (0, 2, 3, 1)).astype(jnp.bfloat16)   # NCHW -> NHWC bf16
    g = params["gate"]
    # gate: conv7x7 s2 p3 + BN + ReLU (fused), then maxpool 3x3 s2 p1
    x = conv_bn_act(x, g["w"], g["shift"], k=7, stride=2, pad=3, relu=True)
    x = maxpool2d(x, k=3, stride=2, pad=1)
    for blocks in params["layers"]:
        for blk in blocks:
            x = basic_block(x, blk)
    return global_avgpool(x)          # avgpool + flatten; self.fc unused in forward


# ------------------------------------- main -------------------------------------

if __name__ == "__main__":
    key = jax.random.PRNGKey(0)
    pkey, xkey = jax.random.split(key)

    in_channels = 3
    blocks_sizes = [64, 128, 128, 128]   # >=64/128 channels keep conv outputs lane-dense
    depths = [1, 1, 1, 1]

    params = make_params(pkey, in_channels, blocks_sizes, depths)
    x = jax.random.normal(xkey, (2, in_channels, 32, 32), jnp.float32)  # NCHW

    fwd = jax.jit(lambda xx: resnet_forward(xx, params))
    out = jax.block_until_ready(fwd(x))
    assert out.shape == (2, blocks_sizes[-1]), out.shape
    assert bool(jnp.all(jnp.isfinite(out)))
    print("KERNEL_OK")
</pallas_src>

<mosaic_0001>
module attributes {stable_mosaic.version = 11 : i64} {
  func.func @_conv_bn_kernel(%arg0: i32, %arg1: memref<4x19x19x8xbf16, #tpu.memory_space<vmem>>, %arg2: memref<49x8x64xbf16, #tpu.memory_space<vmem>>, %arg3: memref<1x64xf32, #tpu.memory_space<vmem>>, %arg4: memref<1x16x16x64xbf16, #tpu.memory_space<vmem>>) attributes {dimension_semantics = [#tpu.dimension_semantics<parallel>], iteration_bounds = array<i64: 2>, scalar_prefetch = 0 : i64, scratch_operands = 0 : i64, tpu.core_type = #tpu.core_type<tc>, window_params = [{transform_indices = @transform_0, window_bounds = array<i64: 4, 19, 19, 8>}, {pipeline_mode = #tpu.pipeline_mode<synchronous>, transform_indices = @transform_1, window_bounds = array<i64: 49, 8, 64>}, {pipeline_mode = #tpu.pipeline_mode<synchronous>, transform_indices = @transform_2, window_bounds = array<i64: 1, 64>}, {transform_indices = @transform_3, window_bounds = array<i64: 1, 16, 16, 64>}]} {
    %c0_i32 = arith.constant 0 : i32
    %c16_i32 = arith.constant 16 : i32
    %0 = arith.addi %c0_i32, %c16_i32 : i32
    %c1_i32 = arith.constant 1 : i32
    scf.for %arg5 = %c0_i32 to %0 step %c1_i32  : i32 {
      %cst = arith.constant 0.000000e+00 : f32
      %1 = vector.broadcast %cst : f32 to vector<16x64xf32>
      %c0_i32_1 = arith.constant 0 : i32
      %2 = arith.addi %arg5, %c0_i32_1 : i32
      %c0 = arith.constant 0 : index
      %3 = arith.index_cast %2 : i32 to index
      %c0_2 = arith.constant 0 : index
      %c0_3 = arith.constant 0 : index
      %4 = vector.load %arg1[%c0, %3, %c0_2, %c0_3] : memref<4x19x19x8xbf16, #tpu.memory_space<vmem>>, vector<1x1x16x8xbf16>
      %5 = vector.shape_cast %4 : vector<1x1x16x8xbf16> to vector<16x8xbf16>
      %c0_4 = arith.constant 0 : index
      %c0_5 = arith.constant 0 : index
      %c0_6 = arith.constant 0 : index
      %6 = vector.load %arg2[%c0_4, %c0_5, %c0_6] : memref<49x8x64xbf16, #tpu.memory_space<vmem>>, vector<1x8x64xbf16>
      %7 = vector.shape_cast %6 : vector<1x8x64xbf16> to vector<8x64xbf16>
      %cst_7 = arith.constant dense<0.000000e+00> : vector<16x64xf32>
      %8 = tpu.matmul %5, %7, %cst_7 {dimension_numbers = #tpu.dot_dimension_numbers<[1], [0], [0], [1], [0, 0, 1, 1], [], []>} : vector<16x8xbf16>, vector<8x64xbf16>, vector<16x64xf32> -> vector<16x64xf32>
      %9 = arith.addf %1, %8 : vector<16x64xf32>
      %c1 = arith.constant 1 : index
      %10 = arith.index_cast %2 : i32 to index
      %c0_8 = arith.constant 0 : index
      %c0_9 = arith.constant 0 : index
      %11 = vector.load %arg1[%c1, %10, %c0_8, %c0_9] : memref<4x19x19x8xbf16, #tpu.memory_space<vmem>>, vector<1x1x16x8xbf16>
      %12 = vector.shape_cast %11 : vector<1x1x16x8xbf16> to vector<16x8xbf16>
      %c1_10 = arith.constant 1 : index
      %c0_11 = arith.constant 0 : index
      %c0_12 = arith.constant 0 : index
      %13 = vector.load %arg2[%c1_10, %c0_11, %c0_12] : memref<49x8x64xbf16, #tpu.memory_space<vmem>>, vector<1x8x64xbf16>
      %14 = vector.shape_cast %13 : vector<1x8x64xbf16> to vector<8x64xbf16>
      %cst_13 = arith.constant dense<0.000000e+00> : vector<16x64xf32>
      %15 = tpu.matmul %12, %14, %cst_13 {dimension_numbers = #tpu.dot_dimension_numbers<[1], [0], [0], [1], [0, 0, 1, 1], [], []>} : vector<16x8xbf16>, vector<8x64xbf16>, vector<16x64xf32> -> vector<16x64xf32>
      %16 = arith.addf %9, %15 : vector<16x64xf32>
      %c0_14 = arith.constant 0 : index
      %17 = arith.index_cast %2 : i32 to index
      %c1_15 = arith.constant 1 : index
      %c0_16 = arith.constant 0 : index
      %18 = vector.load %arg1[%c0_14, %17, %c1_15, %c0_16] : memref<4x19x19x8xbf16, #tpu.memory_space<vmem>>, vector<1x1x16x8xbf16>
      %19 = vector.shape_cast %18 : vector<1x1x16x8xbf16> to vector<16x8xbf16>
      %c2 = arith.constant 2 : index
      %c0_17 = arith.constant 0 : index
      %c0_18 = arith.constant 0 : index
      %20 = vector.load %arg2[%c2, %c0_17, %c0_18] : memref<49x8x64xbf16, #tpu.memory_space<vmem>>, vector<1x8x64xbf16>
      %21 = vector.shape_cast %20 : vector<1x8x64xbf16> to vector<8x64xbf16>
      %cst_19 = arith.constant dense<0.000000e+00> : vector<16x64xf32>
      %22 = tpu.matmul %19, %21, %cst_19 {dimension_numbers = #tpu.dot_dimension_numbers<[1], [0], [0], [1], [0, 0, 1, 1], [], []>} : vector<16x8xbf16>, vector<8x64xbf16>, vector<16x64xf32> -> vector<16x64xf32>
      %23 = arith.addf %16, %22 : vector<16x64xf32>
      %c1_20 = arith.constant 1 : index
      %24 = arith.index_cast %2 : i32 to index
      %c1_21 = arith.constant 1 : index
      %c0_22 = arith.constant 0 : index
      %25 = vector.load %arg1[%c1_20, %24, %c1_21, %c0_22] : memref<4x19x19x8xbf16, #tpu.memory_space<vmem>>, vector<1x1x16x8xbf16>
      %26 = vector.shape_cast %25 : vector<1x1x16x8xbf16> to vector<16x8xbf16>
      %c3 = arith.constant 3 : index
      %c0_23 = arith.constant 0 : index
      %c0_24 = arith.constant 0 : index
      %27 = vector.load %arg2[%c3, %c0_23, %c0_24] : memref<49x8x64xbf16, #tpu.memory_space<vmem>>, vector<1x8x64xbf16>
      %28 = vector.shape_cast %27 : vector<1x8x64xbf16> to vector<8x64xbf16>
      %cst_25 = arith.constant dense<0.000000e+00> : vector<16x64xf32>
      %29 = tpu.matmul %26, %28, %cst_25 {dimension_numbers = #tpu.dot_dimension_numbers<[1], [0], [0], [1], [0, 0, 1, 1], [], []>} : vector<16x8xbf16>, vector<8x64xbf16>, vector<16x64xf32> -> vector<16x64xf32>
      %30 = arith.addf %23, %29 : vector<16x64xf32>
      %c0_26 = arith.constant 0 : index
      %31 = arith.index_cast %2 : i32 to index
      %c2_27 = arith.constant 2 : index
      %c0_28 = arith.constant 0 : index
      %32 = vector.load %arg1[%c0_26, %31, %c2_27, %c0_28] : memref<4x19x19x8xbf16, #tpu.memory_space<vmem>>, vector<1x1x16x8xbf16>
      %33 = vector.shape_cast %32 : vector<1x1x16x8xbf16> to vector<16x8xbf16>
      %c4 = arith.constant 4 : index
      %c0_29 = arith.constant 0 : index
      %c0_30 = arith.constant 0 : index
      %34 = vector.load %arg2[%c4, %c0_29, %c0_30] : memref<49x8x64xbf16, #tpu.memory_space<vmem>>, vector<1x8x64xbf16>
      %35 = vector.shape_cast %34 : vector<1x8x64xbf16> to vector<8x64xbf16>
      %cst_31 = arith.constant dense<0.000000e+00> : vector<16x64xf32>
      %36 = tpu.matmul %33, %35, %cst_31 {dimension_numbers = #tpu.dot_dimension_numbers<[1], [0], [0], [1], [0, 0, 1, 1], [], []>} : vector<16x8xbf16>, vector<8x64xbf16>, vector<16x64xf32> -> vector<16x64xf32>
      %37 = arith.addf %30, %36 : vector<16x64xf32>
      %c1_32 = arith.constant 1 : index
      %38 = arith.index_cast %2 : i32 to index
      %c2_33 = arith.constant 2 : index
      %c0_34 = arith.constant 0 : index
      %39 = vector.load %arg1[%c1_32, %38, %c2_33, %c0_34] : memref<4x19x19x8xbf16, #tpu.memory_space<vmem>>, vector<1x1x16x8xbf16>
      %40 = vector.shape_cast %39 : vector<1x1x16x8xbf16> to vector<16x8xbf16>
      %c5 = arith.constant 5 : index
      %c0_35 = arith.constant 0 : index
      %c0_36 = arith.constant 0 : index
      %41 = vector.load %arg2[%c5, %c0_35, %c0_36] : memref<49x8x64xbf16, #tpu.memory_space<vmem>>, vector<1x8x64xbf16>
      %42 = vector.shape_cast %41 : vector<1x8x64xbf16> to vector<8x64xbf16>
      %cst_37 = arith.constant dense<0.000000e+00> : vector<16x64xf32>
      %43 = tpu.matmul %40, %42, %cst_37 {dimension_numbers = #tpu.dot_dimension_numbers<[1], [0], [0], [1], [0, 0, 1, 1], [], []>} : vector<16x8xbf16>, vector<8x64xbf16>, vector<16x64xf32> -> vector<16x64xf32>
      %44 = arith.addf %37, %43 : vector<16x64xf32>
      %c0_38 = arith.constant 0 : index
      %45 = arith.index_cast %2 : i32 to index
      %c3_39 = arith.constant 3 : index
      %c0_40 = arith.constant 0 : index
      %46 = vector.load %arg1[%c0_38, %45, %c3_39, %c0_40] : memref<4x19x19x8xbf16, #tpu.memory_space<vmem>>, vector<1x1x16x8xbf16>
      %47 = vector.shape_cast %46 : vector<1x1x16x8xbf16> to vector<16x8xbf16>
      %c6 = arith.constant 6 : index
      %c0_41 = arith.constant 0 : index
      %c0_42 = arith.constant 0 : index
      %48 = vector.load %arg2[%c6, %c0_41, %c0_42] : memref<49x8x64xbf16, #tpu.memory_space<vmem>>, vector<1x8x64xbf16>
      %49 = vector.shape_cast %48 : vector<1x8x64xbf16> to vector<8x64xbf16>
      %cst_43 = arith.constant dense<0.000000e+00> : vector<16x64xf32>
      %50 = tpu.matmul %47, %49, %cst_43 {dimension_numbers = #tpu.dot_dimension_numbers<[1], [0], [0], [1], [0, 0, 1, 1], [], []>} : vector<16x8xbf16>, vector<8x64xbf16>, vector<16x64xf32> -> vector<16x64xf32>
      %51 = arith.addf %44, %50 : vector<16x64xf32>
      %c0_i32_44 = arith.constant 0 : i32
      %52 = arith.addi %arg5, %c0_i32_44 : i32
      %c2_45 = arith.constant 2 : index
      %53 = arith.index_cast %52 : i32 to index
      %c0_46 = arith.constant 0 : index
      %c0_47 = arith.constant 0 : index
      %54 = vector.load %arg1[%c2_45, %53, %c0_46, %c0_47] : memref<4x19x19x8xbf16, #tpu.memory_space<vmem>>, vector<1x1x16x8xbf16>
      %55 = vector.shape_cast %54 : vector<1x1x16x8xbf16> to vector<16x8xbf16>
      %c7 = arith.constant 7 : index
      %c0_48 = arith.constant 0 : index
      %c0_49 = arith.constant 0 : index
      %56 = vector.load %arg2[%c7, %c0_48, %c0_49] : memref<49x8x64xbf16, #tpu.memory_space<vmem>>, vector<1x8x64xbf16>
      %57 = vector.shape_cast %56 : vector<1x8x64xbf16> to vector<8x64xbf16>
      %cst_50 = arith.constant dense<0.000000e+00> : vector<16x64xf32>
      %58 = tpu.matmul %55, %57, %cst_50 {dimension_numbers = #tpu.dot_dimension_numbers<[1], [0], [0], [1], [0, 0, 1, 1], [], []>} : vector<16x8xbf16>, vector<8x64xbf16>, vector<16x64xf32> -> vector<16x64xf32>
      %59 = arith.addf %51, %58 : vector<16x64xf32>
      %c3_51 = arith.constant 3 : index
      %60 = arith.index_cast %52 : i32 to index
      %c0_52 = arith.constant 0 : index
      %c0_53 = arith.constant 0 : index
      %61 = vector.load %arg1[%c3_51, %60, %c0_52, %c0_53] : memref<4x19x19x8xbf16, #tpu.memory_space<vmem>>, vector<1x1x16x8xbf16>
      %62 = vector.shape_cast %61 : vector<1x1x16x8xbf16> to vector<16x8xbf16>
      %c8 = arith.constant 8 : index
      %c0_54 = arith.constant 0 : index
      %c0_55 = arith.constant 0 : index
      %63 = vector.load %arg2[%c8, %c0_54, %c0_55] : memref<49x8x64xbf16, #tpu.memory_space<vmem>>, vector<1x8x64xbf16>
      %64 = vector.shape_cast %63 : vector<1x8x64xbf16> to vector<8x64xbf16>
      %cst_56 = arith.constant dense<0.000000e+00> : vector<16x64xf32>
      %65 = tpu.matmul %62, %64, %cst_56 {dimension_numbers = #tpu.dot_dimension_numbers<[1], [0], [0], [1], [0, 0, 1, 1], [], []>} : vector<16x8xbf16>, vector<8x64xbf16>, vector<16x64xf32> -> vector<16x64xf32>
      %66 = arith.addf %59, %65 : vector<16x64xf32>
      %c2_57 = arith.constant 2 : index
      %67 = arith.index_cast %52 : i32 to index
      %c1_58 = arith.constant 1 : index
      %c0_59 = arith.constant 0 : index
      %68 = vector.load %arg1[%c2_57, %67, %c1_58, %c0_59] : memref<4x19x19x8xbf16, #tpu.memory_space<vmem>>, vector<1x1x16x8xbf16>
      %69 = vector.shape_cast %68 : vector<1x1x16x8xbf16> to vector<16x8xbf16>
      %c9 = arith.constant 9 : index
      %c0_60 = arith.constant 0 : index
      %c0_61 = arith.constant 0 : index
      %70 = vector.load %arg2[%c9, %c0_60, %c0_61] : memref<49x8x64xbf16, #tpu.memory_space<vmem>>, vector<1x8x64xbf16>
      %71 = vector.shape_cast %70 : vector<1x8x64xbf16> to vector<8x64xbf16>
      %cst_62 = arith.constant dense<0.000000e+00> : vector<16x64xf32>
      %72 = tpu.matmul %69, %71, %cst_62 {dimension_numbers = #tpu.dot_dimension_numbers<[1], [0], [0], [1], [0, 0, 1, 1], [], []>} : vector<16x8xbf16>, vector<8x64xbf16>, vector<16x64xf32> -> vector<16x64xf32>
      %73 = arith.addf %66, %72 : vector<16x64xf32>
      %c3_63 = arith.constant 3 : index
      %74 = arith.index_cast %52 : i32 to index
      %c1_64 = arith.constant 1 : index
      %c0_65 = arith.constant 0 : index
      %75 = vector.load %arg1[%c3_63, %74, %c1_64, %c0_65] : memref<4x19x19x8xbf16, #tpu.memory_space<vmem>>, vector<1x1x16x8xbf16>
      %76 = vector.shape_cast %75 : vector<1x1x16x8xbf16> to vector<16x8xbf16>
      %c10 = arith.constant 10 : index
      %c0_66 = arith.constant 0 : index
      %c0_67 = arith.constant 0 : index
      %77 = vector.load %arg2[%c10, %c0_66, %c0_67] : memref<49x8x64xbf16, #tpu.memory_space<vmem>>, vector<1x8x64xbf16>
      %78 = vector.shape_cast %77 : vector<1x8x64xbf16> to vector<8x64xbf16>
      %cst_68 = arith.constant dense<0.000000e+00> : vector<16x64xf32>
      %79 = tpu.matmul %76, %78, %cst_68 {dimension_numbers = #tpu.dot_dimension_numbers<[1], [0], [0], [1], [0, 0, 1, 1], [], []>} : vector<16x8xbf16>, vector<8x64xbf16>, vector<16x64xf32> -> vector<16x64xf32>
      %80 = arith.addf %73, %79 : vector<16x64xf32>
      %c2_69 = arith.constant 2 : index
      %81 = arith.index_cast %52 : i32 to index
      %c2_70 = arith.constant 2 : index
      %c0_71 = arith.constant 0 : index
      %82 = vector.load %arg1[%c2_69, %81, %c2_70, %c0_71] : memref<4x19x19x8xbf16, #tpu.memory_space<vmem>>, vector<1x1x16x8xbf16>
      %83 = vector.shape_cast %82 : vector<1x1x16x8xbf16> to vector<16x8xbf16>
      %c11 = arith.constant 11 : index
      %c0_72 = arith.constant 0 : index
      %c0_73 = arith.constant 0 : index
      %84 = vector.load %arg2[%c11, %c0_72, %c0_73] : memref<49x8x64xbf16, #tpu.memory_space<vmem>>, vector<1x8x64xbf16>
      %85 = vector.shape_cast %84 : vector<1x8x64xbf16> to vector<8x64xbf16>
      %cst_74 = arith.constant dense<0.000000e+00> : vector<16x64xf32>
      %86 = tpu.matmul %83, %85, %cst_74 {dimension_numbers = #tpu.dot_dimension_numbers<[1], [0], [0], [1], [0, 0, 1, 1], [], []>} : vector<16x8xbf16>, vector<8x64xbf16>, vector<16x64xf32> -> vector<16x64xf32>
      %87 = arith.addf %80, %86 : vector<16x64xf32>
      %c3_75 = arith.constant 3 : index
      %88 = arith.index_cast %52 : i32 to index
      %c2_76 = arith.constant 2 : index
      %c0_77 = arith.constant 0 : index
      %89 = vector.load %arg1[%c3_75, %88, %c2_76, %c0_77] : memref<4x19x19x8xbf16, #tpu.memory_space<vmem>>, vector<1x1x16x8xbf16>
      %90 = vector.shape_cast %89 : vector<1x1x16x8xbf16> to vector<16x8xbf16>
      %c12 = arith.constant 12 : index
      %c0_78 = arith.constant 0 : index
      %c0_79 = arith.constant 0 : index
      %91 = vector.load %arg2[%c12, %c0_78, %c0_79] : memref<49x8x64xbf16, #tpu.memory_space<vmem>>, vector<1x8x64xbf16>
      %92 = vector.shape_cast %91 : vector<1x8x64xbf16> to vector<8x64xbf16>
      %cst_80 = arith.constant dense<0.000000e+00> : vector<16x64xf32>
      %93 = tpu.matmul %90, %92, %cst_80 {dimension_numbers = #tpu.dot_dimension_numbers<[1], [0], [0], [1], [0, 0, 1, 1], [], []>} : vector<16x8xbf16>, vector<8x64xbf16>, vector<16x64xf32> -> vector<16x64xf32>
      %94 = arith.addf %87, %93 : vector<16x64xf32>
      %c2_81 = arith.constant 2 : index
      %95 = arith.index_cast %52 : i32 to index
      %c3_82 = arith.constant 3 : index
      %c0_83 = arith.constant 0 : index
      %96 = vector.load %arg1[%c2_81, %95, %c3_82, %c0_83] : memref<4x19x19x8xbf16, #tpu.memory_space<vmem>>, vector<1x1x16x8xbf16>
      %97 = vector.shape_cast %96 : vector<1x1x16x8xbf16> to vector<16x8xbf16>
      %c13 = arith.constant 13 : index
      %c0_84 = arith.constant 0 : index
      %c0_85 = arith.constant 0 : index
      %98 = vector.load %arg2[%c13, %c0_84, %c0_85] : memref<49x8x64xbf16, #tpu.memory_space<vmem>>, vector<1x8x64xbf16>
      %99 = vector.shape_cast %98 : vector<1x8x64xbf16> to vector<8x64xbf16>
      %cst_86 = arith.constant dense<0.000000e+00> : vector<16x64xf32>
      %100 = tpu.matmul %97, %99, %cst_86 {dimension_numbers = #tpu.dot_dimension_numbers<[1], [0], [0], [1], [0, 0, 1, 1], [], []>} : vector<16x8xbf16>, vector<8x64xbf16>, vector<16x64xf32> -> vector<16x64xf32>
      %101 = arith.addf %94, %100 : vector<16x64xf32>
      %c1_i32_87 = arith.constant 1 : i32
      %102 = arith.addi %arg5, %c1_i32_87 : i32
      %c0_88 = arith.constant 0 : index
      %103 = arith.index_cast %102 : i32 to index
      %c0_89 = arith.constant 0 : index
      %c0_90 = arith.constant 0 : index
      %104 = vector.load %arg1[%c0_88, %103, %c0_89, %c0_90] : memref<4x19x19x8xbf16, #tpu.memory_space<vmem>>, vector<1x1x16x8xbf16>
      %105 = vector.shape_cast %104 : vector<1x1x16x8xbf16> to vector<16x8xbf16>
      %c14 = arith.constant 14 : index
      %c0_91 = arith.constant 0 : index
      %c0_92 = arith.constant 0 : index
      %106 = vector.load %arg2[%c14, %c0_91, %c0_92] : memref<49x8x64xbf16, #tpu.memory_space<vmem>>, vector<1x8x64xbf16>
      %107 = vector.shape_cast %106 : vector<1x8x64xbf16> to vector<8x64xbf16>
      %cst_93 = arith.constant dense<0.000000e+00> : vector<16x64xf32>
      %108 = tpu.matmul %105, %107, %cst_93 {dimension_numbers = #tpu.dot_dimension_numbers<[1], [0], [0], [1], [0, 0, 1, 1], [], []>} : vector<16x8xbf16>, vector<8x64xbf16>, vector<16x64xf32> -> vector<16x64xf32>
      %109 = arith.addf %101, %108 : vector<16x64xf32>
      %c1_94 = arith.constant 1 : index
      %110 = arith.index_cast %102 : i32 to index
      %c0_95 = arith.constant 0 : index
      %c0_96 = arith.constant 0 : index
      %111 = vector.load %arg1[%c1_94, %110, %c0_95, %c0_96] : memref<4x19x19x8xbf16, #tpu.memory_space<vmem>>, vector<1x1x16x8xbf16>
      %112 = vector.shape_cast %111 : vector<1x1x16x8xbf16> to vector<16x8xbf16>
      %c15 = arith.constant 15 : index
      %c0_97 = arith.constant 0 : index
      %c0_98 = arith.constant 0 : index
      %113 = vector.load %arg2[%c15, %c0_97, %c0_98] : memref<49x8x64xbf16, #tpu.memory_space<vmem>>, vector<1x8x64xbf16>
      %114 = vector.shape_cast %113 : vector<1x8x64xbf16> to vector<8x64xbf16>
      %cst_99 = arith.constant dense<0.000000e+00> : vector<16x64xf32>
      %115 = tpu.matmul %112, %114, %cst_99 {dimension_numbers = #tpu.dot_dimension_numbers<[1], [0], [0], [1], [0, 0, 1, 1], [], []>} : vector<16x8xbf16>, vector<8x64xbf16>, vector<16x64xf32> -> vector<16x64xf32>
      %116 = arith.addf %109, %115 : vector<16x64xf32>
      %c0_100 = arith.constant 0 : index
      %117 = arith.index_cast %102 : i32 to index
      %c1_101 = arith.constant 1 : index
      %c0_102 = arith.constant 0 : index
      %118 = vector.load %arg1[%c0_100, %117, %c1_101, %c0_102] : memref<4x19x19x8xbf16, #tpu.memory_space<vmem>>, vector<1x1x16x8xbf16>
      %119 = vector.shape_cast %118 : vector<1x1x16x8xbf16> to vector<16x8xbf16>
      %c16 = arith.constant 16 : index
      %c0_103 = arith.constant 0 : index
      %c0_104 = arith.constant 0 : index
      %120 = vector.load %arg2[%c16, %c0_103, %c0_104] : memref<49x8x64xbf16, #tpu.memory_space<vmem>>, vector<1x8x64xbf16>
      %121 = vector.shape_cast %120 : vector<1x8x64xbf16> to vector<8x64xbf16>
      %cst_105 = arith.constant dense<0.000000e+00> : vector<16x64xf32>
      %122 = tpu.matmul %119, %121, %cst_105 {dimension_numbers = #tpu.dot_dimension_numbers<[1], [0], [0], [1], [0, 0, 1, 1], [], []>} : vector<16x8xbf16>, vector<8x64xbf16>, vector<16x64xf32> -> vector<16x64xf32>
      %123 = arith.addf %116, %122 : vector<16x64xf32>
      %c1_106 = arith.constant 1 : index
      %124 = arith.index_cast %102 : i32 to index
      %c1_107 = arith.constant 1 : index
      %c0_108 = arith.constant 0 : index
      %125 = vector.load %arg1[%c1_106, %124, %c1_107, %c0_108] : memref<4x19x19x8xbf16, #tpu.memory_space<vmem>>, vector<1x1x16x8xbf16>
      %126 = vector.shape_cast %125 : vector<1x1x16x8xbf16> to vector<16x8xbf16>
      %c17 = arith.constant 17 : index
      %c0_109 = arith.constant 0 : index
      %c0_110 = arith.constant 0 : index
      %127 = vector.load %arg2[%c17, %c0_109, %c0_110] : memref<49x8x64xbf16, #tpu.memory_space<vmem>>, vector<1x8x64xbf16>
      %128 = vector.shape_cast %127 : vector<1x8x64xbf16> to vector<8x64xbf16>
      %cst_111 = arith.constant dense<0.000000e+00> : vector<16x64xf32>
      %129 = tpu.matmul %126, %128, %cst_111 {dimension_numbers = #tpu.dot_dimension_numbers<[1], [0], [0], [1], [0, 0, 1, 1], [], []>} : vector<16x8xbf16>, vector<8x64xbf16>, vector<16x64xf32> -> vector<16x64xf32>
      %130 = arith.addf %123, %129 : vector<16x64xf32>
      %c0_112 = arith.constant 0 : index
      %131 = arith.index_cast %102 : i32 to index
      %c2_113 = arith.constant 2 : index
      %c0_114 = arith.constant 0 : index
      %132 = vector.load %arg1[%c0_112, %131, %c2_113, %c0_114] : memref<4x19x19x8xbf16, #tpu.memory_space<vmem>>, vector<1x1x16x8xbf16>
      %133 = vector.shape_cast %132 : vector<1x1x16x8xbf16> to vector<16x8xbf16>
      %c18 = arith.constant 18 : index
      %c0_115 = arith.constant 0 : index
      %c0_116 = arith.constant 0 : index
      %134 = vector.load %arg2[%c18, %c0_115, %c0_116] : memref<49x8x64xbf16, #tpu.memory_space<vmem>>, vector<1x8x64xbf16>
      %135 = vector.shape_cast %134 : vector<1x8x64xbf16> to vector<8x64xbf16>
      %cst_117 = arith.constant dense<0.000000e+00> : vector<16x64xf32>
      %136 = tpu.matmul %133, %135, %cst_117 {dimension_numbers = #tpu.dot_dimension_numbers<[1], [0], [0], [1], [0, 0, 1, 1], [], []>} : vector<16x8xbf16>, vector<8x64xbf16>, vector<16x64xf32> -> vector<16x64xf32>
      %137 = arith.addf %130, %136 : vector<16x64xf32>
      %c1_118 = arith.constant 1 : index
      %138 = arith.index_cast %102 : i32 to index
      %c2_119 = arith.constant 2 : index
      %c0_120 = arith.constant 0 : index
      %139 = vector.load %arg1[%c1_118, %138, %c2_119, %c0_120] : memref<4x19x19x8xbf16, #tpu.memory_space<vmem>>, vector<1x1x16x8xbf16>
      %140 = vector.shape_cast %139 : vector<1x1x16x8xbf16> to vector<16x8xbf16>
      %c19 = arith.constant 19 : index
      %c0_121 = arith.constant 0 : index
      %c0_122 = arith.constant 0 : index
      %141 = vector.load %arg2[%c19, %c0_121, %c0_122] : memref<49x8x64xbf16, #tpu.memory_space<vmem>>, vector<1x8x64xbf16>
      %142 = vector.shape_cast %141 : vector<1x8x64xbf16> to vector<8x64xbf16>
      %cst_123 = arith.constant dense<0.000000e+00> : vector<16x64xf32>
      %143 = tpu.matmul %140, %142, %cst_123 {dimension_numbers = #tpu.dot_dimension_numbers<[1], [0], [0], [1], [0, 0, 1, 1], [], []>} : vector<16x8xbf16>, vector<8x64xbf16>, vector<16x64xf32> -> vector<16x64xf32>
      %144 = arith.addf %137, %143 : vector<16x64xf32>
      %c0_124 = arith.constant 0 : index
      %145 = arith.index_cast %102 : i32 to index
      %c3_125 = arith.constant 3 : index
      %c0_126 = arith.constant 0 : index
      %146 = vector.load %arg1[%c0_124, %145, %c3_125, %c0_126] : memref<4x19x19x8xbf16, #tpu.memory_space<vmem>>, vector<1x1x16x8xbf16>
      %147 = vector.shape_cast %146 : vector<1x1x16x8xbf16> to vector<16x8xbf16>
      %c20 = arith.constant 20 : index
      %c0_127 = arith.constant 0 : index
      %c0_128 = arith.constant 0 : index
      %148 = vector.load %arg2[%c20, %c0_127, %c0_128] : memref<49x8x64xbf16, #tpu.memory_space<vmem>>, vector<1x8x64xbf16>
      %149 = vector.shape_cast %148 : vector<1x8x64xbf16> to vector<8x64xbf16>
      %cst_129 = arith.constant dense<0.000000e+00> : vector<16x64xf32>
      %150 = tpu.matmul %147, %149, %cst_129 {dimension_numbers = #tpu.dot_dimension_numbers<[1], [0], [0], [1], [0, 0, 1, 1], [], []>} : vector<16x8xbf16>, vector<8x64xbf16>, vector<16x64xf32> -> vector<16x64xf32>
      %151 = arith.addf %144, %150 : vector<16x64xf32>
      %c1_i32_130 = arith.constant 1 : i32
      %152 = arith.addi %arg5, %c1_i32_130 : i32
      %c2_131 = arith.constant 2 : index
      %153 = arith.index_cast %152 : i32 to index
      %c0_132 = arith.constant 0 : index
      %c0_133 = arith.constant 0 : index
      %154 = vector.load %arg1[%c2_131, %153, %c0_132, %c0_133] : memref<4x19x19x8xbf16, #tpu.memory_space<vmem>>, vector<1x1x16x8xbf16>
      %155 = vector.shape_cast %154 : vector<1x1x16x8xbf16> to vector<16x8xbf16>
      %c21 = arith.constant 21 : index
      %c0_134 = arith.constant 0 : index
      %c0_135 = arith.constant 0 : index
      %156 = vector.load %arg2[%c21, %c0_134, %c0_135] : memref<49x8x64xbf16, #tpu.memory_space<vmem>>, vector<1x8x64xbf16>
      %157 = vector.shape_cast %156 : vector<1x8x64xbf16> to vector<8x64xbf16>
      %cst_136 = arith.constant dense<0.000000e+00> : vector<16x64xf32>
      %158 = tpu.matmul %155, %157, %cst_136 {dimension_numbers = #tpu.dot_dimension_numbers<[1], [0], [0], [1], [0, 0, 1, 1], [], []>} : vector<16x8xbf16>, vector<8x64xbf16>, vector<16x64xf32> -> vector<16x64xf32>
      %159 = arith.addf %151, %158 : vector<16x64xf32>
      %c3_137 = arith.constant 3 : index
      %160 = arith.index_cast %152 : i32 to index
      %c0_138 = arith.constant 0 : index
      %c0_139 = arith.constant 0 : index
      %161 = vector.load %arg1[%c3_137, %160, %c0_138, %c0_139] : memref<4x19x19x8xbf16, #tpu.memory_space<vmem>>, vector<1x1x16x8xbf16>
      %162 = vector.shape_cast %161 : vector<1x1x16x8xbf16> to vector<16x8xbf16>
      %c22 = arith.constant 22 : index
      %c0_140 = arith.constant 0 : index
      %c0_141 = arith.constant 0 : index
      %163 = vector.load %arg2[%c22, %c0_140, %c0_141] : memref<49x8x64xbf16, #tpu.memory_space<vmem>>, vector<1x8x64xbf16>
      %164 = vector.shape_cast %163 : vector<1x8x64xbf16> to vector<8x64xbf16>
      %cst_142 = arith.constant dense<0.000000e+00> : vector<16x64xf32>
      %165 = tpu.matmul %162, %164, %cst_142 {dimension_numbers = #tpu.dot_dimension_numbers<[1], [0], [0], [1], [0, 0, 1, 1], [], []>} : vector<16x8xbf16>, vector<8x64xbf16>, vector<16x64xf32> -> vector<16x64xf32>
      %166 = arith.addf %159, %165 : vector<16x64xf32>
      %c2_143 = arith.constant 2 : index
      %167 = arith.index_cast %152 : i32 to index
      %c1_144 = arith.constant 1 : index
      %c0_145 = arith.constant 0 : index
      %168 = vector.load %arg1[%c2_143, %167, %c1_144, %c0_145] : memref<4x19x19x8xbf16, #tpu.memory_space<vmem>>, vector<1x1x16x8xbf16>
      %169 = vector.shape_cast %168 : vector<1x1x16x8xbf16> to vector<16x8xbf16>
      %c23 = arith.constant 23 : index
      %c0_146 = arith.constant 0 : index
      %c0_147 = arith.constant 0 : index
      %170 = vector.load %arg2[%c23, %c0_146, %c0_147] : memref<49x8x64xbf16, #tpu.memory_space<vmem>>, vector<1x8x64xbf16>
      %171 = vector.shape_cast %170 : vector<1x8x64xbf16> to vector<8x64xbf16>
      %cst_148 = arith.constant dense<0.000000e+00> : vector<16x64xf32>
      %172 = tpu.matmul %169, %171, %cst_148 {dimension_numbers = #tpu.dot_dimension_numbers<[1], [0], [0], [1], [0, 0, 1, 1], [], []>} : vector<16x8xbf16>, vector<8x64xbf16>, vector<16x64xf32> -> vector<16x64xf32>
      %173 = arith.addf %166, %172 : vector<16x64xf32>
      %c3_149 = arith.constant 3 : index
      %174 = arith.index_cast %152 : i32 to index
      %c1_150 = arith.constant 1 : index
      %c0_151 = arith.constant 0 : index
      %175 = vector.load %arg1[%c3_149, %174, %c1_150, %c0_151] : memref<4x19x19x8xbf16, #tpu.memory_space<vmem>>, vector<1x1x16x8xbf16>
      %176 = vector.shape_cast %175 : vector<1x1x16x8xbf16> to vector<16x8xbf16>
      %c24 = arith.constant 24 : index
      %c0_152 = arith.constant 0 : index
      %c0_153 = arith.constant 0 : index
      %177 = vector.load %arg2[%c24, %c0_152, %c0_153] : memref<49x8x64xbf16, #tpu.memory_space<vmem>>, vector<1x8x64xbf16>
      %178 = vector.shape_cast %177 : vector<1x8x64xbf16> to vector<8x64xbf16>
      %cst_154 = arith.constant dense<0.000000e+00> : vector<16x64xf32>
      %179 = tpu.matmul %176, %178, %cst_154 {dimension_numbers = #tpu.dot_dimension_numbers<[1], [0], [0], [1], [0, 0, 1, 1], [], []>} : vector<16x8xbf16>, vector<8x64xbf16>, vector<16x64xf32> -> vector<16x64xf32>
      %180 = arith.addf %173, %179 : vector<16x64xf32>
      %c2_155 = arith.constant 2 : index
      %181 = arith.index_cast %152 : i32 to index
      %c2_156 = arith.constant 2 : index
      %c0_157 = arith.constant 0 : index
      %182 = vector.load %arg1[%c2_155, %181, %c2_156, %c0_157] : memref<4x19x19x8xbf16, #tpu.memory_space<vmem>>, vector<1x1x16x8xbf16>
      %183 = vector.shape_cast %182 : vector<1x1x16x8xbf16> to vector<16x8xbf16>
      %c25 = arith.constant 25 : index
      %c0_158 = arith.constant 0 : index
      %c0_159 = arith.constant 0 : index
      %184 = vector.load %arg2[%c25, %c0_158, %c0_159] : memref<49x8x64xbf16, #tpu.memory_space<vmem>>, vector<1x8x64xbf16>
      %185 = vector.shape_cast %184 : vector<1x8x64xbf16> to vector<8x64xbf16>
      %cst_160 = arith.constant dense<0.000000e+00> : vector<16x64xf32>
      %186 = tpu.matmul %183, %185, %cst_160 {dimension_numbers = #tpu.dot_dimension_numbers<[1], [0], [0], [1], [0, 0, 1, 1], [], []>} : vector<16x8xbf16>, vector<8x64xbf16>, vector<16x64xf32> -> vector<16x64xf32>
      %187 = arith.addf %180, %186 : vector<16x64xf32>
      %c3_161 = arith.constant 3 : index
      %188 = arith.index_cast %152 : i32 to index
      %c2_162 = arith.constant 2 : index
      %c0_163 = arith.constant 0 : index
      %189 = vector.load %arg1[%c3_161, %188, %c2_162, %c0_163] : memref<4x19x19x8xbf16, #tpu.memory_space<vmem>>, vector<1x1x16x8xbf16>
      %190 = vector.shape_cast %189 : vector<1x1x16x8xbf16> to vector<16x8xbf16>
      %c26 = arith.constant 26 : index
      %c0_164 = arith.constant 0 : index
      %c0_165 = arith.constant 0 : index
      %191 = vector.load %arg2[%c26, %c0_164, %c0_165] : memref<49x8x64xbf16, #tpu.memory_space<vmem>>, vector<1x8x64xbf16>
      %192 = vector.shape_cast %191 : vector<1x8x64xbf16> to vector<8x64xbf16>
      %cst_166 = arith.constant dense<0.000000e+00> : vector<16x64xf32>
      %193 = tpu.matmul %190, %192, %cst_166 {dimension_numbers = #tpu.dot_dimension_numbers<[1], [0], [0], [1], [0, 0, 1, 1], [], []>} : vector<16x8xbf16>, vector<8x64xbf16>, vector<16x64xf32> -> vector<16x64xf32>
      %194 = arith.addf %187, %193 : vector<16x64xf32>
      %c2_167 = arith.constant 2 : index
      %195 = arith.index_cast %152 : i32 to index
      %c3_168 = arith.constant 3 : index
      %c0_169 = arith.constant 0 : index
      %196 = vector.load %arg1[%c2_167, %195, %c3_168, %c0_169] : memref<4x19x19x8xbf16, #tpu.memory_space<vmem>>, vector<1x1x16x8xbf16>
      %197 = vector.shape_cast %196 : vector<1x1x16x8xbf16> to vector<16x8xbf16>
      %c27 = arith.constant 27 : index
      %c0_170 = arith.constant 0 : index
      %c0_171 = arith.constant 0 : index
      %198 = vector.load %arg2[%c27, %c0_170, %c0_171] : memref<49x8x64xbf16, #tpu.memory_space<vmem>>, vector<1x8x64xbf16>
      %199 = vector.shape_cast %198 : vector<1x8x64xbf16> to vector<8x64xbf16>
      %cst_172 = arith.constant dense<0.000000e+00> : vector<16x64xf32>
      %200 = tpu.matmul %197, %199, %cst_172 {dimension_numbers = #tpu.dot_dimension_numbers<[1], [0], [0], [1], [0, 0, 1, 1], [], []>} : vector<16x8xbf16>, vector<8x64xbf16>, vector<16x64xf32> -> vector<16x64xf32>
      %201 = arith.addf %194, %200 : vector<16x64xf32>
      %c2_i32 = arith.constant 2 : i32
      %202 = arith.addi %arg5, %c2_i32 : i32
      %c0_173 = arith.constant 0 : index
      %203 = arith.index_cast %202 : i32 to index
      %c0_174 = arith.constant 0 : index
      %c0_175 = arith.constant 0 : index
      %204 = vector.load %arg1[%c0_173, %203, %c0_174, %c0_175] : memref<4x19x19x8xbf16, #tpu.memory_space<vmem>>, vector<1x1x16x8xbf16>
      %205 = vector.shape_cast %204 : vector<1x1x16x8xbf16> to vector<16x8xbf16>
      %c28 = arith.constant 28 : index
      %c0_176 = arith.constant 0 : index
      %c0_177 = arith.constant 0 : index
      %206 = vector.load %arg2[%c28, %c0_176, %c0_177] : memref<49x8x64xbf16, #tpu.memory_space<vmem>>, vector<1x8x64xbf16>
      %207 = vector.shape_cast %206 : vector<1x8x64xbf16> to vector<8x64xbf16>
      %cst_178 = arith.constant dense<0.000000e+00> : vector<16x64xf32>
      %208 = tpu.matmul %205, %207, %cst_178 {dimension_numbers = #tpu.dot_dimension_numbers<[1], [0], [0], [1], [0, 0, 1, 1], [], []>} : vector<16x8xbf16>, vector<8x64xbf16>, vector<16x64xf32> -> vector<16x64xf32>
      %209 = arith.addf %201, %208 : vector<16x64xf32>
      %c1_179 = arith.constant 1 : index
      %210 = arith.index_cast %202 : i32 to index
      %c0_180 = arith.constant 0 : index
      %c0_181 = arith.constant 0 : index
      %211 = vector.load %arg1[%c1_179, %210, %c0_180, %c0_181] : memref<4x19x19x8xbf16, #tpu.memory_space<vmem>>, vector<1x1x16x8xbf16>
      %212 = vector.shape_cast %211 : vector<1x1x16x8xbf16> to vector<16x8xbf16>
      %c29 = arith.constant 29 : index
      %c0_182 = arith.constant 0 : index
      %c0_183 = arith.constant 0 : index
      %213 = vector.load %arg2[%c29, %c0_182, %c0_183] : memref<49x8x64xbf16, #tpu.memory_space<vmem>>, vector<1x8x64xbf16>
      %214 = vector.shape_cast %213 : vector<1x8x64xbf16> to vector<8x64xbf16>
      %cst_184 = arith.constant dense<0.000000e+00> : vector<16x64xf32>
      %215 = tpu.matmul %212, %214, %cst_184 {dimension_numbers = #tpu.dot_dimension_numbers<[1], [0], [0], [1], [0, 0, 1, 1], [], []>} : vector<16x8xbf16>, vector<8x64xbf16>, vector<16x64xf32> -> vector<16x64xf32>
      %216 = arith.addf %209, %215 : vector<16x64xf32>
      %c0_185 = arith.constant 0 : index
      %217 = arith.index_cast %202 : i32 to index
      %c1_186 = arith.constant 1 : index
      %c0_187 = arith.constant 0 : index
      %218 = vector.load %arg1[%c0_185, %217, %c1_186, %c0_187] : memref<4x19x19x8xbf16, #tpu.memory_space<vmem>>, vector<1x1x16x8xbf16>
      %219 = vector.shape_cast %218 : vector<1x1x16x8xbf16> to vector<16x8xbf16>
      %c30 = arith.constant 30 : index
      %c0_188 = arith.constant 0 : index
      %c0_189 = arith.constant 0 : index
      %220 = vector.load %arg2[%c30, %c0_188, %c0_189] : memref<49x8x64xbf16, #tpu.memory_space<vmem>>, vector<1x8x64xbf16>
      %221 = vector.shape_cast %220 : vector<1x8x64xbf16> to vector<8x64xbf16>
      %cst_190 = arith.constant dense<0.000000e+00> : vector<16x64xf32>
      %222 = tpu.matmul %219, %221, %cst_190 {dimension_numbers = #tpu.dot_dimension_numbers<[1], [0], [0], [1], [0, 0, 1, 1], [], []>} : vector<16x8xbf16>, vector<8x64xbf16>, vector<16x64xf32> -> vector<16x64xf32>
      %223 = arith.addf %216, %222 : vector<16x64xf32>
      %c1_191 = arith.constant 1 : index
      %224 = arith.index_cast %202 : i32 to index
      %c1_192 = arith.constant 1 : index
      %c0_193 = arith.constant 0 : index
      %225 = vector.load %arg1[%c1_191, %224, %c1_192, %c0_193] : memref<4x19x19x8xbf16, #tpu.memory_space<vmem>>, vector<1x1x16x8xbf16>
      %226 = vector.shape_cast %225 : vector<1x1x16x8xbf16> to vector<16x8xbf16>
      %c31 = arith.constant 31 : index
      %c0_194 = arith.constant 0 : index
      %c0_195 = arith.constant 0 : index
      %227 = vector.load %arg2[%c31, %c0_194, %c0_195] : memref<49x8x64xbf16, #tpu.memory_space<vmem>>, vector<1x8x64xbf16>
      %228 = vector.shape_cast %227 : vector<1x8x64xbf16> to vector<8x64xbf16>
      %cst_196 = arith.constant dense<0.000000e+00> : vector<16x64xf32>
      %229 = tpu.matmul %226, %228, %cst_196 {dimension_numbers = #tpu.dot_dimension_numbers<[1], [0], [0], [1], [0, 0, 1, 1], [], []>} : vector<16x8xbf16>, vector<8x64xbf16>, vector<16x64xf32> -> vector<16x64xf32>
      %230 = arith.addf %223, %229 : vector<16x64xf32>
      %c0_197 = arith.constant 0 : index
      %231 = arith.index_cast %202 : i32 to index
      %c2_198 = arith.constant 2 : index
      %c0_199 = arith.constant 0 : index
      %232 = vector.load %arg1[%c0_197, %231, %c2_198, %c0_199] : memref<4x19x19x8xbf16, #tpu.memory_space<vmem>>, vector<1x1x16x8xbf16>
      %233 = vector.shape_cast %232 : vector<1x1x16x8xbf16> to vector<16x8xbf16>
      %c32 = arith.constant 32 : index
      %c0_200 = arith.constant 0 : index
      %c0_201 = arith.constant 0 : index
      %234 = vector.load %arg2[%c32, %c0_200, %c0_201] : memref<49x8x64xbf16, #tpu.memory_space<vmem>>, vector<1x8x64xbf16>
      %235 = vector.shape_cast %234 : vector<1x8x64xbf16> to vector<8x64xbf16>
      %cst_202 = arith.constant dense<0.000000e+00> : vector<16x64xf32>
      %236 = tpu.matmul %233, %235, %cst_202 {dimension_numbers = #tpu.dot_dimension_numbers<[1], [0], [0], [1], [0, 0, 1, 1], [], []>} : vector<16x8xbf16>, vector<8x64xbf16>, vector<16x64xf32> -> vector<16x64xf32>
      %237 = arith.addf %230, %236 : vector<16x64xf32>
      %c1_203 = arith.constant 1 : index
      %238 = arith.index_cast %202 : i32 to index
      %c2_204 = arith.constant 2 : index
      %c0_205 = arith.constant 0 : index
      %239 = vector.load %arg1[%c1_203, %238, %c2_204, %c0_205] : memref<4x19x19x8xbf16, #tpu.memory_space<vmem>>, vector<1x1x16x8xbf16>
      %240 = vector.shape_cast %239 : vector<1x1x16x8xbf16> to vector<16x8xbf16>
      %c33 = arith.constant 33 : index
      %c0_206 = arith.constant 0 : index
      %c0_207 = arith.constant 0 : index
      %241 = vector.load %arg2[%c33, %c0_206, %c0_207] : memref<49x8x64xbf16, #tpu.memory_space<vmem>>, vector<1x8x64xbf16>
      %242 = vector.shape_cast %241 : vector<1x8x64xbf16> to vector<8x64xbf16>
      %cst_208 = arith.constant dense<0.000000e+00> : vector<16x64xf32>
      %243 = tpu.matmul %240, %242, %cst_208 {dimension_numbers = #tpu.dot_dimension_numbers<[1], [0], [0], [1], [0, 0, 1, 1], [], []>} : vector<16x8xbf16>, vector<8x64xbf16>, vector<16x64xf32> -> vector<16x64xf32>
      %244 = arith.addf %237, %243 : vector<16x64xf32>
      %c0_209 = arith.constant 0 : index
      %245 = arith.index_cast %202 : i32 to index
      %c3_210 = arith.constant 3 : index
      %c0_211 = arith.constant 0 : index
      %246 = vector.load %arg1[%c0_209, %245, %c3_210, %c0_211] : memref<4x19x19x8xbf16, #tpu.memory_space<vmem>>, vector<1x1x16x8xbf16>
      %247 = vector.shape_cast %246 : vector<1x1x16x8xbf16> to vector<16x8xbf16>
      %c34 = arith.constant 34 : index
      %c0_212 = arith.constant 0 : index
      %c0_213 = arith.constant 0 : index
      %248 = vector.load %arg2[%c34, %c0_212, %c0_213] : memref<49x8x64xbf16, #tpu.memory_space<vmem>>, vector<1x8x64xbf16>
      %249 = vector.shape_cast %248 : vector<1x8x64xbf16> to vector<8x64xbf16>
      %cst_214 = arith.constant dense<0.000000e+00> : vector<16x64xf32>
      %250 = tpu.matmul %247, %249, %cst_214 {dimension_numbers = #tpu.dot_dimension_numbers<[1], [0], [0], [1], [0, 0, 1, 1], [], []>} : vector<16x8xbf16>, vector<8x64xbf16>, vector<16x64xf32> -> vector<16x64xf32>
      %251 = arith.addf %244, %250 : vector<16x64xf32>
      %c2_i32_215 = arith.constant 2 : i32
      %252 = arith.addi %arg5, %c2_i32_215 : i32
      %c2_216 = arith.constant 2 : index
      %253 = arith.index_cast %252 : i32 to index
      %c0_217 = arith.constant 0 : index
      %c0_218 = arith.constant 0 : index
      %254 = vector.load %arg1[%c2_216, %253, %c0_217, %c0_218] : memref<4x19x19x8xbf16, #tpu.memory_space<vmem>>, vector<1x1x16x8xbf16>
      %255 = vector.shape_cast %254 : vector<1x1x16x8xbf16> to vector<16x8xbf16>
      %c35 = arith.constant 35 : index
      %c0_219 = arith.constant 0 : index
      %c0_220 = arith.constant 0 : index
      %256 = vector.load %arg2[%c35, %c0_219, %c0_220] : memref<49x8x64xbf16, #tpu.memory_space<vmem>>, vector<1x8x64xbf16>
      %257 = vector.shape_cast %256 : vector<1x8x64xbf16> to vector<8x64xbf16>
      %cst_221 = arith.constant dense<0.000000e+00> : vector<16x64xf32>
      %258 = tpu.matmul %255, %257, %cst_221 {dimension_numbers = #tpu.dot_dimension_numbers<[1], [0], [0], [1], [0, 0, 1, 1], [], []>} : vector<16x8xbf16>, vector<8x64xbf16>, vector<16x64xf32> -> vector<16x64xf32>
      %259 = arith.addf %251, %258 : vector<16x64xf32>
      %c3_222 = arith.constant 3 : index
      %260 = arith.index_cast %252 : i32 to index
      %c0_223 = arith.constant 0 : index
      %c0_224 = arith.constant 0 : index
      %261 = vector.load %arg1[%c3_222, %260, %c0_223, %c0_224] : memref<4x19x19x8xbf16, #tpu.memory_space<vmem>>, vector<1x1x16x8xbf16>
      %262 = vector.shape_cast %261 : vector<1x1x16x8xbf16> to vector<16x8xbf16>
      %c36 = arith.constant 36 : index
      %c0_225 = arith.constant 0 : index
      %c0_226 = arith.constant 0 : index
      %263 = vector.load %arg2[%c36, %c0_225, %c0_226] : memref<49x8x64xbf16, #tpu.memory_space<vmem>>, vector<1x8x64xbf16>
      %264 = vector.shape_cast %263 : vector<1x8x64xbf16> to vector<8x64xbf16>
      %cst_227 = arith.constant dense<0.000000e+00> : vector<16x64xf32>
      %265 = tpu.matmul %262, %264, %cst_227 {dimension_numbers = #tpu.dot_dimension_numbers<[1], [0], [0], [1], [0, 0, 1, 1], [], []>} : vector<16x8xbf16>, vector<8x64xbf16>, vector<16x64xf32> -> vector<16x64xf32>
      %266 = arith.addf %259, %265 : vector<16x64xf32>
      %c2_228 = arith.constant 2 : index
      %267 = arith.index_cast %252 : i32 to index
      %c1_229 = arith.constant 1 : index
      %c0_230 = arith.constant 0 : index
      %268 = vector.load %arg1[%c2_228, %267, %c1_229, %c0_230] : memref<4x19x19x8xbf16, #tpu.memory_space<vmem>>, vector<1x1x16x8xbf16>
      %269 = vector.shape_cast %268 : vector<1x1x16x8xbf16> to vector<16x8xbf16>
      %c37 = arith.constant 37 : index
      %c0_231 = arith.constant 0 : index
      %c0_232 = arith.constant 0 : index
      %270 = vector.load %arg2[%c37, %c0_231, %c0_232] : memref<49x8x64xbf16, #tpu.memory_space<vmem>>, vector<1x8x64xbf16>
      %271 = vector.shape_cast %270 : vector<1x8x64xbf16> to vector<8x64xbf16>
      %cst_233 = arith.constant dense<0.000000e+00> : vector<16x64xf32>
      %272 = tpu.matmul %269, %271, %cst_233 {dimension_numbers = #tpu.dot_dimension_numbers<[1], [0], [0], [1], [0, 0, 1, 1], [], []>} : vector<16x8xbf16>, vector<8x64xbf16>, vector<16x64xf32> -> vector<16x64xf32>
      %273 = arith.addf %266, %272 : vector<16x64xf32>
      %c3_234 = arith.constant 3 : index
      %274 = arith.index_cast %252 : i32 to index
      %c1_235 = arith.constant 1 : index
      %c0_236 = arith.constant 0 : index
      %275 = vector.load %arg1[%c3_234, %274, %c1_235, %c0_236] : memref<4x19x19x8xbf16, #tpu.memory_space<vmem>>, vector<1x1x16x8xbf16>
      %276 = vector.shape_cast %275 : vector<1x1x16x8xbf16> to vector<16x8xbf16>
      %c38 = arith.constant 38 : index
      %c0_237 = arith.constant 0 : index
      %c0_238 = arith.constant 0 : index
      %277 = vector.load %arg2[%c38, %c0_237, %c0_238] : memref<49x8x64xbf16, #tpu.memory_space<vmem>>, vector<1x8x64xbf16>
      %278 = vector.shape_cast %277 : vector<1x8x64xbf16> to vector<8x64xbf16>
      %cst_239 = arith.constant dense<0.000000e+00> : vector<16x64xf32>
      %279 = tpu.matmul %276, %278, %cst_239 {dimension_numbers = #tpu.dot_dimension_numbers<[1], [0], [0], [1], [0, 0, 1, 1], [], []>} : vector<16x8xbf16>, vector<8x64xbf16>, vector<16x64xf32> -> vector<16x64xf32>
      %280 = arith.addf %273, %279 : vector<16x64xf32>
      %c2_240 = arith.constant 2 : index
      %281 = arith.index_cast %252 : i32 to index
      %c2_241 = arith.constant 2 : index
      %c0_242 = arith.constant 0 : index
      %282 = vector.load %arg1[%c2_240, %281, %c2_241, %c0_242] : memref<4x19x19x8xbf16, #tpu.memory_space<vmem>>, vector<1x1x16x8xbf16>
      %283 = vector.shape_cast %282 : vector<1x1x16x8xbf16> to vector<16x8xbf16>
      %c39 = arith.constant 39 : index
      %c0_243 = arith.constant 0 : index
      %c0_244 = arith.constant 0 : index
      %284 = vector.load %arg2[%c39, %c0_243, %c0_244] : memref<49x8x64xbf16, #tpu.memory_space<vmem>>, vector<1x8x64xbf16>
      %285 = vector.shape_cast %284 : vector<1x8x64xbf16> to vector<8x64xbf16>
      %cst_245 = arith.constant dense<0.000000e+00> : vector<16x64xf32>
      %286 = tpu.matmul %283, %285, %cst_245 {dimension_numbers = #tpu.dot_dimension_numbers<[1], [0], [0], [1], [0, 0, 1, 1], [], []>} : vector<16x8xbf16>, vector<8x64xbf16>, vector<16x64xf32> -> vector<16x64xf32>
      %287 = arith.addf %280, %286 : vector<16x64xf32>
      %c3_246 = arith.constant 3 : index
      %288 = arith.index_cast %252 : i32 to index
      %c2_247 = arith.constant 2 : index
      %c0_248 = arith.constant 0 : index
      %289 = vector.load %arg1[%c3_246, %288, %c2_247, %c0_248] : memref<4x19x19x8xbf16, #tpu.memory_space<vmem>>, vector<1x1x16x8xbf16>
      %290 = vector.shape_cast %289 : vector<1x1x16x8xbf16> to vector<16x8xbf16>
      %c40 = arith.constant 40 : index
      %c0_249 = arith.constant 0 : index
      %c0_250 = arith.constant 0 : index
      %291 = vector.load %arg2[%c40, %c0_249, %c0_250] : memref<49x8x64xbf16, #tpu.memory_space<vmem>>, vector<1x8x64xbf16>
      %292 = vector.shape_cast %291 : vector<1x8x64xbf16> to vector<8x64xbf16>
      %cst_251 = arith.constant dense<0.000000e+00> : vector<16x64xf32>
      %293 = tpu.matmul %290, %292, %cst_251 {dimension_numbers = #tpu.dot_dimension_numbers<[1], [0], [0], [1], [0, 0, 1, 1], [], []>} : vector<16x8xbf16>, vector<8x64xbf16>, vector<16x64xf32> -> vector<16x64xf32>
      %294 = arith.addf %287, %293 : vector<16x64xf32>
      %c2_252 = arith.constant 2 : index
      %295 = arith.index_cast %252 : i32 to index
      %c3_253 = arith.constant 3 : index
      %c0_254 = arith.constant 0 : index
      %296 = vector.load %arg1[%c2_252, %295, %c3_253, %c0_254] : memref<4x19x19x8xbf16, #tpu.memory_space<vmem>>, vector<1x1x16x8xbf16>
      %297 = vector.shape_cast %296 : vector<1x1x16x8xbf16> to vector<16x8xbf16>
      %c41 = arith.constant 41 : index
      %c0_255 = arith.constant 0 : index
      %c0_256 = arith.constant 0 : index
      %298 = vector.load %arg2[%c41, %c0_255, %c0_256] : memref<49x8x64xbf16, #tpu.memory_space<vmem>>, vector<1x8x64xbf16>
      %299 = vector.shape_cast %298 : vector<1x8x64xbf16> to vector<8x64xbf16>
      %cst_257 = arith.constant dense<0.000000e+00> : vector<16x64xf32>
      %300 = tpu.matmul %297, %299, %cst_257 {dimension_numbers = #tpu.dot_dimension_numbers<[1], [0], [0], [1], [0, 0, 1, 1], [], []>} : vector<16x8xbf16>, vector<8x64xbf16>, vector<16x64xf32> -> vector<16x64xf32>
      %301 = arith.addf %294, %300 : vector<16x64xf32>
      %c3_i32 = arith.constant 3 : i32
      %302 = arith.addi %arg5, %c3_i32 : i32
      %c0_258 = arith.constant 0 : index
      %303 = arith.index_cast %302 : i32 to index
      %c0_259 = arith.constant 0 : index
      %c0_260 = arith.constant 0 : index
      %304 = vector.load %arg1[%c0_258, %303, %c0_259, %c0_260] : memref<4x19x19x8xbf16, #tpu.memory_space<vmem>>, vector<1x1x16x8xbf16>
      %305 = vector.shape_cast %304 : vector<1x1x16x8xbf16> to vector<16x8xbf16>
      %c42 = arith.constant 42 : index
      %c0_261 = arith.constant 0 : index
      %c0_262 = arith.constant 0 : index
      %306 = vector.load %arg2[%c42, %c0_261, %c0_262] : memref<49x8x64xbf16, #tpu.memory_space<vmem>>, vector<1x8x64xbf16>
      %307 = vector.shape_cast %306 : vector<1x8x64xbf16> to vector<8x64xbf16>
      %cst_263 = arith.constant dense<0.000000e+00> : vector<16x64xf32>
      %308 = tpu.matmul %305, %307, %cst_263 {dimension_numbers = #tpu.dot_dimension_numbers<[1], [0], [0], [1], [0, 0, 1, 1], [], []>} : vector<16x8xbf16>, vector<8x64xbf16>, vector<16x64xf32> -> vector<16x64xf32>
      %309 = arith.addf %301, %308 : vector<16x64xf32>
      %c1_264 = arith.constant 1 : index
      %310 = arith.index_cast %302 : i32 to index
      %c0_265 = arith.constant 0 : index
      %c0_266 = arith.constant 0 : index
      %311 = vector.load %arg1[%c1_264, %310, %c0_265, %c0_266] : memref<4x19x19x8xbf16, #tpu.memory_space<vmem>>, vector<1x1x16x8xbf16>
      %312 = vector.shape_cast %311 : vector<1x1x16x8xbf16> to vector<16x8xbf16>
      %c43 = arith.constant 43 : index
      %c0_267 = arith.constant 0 : index
      %c0_268 = arith.constant 0 : index
      %313 = vector.load %arg2[%c43, %c0_267, %c0_268] : memref<49x8x64xbf16, #tpu.memory_space<vmem>>, vector<1x8x64xbf16>
      %314 = vector.shape_cast %313 : vector<1x8x64xbf16> to vector<8x64xbf16>
      %cst_269 = arith.constant dense<0.000000e+00> : vector<16x64xf32>
      %315 = tpu.matmul %312, %314, %cst_269 {dimension_numbers = #tpu.dot_dimension_numbers<[1], [0], [0], [1], [0, 0, 1, 1], [], []>} : vector<16x8xbf16>, vector<8x64xbf16>, vector<16x64xf32> -> vector<16x64xf32>
      %316 = arith.addf %309, %315 : vector<16x64xf32>
      %c0_270 = arith.constant 0 : index
      %317 = arith.index_cast %302 : i32 to index
      %c1_271 = arith.constant 1 : index
      %c0_272 = arith.constant 0 : index
      %318 = vector.load %arg1[%c0_270, %317, %c1_271, %c0_272] : memref<4x19x19x8xbf16, #tpu.memory_space<vmem>>, vector<1x1x16x8xbf16>
      %319 = vector.shape_cast %318 : vector<1x1x16x8xbf16> to vector<16x8xbf16>
      %c44 = arith.constant 44 : index
      %c0_273 = arith.constant 0 : index
      %c0_274 = arith.constant 0 : index
      %320 = vector.load %arg2[%c44, %c0_273, %c0_274] : memref<49x8x64xbf16, #tpu.memory_space<vmem>>, vector<1x8x64xbf16>
      %321 = vector.shape_cast %320 : vector<1x8x64xbf16> to vector<8x64xbf16>
      %cst_275 = arith.constant dense<0.000000e+00> : vector<16x64xf32>
      %322 = tpu.matmul %319, %321, %cst_275 {dimension_numbers = #tpu.dot_dimension_numbers<[1], [0], [0], [1], [0, 0, 1, 1], [], []>} : vector<16x8xbf16>, vector<8x64xbf16>, vector<16x64xf32> -> vector<16x64xf32>
      %323 = arith.addf %316, %322 : vector<16x64xf32>
      %c1_276 = arith.constant 1 : index
      %324 = arith.index_cast %302 : i32 to index
      %c1_277 = arith.constant 1 : index
      %c0_278 = arith.constant 0 : index
      %325 = vector.load %arg1[%c1_276, %324, %c1_277, %c0_278] : memref<4x19x19x8xbf16, #tpu.memory_space<vmem>>, vector<1x1x16x8xbf16>
      %326 = vector.shape_cast %325 : vector<1x1x16x8xbf16> to vector<16x8xbf16>
      %c45 = arith.constant 45 : index
      %c0_279 = arith.constant 0 : index
      %c0_280 = arith.constant 0 : index
      %327 = vector.load %arg2[%c45, %c0_279, %c0_280] : memref<49x8x64xbf16, #tpu.memory_space<vmem>>, vector<1x8x64xbf16>
      %328 = vector.shape_cast %327 : vector<1x8x64xbf16> to vector<8x64xbf16>
      %cst_281 = arith.constant dense<0.000000e+00> : vector<16x64xf32>
      %329 = tpu.matmul %326, %328, %cst_281 {dimension_numbers = #tpu.dot_dimension_numbers<[1], [0], [0], [1], [0, 0, 1, 1], [], []>} : vector<16x8xbf16>, vector<8x64xbf16>, vector<16x64xf32> -> vector<16x64xf32>
      %330 = arith.addf %323, %329 : vector<16x64xf32>
      %c0_282 = arith.constant 0 : index
      %331 = arith.index_cast %302 : i32 to index
      %c2_283 = arith.constant 2 : index
      %c0_284 = arith.constant 0 : index
      %332 = vector.load %arg1[%c0_282, %331, %c2_283, %c0_284] : memref<4x19x19x8xbf16, #tpu.memory_space<vmem>>, vector<1x1x16x8xbf16>
      %333 = vector.shape_cast %332 : vector<1x1x16x8xbf16> to vector<16x8xbf16>
      %c46 = arith.constant 46 : index
      %c0_285 = arith.constant 0 : index
      %c0_286 = arith.constant 0 : index
      %334 = vector.load %arg2[%c46, %c0_285, %c0_286] : memref<49x8x64xbf16, #tpu.memory_space<vmem>>, vector<1x8x64xbf16>
      %335 = vector.shape_cast %334 : vector<1x8x64xbf16> to vector<8x64xbf16>
      %cst_287 = arith.constant dense<0.000000e+00> : vector<16x64xf32>
      %336 = tpu.matmul %333, %335, %cst_287 {dimension_numbers = #tpu.dot_dimension_numbers<[1], [0], [0], [1], [0, 0, 1, 1], [], []>} : vector<16x8xbf16>, vector<8x64xbf16>, vector<16x64xf32> -> vector<16x64xf32>
      %337 = arith.addf %330, %336 : vector<16x64xf32>
      %c1_288 = arith.constant 1 : index
      %338 = arith.index_cast %302 : i32 to index
      %c2_289 = arith.constant 2 : index
      %c0_290 = arith.constant 0 : index
      %339 = vector.load %arg1[%c1_288, %338, %c2_289, %c0_290] : memref<4x19x19x8xbf16, #tpu.memory_space<vmem>>, vector<1x1x16x8xbf16>
      %340 = vector.shape_cast %339 : vector<1x1x16x8xbf16> to vector<16x8xbf16>
      %c47 = arith.constant 47 : index
      %c0_291 = arith.constant 0 : index
      %c0_292 = arith.constant 0 : index
      %341 = vector.load %arg2[%c47, %c0_291, %c0_292] : memref<49x8x64xbf16, #tpu.memory_space<vmem>>, vector<1x8x64xbf16>
      %342 = vector.shape_cast %341 : vector<1x8x64xbf16> to vector<8x64xbf16>
      %cst_293 = arith.constant dense<0.000000e+00> : vector<16x64xf32>
      %343 = tpu.matmul %340, %342, %cst_293 {dimension_numbers = #tpu.dot_dimension_numbers<[1], [0], [0], [1], [0, 0, 1, 1], [], []>} : vector<16x8xbf16>, vector<8x64xbf16>, vector<16x64xf32> -> vector<16x64xf32>
      %344 = arith.addf %337, %343 : vector<16x64xf32>
      %c0_294 = arith.constant 0 : index
      %345 = arith.index_cast %302 : i32 to index
      %c3_295 = arith.constant 3 : index
      %c0_296 = arith.constant 0 : index
      %346 = vector.load %arg1[%c0_294, %345, %c3_295, %c0_296] : memref<4x19x19x8xbf16, #tpu.memory_space<vmem>>, vector<1x1x16x8xbf16>
      %347 = vector.shape_cast %346 : vector<1x1x16x8xbf16> to vector<16x8xbf16>
      %c48 = arith.constant 48 : index
      %c0_297 = arith.constant 0 : index
      %c0_298 = arith.constant 0 : index
      %348 = vector.load %arg2[%c48, %c0_297, %c0_298] : memref<49x8x64xbf16, #tpu.memory_space<vmem>>, vector<1x8x64xbf16>
      %349 = vector.shape_cast %348 : vector<1x8x64xbf16> to vector<8x64xbf16>
      %cst_299 = arith.constant dense<0.000000e+00> : vector<16x64xf32>
      %350 = tpu.matmul %347, %349, %cst_299 {dimension_numbers = #tpu.dot_dimension_numbers<[1], [0], [0], [1], [0, 0, 1, 1], [], []>} : vector<16x8xbf16>, vector<8x64xbf16>, vector<16x64xf32> -> vector<16x64xf32>
      %351 = arith.addf %344, %350 : vector<16x64xf32>
      %c0_300 = arith.constant 0 : index
      %c0_301 = arith.constant 0 : index
      %352 = vector.load %arg3[%c0_300, %c0_301] : memref<1x64xf32, #tpu.memory_space<vmem>>, vector<1x64xf32>
      %353 = vector.broadcast %352 : vector<1x64xf32> to vector<16x64xf32>
      %354 = arith.addf %351, %353 : vector<16x64xf32>
      %cst_302 = arith.constant 0.000000e+00 : f32
      %355 = vector.broadcast %cst_302 : f32 to vector<16x64xf32>
      %356 = arith.maximumf %354, %355 : vector<16x64xf32>
      %357 = arith.truncf %356 : vector<16x64xf32> to vector<16x64xbf16>
      %c0_303 = arith.constant 0 : index
      %358 = arith.index_cast %arg5 : i32 to index
      %c0_304 = arith.constant 0 : index
      %c0_305 = arith.constant 0 : index
      %359 = vector.load %arg4[%c0_303, %358, %c0_304, %c0_305] : memref<1x16x16x64xbf16, #tpu.memory_space<vmem>>, vector<1x1x16x64xbf16>
      %360 = vector.shape_cast %359 : vector<1x1x16x64xbf16> to vector<16x64xbf16>
      %361 = vector.shape_cast %357 : vector<16x64xbf16> to vector<1x1x16x64xbf16>
      tpu.vector_store %arg4[%c0_303, %358, %c0_304, %c0_305], %361 {strides = array<i32>} : memref<1x16x16x64xbf16, #tpu.memory_space<vmem>>, vector<1x1x16x64xbf16>,
    }
    %c16_i32_0 = arith.constant 16 : i32
    return
  }
  func.func @transform_0(%arg0: i32) -> (i32, i32, i32, i32) {
    %c0_i32 = arith.constant 0 : i32
    %c0_i32_0 = arith.constant 0 : i32
    %c0_i32_1 = arith.constant 0 : i32
    %c0_i32_2 = arith.constant 0 : i32
    return %arg0, %c0_i32, %c0_i32_0, %c0_i32_1 : i32, i32, i32, i32
  }
  func.func @transform_1(%arg0: i32) -> (i32, i32, i32) {
    %c0_i32 = arith.constant 0 : i32
    %c0_i32_0 = arith.constant 0 : i32
    %c0_i32_1 = arith.constant 0 : i32
    %c0_i32_2 = arith.constant 0 : i32
    return %c0_i32, %c0_i32_0, %c0_i32_1 : i32, i32, i32
  }
  func.func @transform_2(%arg0: i32) -> (i32, i32) {
    %c0_i32 = arith.constant 0 : i32
    %c0_i32_0 = arith.constant 0 : i32
    %c0_i32_1 = arith.constant 0 : i32
    return %c0_i32, %c0_i32_0 : i32, i32
  }
  func.func @transform_3(%arg0: i32) -> (i32, i32, i32, i32) {
    %c0_i32 = arith.constant 0 : i32
    %c0_i32_0 = arith.constant 0 : i32
    %c0_i32_1 = arith.constant 0 : i32
    %c0_i32_2 = arith.constant 0 : i32
    return %arg0, %c0_i32, %c0_i32_0, %c0_i32_1 : i32, i32, i32, i32
  }
}

module attributes {stable_mosaic.version = 11 : i64} {
  func.func @_maxpool_kernel(%arg0: i32, %arg1: memref<4x9x9x64xbf16, #tpu.memory_space<vmem>>, %arg2: memref<1x8x8x64xbf16, #tpu.memory_space<vmem>>) attributes {dimension_semantics = [#tpu.dimension_semantics<parallel>], iteration_bounds = array<i64: 2>, scalar_prefetch = 0 : i64, scratch_operands = 0 : i64, tpu.core_type = #tpu.core_type<tc>, window_params = [{transform_indices = @transform_0, window_bounds = array<i64: 4, 9, 9, 64>}, {transform_indices = @transform_1, window_bounds = array<i64: 1, 8, 8, 64>}]} {
    %c0 = arith.constant 0 : index
    %c0_0 = arith.constant 0 : index
    %c0_1 = arith.constant 0 : index
    %c0_2 = arith.constant 0 : index
    %0 = vector.load %arg1[%c0, %c0_0, %c0_1, %c0_2] : memref<4x9x9x64xbf16, #tpu.memory_space<vmem>>, vector<1x8x8x64xbf16>
    %1 = vector.shape_cast %0 : vector<1x8x8x64xbf16> to vector<8x8x64xbf16>
    %c1 = arith.constant 1 : index
    %c0_3 = arith.constant 0 : index
    %c0_4 = arith.constant 0 : index
    %c0_5 = arith.constant 0 : index
    %2 = vector.load %arg1[%c1, %c0_3, %c0_4, %c0_5] : memref<4x9x9x64xbf16, #tpu.memory_space<vmem>>, vector<1x8x8x64xbf16>
    %3 = vector.shape_cast %2 : vector<1x8x8x64xbf16> to vector<8x8x64xbf16>
    %4 = arith.maximumf %1, %3 : vector<8x8x64xbf16>
    %c0_6 = arith.constant 0 : index
    %c0_7 = arith.constant 0 : index
    %c1_8 = arith.constant 1 : index
    %c0_9 = arith.constant 0 : index
    %5 = vector.load %arg1[%c0_6, %c0_7, %c1_8, %c0_9] : memref<4x9x9x64xbf16, #tpu.memory_space<vmem>>, vector<1x8x8x64xbf16>
    %6 = vector.shape_cast %5 : vector<1x8x8x64xbf16> to vector<8x8x64xbf16>
    %7 = arith.maximumf %4, %6 : vector<8x8x64xbf16>
    %c2 = arith.constant 2 : index
    %c0_10 = arith.constant 0 : index
    %c0_11 = arith.constant 0 : index
    %c0_12 = arith.constant 0 : index
    %8 = vector.load %arg1[%c2, %c0_10, %c0_11, %c0_12] : memref<4x9x9x64xbf16, #tpu.memory_space<vmem>>, vector<1x8x8x64xbf16>
    %9 = vector.shape_cast %8 : vector<1x8x8x64xbf16> to vector<8x8x64xbf16>
    %10 = arith.maximumf %7, %9 : vector<8x8x64xbf16>
    %c3 = arith.constant 3 : index
    %c0_13 = arith.constant 0 : index
    %c0_14 = arith.constant 0 : index
    %c0_15 = arith.constant 0 : index
    %11 = vector.load %arg1[%c3, %c0_13, %c0_14, %c0_15] : memref<4x9x9x64xbf16, #tpu.memory_space<vmem>>, vector<1x8x8x64xbf16>
    %12 = vector.shape_cast %11 : vector<1x8x8x64xbf16> to vector<8x8x64xbf16>
    %13 = arith.maximumf %10, %12 : vector<8x8x64xbf16>
    %c2_16 = arith.constant 2 : index
    %c0_17 = arith.constant 0 : index
    %c1_18 = arith.constant 1 : index
    %c0_19 = arith.constant 0 : index
    %14 = vector.load %arg1[%c2_16, %c0_17, %c1_18, %c0_19] : memref<4x9x9x64xbf16, #tpu.memory_space<vmem>>, vector<1x8x8x64xbf16>
    %15 = vector.shape_cast %14 : vector<1x8x8x64xbf16> to vector<8x8x64xbf16>
    %16 = arith.maximumf %13, %15 : vector<8x8x64xbf16>
    %c0_20 = arith.constant 0 : index
    %c1_21 = arith.constant 1 : index
    %c0_22 = arith.constant 0 : index
    %c0_23 = arith.constant 0 : index
    %17 = vector.load %arg1[%c0_20, %c1_21, %c0_22, %c0_23] : memref<4x9x9x64xbf16, #tpu.memory_space<vmem>>, vector<1x8x8x64xbf16>
    %18 = vector.shape_cast %17 : vector<1x8x8x64xbf16> to vector<8x8x64xbf16>
    %19 = arith.maximumf %16, %18 : vector<8x8x64xbf16>
    %c1_24 = arith.constant 1 : index
    %c1_25 = arith.constant 1 : index
    %c0_26 = arith.constant 0 : index
    %c0_27 = arith.constant 0 : index
    %20 = vector.load %arg1[%c1_24, %c1_25, %c0_26, %c0_27] : memref<4x9x9x64xbf16, #tpu.memory_space<vmem>>, vector<1x8x8x64xbf16>
    %21 = vector.shape_cast %20 : vector<1x8x8x64xbf16> to vector<8x8x64xbf16>
    %22 = arith.maximumf %19, %21 : vector<8x8x64xbf16>
    %c0_28 = arith.constant 0 : index
    %c1_29 = arith.constant 1 : index
    %c1_30 = arith.constant 1 : index
    %c0_31 = arith.constant 0 : index
    %23 = vector.load %arg1[%c0_28, %c1_29, %c1_30, %c0_31] : memref<4x9x9x64xbf16, #tpu.memory_space<vmem>>, vector<1x8x8x64xbf16>
    %24 = vector.shape_cast %23 : vector<1x8x8x64xbf16> to vector<8x8x64xbf16>
    %25 = arith.maximumf %22, %24 : vector<8x8x64xbf16>
    %c0_32 = arith.constant 0 : index
    %c0_33 = arith.constant 0 : index
    %c0_34 = arith.constant 0 : index
    %c0_35 = arith.constant 0 : index
    %26 = vector.load %arg2[%c0_32, %c0_33, %c0_34, %c0_35] : memref<1x8x8x64xbf16, #tpu.memory_space<vmem>>, vector<1x8x8x64xbf16>
    %27 = vector.shape_cast %26 : vector<1x8x8x64xbf16> to vector<8x8x64xbf16>
    %28 = vector.shape_cast %25 : vector<8x8x64xbf16> to vector<1x8x8x64xbf16>
    tpu.vector_store %arg2[%c0_32, %c0_33, %c0_34, %c0_35], %28 {strides = array<i32>} : memref<1x8x8x64xbf16, #tpu.memory_space<vmem>>, vector<1x8x8x64xbf16>,
    return
  }
  func.func @transform_0(%arg0: i32) -> (i32, i32, i32, i32) {
    %c0_i32 = arith.constant 0 : i32
    %c0_i32_0 = arith.constant 0 : i32
    %c0_i32_1 = arith.constant 0 : i32
    %c0_i32_2 = arith.constant 0 : i32
    return %arg0, %c0_i32, %c0_i32_0, %c0_i32_1 : i32, i32, i32, i32
  }
  func.func @transform_1(%arg0: i32) -> (i32, i32, i32, i32) {
    %c0_i32 = arith.constant 0 : i32
    %c0_i32_0 = arith.constant 0 : i32
    %c0_i32_1 = arith.constant 0 : i32
    %c0_i32_2 = arith.constant 0 : i32
    return %arg0, %c0_i32, %c0_i32_0, %c0_i32_1 : i32, i32, i32, i32
  }
}

module attributes {stable_mosaic.version = 11 : i64} {
  func.func @_conv_bn_kernel(%arg0: i32, %arg1: memref<1x10x10x64xbf16, #tpu.memory_space<vmem>>, %arg2: memref<9x64x64xbf16, #tpu.memory_space<vmem>>, %arg3: memref<1x64xf32, #tpu.memory_space<vmem>>, %arg4: memref<1x8x8x64xbf16, #tpu.memory_space<vmem>>) attributes {dimension_semantics = [#tpu.dimension_semantics<parallel>], iteration_bounds = array<i64: 2>, scalar_prefetch = 0 : i64, scratch_operands = 0 : i64, tpu.core_type = #tpu.core_type<tc>, window_params = [{transform_indices = @transform_0, window_bounds = array<i64: 1, 10, 10, 64>}, {pipeline_mode = #tpu.pipeline_mode<synchronous>, transform_indices = @transform_1, window_bounds = array<i64: 9, 64, 64>}, {pipeline_mode = #tpu.pipeline_mode<synchronous>, transform_indices = @transform_2, window_bounds = array<i64: 1, 64>}, {transform_indices = @transform_3, window_bounds = array<i64: 1, 8, 8, 64>}]} {
    %c0_i32 = arith.constant 0 : i32
    %c8_i32 = arith.constant 8 : i32
    %0 = arith.addi %c0_i32, %c8_i32 : i32
    %c1_i32 = arith.constant 1 : i32
    scf.for %arg5 = %c0_i32 to %0 step %c1_i32  : i32 {
      %cst = arith.constant 0.000000e+00 : f32
      %1 = vector.broadcast %cst : f32 to vector<8x64xf32>
      %c0_i32_1 = arith.constant 0 : i32
      %2 = arith.addi %arg5, %c0_i32_1 : i32
      %c0 = arith.constant 0 : index
      %3 = arith.index_cast %2 : i32 to index
      %c0_2 = arith.constant 0 : index
      %c0_3 = arith.constant 0 : index
      %4 = vector.load %arg1[%c0, %3, %c0_2, %c0_3] : memref<1x10x10x64xbf16, #tpu.memory_space<vmem>>, vector<1x1x8x64xbf16>
      %5 = vector.shape_cast %4 : vector<1x1x8x64xbf16> to vector<8x64xbf16>
      %c0_4 = arith.constant 0 : index
      %c0_5 = arith.constant 0 : index
      %c0_6 = arith.constant 0 : index
      %6 = vector.load %arg2[%c0_4, %c0_5, %c0_6] : memref<9x64x64xbf16, #tpu.memory_space<vmem>>, vector<1x64x64xbf16>
      %7 = vector.shape_cast %6 : vector<1x64x64xbf16> to vector<64x64xbf16>
      %cst_7 = arith.constant dense<0.000000e+00> : vector<8x64xf32>
      %8 = tpu.matmul %5, %7, %cst_7 {dimension_numbers = #tpu.dot_dimension_numbers<[1], [0], [0], [1], [0, 0, 1, 1], [], []>} : vector<8x64xbf16>, vector<64x64xbf16>, vector<8x64xf32> -> vector<8x64xf32>
      %9 = arith.addf %1, %8 : vector<8x64xf32>
      %c0_8 = arith.constant 0 : index
      %10 = arith.index_cast %2 : i32 to index
      %c1 = arith.constant 1 : index
      %c0_9 = arith.constant 0 : index
      %11 = vector.load %arg1[%c0_8, %10, %c1, %c0_9] : memref<1x10x10x64xbf16, #tpu.memory_space<vmem>>, vector<1x1x8x64xbf16>
      %12 = vector.shape_cast %11 : vector<1x1x8x64xbf16> to vector<8x64xbf16>
      %c1_10 = arith.constant 1 : index
      %c0_11 = arith.constant 0 : index
      %c0_12 = arith.constant 0 : index
      %13 = vector.load %arg2[%c1_10, %c0_11, %c0_12] : memref<9x64x64xbf16, #tpu.memory_space<vmem>>, vector<1x64x64xbf16>
      %14 = vector.shape_cast %13 : vector<1x64x64xbf16> to vector<64x64xbf16>
      %cst_13 = arith.constant dense<0.000000e+00> : vector<8x64xf32>
      %15 = tpu.matmul %12, %14, %cst_13 {dimension_numbers = #tpu.dot_dimension_numbers<[1], [0], [0], [1], [0, 0, 1, 1], [], []>} : vector<8x64xbf16>, vector<64x64xbf16>, vector<8x64xf32> -> vector<8x64xf32>
      %16 = arith.addf %9, %15 : vector<8x64xf32>
      %c0_14 = arith.constant 0 : index
      %17 = arith.index_cast %2 : i32 to index
      %c2 = arith.constant 2 : index
      %c0_15 = arith.constant 0 : index
      %18 = vector.load %arg1[%c0_14, %17, %c2, %c0_15] : memref<1x10x10x64xbf16, #tpu.memory_space<vmem>>, vector<1x1x8x64xbf16>
      %19 = vector.shape_cast %18 : vector<1x1x8x64xbf16> to vector<8x64xbf16>
      %c2_16 = arith.constant 2 : index
      %c0_17 = arith.constant 0 : index
      %c0_18 = arith.constant 0 : index
      %20 = vector.load %arg2[%c2_16, %c0_17, %c0_18] : memref<9x64x64xbf16, #tpu.memory_space<vmem>>, vector<1x64x64xbf16>
      %21 = vector.shape_cast %20 : vector<1x64x64xbf16> to vector<64x64xbf16>
      %cst_19 = arith.constant dense<0.000000e+00> : vector<8x64xf32>
      %22 = tpu.matmul %19, %21, %cst_19 {dimension_numbers = #tpu.dot_dimension_numbers<[1], [0], [0], [1], [0, 0, 1, 1], [], []>} : vector<8x64xbf16>, vector<64x64xbf16>, vector<8x64xf32> -> vector<8x64xf32>
      %23 = arith.addf %16, %22 : vector<8x64xf32>
      %c1_i32_20 = arith.constant 1 : i32
      %24 = arith.addi %arg5, %c1_i32_20 : i32
      %c0_21 = arith.constant 0 : index
      %25 = arith.index_cast %24 : i32 to index
      %c0_22 = arith.constant 0 : index
      %c0_23 = arith.constant 0 : index
      %26 = vector.load %arg1[%c0_21, %25, %c0_22, %c0_23] : memref<1x10x10x64xbf16, #tpu.memory_space<vmem>>, vector<1x1x8x64xbf16>
      %27 = vector.shape_cast %26 : vector<1x1x8x64xbf16> to vector<8x64xbf16>
      %c3 = arith.constant 3 : index
      %c0_24 = arith.constant 0 : index
      %c0_25 = arith.constant 0 : index
      %28 = vector.load %arg2[%c3, %c0_24, %c0_25] : memref<9x64x64xbf16, #tpu.memory_space<vmem>>, vector<1x64x64xbf16>
      %29 = vector.shape_cast %28 : vector<1x64x64xbf16> to vector<64x64xbf16>
      %cst_26 = arith.constant dense<0.000000e+00> : vector<8x64xf32>
      %30 = tpu.matmul %27, %29, %cst_26 {dimension_numbers = #tpu.dot_dimension_numbers<[1], [0], [0], [1], [0, 0, 1, 1], [], []>} : vector<8x64xbf16>, vector<64x64xbf16>, vector<8x64xf32> -> vector<8x64xf32>
      %31 = arith.addf %23, %30 : vector<8x64xf32>
      %c0_27 = arith.constant 0 : index
      %32 = arith.index_cast %24 : i32 to index
      %c1_28 = arith.constant 1 : index
      %c0_29 = arith.constant 0 : index
      %33 = vector.load %arg1[%c0_27, %32, %c1_28, %c0_29] : memref<1x10x10x64xbf16, #tpu.memory_space<vmem>>, vector<1x1x8x64xbf16>
      %34 = vector.shape_cast %33 : vector<1x1x8x64xbf16> to vector<8x64xbf16>
      %c4 = arith.constant 4 : index
      %c0_30 = arith.constant 0 : index
      %c0_31 = arith.constant 0 : index
      %35 = vector.load %arg2[%c4, %c0_30, %c0_31] : memref<9x64x64xbf16, #tpu.memory_space<vmem>>, vector<1x64x64xbf16>
      %36 = vector.shape_cast %35 : vector<1x64x64xbf16> to vector<64x64xbf16>
      %cst_32 = arith.constant dense<0.000000e+00> : vector<8x64xf32>
      %37 = tpu.matmul %34, %36, %cst_32 {dimension_numbers = #tpu.dot_dimension_numbers<[1], [0], [0], [1], [0, 0, 1, 1], [], []>} : vector<8x64xbf16>, vector<64x64xbf16>, vector<8x64xf32> -> vector<8x64xf32>
      %38 = arith.addf %31, %37 : vector<8x64xf32>
      %c0_33 = arith.constant 0 : index
      %39 = arith.index_cast %24 : i32 to index
      %c2_34 = arith.constant 2 : index
      %c0_35 = arith.constant 0 : index
      %40 = vector.load %arg1[%c0_33, %39, %c2_34, %c0_35] : memref<1x10x10x64xbf16, #tpu.memory_space<vmem>>, vector<1x1x8x64xbf16>
      %41 = vector.shape_cast %40 : vector<1x1x8x64xbf16> to vector<8x64xbf16>
      %c5 = arith.constant 5 : index
      %c0_36 = arith.constant 0 : index
      %c0_37 = arith.constant 0 : index
      %42 = vector.load %arg2[%c5, %c0_36, %c0_37] : memref<9x64x64xbf16, #tpu.memory_space<vmem>>, vector<1x64x64xbf16>
      %43 = vector.shape_cast %42 : vector<1x64x64xbf16> to vector<64x64xbf16>
      %cst_38 = arith.constant dense<0.000000e+00> : vector<8x64xf32>
      %44 = tpu.matmul %41, %43, %cst_38 {dimension_numbers = #tpu.dot_dimension_numbers<[1], [0], [0], [1], [0, 0, 1, 1], [], []>} : vector<8x64xbf16>, vector<64x64xbf16>, vector<8x64xf32> -> vector<8x64xf32>
      %45 = arith.addf %38, %44 : vector<8x64xf32>
      %c2_i32 = arith.constant 2 : i32
      %46 = arith.addi %arg5, %c2_i32 : i32
      %c0_39 = arith.constant 0 : index
      %47 = arith.index_cast %46 : i32 to index
      %c0_40 = arith.constant 0 : index
      %c0_41 = arith.constant 0 : index
      %48 = vector.load %arg1[%c0_39, %47, %c0_40, %c0_41] : memref<1x10x10x64xbf16, #tpu.memory_space<vmem>>, vector<1x1x8x64xbf16>
      %49 = vector.shape_cast %48 : vector<1x1x8x64xbf16> to vector<8x64xbf16>
      %c6 = arith.constant 6 : index
      %c0_42 = arith.constant 0 : index
      %c0_43 = arith.constant 0 : index
      %50 = vector.load %arg2[%c6, %c0_42, %c0_43] : memref<9x64x64xbf16, #tpu.memory_space<vmem>>, vector<1x64x64xbf16>
      %51 = vector.shape_cast %50 : vector<1x64x64xbf16> to vector<64x64xbf16>
      %cst_44 = arith.constant dense<0.000000e+00> : vector<8x64xf32>
      %52 = tpu.matmul %49, %51, %cst_44 {dimension_numbers = #tpu.dot_dimension_numbers<[1], [0], [0], [1], [0, 0, 1, 1], [], []>} : vector<8x64xbf16>, vector<64x64xbf16>, vector<8x64xf32> -> vector<8x64xf32>
      %53 = arith.addf %45, %52 : vector<8x64xf32>
      %c0_45 = arith.constant 0 : index
      %54 = arith.index_cast %46 : i32 to index
      %c1_46 = arith.constant 1 : index
      %c0_47 = arith.constant 0 : index
      %55 = vector.load %arg1[%c0_45, %54, %c1_46, %c0_47] : memref<1x10x10x64xbf16, #tpu.memory_space<vmem>>, vector<1x1x8x64xbf16>
      %56 = vector.shape_cast %55 : vector<1x1x8x64xbf16> to vector<8x64xbf16>
      %c7 = arith.constant 7 : index
      %c0_48 = arith.constant 0 : index
      %c0_49 = arith.constant 0 : index
      %57 = vector.load %arg2[%c7, %c0_48, %c0_49] : memref<9x64x64xbf16, #tpu.memory_space<vmem>>, vector<1x64x64xbf16>
      %58 = vector.shape_cast %57 : vector<1x64x64xbf16> to vector<64x64xbf16>
      %cst_50 = arith.constant dense<0.000000e+00> : vector<8x64xf32>
      %59 = tpu.matmul %56, %58, %cst_50 {dimension_numbers = #tpu.dot_dimension_numbers<[1], [0], [0], [1], [0, 0, 1, 1], [], []>} : vector<8x64xbf16>, vector<64x64xbf16>, vector<8x64xf32> -> vector<8x64xf32>
      %60 = arith.addf %53, %59 : vector<8x64xf32>
      %c0_51 = arith.constant 0 : index
      %61 = arith.index_cast %46 : i32 to index
      %c2_52 = arith.constant 2 : index
      %c0_53 = arith.constant 0 : index
      %62 = vector.load %arg1[%c0_51, %61, %c2_52, %c0_53] : memref<1x10x10x64xbf16, #tpu.memory_space<vmem>>, vector<1x1x8x64xbf16>
      %63 = vector.shape_cast %62 : vector<1x1x8x64xbf16> to vector<8x64xbf16>
      %c8 = arith.constant 8 : index
      %c0_54 = arith.constant 0 : index
      %c0_55 = arith.constant 0 : index
      %64 = vector.load %arg2[%c8, %c0_54, %c0_55] : memref<9x64x64xbf16, #tpu.memory_space<vmem>>, vector<1x64x64xbf16>
      %65 = vector.shape_cast %64 : vector<1x64x64xbf16> to vector<64x64xbf16>
      %cst_56 = arith.constant dense<0.000000e+00> : vector<8x64xf32>
      %66 = tpu.matmul %63, %65, %cst_56 {dimension_numbers = #tpu.dot_dimension_numbers<[1], [0], [0], [1], [0, 0, 1, 1], [], []>} : vector<8x64xbf16>, vector<64x64xbf16>, vector<8x64xf32> -> vector<8x64xf32>
      %67 = arith.addf %60, %66 : vector<8x64xf32>
      %c0_57 = arith.constant 0 : index
      %c0_58 = arith.constant 0 : index
      %68 = vector.load %arg3[%c0_57, %c0_58] : memref<1x64xf32, #tpu.memory_space<vmem>>, vector<1x64xf32>
      %69 = vector.broadcast %68 : vector<1x64xf32> to vector<8x64xf32>
      %70 = arith.addf %67, %69 : vector<8x64xf32>
      %cst_59 = arith.constant 0.000000e+00 : f32
      %71 = vector.broadcast %cst_59 : f32 to vector<8x64xf32>
      %72 = arith.maximumf %70, %71 : vector<8x64xf32>
      %73 = arith.truncf %72 : vector<8x64xf32> to vector<8x64xbf16>
      %c0_60 = arith.constant 0 : index
      %74 = arith.index_cast %arg5 : i32 to index
      %c0_61 = arith.constant 0 : index
      %c0_62 = arith.constant 0 : index
      %75 = vector.load %arg4[%c0_60, %74, %c0_61, %c0_62] : memref<1x8x8x64xbf16, #tpu.memory_space<vmem>>, vector<1x1x8x64xbf16>
      %76 = vector.shape_cast %75 : vector<1x1x8x64xbf16> to vector<8x64xbf16>
      %77 = vector.shape_cast %73 : vector<8x64xbf16> to vector<1x1x8x64xbf16>
      tpu.vector_store %arg4[%c0_60, %74, %c0_61, %c0_62], %77 {strides = array<i32>} : memref<1x8x8x64xbf16, #tpu.memory_space<vmem>>, vector<1x1x8x64xbf16>,
    }
    %c8_i32_0 = arith.constant 8 : i32
    return
  }
  func.func @transform_0(%arg0: i32) -> (i32, i32, i32, i32) {
    %c0_i32 = arith.constant 0 : i32
    %c0_i32_0 = arith.constant 0 : i32
    %c0_i32_1 = arith.constant 0 : i32
    %c0_i32_2 = arith.constant 0 : i32
    return %arg0, %c0_i32, %c0_i32_0, %c0_i32_1 : i32, i32, i32, i32
  }
  func.func @transform_1(%arg0: i32) -> (i32, i32, i32) {
    %c0_i32 = arith.constant 0 : i32
    %c0_i32_0 = arith.constant 0 : i32
    %c0_i32_1 = arith.constant 0 : i32
    %c0_i32_2 = arith.constant 0 : i32
    return %c0_i32, %c0_i32_0, %c0_i32_1 : i32, i32, i32
  }
  func.func @transform_2(%arg0: i32) -> (i32, i32) {
    %c0_i32 = arith.constant 0 : i32
    %c0_i32_0 = arith.constant 0 : i32
    %c0_i32_1 = arith.constant 0 : i32
    return %c0_i32, %c0_i32_0 : i32, i32
  }
  func.func @transform_3(%arg0: i32) -> (i32, i32, i32, i32) {
    %c0_i32 = arith.constant 0 : i32
    %c0_i32_0 = arith.constant 0 : i32
    %c0_i32_1 = arith.constant 0 : i32
    %c0_i32_2 = arith.constant 0 : i32
    return %arg0, %c0_i32, %c0_i32_0, %c0_i32_1 : i32, i32, i32, i32
  }
}

module attributes {stable_mosaic.version = 11 : i64} {
  func.func @_conv_bn_res_kernel(%arg0: i32, %arg1: memref<1x10x10x64xbf16, #tpu.memory_space<vmem>>, %arg2: memref<9x64x64xbf16, #tpu.memory_space<vmem>>, %arg3: memref<1x64xf32, #tpu.memory_space<vmem>>, %arg4: memref<1x8x8x64xbf16, #tpu.memory_space<vmem>>, %arg5: memref<1x8x8x64xbf16, #tpu.memory_space<vmem>>) attributes {dimension_semantics = [#tpu.dimension_semantics<parallel>], iteration_bounds = array<i64: 2>, scalar_prefetch = 0 : i64, scratch_operands = 0 : i64, tpu.core_type = #tpu.core_type<tc>, window_params = [{transform_indices = @transform_0, window_bounds = array<i64: 1, 10, 10, 64>}, {pipeline_mode = #tpu.pipeline_mode<synchronous>, transform_indices = @transform_1, window_bounds = array<i64: 9, 64, 64>}, {pipeline_mode = #tpu.pipeline_mode<synchronous>, transform_indices = @transform_2, window_bounds = array<i64: 1, 64>}, {transform_indices = @transform_3, window_bounds = array<i64: 1, 8, 8, 64>}, {transform_indices = @transform_4, window_bounds = array<i64: 1, 8, 8, 64>}]} {
    %c0_i32 = arith.constant 0 : i32
    %c8_i32 = arith.constant 8 : i32
    %0 = arith.addi %c0_i32, %c8_i32 : i32
    %c1_i32 = arith.constant 1 : i32
    scf.for %arg6 = %c0_i32 to %0 step %c1_i32  : i32 {
      %cst = arith.constant 0.000000e+00 : f32
      %1 = vector.broadcast %cst : f32 to vector<8x64xf32>
      %c0_i32_1 = arith.constant 0 : i32
      %2 = arith.addi %arg6, %c0_i32_1 : i32
      %c0 = arith.constant 0 : index
      %3 = arith.index_cast %2 : i32 to index
      %c0_2 = arith.constant 0 : index
      %c0_3 = arith.constant 0 : index
      %4 = vector.load %arg1[%c0, %3, %c0_2, %c0_3] : memref<1x10x10x64xbf16, #tpu.memory_space<vmem>>, vector<1x1x8x64xbf16>
      %5 = vector.shape_cast %4 : vector<1x1x8x64xbf16> to vector<8x64xbf16>
      %c0_4 = arith.constant 0 : index
      %c0_5 = arith.constant 0 : index
      %c0_6 = arith.constant 0 : index
      %6 = vector.load %arg2[%c0_4, %c0_5, %c0_6] : memref<9x64x64xbf16, #tpu.memory_space<vmem>>, vector<1x64x64xbf16>
      %7 = vector.shape_cast %6 : vector<1x64x64xbf16> to vector<64x64xbf16>
      %cst_7 = arith.constant dense<0.000000e+00> : vector<8x64xf32>
      %8 = tpu.matmul %5, %7, %cst_7 {dimension_numbers = #tpu.dot_dimension_numbers<[1], [0], [0], [1], [0, 0, 1, 1], [], []>} : vector<8x64xbf16>, vector<64x64xbf16>, vector<8x64xf32> -> vector<8x64xf32>
      %9 = arith.addf %1, %8 : vector<8x64xf32>
      %c0_8 = arith.constant 0 : index
      %10 = arith.index_cast %2 : i32 to index
      %c1 = arith.constant 1 : index
      %c0_9 = arith.constant 0 : index
      %11 = vector.load %arg1[%c0_8, %10, %c1, %c0_9] : memref<1x10x10x64xbf16, #tpu.memory_space<vmem>>, vector<1x1x8x64xbf16>
      %12 = vector.shape_cast %11 : vector<1x1x8x64xbf16> to vector<8x64xbf16>
      %c1_10 = arith.constant 1 : index
      %c0_11 = arith.constant 0 : index
      %c0_12 = arith.constant 0 : index
      %13 = vector.load %arg2[%c1_10, %c0_11, %c0_12] : memref<9x64x64xbf16, #tpu.memory_space<vmem>>, vector<1x64x64xbf16>
      %14 = vector.shape_cast %13 : vector<1x64x64xbf16> to vector<64x64xbf16>
      %cst_13 = arith.constant dense<0.000000e+00> : vector<8x64xf32>
      %15 = tpu.matmul %12, %14, %cst_13 {dimension_numbers = #tpu.dot_dimension_numbers<[1], [0], [0], [1], [0, 0, 1, 1], [], []>} : vector<8x64xbf16>, vector<64x64xbf16>, vector<8x64xf32> -> vector<8x64xf32>
      %16 = arith.addf %9, %15 : vector<8x64xf32>
      %c0_14 = arith.constant 0 : index
      %17 = arith.index_cast %2 : i32 to index
      %c2 = arith.constant 2 : index
      %c0_15 = arith.constant 0 : index
      %18 = vector.load %arg1[%c0_14, %17, %c2, %c0_15] : memref<1x10x10x64xbf16, #tpu.memory_space<vmem>>, vector<1x1x8x64xbf16>
      %19 = vector.shape_cast %18 : vector<1x1x8x64xbf16> to vector<8x64xbf16>
      %c2_16 = arith.constant 2 : index
      %c0_17 = arith.constant 0 : index
      %c0_18 = arith.constant 0 : index
      %20 = vector.load %arg2[%c2_16, %c0_17, %c0_18] : memref<9x64x64xbf16, #tpu.memory_space<vmem>>, vector<1x64x64xbf16>
      %21 = vector.shape_cast %20 : vector<1x64x64xbf16> to vector<64x64xbf16>
      %cst_19 = arith.constant dense<0.000000e+00> : vector<8x64xf32>
      %22 = tpu.matmul %19, %21, %cst_19 {dimension_numbers = #tpu.dot_dimension_numbers<[1], [0], [0], [1], [0, 0, 1, 1], [], []>} : vector<8x64xbf16>, vector<64x64xbf16>, vector<8x64xf32> -> vector<8x64xf32>
      %23 = arith.addf %16, %22 : vector<8x64xf32>
      %c1_i32_20 = arith.constant 1 : i32
      %24 = arith.addi %arg6, %c1_i32_20 : i32
      %c0_21 = arith.constant 0 : index
      %25 = arith.index_cast %24 : i32 to index
      %c0_22 = arith.constant 0 : index
      %c0_23 = arith.constant 0 : index
      %26 = vector.load %arg1[%c0_21, %25, %c0_22, %c0_23] : memref<1x10x10x64xbf16, #tpu.memory_space<vmem>>, vector<1x1x8x64xbf16>
      %27 = vector.shape_cast %26 : vector<1x1x8x64xbf16> to vector<8x64xbf16>
      %c3 = arith.constant 3 : index
      %c0_24 = arith.constant 0 : index
      %c0_25 = arith.constant 0 : index
      %28 = vector.load %arg2[%c3, %c0_24, %c0_25] : memref<9x64x64xbf16, #tpu.memory_space<vmem>>, vector<1x64x64xbf16>
      %29 = vector.shape_cast %28 : vector<1x64x64xbf16> to vector<64x64xbf16>
      %cst_26 = arith.constant dense<0.000000e+00> : vector<8x64xf32>
      %30 = tpu.matmul %27, %29, %cst_26 {dimension_numbers = #tpu.dot_dimension_numbers<[1], [0], [0], [1], [0, 0, 1, 1], [], []>} : vector<8x64xbf16>, vector<64x64xbf16>, vector<8x64xf32> -> vector<8x64xf32>
      %31 = arith.addf %23, %30 : vector<8x64xf32>
      %c0_27 = arith.constant 0 : index
      %32 = arith.index_cast %24 : i32 to index
      %c1_28 = arith.constant 1 : index
      %c0_29 = arith.constant 0 : index
      %33 = vector.load %arg1[%c0_27, %32, %c1_28, %c0_29] : memref<1x10x10x64xbf16, #tpu.memory_space<vmem>>, vector<1x1x8x64xbf16>
      %34 = vector.shape_cast %33 : vector<1x1x8x64xbf16> to vector<8x64xbf16>
      %c4 = arith.constant 4 : index
      %c0_30 = arith.constant 0 : index
      %c0_31 = arith.constant 0 : index
      %35 = vector.load %arg2[%c4, %c0_30, %c0_31] : memref<9x64x64xbf16, #tpu.memory_space<vmem>>, vector<1x64x64xbf16>
      %36 = vector.shape_cast %35 : vector<1x64x64xbf16> to vector<64x64xbf16>
      %cst_32 = arith.constant dense<0.000000e+00> : vector<8x64xf32>
      %37 = tpu.matmul %34, %36, %cst_32 {dimension_numbers = #tpu.dot_dimension_numbers<[1], [0], [0], [1], [0, 0, 1, 1], [], []>} : vector<8x64xbf16>, vector<64x64xbf16>, vector<8x64xf32> -> vector<8x64xf32>
      %38 = arith.addf %31, %37 : vector<8x64xf32>
      %c0_33 = arith.constant 0 : index
      %39 = arith.index_cast %24 : i32 to index
      %c2_34 = arith.constant 2 : index
      %c0_35 = arith.constant 0 : index
      %40 = vector.load %arg1[%c0_33, %39, %c2_34, %c0_35] : memref<1x10x10x64xbf16, #tpu.memory_space<vmem>>, vector<1x1x8x64xbf16>
      %41 = vector.shape_cast %40 : vector<1x1x8x64xbf16> to vector<8x64xbf16>
      %c5 = arith.constant 5 : index
      %c0_36 = arith.constant 0 : index
      %c0_37 = arith.constant 0 : index
      %42 = vector.load %arg2[%c5, %c0_36, %c0_37] : memref<9x64x64xbf16, #tpu.memory_space<vmem>>, vector<1x64x64xbf16>
      %43 = vector.shape_cast %42 : vector<1x64x64xbf16> to vector<64x64xbf16>
      %cst_38 = arith.constant dense<0.000000e+00> : vector<8x64xf32>
      %44 = tpu.matmul %41, %43, %cst_38 {dimension_numbers = #tpu.dot_dimension_numbers<[1], [0], [0], [1], [0, 0, 1, 1], [], []>} : vector<8x64xbf16>, vector<64x64xbf16>, vector<8x64xf32> -> vector<8x64xf32>
      %45 = arith.addf %38, %44 : vector<8x64xf32>
      %c2_i32 = arith.constant 2 : i32
      %46 = arith.addi %arg6, %c2_i32 : i32
      %c0_39 = arith.constant 0 : index
      %47 = arith.index_cast %46 : i32 to index
      %c0_40 = arith.constant 0 : index
      %c0_41 = arith.constant 0 : index
      %48 = vector.load %arg1[%c0_39, %47, %c0_40, %c0_41] : memref<1x10x10x64xbf16, #tpu.memory_space<vmem>>, vector<1x1x8x64xbf16>
      %49 = vector.shape_cast %48 : vector<1x1x8x64xbf16> to vector<8x64xbf16>
      %c6 = arith.constant 6 : index
      %c0_42 = arith.constant 0 : index
      %c0_43 = arith.constant 0 : index
      %50 = vector.load %arg2[%c6, %c0_42, %c0_43] : memref<9x64x64xbf16, #tpu.memory_space<vmem>>, vector<1x64x64xbf16>
      %51 = vector.shape_cast %50 : vector<1x64x64xbf16> to vector<64x64xbf16>
      %cst_44 = arith.constant dense<0.000000e+00> : vector<8x64xf32>
      %52 = tpu.matmul %49, %51, %cst_44 {dimension_numbers = #tpu.dot_dimension_numbers<[1], [0], [0], [1], [0, 0, 1, 1], [], []>} : vector<8x64xbf16>, vector<64x64xbf16>, vector<8x64xf32> -> vector<8x64xf32>
      %53 = arith.addf %45, %52 : vector<8x64xf32>
      %c0_45 = arith.constant 0 : index
      %54 = arith.index_cast %46 : i32 to index
      %c1_46 = arith.constant 1 : index
      %c0_47 = arith.constant 0 : index
      %55 = vector.load %arg1[%c0_45, %54, %c1_46, %c0_47] : memref<1x10x10x64xbf16, #tpu.memory_space<vmem>>, vector<1x1x8x64xbf16>
      %56 = vector.shape_cast %55 : vector<1x1x8x64xbf16> to vector<8x64xbf16>
      %c7 = arith.constant 7 : index
      %c0_48 = arith.constant 0 : index
      %c0_49 = arith.constant 0 : index
      %57 = vector.load %arg2[%c7, %c0_48, %c0_49] : memref<9x64x64xbf16, #tpu.memory_space<vmem>>, vector<1x64x64xbf16>
      %58 = vector.shape_cast %57 : vector<1x64x64xbf16> to vector<64x64xbf16>
      %cst_50 = arith.constant dense<0.000000e+00> : vector<8x64xf32>
      %59 = tpu.matmul %56, %58, %cst_50 {dimension_numbers = #tpu.dot_dimension_numbers<[1], [0], [0], [1], [0, 0, 1, 1], [], []>} : vector<8x64xbf16>, vector<64x64xbf16>, vector<8x64xf32> -> vector<8x64xf32>
      %60 = arith.addf %53, %59 : vector<8x64xf32>
      %c0_51 = arith.constant 0 : index
      %61 = arith.index_cast %46 : i32 to index
      %c2_52 = arith.constant 2 : index
      %c0_53 = arith.constant 0 : index
      %62 = vector.load %arg1[%c0_51, %61, %c2_52, %c0_53] : memref<1x10x10x64xbf16, #tpu.memory_space<vmem>>, vector<1x1x8x64xbf16>
      %63 = vector.shape_cast %62 : vector<1x1x8x64xbf16> to vector<8x64xbf16>
      %c8 = arith.constant 8 : index
      %c0_54 = arith.constant 0 : index
      %c0_55 = arith.constant 0 : index
      %64 = vector.load %arg2[%c8, %c0_54, %c0_55] : memref<9x64x64xbf16, #tpu.memory_space<vmem>>, vector<1x64x64xbf16>
      %65 = vector.shape_cast %64 : vector<1x64x64xbf16> to vector<64x64xbf16>
      %cst_56 = arith.constant dense<0.000000e+00> : vector<8x64xf32>
      %66 = tpu.matmul %63, %65, %cst_56 {dimension_numbers = #tpu.dot_dimension_numbers<[1], [0], [0], [1], [0, 0, 1, 1], [], []>} : vector<8x64xbf16>, vector<64x64xbf16>, vector<8x64xf32> -> vector<8x64xf32>
      %67 = arith.addf %60, %66 : vector<8x64xf32>
      %c0_57 = arith.constant 0 : index
      %c0_58 = arith.constant 0 : index
      %68 = vector.load %arg3[%c0_57, %c0_58] : memref<1x64xf32, #tpu.memory_space<vmem>>, vector<1x64xf32>
      %69 = vector.broadcast %68 : vector<1x64xf32> to vector<8x64xf32>
      %70 = arith.addf %67, %69 : vector<8x64xf32>
      %c0_59 = arith.constant 0 : index
      %71 = arith.index_cast %arg6 : i32 to index
      %c0_60 = arith.constant 0 : index
      %c0_61 = arith.constant 0 : index
      %72 = vector.load %arg4[%c0_59, %71, %c0_60, %c0_61] : memref<1x8x8x64xbf16, #tpu.memory_space<vmem>>, vector<1x1x8x64xbf16>
      %73 = vector.shape_cast %72 : vector<1x1x8x64xbf16> to vector<8x64xbf16>
      %74 = arith.extf %73 : vector<8x64xbf16> to vector<8x64xf32>
      %75 = arith.addf %70, %74 : vector<8x64xf32>
      %cst_62 = arith.constant 0.000000e+00 : f32
      %76 = vector.broadcast %cst_62 : f32 to vector<8x64xf32>
      %77 = arith.maximumf %75, %76 : vector<8x64xf32>
      %78 = arith.truncf %77 : vector<8x64xf32> to vector<8x64xbf16>
      %c0_63 = arith.constant 0 : index
      %79 = arith.index_cast %arg6 : i32 to index
      %c0_64 = arith.constant 0 : index
      %c0_65 = arith.constant 0 : index
      %80 = vector.load %arg5[%c0_63, %79, %c0_64, %c0_65] : memref<1x8x8x64xbf16, #tpu.memory_space<vmem>>, vector<1x1x8x64xbf16>
      %81 = vector.shape_cast %80 : vector<1x1x8x64xbf16> to vector<8x64xbf16>
      %82 = vector.shape_cast %78 : vector<8x64xbf16> to vector<1x1x8x64xbf16>
      tpu.vector_store %arg5[%c0_63, %79, %c0_64, %c0_65], %82 {strides = array<i32>} : memref<1x8x8x64xbf16, #tpu.memory_space<vmem>>, vector<1x1x8x64xbf16>,
    }
    %c8_i32_0 = arith.constant 8 : i32
    return
  }
  func.func @transform_0(%arg0: i32) -> (i32, i32, i32, i32) {
    %c0_i32 = arith.constant 0 : i32
    %c0_i32_0 = arith.constant 0 : i32
    %c0_i32_1 = arith.constant 0 : i32
    %c0_i32_2 = arith.constant 0 : i32
    return %arg0, %c0_i32, %c0_i32_0, %c0_i32_1 : i32, i32, i32, i32
  }
  func.func @transform_1(%arg0: i32) -> (i32, i32, i32) {
    %c0_i32 = arith.constant 0 : i32
    %c0_i32_0 = arith.constant 0 : i32
    %c0_i32_1 = arith.constant 0 : i32
    %c0_i32_2 = arith.constant 0 : i32
    return %c0_i32, %c0_i32_0, %c0_i32_1 : i32, i32, i32
  }
  func.func @transform_2(%arg0: i32) -> (i32, i32) {
    %c0_i32 = arith.constant 0 : i32
    %c0_i32_0 = arith.constant 0 : i32
    %c0_i32_1 = arith.constant 0 : i32
    return %c0_i32, %c0_i32_0 : i32, i32
  }
  func.func @transform_3(%arg0: i32) -> (i32, i32, i32, i32) {
    %c0_i32 = arith.constant 0 : i32
    %c0_i32_0 = arith.constant 0 : i32
    %c0_i32_1 = arith.constant 0 : i32
    %c0_i32_2 = arith.constant 0 : i32
    return %arg0, %c0_i32, %c0_i32_0, %c0_i32_1 : i32, i32, i32, i32
  }
  func.func @transform_4(%arg0: i32) -> (i32, i32, i32, i32) {
    %c0_i32 = arith.constant 0 : i32
    %c0_i32_0 = arith.constant 0 : i32
    %c0_i32_1 = arith.constant 0 : i32
    %c0_i32_2 = arith.constant 0 : i32
    return %arg0, %c0_i32, %c0_i32_0, %c0_i32_1 : i32, i32, i32, i32
  }
}

module attributes {stable_mosaic.version = 11 : i64} {
  func.func @_conv_bn_kernel(%arg0: i32, %arg1: memref<4x5x5x64xbf16, #tpu.memory_space<vmem>>, %arg2: memref<9x64x128xbf16, #tpu.memory_space<vmem>>, %arg3: memref<1x128xf32, #tpu.memory_space<vmem>>, %arg4: memref<1x4x4x128xbf16, #tpu.memory_space<vmem>>) attributes {dimension_semantics = [#tpu.dimension_semantics<parallel>], iteration_bounds = array<i64: 2>, scalar_prefetch = 0 : i64, scratch_operands = 0 : i64, tpu.core_type = #tpu.core_type<tc>, window_params = [{transform_indices = @transform_0, window_bounds = array<i64: 4, 5, 5, 64>}, {pipeline_mode = #tpu.pipeline_mode<synchronous>, transform_indices = @transform_1, window_bounds = array<i64: 9, 64, 128>}, {pipeline_mode = #tpu.pipeline_mode<synchronous>, transform_indices = @transform_2, window_bounds = array<i64: 1, 128>}, {transform_indices = @transform_3, window_bounds = array<i64: 1, 4, 4, 128>}]} {
    %c0_i32 = arith.constant 0 : i32
    %c4_i32 = arith.constant 4 : i32
    %0 = arith.addi %c0_i32, %c4_i32 : i32
    %c1_i32 = arith.constant 1 : i32
    scf.for %arg5 = %c0_i32 to %0 step %c1_i32  : i32 {
      %cst = arith.constant 0.000000e+00 : f32
      %1 = vector.broadcast %cst : f32 to vector<4x128xf32>
      %c0_i32_1 = arith.constant 0 : i32
      %2 = arith.addi %arg5, %c0_i32_1 : i32
      %c0 = arith.constant 0 : index
      %3 = arith.index_cast %2 : i32 to index
      %c0_2 = arith.constant 0 : index
      %c0_3 = arith.constant 0 : index
      %4 = vector.load %arg1[%c0, %3, %c0_2, %c0_3] : memref<4x5x5x64xbf16, #tpu.memory_space<vmem>>, vector<1x1x4x64xbf16>
      %5 = vector.shape_cast %4 : vector<1x1x4x64xbf16> to vector<4x64xbf16>
      %c0_4 = arith.constant 0 : index
      %c0_5 = arith.constant 0 : index
      %c0_6 = arith.constant 0 : index
      %6 = vector.load %arg2[%c0_4, %c0_5, %c0_6] : memref<9x64x128xbf16, #tpu.memory_space<vmem>>, vector<1x64x128xbf16>
      %7 = vector.shape_cast %6 : vector<1x64x128xbf16> to vector<64x128xbf16>
      %cst_7 = arith.constant dense<0.000000e+00> : vector<4x128xf32>
      %8 = tpu.matmul %5, %7, %cst_7 {dimension_numbers = #tpu.dot_dimension_numbers<[1], [0], [0], [1], [0, 0, 1, 1], [], []>} : vector<4x64xbf16>, vector<64x128xbf16>, vector<4x128xf32> -> vector<4x128xf32>
      %9 = arith.addf %1, %8 : vector<4x128xf32>
      %c1 = arith.constant 1 : index
      %10 = arith.index_cast %2 : i32 to index
      %c0_8 = arith.constant 0 : index
      %c0_9 = arith.constant 0 : index
      %11 = vector.load %arg1[%c1, %10, %c0_8, %c0_9] : memref<4x5x5x64xbf16, #tpu.memory_space<vmem>>, vector<1x1x4x64xbf16>
      %12 = vector.shape_cast %11 : vector<1x1x4x64xbf16> to vector<4x64xbf16>
      %c1_10 = arith.constant 1 : index
      %c0_11 = arith.constant 0 : index
      %c0_12 = arith.constant 0 : index
      %13 = vector.load %arg2[%c1_10, %c0_11, %c0_12] : memref<9x64x128xbf16, #tpu.memory_space<vmem>>, vector<1x64x128xbf16>
      %14 = vector.shape_cast %13 : vector<1x64x128xbf16> to vector<64x128xbf16>
      %cst_13 = arith.constant dense<0.000000e+00> : vector<4x128xf32>
      %15 = tpu.matmul %12, %14, %cst_13 {dimension_numbers = #tpu.dot_dimension_numbers<[1], [0], [0], [1], [0, 0, 1, 1], [], []>} : vector<4x64xbf16>, vector<64x128xbf16>, vector<4x128xf32> -> vector<4x128xf32>
      %16 = arith.addf %9, %15 : vector<4x128xf32>
      %c0_14 = arith.constant 0 : index
      %17 = arith.index_cast %2 : i32 to index
      %c1_15 = arith.constant 1 : index
      %c0_16 = arith.constant 0 : index
      %18 = vector.load %arg1[%c0_14, %17, %c1_15, %c0_16] : memref<4x5x5x64xbf16, #tpu.memory_space<vmem>>, vector<1x1x4x64xbf16>
      %19 = vector.shape_cast %18 : vector<1x1x4x64xbf16> to vector<4x64xbf16>
      %c2 = arith.constant 2 : index
      %c0_17 = arith.constant 0 : index
      %c0_18 = arith.constant 0 : index
      %20 = vector.load %arg2[%c2, %c0_17, %c0_18] : memref<9x64x128xbf16, #tpu.memory_space<vmem>>, vector<1x64x128xbf16>
      %21 = vector.shape_cast %20 : vector<1x64x128xbf16> to vector<64x128xbf16>
      %cst_19 = arith.constant dense<0.000000e+00> : vector<4x128xf32>
      %22 = tpu.matmul %19, %21, %cst_19 {dimension_numbers = #tpu.dot_dimension_numbers<[1], [0], [0], [1], [0, 0, 1, 1], [], []>} : vector<4x64xbf16>, vector<64x128xbf16>, vector<4x128xf32> -> vector<4x128xf32>
      %23 = arith.addf %16, %22 : vector<4x128xf32>
      %c0_i32_20 = arith.constant 0 : i32
      %24 = arith.addi %arg5, %c0_i32_20 : i32
      %c2_21 = arith.constant 2 : index
      %25 = arith.index_cast %24 : i32 to index
      %c0_22 = arith.constant 0 : index
      %c0_23 = arith.constant 0 : index
      %26 = vector.load %arg1[%c2_21, %25, %c0_22, %c0_23] : memref<4x5x5x64xbf16, #tpu.memory_space<vmem>>, vector<1x1x4x64xbf16>
      %27 = vector.shape_cast %26 : vector<1x1x4x64xbf16> to vector<4x64xbf16>
      %c3 = arith.constant 3 : index
      %c0_24 = arith.constant 0 : index
      %c0_25 = arith.constant 0 : index
      %28 = vector.load %arg2[%c3, %c0_24, %c0_25] : memref<9x64x128xbf16, #tpu.memory_space<vmem>>, vector<1x64x128xbf16>
      %29 = vector.shape_cast %28 : vector<1x64x128xbf16> to vector<64x128xbf16>
      %cst_26 = arith.constant dense<0.000000e+00> : vector<4x128xf32>
      %30 = tpu.matmul %27, %29, %cst_26 {dimension_numbers = #tpu.dot_dimension_numbers<[1], [0], [0], [1], [0, 0, 1, 1], [], []>} : vector<4x64xbf16>, vector<64x128xbf16>, vector<4x128xf32> -> vector<4x128xf32>
      %31 = arith.addf %23, %30 : vector<4x128xf32>
      %c3_27 = arith.constant 3 : index
      %32 = arith.index_cast %24 : i32 to index
      %c0_28 = arith.constant 0 : index
      %c0_29 = arith.constant 0 : index
      %33 = vector.load %arg1[%c3_27, %32, %c0_28, %c0_29] : memref<4x5x5x64xbf16, #tpu.memory_space<vmem>>, vector<1x1x4x64xbf16>
      %34 = vector.shape_cast %33 : vector<1x1x4x64xbf16> to vector<4x64xbf16>
      %c4 = arith.constant 4 : index
      %c0_30 = arith.constant 0 : index
      %c0_31 = arith.constant 0 : index
      %35 = vector.load %arg2[%c4, %c0_30, %c0_31] : memref<9x64x128xbf16, #tpu.memory_space<vmem>>, vector<1x64x128xbf16>
      %36 = vector.shape_cast %35 : vector<1x64x128xbf16> to vector<64x128xbf16>
      %cst_32 = arith.constant dense<0.000000e+00> : vector<4x128xf32>
      %37 = tpu.matmul %34, %36, %cst_32 {dimension_numbers = #tpu.dot_dimension_numbers<[1], [0], [0], [1], [0, 0, 1, 1], [], []>} : vector<4x64xbf16>, vector<64x128xbf16>, vector<4x128xf32> -> vector<4x128xf32>
      %38 = arith.addf %31, %37 : vector<4x128xf32>
      %c2_33 = arith.constant 2 : index
      %39 = arith.index_cast %24 : i32 to index
      %c1_34 = arith.constant 1 : index
      %c0_35 = arith.constant 0 : index
      %40 = vector.load %arg1[%c2_33, %39, %c1_34, %c0_35] : memref<4x5x5x64xbf16, #tpu.memory_space<vmem>>, vector<1x1x4x64xbf16>
      %41 = vector.shape_cast %40 : vector<1x1x4x64xbf16> to vector<4x64xbf16>
      %c5 = arith.constant 5 : index
      %c0_36 = arith.constant 0 : index
      %c0_37 = arith.constant 0 : index
      %42 = vector.load %arg2[%c5, %c0_36, %c0_37] : memref<9x64x128xbf16, #tpu.memory_space<vmem>>, vector<1x64x128xbf16>
      %43 = vector.shape_cast %42 : vector<1x64x128xbf16> to vector<64x128xbf16>
      %cst_38 = arith.constant dense<0.000000e+00> : vector<4x128xf32>
      %44 = tpu.matmul %41, %43, %cst_38 {dimension_numbers = #tpu.dot_dimension_numbers<[1], [0], [0], [1], [0, 0, 1, 1], [], []>} : vector<4x64xbf16>, vector<64x128xbf16>, vector<4x128xf32> -> vector<4x128xf32>
      %45 = arith.addf %38, %44 : vector<4x128xf32>
      %c1_i32_39 = arith.constant 1 : i32
      %46 = arith.addi %arg5, %c1_i32_39 : i32
      %c0_40 = arith.constant 0 : index
      %47 = arith.index_cast %46 : i32 to index
      %c0_41 = arith.constant 0 : index
      %c0_42 = arith.constant 0 : index
      %48 = vector.load %arg1[%c0_40, %47, %c0_41, %c0_42] : memref<4x5x5x64xbf16, #tpu.memory_space<vmem>>, vector<1x1x4x64xbf16>
      %49 = vector.shape_cast %48 : vector<1x1x4x64xbf16> to vector<4x64xbf16>
      %c6 = arith.constant 6 : index
      %c0_43 = arith.constant 0 : index
      %c0_44 = arith.constant 0 : index
      %50 = vector.load %arg2[%c6, %c0_43, %c0_44] : memref<9x64x128xbf16, #tpu.memory_space<vmem>>, vector<1x64x128xbf16>
      %51 = vector.shape_cast %50 : vector<1x64x128xbf16> to vector<64x128xbf16>
      %cst_45 = arith.constant dense<0.000000e+00> : vector<4x128xf32>
      %52 = tpu.matmul %49, %51, %cst_45 {dimension_numbers = #tpu.dot_dimension_numbers<[1], [0], [0], [1], [0, 0, 1, 1], [], []>} : vector<4x64xbf16>, vector<64x128xbf16>, vector<4x128xf32> -> vector<4x128xf32>
      %53 = arith.addf %45, %52 : vector<4x128xf32>
      %c1_46 = arith.constant 1 : index
      %54 = arith.index_cast %46 : i32 to index
      %c0_47 = arith.constant 0 : index
      %c0_48 = arith.constant 0 : index
      %55 = vector.load %arg1[%c1_46, %54, %c0_47, %c0_48] : memref<4x5x5x64xbf16, #tpu.memory_space<vmem>>, vector<1x1x4x64xbf16>
      %56 = vector.shape_cast %55 : vector<1x1x4x64xbf16> to vector<4x64xbf16>
      %c7 = arith.constant 7 : index
      %c0_49 = arith.constant 0 : index
      %c0_50 = arith.constant 0 : index
      %57 = vector.load %arg2[%c7, %c0_49, %c0_50] : memref<9x64x128xbf16, #tpu.memory_space<vmem>>, vector<1x64x128xbf16>
      %58 = vector.shape_cast %57 : vector<1x64x128xbf16> to vector<64x128xbf16>
      %cst_51 = arith.constant dense<0.000000e+00> : vector<4x128xf32>
      %59 = tpu.matmul %56, %58, %cst_51 {dimension_numbers = #tpu.dot_dimension_numbers<[1], [0], [0], [1], [0, 0, 1, 1], [], []>} : vector<4x64xbf16>, vector<64x128xbf16>, vector<4x128xf32> -> vector<4x128xf32>
      %60 = arith.addf %53, %59 : vector<4x128xf32>
      %c0_52 = arith.constant 0 : index
      %61 = arith.index_cast %46 : i32 to index
      %c1_53 = arith.constant 1 : index
      %c0_54 = arith.constant 0 : index
      %62 = vector.load %arg1[%c0_52, %61, %c1_53, %c0_54] : memref<4x5x5x64xbf16, #tpu.memory_space<vmem>>, vector<1x1x4x64xbf16>
      %63 = vector.shape_cast %62 : vector<1x1x4x64xbf16> to vector<4x64xbf16>
      %c8 = arith.constant 8 : index
      %c0_55 = arith.constant 0 : index
      %c0_56 = arith.constant 0 : index
      %64 = vector.load %arg2[%c8, %c0_55, %c0_56] : memref<9x64x128xbf16, #tpu.memory_space<vmem>>, vector<1x64x128xbf16>
      %65 = vector.shape_cast %64 : vector<1x64x128xbf16> to vector<64x128xbf16>
      %cst_57 = arith.constant dense<0.000000e+00> : vector<4x128xf32>
      %66 = tpu.matmul %63, %65, %cst_57 {dimension_numbers = #tpu.dot_dimension_numbers<[1], [0], [0], [1], [0, 0, 1, 1], [], []>} : vector<4x64xbf16>, vector<64x128xbf16>, vector<4x128xf32> -> vector<4x128xf32>
      %67 = arith.addf %60, %66 : vector<4x128xf32>
      %c0_58 = arith.constant 0 : index
      %c0_59 = arith.constant 0 : index
      %68 = vector.load %arg3[%c0_58, %c0_59] : memref<1x128xf32, #tpu.memory_space<vmem>>, vector<1x128xf32>
      %69 = vector.broadcast %68 : vector<1x128xf32> to vector<4x128xf32>
      %70 = arith.addf %67, %69 : vector<4x128xf32>
      %cst_60 = arith.constant 0.000000e+00 : f32
      %71 = vector.broadcast %cst_60 : f32 to vector<4x128xf32>
      %72 = arith.maximumf %70, %71 : vector<4x128xf32>
      %73 = arith.truncf %72 : vector<4x128xf32> to vector<4x128xbf16>
      %c0_61 = arith.constant 0 : index
      %74 = arith.index_cast %arg5 : i32 to index
      %c0_62 = arith.constant 0 : index
      %c0_63 = arith.constant 0 : index
      %75 = vector.load %arg4[%c0_61, %74, %c0_62, %c0_63] : memref<1x4x4x128xbf16, #tpu.memory_space<vmem>>, vector<1x1x4x128xbf16>
      %76 = vector.shape_cast %75 : vector<1x1x4x128xbf16> to vector<4x128xbf16>
      %77 = vector.shape_cast %73 : vector<4x128xbf16> to vector<1x1x4x128xbf16>
      tpu.vector_store %arg4[%c0_61, %74, %c0_62, %c0_63], %77 {strides = array<i32>} : memref<1x4x4x128xbf16, #tpu.memory_space<vmem>>, vector<1x1x4x128xbf16>,
    }
    %c4_i32_0 = arith.constant 4 : i32
    return
  }
  func.func @transform_0(%arg0: i32) -> (i32, i32, i32, i32) {
    %c0_i32 = arith.constant 0 : i32
    %c0_i32_0 = arith.constant 0 : i32
    %c0_i32_1 = arith.constant 0 : i32
    %c0_i32_2 = arith.constant 0 : i32
    return %arg0, %c0_i32, %c0_i32_0, %c0_i32_1 : i32, i32, i32, i32
  }
  func.func @transform_1(%arg0: i32) -> (i32, i32, i32) {
    %c0_i32 = arith.constant 0 : i32
    %c0_i32_0 = arith.constant 0 : i32
    %c0_i32_1 = arith.constant 0 : i32
    %c0_i32_2 = arith.constant 0 : i32
    return %c0_i32, %c0_i32_0, %c0_i32_1 : i32, i32, i32
  }
  func.func @transform_2(%arg0: i32) -> (i32, i32) {
    %c0_i32 = arith.constant 0 : i32
    %c0_i32_0 = arith.constant 0 : i32
    %c0_i32_1 = arith.constant 0 : i32
    return %c0_i32, %c0_i32_0 : i32, i32
  }
  func.func @transform_3(%arg0: i32) -> (i32, i32, i32, i32) {
    %c0_i32 = arith.constant 0 : i32
    %c0_i32_0 = arith.constant 0 : i32
    %c0_i32_1 = arith.constant 0 : i32
    %c0_i32_2 = arith.constant 0 : i32
    return %arg0, %c0_i32, %c0_i32_0, %c0_i32_1 : i32, i32, i32, i32
  }
}

module attributes {stable_mosaic.version = 11 : i64} {
  func.func @_conv_bn_res_kernel(%arg0: i32, %arg1: memref<1x6x6x128xbf16, #tpu.memory_space<vmem>>, %arg2: memref<9x128x128xbf16, #tpu.memory_space<vmem>>, %arg3: memref<1x128xf32, #tpu.memory_space<vmem>>, %arg4: memref<1x4x4x128xbf16, #tpu.memory_space<vmem>>, %arg5: memref<1x4x4x128xbf16, #tpu.memory_space<vmem>>) attributes {dimension_semantics = [#tpu.dimension_semantics<parallel>], iteration_bounds = array<i64: 2>, scalar_prefetch = 0 : i64, scratch_operands = 0 : i64, tpu.core_type = #tpu.core_type<tc>, window_params = [{transform_indices = @transform_0, window_bounds = array<i64: 1, 6, 6, 128>}, {pipeline_mode = #tpu.pipeline_mode<synchronous>, transform_indices = @transform_1, window_bounds = array<i64: 9, 128, 128>}, {pipeline_mode = #tpu.pipeline_mode<synchronous>, transform_indices = @transform_2, window_bounds = array<i64: 1, 128>}, {transform_indices = @transform_3, window_bounds = array<i64: 1, 4, 4, 128>}, {transform_indices = @transform_4, window_bounds = array<i64: 1, 4, 4, 128>}]} {
    %c0_i32 = arith.constant 0 : i32
    %c4_i32 = arith.constant 4 : i32
    %0 = arith.addi %c0_i32, %c4_i32 : i32
    %c1_i32 = arith.constant 1 : i32
    scf.for %arg6 = %c0_i32 to %0 step %c1_i32  : i32 {
      %cst = arith.constant 0.000000e+00 : f32
      %1 = vector.broadcast %cst : f32 to vector<4x128xf32>
      %c0_i32_1 = arith.constant 0 : i32
      %2 = arith.addi %arg6, %c0_i32_1 : i32
      %c0 = arith.constant 0 : index
      %3 = arith.index_cast %2 : i32 to index
      %c0_2 = arith.constant 0 : index
      %c0_3 = arith.constant 0 : index
      %4 = vector.load %arg1[%c0, %3, %c0_2, %c0_3] : memref<1x6x6x128xbf16, #tpu.memory_space<vmem>>, vector<1x1x4x128xbf16>
      %5 = vector.shape_cast %4 : vector<1x1x4x128xbf16> to vector<4x128xbf16>
      %c0_4 = arith.constant 0 : index
      %c0_5 = arith.constant 0 : index
      %c0_6 = arith.constant 0 : index
      %6 = vector.load %arg2[%c0_4, %c0_5, %c0_6] : memref<9x128x128xbf16, #tpu.memory_space<vmem>>, vector<1x128x128xbf16>
      %7 = vector.shape_cast %6 : vector<1x128x128xbf16> to vector<128x128xbf16>
      %cst_7 = arith.constant dense<0.000000e+00> : vector<4x128xf32>
      %8 = tpu.matmul %5, %7, %cst_7 {dimension_numbers = #tpu.dot_dimension_numbers<[1], [0], [0], [1], [0, 0, 1, 1], [], []>} : vector<4x128xbf16>, vector<128x128xbf16>, vector<4x128xf32> -> vector<4x128xf32>
      %9 = arith.addf %1, %8 : vector<4x128xf32>
      %c0_8 = arith.constant 0 : index
      %10 = arith.index_cast %2 : i32 to index
      %c1 = arith.constant 1 : index
      %c0_9 = arith.constant 0 : index
      %11 = vector.load %arg1[%c0_8, %10, %c1, %c0_9] : memref<1x6x6x128xbf16, #tpu.memory_space<vmem>>, vector<1x1x4x128xbf16>
      %12 = vector.shape_cast %11 : vector<1x1x4x128xbf16> to vector<4x128xbf16>
      %c1_10 = arith.constant 1 : index
      %c0_11 = arith.constant 0 : index
      %c0_12 = arith.constant 0 : index
      %13 = vector.load %arg2[%c1_10, %c0_11, %c0_12] : memref<9x128x128xbf16, #tpu.memory_space<vmem>>, vector<1x128x128xbf16>
      %14 = vector.shape_cast %13 : vector<1x128x128xbf16> to vector<128x128xbf16>
      %cst_13 = arith.constant dense<0.000000e+00> : vector<4x128xf32>
      %15 = tpu.matmul %12, %14, %cst_13 {dimension_numbers = #tpu.dot_dimension_numbers<[1], [0], [0], [1], [0, 0, 1, 1], [], []>} : vector<4x128xbf16>, vector<128x128xbf16>, vector<4x128xf32> -> vector<4x128xf32>
      %16 = arith.addf %9, %15 : vector<4x128xf32>
      %c0_14 = arith.constant 0 : index
      %17 = arith.index_cast %2 : i32 to index
      %c2 = arith.constant 2 : index
      %c0_15 = arith.constant 0 : index
      %18 = vector.load %arg1[%c0_14, %17, %c2, %c0_15] : memref<1x6x6x128xbf16, #tpu.memory_space<vmem>>, vector<1x1x4x128xbf16>
      %19 = vector.shape_cast %18 : vector<1x1x4x128xbf16> to vector<4x128xbf16>
      %c2_16 = arith.constant 2 : index
      %c0_17 = arith.constant 0 : index
      %c0_18 = arith.constant 0 : index
      %20 = vector.load %arg2[%c2_16, %c0_17, %c0_18] : memref<9x128x128xbf16, #tpu.memory_space<vmem>>, vector<1x128x128xbf16>
      %21 = vector.shape_cast %20 : vector<1x128x128xbf16> to vector<128x128xbf16>
      %cst_19 = arith.constant dense<0.000000e+00> : vector<4x128xf32>
      %22 = tpu.matmul %19, %21, %cst_19 {dimension_numbers = #tpu.dot_dimension_numbers<[1], [0], [0], [1], [0, 0, 1, 1], [], []>} : vector<4x128xbf16>, vector<128x128xbf16>, vector<4x128xf32> -> vector<4x128xf32>
      %23 = arith.addf %16, %22 : vector<4x128xf32>
      %c1_i32_20 = arith.constant 1 : i32
      %24 = arith.addi %arg6, %c1_i32_20 : i32
      %c0_21 = arith.constant 0 : index
      %25 = arith.index_cast %24 : i32 to index
      %c0_22 = arith.constant 0 : index
      %c0_23 = arith.constant 0 : index
      %26 = vector.load %arg1[%c0_21, %25, %c0_22, %c0_23] : memref<1x6x6x128xbf16, #tpu.memory_space<vmem>>, vector<1x1x4x128xbf16>
      %27 = vector.shape_cast %26 : vector<1x1x4x128xbf16> to vector<4x128xbf16>
      %c3 = arith.constant 3 : index
      %c0_24 = arith.constant 0 : index
      %c0_25 = arith.constant 0 : index
      %28 = vector.load %arg2[%c3, %c0_24, %c0_25] : memref<9x128x128xbf16, #tpu.memory_space<vmem>>, vector<1x128x128xbf16>
      %29 = vector.shape_cast %28 : vector<1x128x128xbf16> to vector<128x128xbf16>
      %cst_26 = arith.constant dense<0.000000e+00> : vector<4x128xf32>
      %30 = tpu.matmul %27, %29, %cst_26 {dimension_numbers = #tpu.dot_dimension_numbers<[1], [0], [0], [1], [0, 0, 1, 1], [], []>} : vector<4x128xbf16>, vector<128x128xbf16>, vector<4x128xf32> -> vector<4x128xf32>
      %31 = arith.addf %23, %30 : vector<4x128xf32>
      %c0_27 = arith.constant 0 : index
      %32 = arith.index_cast %24 : i32 to index
      %c1_28 = arith.constant 1 : index
      %c0_29 = arith.constant 0 : index
      %33 = vector.load %arg1[%c0_27, %32, %c1_28, %c0_29] : memref<1x6x6x128xbf16, #tpu.memory_space<vmem>>, vector<1x1x4x128xbf16>
      %34 = vector.shape_cast %33 : vector<1x1x4x128xbf16> to vector<4x128xbf16>
      %c4 = arith.constant 4 : index
      %c0_30 = arith.constant 0 : index
      %c0_31 = arith.constant 0 : index
      %35 = vector.load %arg2[%c4, %c0_30, %c0_31] : memref<9x128x128xbf16, #tpu.memory_space<vmem>>, vector<1x128x128xbf16>
      %36 = vector.shape_cast %35 : vector<1x128x128xbf16> to vector<128x128xbf16>
      %cst_32 = arith.constant dense<0.000000e+00> : vector<4x128xf32>
      %37 = tpu.matmul %34, %36, %cst_32 {dimension_numbers = #tpu.dot_dimension_numbers<[1], [0], [0], [1], [0, 0, 1, 1], [], []>} : vector<4x128xbf16>, vector<128x128xbf16>, vector<4x128xf32> -> vector<4x128xf32>
      %38 = arith.addf %31, %37 : vector<4x128xf32>
      %c0_33 = arith.constant 0 : index
      %39 = arith.index_cast %24 : i32 to index
      %c2_34 = arith.constant 2 : index
      %c0_35 = arith.constant 0 : index
      %40 = vector.load %arg1[%c0_33, %39, %c2_34, %c0_35] : memref<1x6x6x128xbf16, #tpu.memory_space<vmem>>, vector<1x1x4x128xbf16>
      %41 = vector.shape_cast %40 : vector<1x1x4x128xbf16> to vector<4x128xbf16>
      %c5 = arith.constant 5 : index
      %c0_36 = arith.constant 0 : index
      %c0_37 = arith.constant 0 : index
      %42 = vector.load %arg2[%c5, %c0_36, %c0_37] : memref<9x128x128xbf16, #tpu.memory_space<vmem>>, vector<1x128x128xbf16>
      %43 = vector.shape_cast %42 : vector<1x128x128xbf16> to vector<128x128xbf16>
      %cst_38 = arith.constant dense<0.000000e+00> : vector<4x128xf32>
      %44 = tpu.matmul %41, %43, %cst_38 {dimension_numbers = #tpu.dot_dimension_numbers<[1], [0], [0], [1], [0, 0, 1, 1], [], []>} : vector<4x128xbf16>, vector<128x128xbf16>, vector<4x128xf32> -> vector<4x128xf32>
      %45 = arith.addf %38, %44 : vector<4x128xf32>
      %c2_i32 = arith.constant 2 : i32
      %46 = arith.addi %arg6, %c2_i32 : i32
      %c0_39 = arith.constant 0 : index
      %47 = arith.index_cast %46 : i32 to index
      %c0_40 = arith.constant 0 : index
      %c0_41 = arith.constant 0 : index
      %48 = vector.load %arg1[%c0_39, %47, %c0_40, %c0_41] : memref<1x6x6x128xbf16, #tpu.memory_space<vmem>>, vector<1x1x4x128xbf16>
      %49 = vector.shape_cast %48 : vector<1x1x4x128xbf16> to vector<4x128xbf16>
      %c6 = arith.constant 6 : index
      %c0_42 = arith.constant 0 : index
      %c0_43 = arith.constant 0 : index
      %50 = vector.load %arg2[%c6, %c0_42, %c0_43] : memref<9x128x128xbf16, #tpu.memory_space<vmem>>, vector<1x128x128xbf16>
      %51 = vector.shape_cast %50 : vector<1x128x128xbf16> to vector<128x128xbf16>
      %cst_44 = arith.constant dense<0.000000e+00> : vector<4x128xf32>
      %52 = tpu.matmul %49, %51, %cst_44 {dimension_numbers = #tpu.dot_dimension_numbers<[1], [0], [0], [1], [0, 0, 1, 1], [], []>} : vector<4x128xbf16>, vector<128x128xbf16>, vector<4x128xf32> -> vector<4x128xf32>
      %53 = arith.addf %45, %52 : vector<4x128xf32>
      %c0_45 = arith.constant 0 : index
      %54 = arith.index_cast %46 : i32 to index
      %c1_46 = arith.constant 1 : index
      %c0_47 = arith.constant 0 : index
      %55 = vector.load %arg1[%c0_45, %54, %c1_46, %c0_47] : memref<1x6x6x128xbf16, #tpu.memory_space<vmem>>, vector<1x1x4x128xbf16>
      %56 = vector.shape_cast %55 : vector<1x1x4x128xbf16> to vector<4x128xbf16>
      %c7 = arith.constant 7 : index
      %c0_48 = arith.constant 0 : index
      %c0_49 = arith.constant 0 : index
      %57 = vector.load %arg2[%c7, %c0_48, %c0_49] : memref<9x128x128xbf16, #tpu.memory_space<vmem>>, vector<1x128x128xbf16>
      %58 = vector.shape_cast %57 : vector<1x128x128xbf16> to vector<128x128xbf16>
      %cst_50 = arith.constant dense<0.000000e+00> : vector<4x128xf32>
      %59 = tpu.matmul %56, %58, %cst_50 {dimension_numbers = #tpu.dot_dimension_numbers<[1], [0], [0], [1], [0, 0, 1, 1], [], []>} : vector<4x128xbf16>, vector<128x128xbf16>, vector<4x128xf32> -> vector<4x128xf32>
      %60 = arith.addf %53, %59 : vector<4x128xf32>
      %c0_51 = arith.constant 0 : index
      %61 = arith.index_cast %46 : i32 to index
      %c2_52 = arith.constant 2 : index
      %c0_53 = arith.constant 0 : index
      %62 = vector.load %arg1[%c0_51, %61, %c2_52, %c0_53] : memref<1x6x6x128xbf16, #tpu.memory_space<vmem>>, vector<1x1x4x128xbf16>
      %63 = vector.shape_cast %62 : vector<1x1x4x128xbf16> to vector<4x128xbf16>
      %c8 = arith.constant 8 : index
      %c0_54 = arith.constant 0 : index
      %c0_55 = arith.constant 0 : index
      %64 = vector.load %arg2[%c8, %c0_54, %c0_55] : memref<9x128x128xbf16, #tpu.memory_space<vmem>>, vector<1x128x128xbf16>
      %65 = vector.shape_cast %64 : vector<1x128x128xbf16> to vector<128x128xbf16>
      %cst_56 = arith.constant dense<0.000000e+00> : vector<4x128xf32>
      %66 = tpu.matmul %63, %65, %cst_56 {dimension_numbers = #tpu.dot_dimension_numbers<[1], [0], [0], [1], [0, 0, 1, 1], [], []>} : vector<4x128xbf16>, vector<128x128xbf16>, vector<4x128xf32> -> vector<4x128xf32>
      %67 = arith.addf %60, %66 : vector<4x128xf32>
      %c0_57 = arith.constant 0 : index
      %c0_58 = arith.constant 0 : index
      %68 = vector.load %arg3[%c0_57, %c0_58] : memref<1x128xf32, #tpu.memory_space<vmem>>, vector<1x128xf32>
      %69 = vector.broadcast %68 : vector<1x128xf32> to vector<4x128xf32>
      %70 = arith.addf %67, %69 : vector<4x128xf32>
      %c0_59 = arith.constant 0 : index
      %71 = arith.index_cast %arg6 : i32 to index
      %c0_60 = arith.constant 0 : index
      %c0_61 = arith.constant 0 : index
      %72 = vector.load %arg4[%c0_59, %71, %c0_60, %c0_61] : memref<1x4x4x128xbf16, #tpu.memory_space<vmem>>, vector<1x1x4x128xbf16>
      %73 = vector.shape_cast %72 : vector<1x1x4x128xbf16> to vector<4x128xbf16>
      %74 = arith.extf %73 : vector<4x128xbf16> to vector<4x128xf32>
      %75 = arith.addf %70, %74 : vector<4x128xf32>
      %cst_62 = arith.constant 0.000000e+00 : f32
      %76 = vector.broadcast %cst_62 : f32 to vector<4x128xf32>
      %77 = arith.maximumf %75, %76 : vector<4x128xf32>
      %78 = arith.truncf %77 : vector<4x128xf32> to vector<4x128xbf16>
      %c0_63 = arith.constant 0 : index
      %79 = arith.index_cast %arg6 : i32 to index
      %c0_64 = arith.constant 0 : index
      %c0_65 = arith.constant 0 : index
      %80 = vector.load %arg5[%c0_63, %79, %c0_64, %c0_65] : memref<1x4x4x128xbf16, #tpu.memory_space<vmem>>, vector<1x1x4x128xbf16>
      %81 = vector.shape_cast %80 : vector<1x1x4x128xbf16> to vector<4x128xbf16>
      %82 = vector.shape_cast %78 : vector<4x128xbf16> to vector<1x1x4x128xbf16>
      tpu.vector_store %arg5[%c0_63, %79, %c0_64, %c0_65], %82 {strides = array<i32>} : memref<1x4x4x128xbf16, #tpu.memory_space<vmem>>, vector<1x1x4x128xbf16>,
    }
    %c4_i32_0 = arith.constant 4 : i32
    return
  }
  func.func @transform_0(%arg0: i32) -> (i32, i32, i32, i32) {
    %c0_i32 = arith.constant 0 : i32
    %c0_i32_0 = arith.constant 0 : i32
    %c0_i32_1 = arith.constant 0 : i32
    %c0_i32_2 = arith.constant 0 : i32
    return %arg0, %c0_i32, %c0_i32_0, %c0_i32_1 : i32, i32, i32, i32
  }
  func.func @transform_1(%arg0: i32) -> (i32, i32, i32) {
    %c0_i32 = arith.constant 0 : i32
    %c0_i32_0 = arith.constant 0 : i32
    %c0_i32_1 = arith.constant 0 : i32
    %c0_i32_2 = arith.constant 0 : i32
    return %c0_i32, %c0_i32_0, %c0_i32_1 : i32, i32, i32
  }
  func.func @transform_2(%arg0: i32) -> (i32, i32) {
    %c0_i32 = arith.constant 0 : i32
    %c0_i32_0 = arith.constant 0 : i32
    %c0_i32_1 = arith.constant 0 : i32
    return %c0_i32, %c0_i32_0 : i32, i32
  }
  func.func @transform_3(%arg0: i32) -> (i32, i32, i32, i32) {
    %c0_i32 = arith.constant 0 : i32
    %c0_i32_0 = arith.constant 0 : i32
    %c0_i32_1 = arith.constant 0 : i32
    %c0_i32_2 = arith.constant 0 : i32
    return %arg0, %c0_i32, %c0_i32_0, %c0_i32_1 : i32, i32, i32, i32
  }
  func.func @transform_4(%arg0: i32) -> (i32, i32, i32, i32) {
    %c0_i32 = arith.constant 0 : i32
    %c0_i32_0 = arith.constant 0 : i32
    %c0_i32_1 = arith.constant 0 : i32
    %c0_i32_2 = arith.constant 0 : i32
    return %arg0, %c0_i32, %c0_i32_0, %c0_i32_1 : i32, i32, i32, i32
  }
}

module attributes {stable_mosaic.version = 11 : i64} {
  func.func @_conv_bn_kernel(%arg0: i32, %arg1: memref<4x4x4x64xbf16, #tpu.memory_space<vmem>>, %arg2: memref<1x64x128xbf16, #tpu.memory_space<vmem>>, %arg3: memref<1x128xf32, #tpu.memory_space<vmem>>, %arg4: memref<1x4x4x128xbf16, #tpu.memory_space<vmem>>) attributes {dimension_semantics = [#tpu.dimension_semantics<parallel>], iteration_bounds = array<i64: 2>, scalar_prefetch = 0 : i64, scratch_operands = 0 : i64, tpu.core_type = #tpu.core_type<tc>, window_params = [{transform_indices = @transform_0, window_bounds = array<i64: 4, 4, 4, 64>}, {pipeline_mode = #tpu.pipeline_mode<synchronous>, transform_indices = @transform_1, window_bounds = array<i64: 1, 64, 128>}, {pipeline_mode = #tpu.pipeline_mode<synchronous>, transform_indices = @transform_2, window_bounds = array<i64: 1, 128>}, {transform_indices = @transform_3, window_bounds = array<i64: 1, 4, 4, 128>}]} {
    %c0_i32 = arith.constant 0 : i32
    %c4_i32 = arith.constant 4 : i32
    %0 = arith.addi %c0_i32, %c4_i32 : i32
    %c1_i32 = arith.constant 1 : i32
    scf.for %arg5 = %c0_i32 to %0 step %c1_i32  : i32 {
      %cst = arith.constant 0.000000e+00 : f32
      %1 = vector.broadcast %cst : f32 to vector<4x128xf32>
      %c0_i32_1 = arith.constant 0 : i32
      %2 = arith.addi %arg5, %c0_i32_1 : i32
      %c0 = arith.constant 0 : index
      %3 = arith.index_cast %2 : i32 to index
      %c0_2 = arith.constant 0 : index
      %c0_3 = arith.constant 0 : index
      %4 = vector.load %arg1[%c0, %3, %c0_2, %c0_3] : memref<4x4x4x64xbf16, #tpu.memory_space<vmem>>, vector<1x1x4x64xbf16>
      %5 = vector.shape_cast %4 : vector<1x1x4x64xbf16> to vector<4x64xbf16>
      %c0_4 = arith.constant 0 : index
      %c0_5 = arith.constant 0 : index
      %c0_6 = arith.constant 0 : index
      %6 = vector.load %arg2[%c0_4, %c0_5, %c0_6] : memref<1x64x128xbf16, #tpu.memory_space<vmem>>, vector<1x64x128xbf16>
      %7 = vector.shape_cast %6 : vector<1x64x128xbf16> to vector<64x128xbf16>
      %cst_7 = arith.constant dense<0.000000e+00> : vector<4x128xf32>
      %8 = tpu.matmul %5, %7, %cst_7 {dimension_numbers = #tpu.dot_dimension_numbers<[1], [0], [0], [1], [0, 0, 1, 1], [], []>} : vector<4x64xbf16>, vector<64x128xbf16>, vector<4x128xf32> -> vector<4x128xf32>
      %9 = arith.addf %1, %8 : vector<4x128xf32>
      %c0_8 = arith.constant 0 : index
      %c0_9 = arith.constant 0 : index
      %10 = vector.load %arg3[%c0_8, %c0_9] : memref<1x128xf32, #tpu.memory_space<vmem>>, vector<1x128xf32>
      %11 = vector.broadcast %10 : vector<1x128xf32> to vector<4x128xf32>
      %12 = arith.addf %9, %11 : vector<4x128xf32>
      %13 = arith.truncf %12 : vector<4x128xf32> to vector<4x128xbf16>
      %c0_10 = arith.constant 0 : index
      %14 = arith.index_cast %arg5 : i32 to index
      %c0_11 = arith.constant 0 : index
      %c0_12 = arith.constant 0 : index
      %15 = vector.load %arg4[%c0_10, %14, %c0_11, %c0_12] : memref<1x4x4x128xbf16, #tpu.memory_space<vmem>>, vector<1x1x4x128xbf16>
      %16 = vector.shape_cast %15 : vector<1x1x4x128xbf16> to vector<4x128xbf16>
      %17 = vector.shape_cast %13 : vector<4x128xbf16> to vector<1x1x4x128xbf16>
      tpu.vector_store %arg4[%c0_10, %14, %c0_11, %c0_12], %17 {strides = array<i32>} : memref<1x4x4x128xbf16, #tpu.memory_space<vmem>>, vector<1x1x4x128xbf16>,
    }
    %c4_i32_0 = arith.constant 4 : i32
    return
  }
  func.func @transform_0(%arg0: i32) -> (i32, i32, i32, i32) {
    %c0_i32 = arith.constant 0 : i32
    %c0_i32_0 = arith.constant 0 : i32
    %c0_i32_1 = arith.constant 0 : i32
    %c0_i32_2 = arith.constant 0 : i32
    return %arg0, %c0_i32, %c0_i32_0, %c0_i32_1 : i32, i32, i32, i32
  }
  func.func @transform_1(%arg0: i32) -> (i32, i32, i32) {
    %c0_i32 = arith.constant 0 : i32
    %c0_i32_0 = arith.constant 0 : i32
    %c0_i32_1 = arith.constant 0 : i32
    %c0_i32_2 = arith.constant 0 : i32
    return %c0_i32, %c0_i32_0, %c0_i32_1 : i32, i32, i32
  }
  func.func @transform_2(%arg0: i32) -> (i32, i32) {
    %c0_i32 = arith.constant 0 : i32
    %c0_i32_0 = arith.constant 0 : i32
    %c0_i32_1 = arith.constant 0 : i32
    return %c0_i32, %c0_i32_0 : i32, i32
  }
  func.func @transform_3(%arg0: i32) -> (i32, i32, i32, i32) {
    %c0_i32 = arith.constant 0 : i32
    %c0_i32_0 = arith.constant 0 : i32
    %c0_i32_1 = arith.constant 0 : i32
    %c0_i32_2 = arith.constant 0 : i32
    return %arg0, %c0_i32, %c0_i32_0, %c0_i32_1 : i32, i32, i32, i32
  }
}

module attributes {stable_mosaic.version = 11 : i64} {
  func.func @_conv_bn_kernel(%arg0: i32, %arg1: memref<4x3x3x128xbf16, #tpu.memory_space<vmem>>, %arg2: memref<9x128x128xbf16, #tpu.memory_space<vmem>>, %arg3: memref<1x128xf32, #tpu.memory_space<vmem>>, %arg4: memref<1x2x2x128xbf16, #tpu.memory_space<vmem>>) attributes {dimension_semantics = [#tpu.dimension_semantics<parallel>], iteration_bounds = array<i64: 2>, scalar_prefetch = 0 : i64, scratch_operands = 0 : i64, tpu.core_type = #tpu.core_type<tc>, window_params = [{transform_indices = @transform_0, window_bounds = array<i64: 4, 3, 3, 128>}, {pipeline_mode = #tpu.pipeline_mode<synchronous>, transform_indices = @transform_1, window_bounds = array<i64: 9, 128, 128>}, {pipeline_mode = #tpu.pipeline_mode<synchronous>, transform_indices = @transform_2, window_bounds = array<i64: 1, 128>}, {transform_indices = @transform_3, window_bounds = array<i64: 1, 2, 2, 128>}]} {
    %c0_i32 = arith.constant 0 : i32
    %c2_i32 = arith.constant 2 : i32
    %0 = arith.addi %c0_i32, %c2_i32 : i32
    %c1_i32 = arith.constant 1 : i32
    scf.for %arg5 = %c0_i32 to %0 step %c1_i32  : i32 {
      %cst = arith.constant 0.000000e+00 : f32
      %1 = vector.broadcast %cst : f32 to vector<2x128xf32>
      %c0_i32_1 = arith.constant 0 : i32
      %2 = arith.addi %arg5, %c0_i32_1 : i32
      %c0 = arith.constant 0 : index
      %3 = arith.index_cast %2 : i32 to index
      %c0_2 = arith.constant 0 : index
      %c0_3 = arith.constant 0 : index
      %4 = vector.load %arg1[%c0, %3, %c0_2, %c0_3] : memref<4x3x3x128xbf16, #tpu.memory_space<vmem>>, vector<1x1x2x128xbf16>
      %5 = vector.shape_cast %4 : vector<1x1x2x128xbf16> to vector<2x128xbf16>
      %c0_4 = arith.constant 0 : index
      %c0_5 = arith.constant 0 : index
      %c0_6 = arith.constant 0 : index
      %6 = vector.load %arg2[%c0_4, %c0_5, %c0_6] : memref<9x128x128xbf16, #tpu.memory_space<vmem>>, vector<1x128x128xbf16>
      %7 = vector.shape_cast %6 : vector<1x128x128xbf16> to vector<128x128xbf16>
      %cst_7 = arith.constant dense<0.000000e+00> : vector<2x128xf32>
      %8 = tpu.matmul %5, %7, %cst_7 {dimension_numbers = #tpu.dot_dimension_numbers<[1], [0], [0], [1], [0, 0, 1, 1], [], []>} : vector<2x128xbf16>, vector<128x128xbf16>, vector<2x128xf32> -> vector<2x128xf32>
      %9 = arith.addf %1, %8 : vector<2x128xf32>
      %c1 = arith.constant 1 : index
      %10 = arith.index_cast %2 : i32 to index
      %c0_8 = arith.constant 0 : index
      %c0_9 = arith.constant 0 : index
      %11 = vector.load %arg1[%c1, %10, %c0_8, %c0_9] : memref<4x3x3x128xbf16, #tpu.memory_space<vmem>>, vector<1x1x2x128xbf16>
      %12 = vector.shape_cast %11 : vector<1x1x2x128xbf16> to vector<2x128xbf16>
      %c1_10 = arith.constant 1 : index
      %c0_11 = arith.constant 0 : index
      %c0_12 = arith.constant 0 : index
      %13 = vector.load %arg2[%c1_10, %c0_11, %c0_12] : memref<9x128x128xbf16, #tpu.memory_space<vmem>>, vector<1x128x128xbf16>
      %14 = vector.shape_cast %13 : vector<1x128x128xbf16> to vector<128x128xbf16>
      %cst_13 = arith.constant dense<0.000000e+00> : vector<2x128xf32>
      %15 = tpu.matmul %12, %14, %cst_13 {dimension_numbers = #tpu.dot_dimension_numbers<[1], [0], [0], [1], [0, 0, 1, 1], [], []>} : vector<2x128xbf16>, vector<128x128xbf16>, vector<2x128xf32> -> vector<2x128xf32>
      %16 = arith.addf %9, %15 : vector<2x128xf32>
      %c0_14 = arith.constant 0 : index
      %17 = arith.index_cast %2 : i32 to index
      %c1_15 = arith.constant 1 : index
      %c0_16 = arith.constant 0 : index
      %18 = vector.load %arg1[%c0_14, %17, %c1_15, %c0_16] : memref<4x3x3x128xbf16, #tpu.memory_space<vmem>>, vector<1x1x2x128xbf16>
      %19 = vector.shape_cast %18 : vector<1x1x2x128xbf16> to vector<2x128xbf16>
      %c2 = arith.constant 2 : index
      %c0_17 = arith.constant 0 : index
      %c0_18 = arith.constant 0 : index
      %20 = vector.load %arg2[%c2, %c0_17, %c0_18] : memref<9x128x128xbf16, #tpu.memory_space<vmem>>, vector<1x128x128xbf16>
      %21 = vector.shape_cast %20 : vector<1x128x128xbf16> to vector<128x128xbf16>
      %cst_19 = arith.constant dense<0.000000e+00> : vector<2x128xf32>
      %22 = tpu.matmul %19, %21, %cst_19 {dimension_numbers = #tpu.dot_dimension_numbers<[1], [0], [0], [1], [0, 0, 1, 1], [], []>} : vector<2x128xbf16>, vector<128x128xbf16>, vector<2x128xf32> -> vector<2x128xf32>
      %23 = arith.addf %16, %22 : vector<2x128xf32>
      %c0_i32_20 = arith.constant 0 : i32
      %24 = arith.addi %arg5, %c0_i32_20 : i32
      %c2_21 = arith.constant 2 : index
      %25 = arith.index_cast %24 : i32 to index
      %c0_22 = arith.constant 0 : index
      %c0_23 = arith.constant 0 : index
      %26 = vector.load %arg1[%c2_21, %25, %c0_22, %c0_23] : memref<4x3x3x128xbf16, #tpu.memory_space<vmem>>, vector<1x1x2x128xbf16>
      %27 = vector.shape_cast %26 : vector<1x1x2x128xbf16> to vector<2x128xbf16>
      %c3 = arith.constant 3 : index
      %c0_24 = arith.constant 0 : index
      %c0_25 = arith.constant 0 : index
      %28 = vector.load %arg2[%c3, %c0_24, %c0_25] : memref<9x128x128xbf16, #tpu.memory_space<vmem>>, vector<1x128x128xbf16>
      %29 = vector.shape_cast %28 : vector<1x128x128xbf16> to vector<128x128xbf16>
      %cst_26 = arith.constant dense<0.000000e+00> : vector<2x128xf32>
      %30 = tpu.matmul %27, %29, %cst_26 {dimension_numbers = #tpu.dot_dimension_numbers<[1], [0], [0], [1], [0, 0, 1, 1], [], []>} : vector<2x128xbf16>, vector<128x128xbf16>, vector<2x128xf32> -> vector<2x128xf32>
      %31 = arith.addf %23, %30 : vector<2x128xf32>
      %c3_27 = arith.constant 3 : index
      %32 = arith.index_cast %24 : i32 to index
      %c0_28 = arith.constant 0 : index
      %c0_29 = arith.constant 0 : index
      %33 = vector.load %arg1[%c3_27, %32, %c0_28, %c0_29] : memref<4x3x3x128xbf16, #tpu.memory_space<vmem>>, vector<1x1x2x128xbf16>
      %34 = vector.shape_cast %33 : vector<1x1x2x128xbf16> to vector<2x128xbf16>
      %c4 = arith.constant 4 : index
      %c0_30 = arith.constant 0 : index
      %c0_31 = arith.constant 0 : index
      %35 = vector.load %arg2[%c4, %c0_30, %c0_31] : memref<9x128x128xbf16, #tpu.memory_space<vmem>>, vector<1x128x128xbf16>
      %36 = vector.shape_cast %35 : vector<1x128x128xbf16> to vector<128x128xbf16>
      %cst_32 = arith.constant dense<0.000000e+00> : vector<2x128xf32>
      %37 = tpu.matmul %34, %36, %cst_32 {dimension_numbers = #tpu.dot_dimension_numbers<[1], [0], [0], [1], [0, 0, 1, 1], [], []>} : vector<2x128xbf16>, vector<128x128xbf16>, vector<2x128xf32> -> vector<2x128xf32>
      %38 = arith.addf %31, %37 : vector<2x128xf32>
      %c2_33 = arith.constant 2 : index
      %39 = arith.index_cast %24 : i32 to index
      %c1_34 = arith.constant 1 : index
      %c0_35 = arith.constant 0 : index
      %40 = vector.load %arg1[%c2_33, %39, %c1_34, %c0_35] : memref<4x3x3x128xbf16, #tpu.memory_space<vmem>>, vector<1x1x2x128xbf16>
      %41 = vector.shape_cast %40 : vector<1x1x2x128xbf16> to vector<2x128xbf16>
      %c5 = arith.constant 5 : index
      %c0_36 = arith.constant 0 : index
      %c0_37 = arith.constant 0 : index
      %42 = vector.load %arg2[%c5, %c0_36, %c0_37] : memref<9x128x128xbf16, #tpu.memory_space<vmem>>, vector<1x128x128xbf16>
      %43 = vector.shape_cast %42 : vector<1x128x128xbf16> to vector<128x128xbf16>
      %cst_38 = arith.constant dense<0.000000e+00> : vector<2x128xf32>
      %44 = tpu.matmul %41, %43, %cst_38 {dimension_numbers = #tpu.dot_dimension_numbers<[1], [0], [0], [1], [0, 0, 1, 1], [], []>} : vector<2x128xbf16>, vector<128x128xbf16>, vector<2x128xf32> -> vector<2x128xf32>
      %45 = arith.addf %38, %44 : vector<2x128xf32>
      %c1_i32_39 = arith.constant 1 : i32
      %46 = arith.addi %arg5, %c1_i32_39 : i32
      %c0_40 = arith.constant 0 : index
      %47 = arith.index_cast %46 : i32 to index
      %c0_41 = arith.constant 0 : index
      %c0_42 = arith.constant 0 : index
      %48 = vector.load %arg1[%c0_40, %47, %c0_41, %c0_42] : memref<4x3x3x128xbf16, #tpu.memory_space<vmem>>, vector<1x1x2x128xbf16>
      %49 = vector.shape_cast %48 : vector<1x1x2x128xbf16> to vector<2x128xbf16>
      %c6 = arith.constant 6 : index
      %c0_43 = arith.constant 0 : index
      %c0_44 = arith.constant 0 : index
      %50 = vector.load %arg2[%c6, %c0_43, %c0_44] : memref<9x128x128xbf16, #tpu.memory_space<vmem>>, vector<1x128x128xbf16>
      %51 = vector.shape_cast %50 : vector<1x128x128xbf16> to vector<128x128xbf16>
      %cst_45 = arith.constant dense<0.000000e+00> : vector<2x128xf32>
      %52 = tpu.matmul %49, %51, %cst_45 {dimension_numbers = #tpu.dot_dimension_numbers<[1], [0], [0], [1], [0, 0, 1, 1], [], []>} : vector<2x128xbf16>, vector<128x128xbf16>, vector<2x128xf32> -> vector<2x128xf32>
      %53 = arith.addf %45, %52 : vector<2x128xf32>
      %c1_46 = arith.constant 1 : index
      %54 = arith.index_cast %46 : i32 to index
      %c0_47 = arith.constant 0 : index
      %c0_48 = arith.constant 0 : index
      %55 = vector.load %arg1[%c1_46, %54, %c0_47, %c0_48] : memref<4x3x3x128xbf16, #tpu.memory_space<vmem>>, vector<1x1x2x128xbf16>
      %56 = vector.shape_cast %55 : vector<1x1x2x128xbf16> to vector<2x128xbf16>
      %c7 = arith.constant 7 : index
      %c0_49 = arith.constant 0 : index
      %c0_50 = arith.constant 0 : index
      %57 = vector.load %arg2[%c7, %c0_49, %c0_50] : memref<9x128x128xbf16, #tpu.memory_space<vmem>>, vector<1x128x128xbf16>
      %58 = vector.shape_cast %57 : vector<1x128x128xbf16> to vector<128x128xbf16>
      %cst_51 = arith.constant dense<0.000000e+00> : vector<2x128xf32>
      %59 = tpu.matmul %56, %58, %cst_51 {dimension_numbers = #tpu.dot_dimension_numbers<[1], [0], [0], [1], [0, 0, 1, 1], [], []>} : vector<2x128xbf16>, vector<128x128xbf16>, vector<2x128xf32> -> vector<2x128xf32>
      %60 = arith.addf %53, %59 : vector<2x128xf32>
      %c0_52 = arith.constant 0 : index
      %61 = arith.index_cast %46 : i32 to index
      %c1_53 = arith.constant 1 : index
      %c0_54 = arith.constant 0 : index
      %62 = vector.load %arg1[%c0_52, %61, %c1_53, %c0_54] : memref<4x3x3x128xbf16, #tpu.memory_space<vmem>>, vector<1x1x2x128xbf16>
      %63 = vector.shape_cast %62 : vector<1x1x2x128xbf16> to vector<2x128xbf16>
      %c8 = arith.constant 8 : index
      %c0_55 = arith.constant 0 : index
      %c0_56 = arith.constant 0 : index
      %64 = vector.load %arg2[%c8, %c0_55, %c0_56] : memref<9x128x128xbf16, #tpu.memory_space<vmem>>, vector<1x128x128xbf16>
      %65 = vector.shape_cast %64 : vector<1x128x128xbf16> to vector<128x128xbf16>
      %cst_57 = arith.constant dense<0.000000e+00> : vector<2x128xf32>
      %66 = tpu.matmul %63, %65, %cst_57 {dimension_numbers = #tpu.dot_dimension_numbers<[1], [0], [0], [1], [0, 0, 1, 1], [], []>} : vector<2x128xbf16>, vector<128x128xbf16>, vector<2x128xf32> -> vector<2x128xf32>
      %67 = arith.addf %60, %66 : vector<2x128xf32>
      %c0_58 = arith.constant 0 : index
      %c0_59 = arith.constant 0 : index
      %68 = vector.load %arg3[%c0_58, %c0_59] : memref<1x128xf32, #tpu.memory_space<vmem>>, vector<1x128xf32>
      %69 = vector.broadcast %68 : vector<1x128xf32> to vector<2x128xf32>
      %70 = arith.addf %67, %69 : vector<2x128xf32>
      %cst_60 = arith.constant 0.000000e+00 : f32
      %71 = vector.broadcast %cst_60 : f32 to vector<2x128xf32>
      %72 = arith.maximumf %70, %71 : vector<2x128xf32>
      %73 = arith.truncf %72 : vector<2x128xf32> to vector<2x128xbf16>
      %c0_61 = arith.constant 0 : index
      %74 = arith.index_cast %arg5 : i32 to index
      %c0_62 = arith.constant 0 : index
      %c0_63 = arith.constant 0 : index
      %75 = vector.load %arg4[%c0_61, %74, %c0_62, %c0_63] : memref<1x2x2x128xbf16, #tpu.memory_space<vmem>>, vector<1x1x2x128xbf16>
      %76 = vector.shape_cast %75 : vector<1x1x2x128xbf16> to vector<2x128xbf16>
      %77 = vector.shape_cast %73 : vector<2x128xbf16> to vector<1x1x2x128xbf16>
      tpu.vector_store %arg4[%c0_61, %74, %c0_62, %c0_63], %77 {strides = array<i32>} : memref<1x2x2x128xbf16, #tpu.memory_space<vmem>>, vector<1x1x2x128xbf16>,
    }
    %c2_i32_0 = arith.constant 2 : i32
    return
  }
  func.func @transform_0(%arg0: i32) -> (i32, i32, i32, i32) {
    %c0_i32 = arith.constant 0 : i32
    %c0_i32_0 = arith.constant 0 : i32
    %c0_i32_1 = arith.constant 0 : i32
    %c0_i32_2 = arith.constant 0 : i32
    return %arg0, %c0_i32, %c0_i32_0, %c0_i32_1 : i32, i32, i32, i32
  }
  func.func @transform_1(%arg0: i32) -> (i32, i32, i32) {
    %c0_i32 = arith.constant 0 : i32
    %c0_i32_0 = arith.constant 0 : i32
    %c0_i32_1 = arith.constant 0 : i32
    %c0_i32_2 = arith.constant 0 : i32
    return %c0_i32, %c0_i32_0, %c0_i32_1 : i32, i32, i32
  }
  func.func @transform_2(%arg0: i32) -> (i32, i32) {
    %c0_i32 = arith.constant 0 : i32
    %c0_i32_0 = arith.constant 0 : i32
    %c0_i32_1 = arith.constant 0 : i32
    return %c0_i32, %c0_i32_0 : i32, i32
  }
  func.func @transform_3(%arg0: i32) -> (i32, i32, i32, i32) {
    %c0_i32 = arith.constant 0 : i32
    %c0_i32_0 = arith.constant 0 : i32
    %c0_i32_1 = arith.constant 0 : i32
    %c0_i32_2 = arith.constant 0 : i32
    return %arg0, %c0_i32, %c0_i32_0, %c0_i32_1 : i32, i32, i32, i32
  }
}

module attributes {stable_mosaic.version = 11 : i64} {
  func.func @_conv_bn_res_kernel(%arg0: i32, %arg1: memref<1x4x4x128xbf16, #tpu.memory_space<vmem>>, %arg2: memref<9x128x128xbf16, #tpu.memory_space<vmem>>, %arg3: memref<1x128xf32, #tpu.memory_space<vmem>>, %arg4: memref<1x2x2x128xbf16, #tpu.memory_space<vmem>>, %arg5: memref<1x2x2x128xbf16, #tpu.memory_space<vmem>>) attributes {dimension_semantics = [#tpu.dimension_semantics<parallel>], iteration_bounds = array<i64: 2>, scalar_prefetch = 0 : i64, scratch_operands = 0 : i64, tpu.core_type = #tpu.core_type<tc>, window_params = [{transform_indices = @transform_0, window_bounds = array<i64: 1, 4, 4, 128>}, {pipeline_mode = #tpu.pipeline_mode<synchronous>, transform_indices = @transform_1, window_bounds = array<i64: 9, 128, 128>}, {pipeline_mode = #tpu.pipeline_mode<synchronous>, transform_indices = @transform_2, window_bounds = array<i64: 1, 128>}, {transform_indices = @transform_3, window_bounds = array<i64: 1, 2, 2, 128>}, {transform_indices = @transform_4, window_bounds = array<i64: 1, 2, 2, 128>}]} {
    %c0_i32 = arith.constant 0 : i32
    %c2_i32 = arith.constant 2 : i32
    %0 = arith.addi %c0_i32, %c2_i32 : i32
    %c1_i32 = arith.constant 1 : i32
    scf.for %arg6 = %c0_i32 to %0 step %c1_i32  : i32 {
      %cst = arith.constant 0.000000e+00 : f32
      %1 = vector.broadcast %cst : f32 to vector<2x128xf32>
      %c0_i32_1 = arith.constant 0 : i32
      %2 = arith.addi %arg6, %c0_i32_1 : i32
      %c0 = arith.constant 0 : index
      %3 = arith.index_cast %2 : i32 to index
      %c0_2 = arith.constant 0 : index
      %c0_3 = arith.constant 0 : index
      %4 = vector.load %arg1[%c0, %3, %c0_2, %c0_3] : memref<1x4x4x128xbf16, #tpu.memory_space<vmem>>, vector<1x1x2x128xbf16>
      %5 = vector.shape_cast %4 : vector<1x1x2x128xbf16> to vector<2x128xbf16>
      %c0_4 = arith.constant 0 : index
      %c0_5 = arith.constant 0 : index
      %c0_6 = arith.constant 0 : index
      %6 = vector.load %arg2[%c0_4, %c0_5, %c0_6] : memref<9x128x128xbf16, #tpu.memory_space<vmem>>, vector<1x128x128xbf16>
      %7 = vector.shape_cast %6 : vector<1x128x128xbf16> to vector<128x128xbf16>
      %cst_7 = arith.constant dense<0.000000e+00> : vector<2x128xf32>
      %8 = tpu.matmul %5, %7, %cst_7 {dimension_numbers = #tpu.dot_dimension_numbers<[1], [0], [0], [1], [0, 0, 1, 1], [], []>} : vector<2x128xbf16>, vector<128x128xbf16>, vector<2x128xf32> -> vector<2x128xf32>
      %9 = arith.addf %1, %8 : vector<2x128xf32>
      %c0_8 = arith.constant 0 : index
      %10 = arith.index_cast %2 : i32 to index
      %c1 = arith.constant 1 : index
      %c0_9 = arith.constant 0 : index
      %11 = vector.load %arg1[%c0_8, %10, %c1, %c0_9] : memref<1x4x4x128xbf16, #tpu.memory_space<vmem>>, vector<1x1x2x128xbf16>
      %12 = vector.shape_cast %11 : vector<1x1x2x128xbf16> to vector<2x128xbf16>
      %c1_10 = arith.constant 1 : index
      %c0_11 = arith.constant 0 : index
      %c0_12 = arith.constant 0 : index
      %13 = vector.load %arg2[%c1_10, %c0_11, %c0_12] : memref<9x128x128xbf16, #tpu.memory_space<vmem>>, vector<1x128x128xbf16>
      %14 = vector.shape_cast %13 : vector<1x128x128xbf16> to vector<128x128xbf16>
      %cst_13 = arith.constant dense<0.000000e+00> : vector<2x128xf32>
      %15 = tpu.matmul %12, %14, %cst_13 {dimension_numbers = #tpu.dot_dimension_numbers<[1], [0], [0], [1], [0, 0, 1, 1], [], []>} : vector<2x128xbf16>, vector<128x128xbf16>, vector<2x128xf32> -> vector<2x128xf32>
      %16 = arith.addf %9, %15 : vector<2x128xf32>
      %c0_14 = arith.constant 0 : index
      %17 = arith.index_cast %2 : i32 to index
      %c2 = arith.constant 2 : index
      %c0_15 = arith.constant 0 : index
      %18 = vector.load %arg1[%c0_14, %17, %c2, %c0_15] : memref<1x4x4x128xbf16, #tpu.memory_space<vmem>>, vector<1x1x2x128xbf16>
      %19 = vector.shape_cast %18 : vector<1x1x2x128xbf16> to vector<2x128xbf16>
      %c2_16 = arith.constant 2 : index
      %c0_17 = arith.constant 0 : index
      %c0_18 = arith.constant 0 : index
      %20 = vector.load %arg2[%c2_16, %c0_17, %c0_18] : memref<9x128x128xbf16, #tpu.memory_space<vmem>>, vector<1x128x128xbf16>
      %21 = vector.shape_cast %20 : vector<1x128x128xbf16> to vector<128x128xbf16>
      %cst_19 = arith.constant dense<0.000000e+00> : vector<2x128xf32>
      %22 = tpu.matmul %19, %21, %cst_19 {dimension_numbers = #tpu.dot_dimension_numbers<[1], [0], [0], [1], [0, 0, 1, 1], [], []>} : vector<2x128xbf16>, vector<128x128xbf16>, vector<2x128xf32> -> vector<2x128xf32>
      %23 = arith.addf %16, %22 : vector<2x128xf32>
      %c1_i32_20 = arith.constant 1 : i32
      %24 = arith.addi %arg6, %c1_i32_20 : i32
      %c0_21 = arith.constant 0 : index
      %25 = arith.index_cast %24 : i32 to index
      %c0_22 = arith.constant 0 : index
      %c0_23 = arith.constant 0 : index
      %26 = vector.load %arg1[%c0_21, %25, %c0_22, %c0_23] : memref<1x4x4x128xbf16, #tpu.memory_space<vmem>>, vector<1x1x2x128xbf16>
      %27 = vector.shape_cast %26 : vector<1x1x2x128xbf16> to vector<2x128xbf16>
      %c3 = arith.constant 3 : index
      %c0_24 = arith.constant 0 : index
      %c0_25 = arith.constant 0 : index
      %28 = vector.load %arg2[%c3, %c0_24, %c0_25] : memref<9x128x128xbf16, #tpu.memory_space<vmem>>, vector<1x128x128xbf16>
      %29 = vector.shape_cast %28 : vector<1x128x128xbf16> to vector<128x128xbf16>
      %cst_26 = arith.constant dense<0.000000e+00> : vector<2x128xf32>
      %30 = tpu.matmul %27, %29, %cst_26 {dimension_numbers = #tpu.dot_dimension_numbers<[1], [0], [0], [1], [0, 0, 1, 1], [], []>} : vector<2x128xbf16>, vector<128x128xbf16>, vector<2x128xf32> -> vector<2x128xf32>
      %31 = arith.addf %23, %30 : vector<2x128xf32>
      %c0_27 = arith.constant 0 : index
      %32 = arith.index_cast %24 : i32 to index
      %c1_28 = arith.constant 1 : index
      %c0_29 = arith.constant 0 : index
      %33 = vector.load %arg1[%c0_27, %32, %c1_28, %c0_29] : memref<1x4x4x128xbf16, #tpu.memory_space<vmem>>, vector<1x1x2x128xbf16>
      %34 = vector.shape_cast %33 : vector<1x1x2x128xbf16> to vector<2x128xbf16>
      %c4 = arith.constant 4 : index
      %c0_30 = arith.constant 0 : index
      %c0_31 = arith.constant 0 : index
      %35 = vector.load %arg2[%c4, %c0_30, %c0_31] : memref<9x128x128xbf16, #tpu.memory_space<vmem>>, vector<1x128x128xbf16>
      %36 = vector.shape_cast %35 : vector<1x128x128xbf16> to vector<128x128xbf16>
      %cst_32 = arith.constant dense<0.000000e+00> : vector<2x128xf32>
      %37 = tpu.matmul %34, %36, %cst_32 {dimension_numbers = #tpu.dot_dimension_numbers<[1], [0], [0], [1], [0, 0, 1, 1], [], []>} : vector<2x128xbf16>, vector<128x128xbf16>, vector<2x128xf32> -> vector<2x128xf32>
      %38 = arith.addf %31, %37 : vector<2x128xf32>
      %c0_33 = arith.constant 0 : index
      %39 = arith.index_cast %24 : i32 to index
      %c2_34 = arith.constant 2 : index
      %c0_35 = arith.constant 0 : index
      %40 = vector.load %arg1[%c0_33, %39, %c2_34, %c0_35] : memref<1x4x4x128xbf16, #tpu.memory_space<vmem>>, vector<1x1x2x128xbf16>
      %41 = vector.shape_cast %40 : vector<1x1x2x128xbf16> to vector<2x128xbf16>
      %c5 = arith.constant 5 : index
      %c0_36 = arith.constant 0 : index
      %c0_37 = arith.constant 0 : index
      %42 = vector.load %arg2[%c5, %c0_36, %c0_37] : memref<9x128x128xbf16, #tpu.memory_space<vmem>>, vector<1x128x128xbf16>
      %43 = vector.shape_cast %42 : vector<1x128x128xbf16> to vector<128x128xbf16>
      %cst_38 = arith.constant dense<0.000000e+00> : vector<2x128xf32>
      %44 = tpu.matmul %41, %43, %cst_38 {dimension_numbers = #tpu.dot_dimension_numbers<[1], [0], [0], [1], [0, 0, 1, 1], [], []>} : vector<2x128xbf16>, vector<128x128xbf16>, vector<2x128xf32> -> vector<2x128xf32>
      %45 = arith.addf %38, %44 : vector<2x128xf32>
      %c2_i32_39 = arith.constant 2 : i32
      %46 = arith.addi %arg6, %c2_i32_39 : i32
      %c0_40 = arith.constant 0 : index
      %47 = arith.index_cast %46 : i32 to index
      %c0_41 = arith.constant 0 : index
      %c0_42 = arith.constant 0 : index
      %48 = vector.load %arg1[%c0_40, %47, %c0_41, %c0_42] : memref<1x4x4x128xbf16, #tpu.memory_space<vmem>>, vector<1x1x2x128xbf16>
      %49 = vector.shape_cast %48 : vector<1x1x2x128xbf16> to vector<2x128xbf16>
      %c6 = arith.constant 6 : index
      %c0_43 = arith.constant 0 : index
      %c0_44 = arith.constant 0 : index
      %50 = vector.load %arg2[%c6, %c0_43, %c0_44] : memref<9x128x128xbf16, #tpu.memory_space<vmem>>, vector<1x128x128xbf16>
      %51 = vector.shape_cast %50 : vector<1x128x128xbf16> to vector<128x128xbf16>
      %cst_45 = arith.constant dense<0.000000e+00> : vector<2x128xf32>
      %52 = tpu.matmul %49, %51, %cst_45 {dimension_numbers = #tpu.dot_dimension_numbers<[1], [0], [0], [1], [0, 0, 1, 1], [], []>} : vector<2x128xbf16>, vector<128x128xbf16>, vector<2x128xf32> -> vector<2x128xf32>
      %53 = arith.addf %45, %52 : vector<2x128xf32>
      %c0_46 = arith.constant 0 : index
      %54 = arith.index_cast %46 : i32 to index
      %c1_47 = arith.constant 1 : index
      %c0_48 = arith.constant 0 : index
      %55 = vector.load %arg1[%c0_46, %54, %c1_47, %c0_48] : memref<1x4x4x128xbf16, #tpu.memory_space<vmem>>, vector<1x1x2x128xbf16>
      %56 = vector.shape_cast %55 : vector<1x1x2x128xbf16> to vector<2x128xbf16>
      %c7 = arith.constant 7 : index
      %c0_49 = arith.constant 0 : index
      %c0_50 = arith.constant 0 : index
      %57 = vector.load %arg2[%c7, %c0_49, %c0_50] : memref<9x128x128xbf16, #tpu.memory_space<vmem>>, vector<1x128x128xbf16>
      %58 = vector.shape_cast %57 : vector<1x128x128xbf16> to vector<128x128xbf16>
      %cst_51 = arith.constant dense<0.000000e+00> : vector<2x128xf32>
      %59 = tpu.matmul %56, %58, %cst_51 {dimension_numbers = #tpu.dot_dimension_numbers<[1], [0], [0], [1], [0, 0, 1, 1], [], []>} : vector<2x128xbf16>, vector<128x128xbf16>, vector<2x128xf32> -> vector<2x128xf32>
      %60 = arith.addf %53, %59 : vector<2x128xf32>
      %c0_52 = arith.constant 0 : index
      %61 = arith.index_cast %46 : i32 to index
      %c2_53 = arith.constant 2 : index
      %c0_54 = arith.constant 0 : index
      %62 = vector.load %arg1[%c0_52, %61, %c2_53, %c0_54] : memref<1x4x4x128xbf16, #tpu.memory_space<vmem>>, vector<1x1x2x128xbf16>
      %63 = vector.shape_cast %62 : vector<1x1x2x128xbf16> to vector<2x128xbf16>
      %c8 = arith.constant 8 : index
      %c0_55 = arith.constant 0 : index
      %c0_56 = arith.constant 0 : index
      %64 = vector.load %arg2[%c8, %c0_55, %c0_56] : memref<9x128x128xbf16, #tpu.memory_space<vmem>>, vector<1x128x128xbf16>
      %65 = vector.shape_cast %64 : vector<1x128x128xbf16> to vector<128x128xbf16>
      %cst_57 = arith.constant dense<0.000000e+00> : vector<2x128xf32>
      %66 = tpu.matmul %63, %65, %cst_57 {dimension_numbers = #tpu.dot_dimension_numbers<[1], [0], [0], [1], [0, 0, 1, 1], [], []>} : vector<2x128xbf16>, vector<128x128xbf16>, vector<2x128xf32> -> vector<2x128xf32>
      %67 = arith.addf %60, %66 : vector<2x128xf32>
      %c0_58 = arith.constant 0 : index
      %c0_59 = arith.constant 0 : index
      %68 = vector.load %arg3[%c0_58, %c0_59] : memref<1x128xf32, #tpu.memory_space<vmem>>, vector<1x128xf32>
      %69 = vector.broadcast %68 : vector<1x128xf32> to vector<2x128xf32>
      %70 = arith.addf %67, %69 : vector<2x128xf32>
      %c0_60 = arith.constant 0 : index
      %71 = arith.index_cast %arg6 : i32 to index
      %c0_61 = arith.constant 0 : index
      %c0_62 = arith.constant 0 : index
      %72 = vector.load %arg4[%c0_60, %71, %c0_61, %c0_62] : memref<1x2x2x128xbf16, #tpu.memory_space<vmem>>, vector<1x1x2x128xbf16>
      %73 = vector.shape_cast %72 : vector<1x1x2x128xbf16> to vector<2x128xbf16>
      %74 = arith.extf %73 : vector<2x128xbf16> to vector<2x128xf32>
      %75 = arith.addf %70, %74 : vector<2x128xf32>
      %cst_63 = arith.constant 0.000000e+00 : f32
      %76 = vector.broadcast %cst_63 : f32 to vector<2x128xf32>
      %77 = arith.maximumf %75, %76 : vector<2x128xf32>
      %78 = arith.truncf %77 : vector<2x128xf32> to vector<2x128xbf16>
      %c0_64 = arith.constant 0 : index
      %79 = arith.index_cast %arg6 : i32 to index
      %c0_65 = arith.constant 0 : index
      %c0_66 = arith.constant 0 : index
      %80 = vector.load %arg5[%c0_64, %79, %c0_65, %c0_66] : memref<1x2x2x128xbf16, #tpu.memory_space<vmem>>, vector<1x1x2x128xbf16>
      %81 = vector.shape_cast %80 : vector<1x1x2x128xbf16> to vector<2x128xbf16>
      %82 = vector.shape_cast %78 : vector<2x128xbf16> to vector<1x1x2x128xbf16>
      tpu.vector_store %arg5[%c0_64, %79, %c0_65, %c0_66], %82 {strides = array<i32>} : memref<1x2x2x128xbf16, #tpu.memory_space<vmem>>, vector<1x1x2x128xbf16>,
    }
    %c2_i32_0 = arith.constant 2 : i32
    return
  }
  func.func @transform_0(%arg0: i32) -> (i32, i32, i32, i32) {
    %c0_i32 = arith.constant 0 : i32
    %c0_i32_0 = arith.constant 0 : i32
    %c0_i32_1 = arith.constant 0 : i32
    %c0_i32_2 = arith.constant 0 : i32
    return %arg0, %c0_i32, %c0_i32_0, %c0_i32_1 : i32, i32, i32, i32
  }
  func.func @transform_1(%arg0: i32) -> (i32, i32, i32) {
    %c0_i32 = arith.constant 0 : i32
    %c0_i32_0 = arith.constant 0 : i32
    %c0_i32_1 = arith.constant 0 : i32
    %c0_i32_2 = arith.constant 0 : i32
    return %c0_i32, %c0_i32_0, %c0_i32_1 : i32, i32, i32
  }
  func.func @transform_2(%arg0: i32) -> (i32, i32) {
    %c0_i32 = arith.constant 0 : i32
    %c0_i32_0 = arith.constant 0 : i32
    %c0_i32_1 = arith.constant 0 : i32
    return %c0_i32, %c0_i32_0 : i32, i32
  }
  func.func @transform_3(%arg0: i32) -> (i32, i32, i32, i32) {
    %c0_i32 = arith.constant 0 : i32
    %c0_i32_0 = arith.constant 0 : i32
    %c0_i32_1 = arith.constant 0 : i32
    %c0_i32_2 = arith.constant 0 : i32
    return %arg0, %c0_i32, %c0_i32_0, %c0_i32_1 : i32, i32, i32, i32
  }
  func.func @transform_4(%arg0: i32) -> (i32, i32, i32, i32) {
    %c0_i32 = arith.constant 0 : i32
    %c0_i32_0 = arith.constant 0 : i32
    %c0_i32_1 = arith.constant 0 : i32
    %c0_i32_2 = arith.constant 0 : i32
    return %arg0, %c0_i32, %c0_i32_0, %c0_i32_1 : i32, i32, i32, i32
  }
}

module attributes {stable_mosaic.version = 11 : i64} {
  func.func @_conv_bn_kernel(%arg0: i32, %arg1: memref<4x2x2x128xbf16, #tpu.memory_space<vmem>>, %arg2: memref<1x128x128xbf16, #tpu.memory_space<vmem>>, %arg3: memref<1x128xf32, #tpu.memory_space<vmem>>, %arg4: memref<1x2x2x128xbf16, #tpu.memory_space<vmem>>) attributes {dimension_semantics = [#tpu.dimension_semantics<parallel>], iteration_bounds = array<i64: 2>, scalar_prefetch = 0 : i64, scratch_operands = 0 : i64, tpu.core_type = #tpu.core_type<tc>, window_params = [{transform_indices = @transform_0, window_bounds = array<i64: 4, 2, 2, 128>}, {pipeline_mode = #tpu.pipeline_mode<synchronous>, transform_indices = @transform_1, window_bounds = array<i64: 1, 128, 128>}, {pipeline_mode = #tpu.pipeline_mode<synchronous>, transform_indices = @transform_2, window_bounds = array<i64: 1, 128>}, {transform_indices = @transform_3, window_bounds = array<i64: 1, 2, 2, 128>}]} {
    %c0_i32 = arith.constant 0 : i32
    %c2_i32 = arith.constant 2 : i32
    %0 = arith.addi %c0_i32, %c2_i32 : i32
    %c1_i32 = arith.constant 1 : i32
    scf.for %arg5 = %c0_i32 to %0 step %c1_i32  : i32 {
      %cst = arith.constant 0.000000e+00 : f32
      %1 = vector.broadcast %cst : f32 to vector<2x128xf32>
      %c0_i32_1 = arith.constant 0 : i32
      %2 = arith.addi %arg5, %c0_i32_1 : i32
      %c0 = arith.constant 0 : index
      %3 = arith.index_cast %2 : i32 to index
      %c0_2 = arith.constant 0 : index
      %c0_3 = arith.constant 0 : index
      %4 = vector.load %arg1[%c0, %3, %c0_2, %c0_3] : memref<4x2x2x128xbf16, #tpu.memory_space<vmem>>, vector<1x1x2x128xbf16>
      %5 = vector.shape_cast %4 : vector<1x1x2x128xbf16> to vector<2x128xbf16>
      %c0_4 = arith.constant 0 : index
      %c0_5 = arith.constant 0 : index
      %c0_6 = arith.constant 0 : index
      %6 = vector.load %arg2[%c0_4, %c0_5, %c0_6] : memref<1x128x128xbf16, #tpu.memory_space<vmem>>, vector<1x128x128xbf16>
      %7 = vector.shape_cast %6 : vector<1x128x128xbf16> to vector<128x128xbf16>
      %cst_7 = arith.constant dense<0.000000e+00> : vector<2x128xf32>
      %8 = tpu.matmul %5, %7, %cst_7 {dimension_numbers = #tpu.dot_dimension_numbers<[1], [0], [0], [1], [0, 0, 1, 1], [], []>} : vector<2x128xbf16>, vector<128x128xbf16>, vector<2x128xf32> -> vector<2x128xf32>
      %9 = arith.addf %1, %8 : vector<2x128xf32>
      %c0_8 = arith.constant 0 : index
      %c0_9 = arith.constant 0 : index
      %10 = vector.load %arg3[%c0_8, %c0_9] : memref<1x128xf32, #tpu.memory_space<vmem>>, vector<1x128xf32>
      %11 = vector.broadcast %10 : vector<1x128xf32> to vector<2x128xf32>
      %12 = arith.addf %9, %11 : vector<2x128xf32>
      %13 = arith.truncf %12 : vector<2x128xf32> to vector<2x128xbf16>
      %c0_10 = arith.constant 0 : index
      %14 = arith.index_cast %arg5 : i32 to index
      %c0_11 = arith.constant 0 : index
      %c0_12 = arith.constant 0 : index
      %15 = vector.load %arg4[%c0_10, %14, %c0_11, %c0_12] : memref<1x2x2x128xbf16, #tpu.memory_space<vmem>>, vector<1x1x2x128xbf16>
      %16 = vector.shape_cast %15 : vector<1x1x2x128xbf16> to vector<2x128xbf16>
      %17 = vector.shape_cast %13 : vector<2x128xbf16> to vector<1x1x2x128xbf16>
      tpu.vector_store %arg4[%c0_10, %14, %c0_11, %c0_12], %17 {strides = array<i32>} : memref<1x2x2x128xbf16, #tpu.memory_space<vmem>>, vector<1x1x2x128xbf16>,
    }
    %c2_i32_0 = arith.constant 2 : i32
    return
  }
  func.func @transform_0(%arg0: i32) -> (i32, i32, i32, i32) {
    %c0_i32 = arith.constant 0 : i32
    %c0_i32_0 = arith.constant 0 : i32
    %c0_i32_1 = arith.constant 0 : i32
    %c0_i32_2 = arith.constant 0 : i32
    return %arg0, %c0_i32, %c0_i32_0, %c0_i32_1 : i32, i32, i32, i32
  }
  func.func @transform_1(%arg0: i32) -> (i32, i32, i32) {
    %c0_i32 = arith.constant 0 : i32
    %c0_i32_0 = arith.constant 0 : i32
    %c0_i32_1 = arith.constant 0 : i32
    %c0_i32_2 = arith.constant 0 : i32
    return %c0_i32, %c0_i32_0, %c0_i32_1 : i32, i32, i32
  }
  func.func @transform_2(%arg0: i32) -> (i32, i32) {
    %c0_i32 = arith.constant 0 : i32
    %c0_i32_0 = arith.constant 0 : i32
    %c0_i32_1 = arith.constant 0 : i32
    return %c0_i32, %c0_i32_0 : i32, i32
  }
  func.func @transform_3(%arg0: i32) -> (i32, i32, i32, i32) {
    %c0_i32 = arith.constant 0 : i32
    %c0_i32_0 = arith.constant 0 : i32
    %c0_i32_1 = arith.constant 0 : i32
    %c0_i32_2 = arith.constant 0 : i32
    return %arg0, %c0_i32, %c0_i32_0, %c0_i32_1 : i32, i32, i32, i32
  }
}

module attributes {stable_mosaic.version = 11 : i64} {
  func.func @_conv_bn_kernel(%arg0: i32, %arg1: memref<4x1x1x128xbf16, #tpu.memory_space<vmem>>, %arg2: memref<1x128x128xbf16, #tpu.memory_space<vmem>>, %arg3: memref<1x128xf32, #tpu.memory_space<vmem>>, %arg4: memref<1x1x1x128xbf16, #tpu.memory_space<vmem>>) attributes {dimension_semantics = [#tpu.dimension_semantics<parallel>], iteration_bounds = array<i64: 2>, scalar_prefetch = 0 : i64, scratch_operands = 0 : i64, tpu.core_type = #tpu.core_type<tc>, window_params = [{transform_indices = @transform_0, window_bounds = array<i64: 4, 1, 1, 128>}, {pipeline_mode = #tpu.pipeline_mode<synchronous>, transform_indices = @transform_1, window_bounds = array<i64: 1, 128, 128>}, {pipeline_mode = #tpu.pipeline_mode<synchronous>, transform_indices = @transform_2, window_bounds = array<i64: 1, 128>}, {transform_indices = @transform_3, window_bounds = array<i64: 1, 1, 1, 128>}]} {
    %c0_i32 = arith.constant 0 : i32
    %cst = arith.constant 0.000000e+00 : f32
    %0 = vector.broadcast %cst : f32 to vector<1x128xf32>
    %c0_i32_0 = arith.constant 0 : i32
    %1 = arith.addi %c0_i32, %c0_i32_0 : i32
    %c0 = arith.constant 0 : index
    %2 = arith.index_cast %1 : i32 to index
    %c0_1 = arith.constant 0 : index
    %c0_2 = arith.constant 0 : index
    %3 = vector.load %arg1[%c0, %2, %c0_1, %c0_2] : memref<4x1x1x128xbf16, #tpu.memory_space<vmem>>, vector<1x1x1x128xbf16>
    %4 = vector.shape_cast %3 : vector<1x1x1x128xbf16> to vector<1x128xbf16>
    %c0_3 = arith.constant 0 : index
    %c0_4 = arith.constant 0 : index
    %c0_5 = arith.constant 0 : index
    %5 = vector.load %arg2[%c0_3, %c0_4, %c0_5] : memref<1x128x128xbf16, #tpu.memory_space<vmem>>, vector<1x128x128xbf16>
    %6 = vector.shape_cast %5 : vector<1x128x128xbf16> to vector<128x128xbf16>
    %cst_6 = arith.constant dense<0.000000e+00> : vector<1x128xf32>
    %7 = tpu.matmul %4, %6, %cst_6 {dimension_numbers = #tpu.dot_dimension_numbers<[1], [0], [0], [1], [0, 0, 1, 1], [], []>} : vector<1x128xbf16>, vector<128x128xbf16>, vector<1x128xf32> -> vector<1x128xf32>
    %8 = arith.addf %0, %7 : vector<1x128xf32>
    %c0_7 = arith.constant 0 : index
    %c0_8 = arith.constant 0 : index
    %9 = vector.load %arg3[%c0_7, %c0_8] : memref<1x128xf32, #tpu.memory_space<vmem>>, vector<1x128xf32>
    %10 = arith.addf %8, %9 : vector<1x128xf32>
    %11 = arith.truncf %10 : vector<1x128xf32> to vector<1x128xbf16>
    %c0_9 = arith.constant 0 : index
    %12 = arith.index_cast %c0_i32 : i32 to index
    %c0_10 = arith.constant 0 : index
    %c0_11 = arith.constant 0 : index
    %13 = vector.load %arg4[%c0_9, %12, %c0_10, %c0_11] : memref<1x1x1x128xbf16, #tpu.memory_space<vmem>>, vector<1x1x1x128xbf16>
    %14 = vector.shape_cast %13 : vector<1x1x1x128xbf16> to vector<1x128xbf16>
    %15 = vector.shape_cast %11 : vector<1x128xbf16> to vector<1x1x1x128xbf16>
    tpu.vector_store %arg4[%c0_9, %12, %c0_10, %c0_11], %15 {strides = array<i32>} : memref<1x1x1x128xbf16, #tpu.memory_space<vmem>>, vector<1x1x1x128xbf16>,
    %c1_i32 = arith.constant 1 : i32
    return
  }
  func.func @transform_0(%arg0: i32) -> (i32, i32, i32, i32) {
    %c0_i32 = arith.constant 0 : i32
    %c0_i32_0 = arith.constant 0 : i32
    %c0_i32_1 = arith.constant 0 : i32
    %c0_i32_2 = arith.constant 0 : i32
    return %arg0, %c0_i32, %c0_i32_0, %c0_i32_1 : i32, i32, i32, i32
  }
  func.func @transform_1(%arg0: i32) -> (i32, i32, i32) {
    %c0_i32 = arith.constant 0 : i32
    %c0_i32_0 = arith.constant 0 : i32
    %c0_i32_1 = arith.constant 0 : i32
    %c0_i32_2 = arith.constant 0 : i32
    return %c0_i32, %c0_i32_0, %c0_i32_1 : i32, i32, i32
  }
  func.func @transform_2(%arg0: i32) -> (i32, i32) {
    %c0_i32 = arith.constant 0 : i32
    %c0_i32_0 = arith.constant 0 : i32
    %c0_i32_1 = arith.constant 0 : i32
    return %c0_i32, %c0_i32_0 : i32, i32
  }
  func.func @transform_3(%arg0: i32) -> (i32, i32, i32, i32) {
    %c0_i32 = arith.constant 0 : i32
    %c0_i32_0 = arith.constant 0 : i32
    %c0_i32_1 = arith.constant 0 : i32
    %c0_i32_2 = arith.constant 0 : i32
    return %arg0, %c0_i32, %c0_i32_0, %c0_i32_1 : i32, i32, i32, i32
  }
}

module attributes {stable_mosaic.version = 11 : i64} {
  func.func @_conv_bn_kernel(%arg0: i32, %arg1: memref<4x2x2x128xbf16, #tpu.memory_space<vmem>>, %arg2: memref<9x128x128xbf16, #tpu.memory_space<vmem>>, %arg3: memref<1x128xf32, #tpu.memory_space<vmem>>, %arg4: memref<1x1x1x128xbf16, #tpu.memory_space<vmem>>) attributes {dimension_semantics = [#tpu.dimension_semantics<parallel>], iteration_bounds = array<i64: 2>, scalar_prefetch = 0 : i64, scratch_operands = 0 : i64, tpu.core_type = #tpu.core_type<tc>, window_params = [{transform_indices = @transform_0, window_bounds = array<i64: 4, 2, 2, 128>}, {pipeline_mode = #tpu.pipeline_mode<synchronous>, transform_indices = @transform_1, window_bounds = array<i64: 9, 128, 128>}, {pipeline_mode = #tpu.pipeline_mode<synchronous>, transform_indices = @transform_2, window_bounds = array<i64: 1, 128>}, {transform_indices = @transform_3, window_bounds = array<i64: 1, 1, 1, 128>}]} {
    %c0_i32 = arith.constant 0 : i32
    %cst = arith.constant 0.000000e+00 : f32
    %0 = vector.broadcast %cst : f32 to vector<1x128xf32>
    %c0_i32_0 = arith.constant 0 : i32
    %1 = arith.addi %c0_i32, %c0_i32_0 : i32
    %c0 = arith.constant 0 : index
    %2 = arith.index_cast %1 : i32 to index
    %c0_1 = arith.constant 0 : index
    %c0_2 = arith.constant 0 : index
    %3 = vector.load %arg1[%c0, %2, %c0_1, %c0_2] : memref<4x2x2x128xbf16, #tpu.memory_space<vmem>>, vector<1x1x1x128xbf16>
    %4 = vector.shape_cast %3 : vector<1x1x1x128xbf16> to vector<1x128xbf16>
    %c0_3 = arith.constant 0 : index
    %c0_4 = arith.constant 0 : index
    %c0_5 = arith.constant 0 : index
    %5 = vector.load %arg2[%c0_3, %c0_4, %c0_5] : memref<9x128x128xbf16, #tpu.memory_space<vmem>>, vector<1x128x128xbf16>
    %6 = vector.shape_cast %5 : vector<1x128x128xbf16> to vector<128x128xbf16>
    %cst_6 = arith.constant dense<0.000000e+00> : vector<1x128xf32>
    %7 = tpu.matmul %4, %6, %cst_6 {dimension_numbers = #tpu.dot_dimension_numbers<[1], [0], [0], [1], [0, 0, 1, 1], [], []>} : vector<1x128xbf16>, vector<128x128xbf16>, vector<1x128xf32> -> vector<1x128xf32>
    %8 = arith.addf %0, %7 : vector<1x128xf32>
    %c1 = arith.constant 1 : index
    %9 = arith.index_cast %1 : i32 to index
    %c0_7 = arith.constant 0 : index
    %c0_8 = arith.constant 0 : index
    %10 = vector.load %arg1[%c1, %9, %c0_7, %c0_8] : memref<4x2x2x128xbf16, #tpu.memory_space<vmem>>, vector<1x1x1x128xbf16>
    %11 = vector.shape_cast %10 : vector<1x1x1x128xbf16> to vector<1x128xbf16>
    %c1_9 = arith.constant 1 : index
    %c0_10 = arith.constant 0 : index
    %c0_11 = arith.constant 0 : index
    %12 = vector.load %arg2[%c1_9, %c0_10, %c0_11] : memref<9x128x128xbf16, #tpu.memory_space<vmem>>, vector<1x128x128xbf16>
    %13 = vector.shape_cast %12 : vector<1x128x128xbf16> to vector<128x128xbf16>
    %cst_12 = arith.constant dense<0.000000e+00> : vector<1x128xf32>
    %14 = tpu.matmul %11, %13, %cst_12 {dimension_numbers = #tpu.dot_dimension_numbers<[1], [0], [0], [1], [0, 0, 1, 1], [], []>} : vector<1x128xbf16>, vector<128x128xbf16>, vector<1x128xf32> -> vector<1x128xf32>
    %15 = arith.addf %8, %14 : vector<1x128xf32>
    %c0_13 = arith.constant 0 : index
    %16 = arith.index_cast %1 : i32 to index
    %c1_14 = arith.constant 1 : index
    %c0_15 = arith.constant 0 : index
    %17 = vector.load %arg1[%c0_13, %16, %c1_14, %c0_15] : memref<4x2x2x128xbf16, #tpu.memory_space<vmem>>, vector<1x1x1x128xbf16>
    %18 = vector.shape_cast %17 : vector<1x1x1x128xbf16> to vector<1x128xbf16>
    %c2 = arith.constant 2 : index
    %c0_16 = arith.constant 0 : index
    %c0_17 = arith.constant 0 : index
    %19 = vector.load %arg2[%c2, %c0_16, %c0_17] : memref<9x128x128xbf16, #tpu.memory_space<vmem>>, vector<1x128x128xbf16>
    %20 = vector.shape_cast %19 : vector<1x128x128xbf16> to vector<128x128xbf16>
    %cst_18 = arith.constant dense<0.000000e+00> : vector<1x128xf32>
    %21 = tpu.matmul %18, %20, %cst_18 {dimension_numbers = #tpu.dot_dimension_numbers<[1], [0], [0], [1], [0, 0, 1, 1], [], []>} : vector<1x128xbf16>, vector<128x128xbf16>, vector<1x128xf32> -> vector<1x128xf32>
    %22 = arith.addf %15, %21 : vector<1x128xf32>
    %c0_i32_19 = arith.constant 0 : i32
    %23 = arith.addi %c0_i32, %c0_i32_19 : i32
    %c2_20 = arith.constant 2 : index
    %24 = arith.index_cast %23 : i32 to index
    %c0_21 = arith.constant 0 : index
    %c0_22 = arith.constant 0 : index
    %25 = vector.load %arg1[%c2_20, %24, %c0_21, %c0_22] : memref<4x2x2x128xbf16, #tpu.memory_space<vmem>>, vector<1x1x1x128xbf16>
    %26 = vector.shape_cast %25 : vector<1x1x1x128xbf16> to vector<1x128xbf16>
    %c3 = arith.constant 3 : index
    %c0_23 = arith.constant 0 : index
    %c0_24 = arith.constant 0 : index
    %27 = vector.load %arg2[%c3, %c0_23, %c0_24] : memref<9x128x128xbf16, #tpu.memory_space<vmem>>, vector<1x128x128xbf16>
    %28 = vector.shape_cast %27 : vector<1x128x128xbf16> to vector<128x128xbf16>
    %cst_25 = arith.constant dense<0.000000e+00> : vector<1x128xf32>
    %29 = tpu.matmul %26, %28, %cst_25 {dimension_numbers = #tpu.dot_dimension_numbers<[1], [0], [0], [1], [0, 0, 1, 1], [], []>} : vector<1x128xbf16>, vector<128x128xbf16>, vector<1x128xf32> -> vector<1x128xf32>
    %30 = arith.addf %22, %29 : vector<1x128xf32>
    %c3_26 = arith.constant 3 : index
    %31 = arith.index_cast %23 : i32 to index
    %c0_27 = arith.constant 0 : index
    %c0_28 = arith.constant 0 : index
    %32 = vector.load %arg1[%c3_26, %31, %c0_27, %c0_28] : memref<4x2x2x128xbf16, #tpu.memory_space<vmem>>, vector<1x1x1x128xbf16>
    %33 = vector.shape_cast %32 : vector<1x1x1x128xbf16> to vector<1x128xbf16>
    %c4 = arith.constant 4 : index
    %c0_29 = arith.constant 0 : index
    %c0_30 = arith.constant 0 : index
    %34 = vector.load %arg2[%c4, %c0_29, %c0_30] : memref<9x128x128xbf16, #tpu.memory_space<vmem>>, vector<1x128x128xbf16>
    %35 = vector.shape_cast %34 : vector<1x128x128xbf16> to vector<128x128xbf16>
    %cst_31 = arith.constant dense<0.000000e+00> : vector<1x128xf32>
    %36 = tpu.matmul %33, %35, %cst_31 {dimension_numbers = #tpu.dot_dimension_numbers<[1], [0], [0], [1], [0, 0, 1, 1], [], []>} : vector<1x128xbf16>, vector<128x128xbf16>, vector<1x128xf32> -> vector<1x128xf32>
    %37 = arith.addf %30, %36 : vector<1x128xf32>
    %c2_32 = arith.constant 2 : index
    %38 = arith.index_cast %23 : i32 to index
    %c1_33 = arith.constant 1 : index
    %c0_34 = arith.constant 0 : index
    %39 = vector.load %arg1[%c2_32, %38, %c1_33, %c0_34] : memref<4x2x2x128xbf16, #tpu.memory_space<vmem>>, vector<1x1x1x128xbf16>
    %40 = vector.shape_cast %39 : vector<1x1x1x128xbf16> to vector<1x128xbf16>
    %c5 = arith.constant 5 : index
    %c0_35 = arith.constant 0 : index
    %c0_36 = arith.constant 0 : index
    %41 = vector.load %arg2[%c5, %c0_35, %c0_36] : memref<9x128x128xbf16, #tpu.memory_space<vmem>>, vector<1x128x128xbf16>
    %42 = vector.shape_cast %41 : vector<1x128x128xbf16> to vector<128x128xbf16>
    %cst_37 = arith.constant dense<0.000000e+00> : vector<1x128xf32>
    %43 = tpu.matmul %40, %42, %cst_37 {dimension_numbers = #tpu.dot_dimension_numbers<[1], [0], [0], [1], [0, 0, 1, 1], [], []>} : vector<1x128xbf16>, vector<128x128xbf16>, vector<1x128xf32> -> vector<1x128xf32>
    %44 = arith.addf %37, %43 : vector<1x128xf32>
    %c1_i32 = arith.constant 1 : i32
    %45 = arith.addi %c0_i32, %c1_i32 : i32
    %c0_38 = arith.constant 0 : index
    %46 = arith.index_cast %45 : i32 to index
    %c0_39 = arith.constant 0 : index
    %c0_40 = arith.constant 0 : index
    %47 = vector.load %arg1[%c0_38, %46, %c0_39, %c0_40] : memref<4x2x2x128xbf16, #tpu.memory_space<vmem>>, vector<1x1x1x128xbf16>
    %48 = vector.shape_cast %47 : vector<1x1x1x128xbf16> to vector<1x128xbf16>
    %c6 = arith.constant 6 : index
    %c0_41 = arith.constant 0 : index
    %c0_42 = arith.constant 0 : index
    %49 = vector.load %arg2[%c6, %c0_41, %c0_42] : memref<9x128x128xbf16, #tpu.memory_space<vmem>>, vector<1x128x128xbf16>
    %50 = vector.shape_cast %49 : vector<1x128x128xbf16> to vector<128x128xbf16>
    %cst_43 = arith.constant dense<0.000000e+00> : vector<1x128xf32>
    %51 = tpu.matmul %48, %50, %cst_43 {dimension_numbers = #tpu.dot_dimension_numbers<[1], [0], [0], [1], [0, 0, 1, 1], [], []>} : vector<1x128xbf16>, vector<128x128xbf16>, vector<1x128xf32> -> vector<1x128xf32>
    %52 = arith.addf %44, %51 : vector<1x128xf32>
    %c1_44 = arith.constant 1 : index
    %53 = arith.index_cast %45 : i32 to index
    %c0_45 = arith.constant 0 : index
    %c0_46 = arith.constant 0 : index
    %54 = vector.load %arg1[%c1_44, %53, %c0_45, %c0_46] : memref<4x2x2x128xbf16, #tpu.memory_space<vmem>>, vector<1x1x1x128xbf16>
    %55 = vector.shape_cast %54 : vector<1x1x1x128xbf16> to vector<1x128xbf16>
    %c7 = arith.constant 7 : index
    %c0_47 = arith.constant 0 : index
    %c0_48 = arith.constant 0 : index
    %56 = vector.load %arg2[%c7, %c0_47, %c0_48] : memref<9x128x128xbf16, #tpu.memory_space<vmem>>, vector<1x128x128xbf16>
    %57 = vector.shape_cast %56 : vector<1x128x128xbf16> to vector<128x128xbf16>
    %cst_49 = arith.constant dense<0.000000e+00> : vector<1x128xf32>
    %58 = tpu.matmul %55, %57, %cst_49 {dimension_numbers = #tpu.dot_dimension_numbers<[1], [0], [0], [1], [0, 0, 1, 1], [], []>} : vector<1x128xbf16>, vector<128x128xbf16>, vector<1x128xf32> -> vector<1x128xf32>
    %59 = arith.addf %52, %58 : vector<1x128xf32>
    %c0_50 = arith.constant 0 : index
    %60 = arith.index_cast %45 : i32 to index
    %c1_51 = arith.constant 1 : index
    %c0_52 = arith.constant 0 : index
    %61 = vector.load %arg1[%c0_50, %60, %c1_51, %c0_52] : memref<4x2x2x128xbf16, #tpu.memory_space<vmem>>, vector<1x1x1x128xbf16>
    %62 = vector.shape_cast %61 : vector<1x1x1x128xbf16> to vector<1x128xbf16>
    %c8 = arith.constant 8 : index
    %c0_53 = arith.constant 0 : index
    %c0_54 = arith.constant 0 : index
    %63 = vector.load %arg2[%c8, %c0_53, %c0_54] : memref<9x128x128xbf16, #tpu.memory_space<vmem>>, vector<1x128x128xbf16>
    %64 = vector.shape_cast %63 : vector<1x128x128xbf16> to vector<128x128xbf16>
    %cst_55 = arith.constant dense<0.000000e+00> : vector<1x128xf32>
    %65 = tpu.matmul %62, %64, %cst_55 {dimension_numbers = #tpu.dot_dimension_numbers<[1], [0], [0], [1], [0, 0, 1, 1], [], []>} : vector<1x128xbf16>, vector<128x128xbf16>, vector<1x128xf32> -> vector<1x128xf32>
    %66 = arith.addf %59, %65 : vector<1x128xf32>
    %c0_56 = arith.constant 0 : index
    %c0_57 = arith.constant 0 : index
    %67 = vector.load %arg3[%c0_56, %c0_57] : memref<1x128xf32, #tpu.memory_space<vmem>>, vector<1x128xf32>
    %68 = arith.addf %66, %67 : vector<1x128xf32>
    %cst_58 = arith.constant 0.000000e+00 : f32
    %69 = vector.broadcast %cst_58 : f32 to vector<1x128xf32>
    %70 = arith.maximumf %68, %69 : vector<1x128xf32>
    %71 = arith.truncf %70 : vector<1x128xf32> to vector<1x128xbf16>
    %c0_59 = arith.constant 0 : index
    %72 = arith.index_cast %c0_i32 : i32 to index
    %c0_60 = arith.constant 0 : index
    %c0_61 = arith.constant 0 : index
    %73 = vector.load %arg4[%c0_59, %72, %c0_60, %c0_61] : memref<1x1x1x128xbf16, #tpu.memory_space<vmem>>, vector<1x1x1x128xbf16>
    %74 = vector.shape_cast %73 : vector<1x1x1x128xbf16> to vector<1x128xbf16>
    %75 = vector.shape_cast %71 : vector<1x128xbf16> to vector<1x1x1x128xbf16>
    tpu.vector_store %arg4[%c0_59, %72, %c0_60, %c0_61], %75 {strides = array<i32>} : memref<1x1x1x128xbf16, #tpu.memory_space<vmem>>, vector<1x1x1x128xbf16>,
    %c1_i32_62 = arith.constant 1 : i32
    return
  }
  func.func @transform_0(%arg0: i32) -> (i32, i32, i32, i32) {
    %c0_i32 = arith.constant 0 : i32
    %c0_i32_0 = arith.constant 0 : i32
    %c0_i32_1 = arith.constant 0 : i32
    %c0_i32_2 = arith.constant 0 : i32
    return %arg0, %c0_i32, %c0_i32_0, %c0_i32_1 : i32, i32, i32, i32
  }
  func.func @transform_1(%arg0: i32) -> (i32, i32, i32) {
    %c0_i32 = arith.constant 0 : i32
    %c0_i32_0 = arith.constant 0 : i32
    %c0_i32_1 = arith.constant 0 : i32
    %c0_i32_2 = arith.constant 0 : i32
    return %c0_i32, %c0_i32_0, %c0_i32_1 : i32, i32, i32
  }
  func.func @transform_2(%arg0: i32) -> (i32, i32) {
    %c0_i32 = arith.constant 0 : i32
    %c0_i32_0 = arith.constant 0 : i32
    %c0_i32_1 = arith.constant 0 : i32
    return %c0_i32, %c0_i32_0 : i32, i32
  }
  func.func @transform_3(%arg0: i32) -> (i32, i32, i32, i32) {
    %c0_i32 = arith.constant 0 : i32
    %c0_i32_0 = arith.constant 0 : i32
    %c0_i32_1 = arith.constant 0 : i32
    %c0_i32_2 = arith.constant 0 : i32
    return %arg0, %c0_i32, %c0_i32_0, %c0_i32_1 : i32, i32, i32, i32
  }
}

module attributes {stable_mosaic.version = 11 : i64} {
  func.func @_conv_bn_res_kernel(%arg0: i32, %arg1: memref<1x3x3x128xbf16, #tpu.memory_space<vmem>>, %arg2: memref<9x128x128xbf16, #tpu.memory_space<vmem>>, %arg3: memref<1x128xf32, #tpu.memory_space<vmem>>, %arg4: memref<1x1x1x128xbf16, #tpu.memory_space<vmem>>, %arg5: memref<1x1x1x128xbf16, #tpu.memory_space<vmem>>) attributes {dimension_semantics = [#tpu.dimension_semantics<parallel>], iteration_bounds = array<i64: 2>, scalar_prefetch = 0 : i64, scratch_operands = 0 : i64, tpu.core_type = #tpu.core_type<tc>, window_params = [{transform_indices = @transform_0, window_bounds = array<i64: 1, 3, 3, 128>}, {pipeline_mode = #tpu.pipeline_mode<synchronous>, transform_indices = @transform_1, window_bounds = array<i64: 9, 128, 128>}, {pipeline_mode = #tpu.pipeline_mode<synchronous>, transform_indices = @transform_2, window_bounds = array<i64: 1, 128>}, {transform_indices = @transform_3, window_bounds = array<i64: 1, 1, 1, 128>}, {transform_indices = @transform_4, window_bounds = array<i64: 1, 1, 1, 128>}]} {
    %c0_i32 = arith.constant 0 : i32
    %cst = arith.constant 0.000000e+00 : f32
    %0 = vector.broadcast %cst : f32 to vector<1x128xf32>
    %c0_i32_0 = arith.constant 0 : i32
    %1 = arith.addi %c0_i32, %c0_i32_0 : i32
    %c0 = arith.constant 0 : index
    %2 = arith.index_cast %1 : i32 to index
    %c0_1 = arith.constant 0 : index
    %c0_2 = arith.constant 0 : index
    %3 = vector.load %arg1[%c0, %2, %c0_1, %c0_2] : memref<1x3x3x128xbf16, #tpu.memory_space<vmem>>, vector<1x1x1x128xbf16>
    %4 = vector.shape_cast %3 : vector<1x1x1x128xbf16> to vector<1x128xbf16>
    %c0_3 = arith.constant 0 : index
    %c0_4 = arith.constant 0 : index
    %c0_5 = arith.constant 0 : index
    %5 = vector.load %arg2[%c0_3, %c0_4, %c0_5] : memref<9x128x128xbf16, #tpu.memory_space<vmem>>, vector<1x128x128xbf16>
    %6 = vector.shape_cast %5 : vector<1x128x128xbf16> to vector<128x128xbf16>
    %cst_6 = arith.constant dense<0.000000e+00> : vector<1x128xf32>
    %7 = tpu.matmul %4, %6, %cst_6 {dimension_numbers = #tpu.dot_dimension_numbers<[1], [0], [0], [1], [0, 0, 1, 1], [], []>} : vector<1x128xbf16>, vector<128x128xbf16>, vector<1x128xf32> -> vector<1x128xf32>
    %8 = arith.addf %0, %7 : vector<1x128xf32>
    %c0_7 = arith.constant 0 : index
    %9 = arith.index_cast %1 : i32 to index
    %c1 = arith.constant 1 : index
    %c0_8 = arith.constant 0 : index
    %10 = vector.load %arg1[%c0_7, %9, %c1, %c0_8] : memref<1x3x3x128xbf16, #tpu.memory_space<vmem>>, vector<1x1x1x128xbf16>
    %11 = vector.shape_cast %10 : vector<1x1x1x128xbf16> to vector<1x128xbf16>
    %c1_9 = arith.constant 1 : index
    %c0_10 = arith.constant 0 : index
    %c0_11 = arith.constant 0 : index
    %12 = vector.load %arg2[%c1_9, %c0_10, %c0_11] : memref<9x128x128xbf16, #tpu.memory_space<vmem>>, vector<1x128x128xbf16>
    %13 = vector.shape_cast %12 : vector<1x128x128xbf16> to vector<128x128xbf16>
    %cst_12 = arith.constant dense<0.000000e+00> : vector<1x128xf32>
    %14 = tpu.matmul %11, %13, %cst_12 {dimension_numbers = #tpu.dot_dimension_numbers<[1], [0], [0], [1], [0, 0, 1, 1], [], []>} : vector<1x128xbf16>, vector<128x128xbf16>, vector<1x128xf32> -> vector<1x128xf32>
    %15 = arith.addf %8, %14 : vector<1x128xf32>
    %c0_13 = arith.constant 0 : index
    %16 = arith.index_cast %1 : i32 to index
    %c2 = arith.constant 2 : index
    %c0_14 = arith.constant 0 : index
    %17 = vector.load %arg1[%c0_13, %16, %c2, %c0_14] : memref<1x3x3x128xbf16, #tpu.memory_space<vmem>>, vector<1x1x1x128xbf16>
    %18 = vector.shape_cast %17 : vector<1x1x1x128xbf16> to vector<1x128xbf16>
    %c2_15 = arith.constant 2 : index
    %c0_16 = arith.constant 0 : index
    %c0_17 = arith.constant 0 : index
    %19 = vector.load %arg2[%c2_15, %c0_16, %c0_17] : memref<9x128x128xbf16, #tpu.memory_space<vmem>>, vector<1x128x128xbf16>
    %20 = vector.shape_cast %19 : vector<1x128x128xbf16> to vector<128x128xbf16>
    %cst_18 = arith.constant dense<0.000000e+00> : vector<1x128xf32>
    %21 = tpu.matmul %18, %20, %cst_18 {dimension_numbers = #tpu.dot_dimension_numbers<[1], [0], [0], [1], [0, 0, 1, 1], [], []>} : vector<1x128xbf16>, vector<128x128xbf16>, vector<1x128xf32> -> vector<1x128xf32>
    %22 = arith.addf %15, %21 : vector<1x128xf32>
    %c1_i32 = arith.constant 1 : i32
    %23 = arith.addi %c0_i32, %c1_i32 : i32
    %c0_19 = arith.constant 0 : index
    %24 = arith.index_cast %23 : i32 to index
    %c0_20 = arith.constant 0 : index
    %c0_21 = arith.constant 0 : index
    %25 = vector.load %arg1[%c0_19, %24, %c0_20, %c0_21] : memref<1x3x3x128xbf16, #tpu.memory_space<vmem>>, vector<1x1x1x128xbf16>
    %26 = vector.shape_cast %25 : vector<1x1x1x128xbf16> to vector<1x128xbf16>
    %c3 = arith.constant 3 : index
    %c0_22 = arith.constant 0 : index
    %c0_23 = arith.constant 0 : index
    %27 = vector.load %arg2[%c3, %c0_22, %c0_23] : memref<9x128x128xbf16, #tpu.memory_space<vmem>>, vector<1x128x128xbf16>
    %28 = vector.shape_cast %27 : vector<1x128x128xbf16> to vector<128x128xbf16>
    %cst_24 = arith.constant dense<0.000000e+00> : vector<1x128xf32>
    %29 = tpu.matmul %26, %28, %cst_24 {dimension_numbers = #tpu.dot_dimension_numbers<[1], [0], [0], [1], [0, 0, 1, 1], [], []>} : vector<1x128xbf16>, vector<128x128xbf16>, vector<1x128xf32> -> vector<1x128xf32>
    %30 = arith.addf %22, %29 : vector<1x128xf32>
    %c0_25 = arith.constant 0 : index
    %31 = arith.index_cast %23 : i32 to index
    %c1_26 = arith.constant 1 : index
    %c0_27 = arith.constant 0 : index
    %32 = vector.load %arg1[%c0_25, %31, %c1_26, %c0_27] : memref<1x3x3x128xbf16, #tpu.memory_space<vmem>>, vector<1x1x1x128xbf16>
    %33 = vector.shape_cast %32 : vector<1x1x1x128xbf16> to vector<1x128xbf16>
    %c4 = arith.constant 4 : index
    %c0_28 = arith.constant 0 : index
    %c0_29 = arith.constant 0 : index
    %34 = vector.load %arg2[%c4, %c0_28, %c0_29] : memref<9x128x128xbf16, #tpu.memory_space<vmem>>, vector<1x128x128xbf16>
    %35 = vector.shape_cast %34 : vector<1x128x128xbf16> to vector<128x128xbf16>
    %cst_30 = arith.constant dense<0.000000e+00> : vector<1x128xf32>
    %36 = tpu.matmul %33, %35, %cst_30 {dimension_numbers = #tpu.dot_dimension_numbers<[1], [0], [0], [1], [0, 0, 1, 1], [], []>} : vector<1x128xbf16>, vector<128x128xbf16>, vector<1x128xf32> -> vector<1x128xf32>
    %37 = arith.addf %30, %36 : vector<1x128xf32>
    %c0_31 = arith.constant 0 : index
    %38 = arith.index_cast %23 : i32 to index
    %c2_32 = arith.constant 2 : index
    %c0_33 = arith.constant 0 : index
    %39 = vector.load %arg1[%c0_31, %38, %c2_32, %c0_33] : memref<1x3x3x128xbf16, #tpu.memory_space<vmem>>, vector<1x1x1x128xbf16>
    %40 = vector.shape_cast %39 : vector<1x1x1x128xbf16> to vector<1x128xbf16>
    %c5 = arith.constant 5 : index
    %c0_34 = arith.constant 0 : index
    %c0_35 = arith.constant 0 : index
    %41 = vector.load %arg2[%c5, %c0_34, %c0_35] : memref<9x128x128xbf16, #tpu.memory_space<vmem>>, vector<1x128x128xbf16>
    %42 = vector.shape_cast %41 : vector<1x128x128xbf16> to vector<128x128xbf16>
    %cst_36 = arith.constant dense<0.000000e+00> : vector<1x128xf32>
    %43 = tpu.matmul %40, %42, %cst_36 {dimension_numbers = #tpu.dot_dimension_numbers<[1], [0], [0], [1], [0, 0, 1, 1], [], []>} : vector<1x128xbf16>, vector<128x128xbf16>, vector<1x128xf32> -> vector<1x128xf32>
    %44 = arith.addf %37, %43 : vector<1x128xf32>
    %c2_i32 = arith.constant 2 : i32
    %45 = arith.addi %c0_i32, %c2_i32 : i32
    %c0_37 = arith.constant 0 : index
    %46 = arith.index_cast %45 : i32 to index
    %c0_38 = arith.constant 0 : index
    %c0_39 = arith.constant 0 : index
    %47 = vector.load %arg1[%c0_37, %46, %c0_38, %c0_39] : memref<1x3x3x128xbf16, #tpu.memory_space<vmem>>, vector<1x1x1x128xbf16>
    %48 = vector.shape_cast %47 : vector<1x1x1x128xbf16> to vector<1x128xbf16>
    %c6 = arith.constant 6 : index
    %c0_40 = arith.constant 0 : index
    %c0_41 = arith.constant 0 : index
    %49 = vector.load %arg2[%c6, %c0_40, %c0_41] : memref<9x128x128xbf16, #tpu.memory_space<vmem>>, vector<1x128x128xbf16>
    %50 = vector.shape_cast %49 : vector<1x128x128xbf16> to vector<128x128xbf16>
    %cst_42 = arith.constant dense<0.000000e+00> : vector<1x128xf32>
    %51 = tpu.matmul %48, %50, %cst_42 {dimension_numbers = #tpu.dot_dimension_numbers<[1], [0], [0], [1], [0, 0, 1, 1], [], []>} : vector<1x128xbf16>, vector<128x128xbf16>, vector<1x128xf32> -> vector<1x128xf32>
    %52 = arith.addf %44, %51 : vector<1x128xf32>
    %c0_43 = arith.constant 0 : index
    %53 = arith.index_cast %45 : i32 to index
    %c1_44 = arith.constant 1 : index
    %c0_45 = arith.constant 0 : index
    %54 = vector.load %arg1[%c0_43, %53, %c1_44, %c0_45] : memref<1x3x3x128xbf16, #tpu.memory_space<vmem>>, vector<1x1x1x128xbf16>
    %55 = vector.shape_cast %54 : vector<1x1x1x128xbf16> to vector<1x128xbf16>
    %c7 = arith.constant 7 : index
    %c0_46 = arith.constant 0 : index
    %c0_47 = arith.constant 0 : index
    %56 = vector.load %arg2[%c7, %c0_46, %c0_47] : memref<9x128x128xbf16, #tpu.memory_space<vmem>>, vector<1x128x128xbf16>
    %57 = vector.shape_cast %56 : vector<1x128x128xbf16> to vector<128x128xbf16>
    %cst_48 = arith.constant dense<0.000000e+00> : vector<1x128xf32>
    %58 = tpu.matmul %55, %57, %cst_48 {dimension_numbers = #tpu.dot_dimension_numbers<[1], [0], [0], [1], [0, 0, 1, 1], [], []>} : vector<1x128xbf16>, vector<128x128xbf16>, vector<1x128xf32> -> vector<1x128xf32>
    %59 = arith.addf %52, %58 : vector<1x128xf32>
    %c0_49 = arith.constant 0 : index
    %60 = arith.index_cast %45 : i32 to index
    %c2_50 = arith.constant 2 : index
    %c0_51 = arith.constant 0 : index
    %61 = vector.load %arg1[%c0_49, %60, %c2_50, %c0_51] : memref<1x3x3x128xbf16, #tpu.memory_space<vmem>>, vector<1x1x1x128xbf16>
    %62 = vector.shape_cast %61 : vector<1x1x1x128xbf16> to vector<1x128xbf16>
    %c8 = arith.constant 8 : index
    %c0_52 = arith.constant 0 : index
    %c0_53 = arith.constant 0 : index
    %63 = vector.load %arg2[%c8, %c0_52, %c0_53] : memref<9x128x128xbf16, #tpu.memory_space<vmem>>, vector<1x128x128xbf16>
    %64 = vector.shape_cast %63 : vector<1x128x128xbf16> to vector<128x128xbf16>
    %cst_54 = arith.constant dense<0.000000e+00> : vector<1x128xf32>
    %65 = tpu.matmul %62, %64, %cst_54 {dimension_numbers = #tpu.dot_dimension_numbers<[1], [0], [0], [1], [0, 0, 1, 1], [], []>} : vector<1x128xbf16>, vector<128x128xbf16>, vector<1x128xf32> -> vector<1x128xf32>
    %66 = arith.addf %59, %65 : vector<1x128xf32>
    %c0_55 = arith.constant 0 : index
    %c0_56 = arith.constant 0 : index
    %67 = vector.load %arg3[%c0_55, %c0_56] : memref<1x128xf32, #tpu.memory_space<vmem>>, vector<1x128xf32>
    %68 = arith.addf %66, %67 : vector<1x128xf32>
    %c0_57 = arith.constant 0 : index
    %69 = arith.index_cast %c0_i32 : i32 to index
    %c0_58 = arith.constant 0 : index
    %c0_59 = arith.constant 0 : index
    %70 = vector.load %arg4[%c0_57, %69, %c0_58, %c0_59] : memref<1x1x1x128xbf16, #tpu.memory_space<vmem>>, vector<1x1x1x128xbf16>
    %71 = vector.shape_cast %70 : vector<1x1x1x128xbf16> to vector<1x128xbf16>
    %72 = arith.extf %71 : vector<1x128xbf16> to vector<1x128xf32>
    %73 = arith.addf %68, %72 : vector<1x128xf32>
    %cst_60 = arith.constant 0.000000e+00 : f32
    %74 = vector.broadcast %cst_60 : f32 to vector<1x128xf32>
    %75 = arith.maximumf %73, %74 : vector<1x128xf32>
    %76 = arith.truncf %75 : vector<1x128xf32> to vector<1x128xbf16>
    %c0_61 = arith.constant 0 : index
    %77 = arith.index_cast %c0_i32 : i32 to index
    %c0_62 = arith.constant 0 : index
    %c0_63 = arith.constant 0 : index
    %78 = vector.load %arg5[%c0_61, %77, %c0_62, %c0_63] : memref<1x1x1x128xbf16, #tpu.memory_space<vmem>>, vector<1x1x1x128xbf16>
    %79 = vector.shape_cast %78 : vector<1x1x1x128xbf16> to vector<1x128xbf16>
    %80 = vector.shape_cast %76 : vector<1x128xbf16> to vector<1x1x1x128xbf16>
    tpu.vector_store %arg5[%c0_61, %77, %c0_62, %c0_63], %80 {strides = array<i32>} : memref<1x1x1x128xbf16, #tpu.memory_space<vmem>>, vector<1x1x1x128xbf16>,
    %c1_i32_64 = arith.constant 1 : i32
    return
  }
  func.func @transform_0(%arg0: i32) -> (i32, i32, i32, i32) {
    %c0_i32 = arith.constant 0 : i32
    %c0_i32_0 = arith.constant 0 : i32
    %c0_i32_1 = arith.constant 0 : i32
    %c0_i32_2 = arith.constant 0 : i32
    return %arg0, %c0_i32, %c0_i32_0, %c0_i32_1 : i32, i32, i32, i32
  }
  func.func @transform_1(%arg0: i32) -> (i32, i32, i32) {
    %c0_i32 = arith.constant 0 : i32
    %c0_i32_0 = arith.constant 0 : i32
    %c0_i32_1 = arith.constant 0 : i32
    %c0_i32_2 = arith.constant 0 : i32
    return %c0_i32, %c0_i32_0, %c0_i32_1 : i32, i32, i32
  }
  func.func @transform_2(%arg0: i32) -> (i32, i32) {
    %c0_i32 = arith.constant 0 : i32
    %c0_i32_0 = arith.constant 0 : i32
    %c0_i32_1 = arith.constant 0 : i32
    return %c0_i32, %c0_i32_0 : i32, i32
  }
  func.func @transform_3(%arg0: i32) -> (i32, i32, i32, i32) {
    %c0_i32 = arith.constant 0 : i32
    %c0_i32_0 = arith.constant 0 : i32
    %c0_i32_1 = arith.constant 0 : i32
    %c0_i32_2 = arith.constant 0 : i32
    return %arg0, %c0_i32, %c0_i32_0, %c0_i32_1 : i32, i32, i32, i32
  }
  func.func @transform_4(%arg0: i32) -> (i32, i32, i32, i32) {
    %c0_i32 = arith.constant 0 : i32
    %c0_i32_0 = arith.constant 0 : i32
    %c0_i32_1 = arith.constant 0 : i32
    %c0_i32_2 = arith.constant 0 : i32
    return %arg0, %c0_i32, %c0_i32_0, %c0_i32_1 : i32, i32, i32, i32
  }
}

module attributes {stable_mosaic.version = 11 : i64} {
  func.func @_avgpool_kernel(%arg0: i32, %arg1: memref<2x1x128xbf16, #tpu.memory_space<vmem>>, %arg2: memref<2x128xf32, #tpu.memory_space<vmem>>) attributes {dimension_semantics = [#tpu.dimension_semantics<arbitrary>], iteration_bounds = array<i64: 1>, scalar_prefetch = 0 : i64, scratch_operands = 0 : i64, tpu.core_type = #tpu.core_type<tc>, window_params = [{pipeline_mode = #tpu.pipeline_mode<synchronous>, transform_indices = @transform_0, window_bounds = array<i64: 2, 1, 128>}, {pipeline_mode = #tpu.pipeline_mode<synchronous>, transform_indices = @transform_1, window_bounds = array<i64: 2, 128>}]} {
    %c0 = arith.constant 0 : index
    %c0_0 = arith.constant 0 : index
    %c0_1 = arith.constant 0 : index
    %0 = vector.load %arg1[%c0, %c0_0, %c0_1] : memref<2x1x128xbf16, #tpu.memory_space<vmem>>, vector<2x1x128xbf16>
    %1 = arith.extf %0 : vector<2x1x128xbf16> to vector<2x1x128xf32>
    %cst = arith.constant dense<0.000000e+00> : vector<2x128xf32>
    %2 = vector.multi_reduction <add>, %1, %cst [1] : vector<2x1x128xf32> to vector<2x128xf32>
    %cst_2 = arith.constant 1.000000e+00 : f32
    %3 = vector.broadcast %cst_2 : f32 to vector<2x128xf32>
    %4 = arith.divf %2, %3 : vector<2x128xf32>
    %c0_3 = arith.constant 0 : index
    %c0_4 = arith.constant 0 : index
    %5 = vector.load %arg2[%c0_3, %c0_4] : memref<2x128xf32, #tpu.memory_space<vmem>>, vector<2x128xf32>
    tpu.vector_store %arg2[%c0_3, %c0_4], %4 {strides = array<i32>} : memref<2x128xf32, #tpu.memory_space<vmem>>, vector<2x128xf32>,
    return
  }
  func.func @transform_0(%arg0: i32) -> (i32, i32, i32) {
    %c0_i32 = arith.constant 0 : i32
    %c0_i32_0 = arith.constant 0 : i32
    %c0_i32_1 = arith.constant 0 : i32
    %c0_i32_2 = arith.constant 0 : i32
    return %c0_i32, %c0_i32_0, %c0_i32_1 : i32, i32, i32
  }
  func.func @transform_1(%arg0: i32) -> (i32, i32) {
    %c0_i32 = arith.constant 0 : i32
    %c0_i32_0 = arith.constant 0 : i32
    %c0_i32_1 = arith.constant 0 : i32
    return %c0_i32, %c0_i32_0 : i32, i32
  }
}

</mosaic_0001>

<bundles_post_ra>
// kernel: _lambda_.15
= control target key start
LH: loop header
LB: loop body
LE: loop exit
PB: predicated region body
PF: predicated region fallthrough
CT: control target
= control target key end

     0   :  { %s785_s6 = smov 0   ;;  %s1055_s0 = inlined_call_operand.vmem [shape: bf16[8,9,9,64], index: 0, kind: input, shape index: {}]   ;;  %s1056_s1 = inlined_call_operand.vmem [shape: bf16[2,8,8,64], index: 1, kind: output, shape index: {}]  }
   0x1 LB: > { %s791_s7 = sadd.s32 4294967295, %s773_s6   ;;  %p694_p0 = scmp.ge.s32.totalorder %s773_s6, 1  ;;  %s773_s6 = sphi %s785_s6, %s11_s6  }
   0x2   : > { %p89_p1 = scmp.lt.s32.totalorder %s773_s6, 3 }
   0x4   : > { %p90_p2 = pnand %p694_p0, %p89_p1 }
   0x5   : > { %s695_s8 = sshll.u32 (!%p90_p2), %s791_s7, 2  ;;  %vm155_vm0 = vsmask.f32 (!%p90_p2), 3328  ;;  %vm156_vm1 = vsmask.f32 (!%p90_p2), 7440  ;;  %p117_p4 = scmp.lt.s32.totalorder (!%p90_p2), %s791_s7, 1 }
   0x6   : > { %93 = sbr.rel (%p90_p2) target bundleno = 100 (0x64), region = 24  ;;  %p111_p3 = scmp.lt.s32.totalorder (!%p90_p2), %s695_s8, 7  ;;  %vm815_vm2 = vmor (!%p90_p2), %vm155_vm0, %vm156_vm1  ;;  %vm626_vm3 = vcmask (!%p90_p2), 519168  }
   0xd   : > { %s1060_s8 = smov (!%p111_p3, %s695_s8), 7  ;;  %s1062_s7 = smov (!%p117_p4, %s791_s7), 1 }
   0xe   : > { %s758_s9 = smul.u32 72, %s1060_s8  ;;  %s757_s13 = sshll.u32 %s1062_s7, 5 }
   0xf   : > { %s880_s16 = scalar_lea.vmem %s1056_s1, %s757_s13 }
  0x10   : > { %s799_s12 = scalar_lea.vmem %s1055_s0, %s758_s9 }
  0x11   : > { %v122_v0 = vld [vmem:[%s799_s12] sm:$0xf]  ;;  %v147_v1 = vld [vmem:[%s799_s12 + $0x4] sm:$0x1]  ;;  %v707_v5 = vld [vmem:[%s799_s12 + $0x90] sm:$0xf] }
  0x12   : > { %v159_v2 = vshrl.u32 %v122_v0, 16  ;;  %v162_v3 = vshll.u32 %v122_v0, 16  ;;  %v168_v4 = vshll.u32 %v147_v1, 16  ;;  %v699_v6 = vld [vmem:[%s799_s12 + $0x48] sm:$0xf]  ;;  %v329_v8 = vshrl.u32 %v707_v5, 16 }
  0x13   : > { %v723_v7 = vld [vmem:[%s799_s12 + $0x94] sm:$0x1]  ;;  %v332_v9 = vshll.u32 %v707_v5, 16  ;;  %v807_v13 = vld [vmem:[%s799_s12 + $0x8] sm:$0xf]  ;;  %v139_v22 = vmax.bf16 %v699_v6, %v122_v0 }
  0x14   : > { %v161_v10 = vrot.slane %v159_v2, 4  ;;  %v164_v11 = vrot.slane %v162_v3, 5  ;;  %v338_v12 = vshll.u32 %v723_v7, 16  ;;  %v331_v14 = vrot.slane %v329_v8, 4  ;;  %v747_v16 = vld [vmem:[%s799_s12 + $0xc] sm:$0x1] }
  0x15   : > { %v334_v15 = vrot.slane %v332_v9, 5  ;;  %v170_v18 = vrot.slane %v168_v4, 5  ;;  %v499_v19 = vshrl.u32 %v807_v13, 16  ;;  %v502_v20 = vshll.u32 %v807_v13, 16  ;;  %v123_v21 = vld [vmem:[%s799_s12 + $0x8] sm:$0xf] }
  0x16   : > { %v165_v17 = vor.u32 %v164_v11, %v161_v10  ;;  %v508_v25 = vshll.u32 %v747_v16, 16  ;;  %v700_v26 = vld [vmem:[%s799_s12 + $0x50] sm:$0xf]  ;;  %v148_v27 = vld [vmem:[%s799_s12 + $0xc] sm:$0x1]  ;;  %v173_v28 = vshrl.u32 %v123_v21, 16 }
  0x17   : > { %v335_v24 = vor.u32 %v334_v15, %v331_v14  ;;  %v340_v30 = vrot.slane %v338_v12, 5  ;;  %v501_v31 = vrot.slane %v499_v19, 4  ;;  %v504_v32 = vrot.slane %v502_v20, 5  ;;  %v822_v33 = vld [vmem:[%s799_s12 + $0x98] sm:$0xf] }
  0x18   : > { %v166_v29 = vrot.slane %v165_v17, 4  ;;  %v140_v35 = vmax.bf16 %v700_v26, %v123_v21  ;;  %v175_v36 = vrot.slane %v173_v28, 4  ;;  %v176_v37 = vshll.u32 %v123_v21, 16  ;;  %v724_v41 = vld [vmem:[%s799_s12 + $0x9c] sm:$0x1] }
  0x19   : > { %v336_v34 = vrot.slane %v335_v24, 4  ;;  %v505_v39 = vor.u32 %v504_v32, %v501_v31  ;;  %v182_v40 = vshll.u32 %v148_v27, 16  ;;  %v343_v42 = vshrl.u32 %v822_v33, 16  ;;  %v830_v43 = vld [vmem:[%s799_s12 + $0x10] sm:$0xf] }
  0x1a   : > { %v171_v38 = vsel %vm815_vm2, %v166_v29, %v170_v18  ;;  %v832_v45 = vrot.slane %v508_v25, 5  ;;  %v178_v46 = vrot.slane %v176_v37, 5  ;;  %v346_v47 = vshll.u32 %v822_v33, 16  ;;  %v748_v48 = vld [vmem:[%s799_s12 + $0x14] sm:$0x1] }
  0x1b   : > { %v278_v44 = vmax.bf16 %v171_v38, %v139_v22  ;;  %v715_v49 = vld [vmem:[%s799_s12 + $0xd8] sm:$0xf]  ;;  %v506_v50 = vrot.slane %v505_v39, 4  ;;  %v184_v51 = vrot.slane %v182_v40, 5  ;;  %v345_v52 = vrot.slane %v343_v42, 4 }
  0x1c   : > { %v352_v53 = vshll.u32 %v724_v41, 16  ;;  %v179_v55 = vor.u32 %v178_v46, %v175_v36  ;;  %v348_v56 = vrot.slane %v346_v47, 5  ;;  %v513_v57 = vshrl.u32 %v830_v43, 16  ;;  %v844_v58 = vld [vmem:[%s799_s12 + $0x10] sm:$0xf] }
  0x1d   : > { %v295_v54 = vmax.bf16 %v707_v5, %v278_v44  ;;  %v341_v59 = vsel %vm815_vm2, %v336_v34, %v340_v30  ;;  %v516_v61 = vshll.u32 %v830_v43, 16  ;;  %v522_v62 = vshll.u32 %v748_v48, 16  ;;  %v149_v3 = vld [vmem:[%s799_s12 + $0x14] sm:$0x1]  ;;  %v857_v8 = vld [vmem:[%s799_s12 + $0xa0] sm:$0xf] }
  0x1e   : > { %v354_v60 = vrot.slane %v352_v53, 5  ;;  %v180_v0 = vrot.slane %v179_v55, 4  ;;  %v349_v1 = vor.u32 %v348_v56, %v345_v52  ;;  %v515_v2 = vrot.slane %v513_v57, 4  ;;  %v739_v10 = vld [vmem:[%s799_s12 + $0x50] sm:$0xf] }
  0x1f   : > { %v312_v63 = vmax.bf16 %v715_v49, %v295_v54  ;;  %v511_v4 = vsel %vm815_vm2, %v506_v50, %v832_v45  ;;  %v518_v5 = vrot.slane %v516_v61, 5  ;;  %v853_v6 = vrot.slane %v522_v62, 5  ;;  %v716_v16 = vld [vmem:[%s799_s12 + $0xe0] sm:$0xf]  ;;  %v725_v20 = vld [vmem:[%s799_s12 + $0xa4] sm:$0x1] }
  0x20   : > { %v187_v7 = vshrl.u32 %v844_v58, 16  ;;  %v185_v11 = vsel %vm815_vm2, %v180_v0, %v184_v51  ;;  %v350_v12 = vrot.slane %v349_v1, 4  ;;  %v190_v14 = vshll.u32 %v844_v58, 16  ;;  %v701_v24 = vld [vmem:[%s799_s12 + $0x58] sm:$0xf] }
  0x21   : > { %v448_v9 = vmax.bf16 %v341_v59, %v312_v63  ;;  %v279_v15 = vmax.bf16 %v185_v11, %v140_v35  ;;  %v519_v17 = vor.u32 %v518_v5, %v515_v2  ;;  %v196_v19 = vshll.u32 %v149_v3, 16  ;;  %v872_v27 = vld [vmem:[%s799_s12 + $0x18] sm:$0xf]  ;;  %v749_v36 = vld [vmem:[%s799_s12 + $0x1c] sm:$0x1] }
  0x22   : > { %v189_v18 = vrot.slane %v187_v7, 4  ;;  %v355_v22 = vsel %vm815_vm2, %v350_v12, %v354_v60  ;;  %v192_v25 = vrot.slane %v190_v14, 5  ;;  %v357_v26 = vshrl.u32 %v857_v8, 16  ;;  %v885_v40 = vld [vmem:[%s799_s12 + $0x18] sm:$0xf] }
  0x23   : > { %v465_v21 = vmax.bf16 %v807_v13, %v448_v9  ;;  %v296_v28 = vmax.bf16 %v822_v33, %v279_v15  ;;  %v520_v29 = vrot.slane %v519_v17, 4  ;;  %v198_v30 = vrot.slane %v196_v19, 5  ;;  %v892_v46 = vld [vmem:[%s799_s12 + $0x60] sm:$0xf]  ;;  %v740_v48 = vld [vmem:[%s799_s12 + $0x58] sm:$0xf] }
  0x24   : > { %v360_v31 = vshll.u32 %v857_v8, 16  ;;  %v193_v34 = vor.u32 %v192_v25, %v189_v18  ;;  %v359_v13 = vrot.slane %v357_v26, 4  ;;  %v366_v35 = vshll.u32 %v725_v20, 16  ;;  %v150_v52 = vld [vmem:[%s799_s12 + $0x1c] sm:$0x1] }
  0x25   : > { %v482_v32 = vmax.bf16 %v739_v10, %v465_v21  ;;  %v313_v37 = vmax.bf16 %v716_v16, %v296_v28  ;;  %v141_v33 = vmax.bf16 %v701_v24, %v844_v58  ;;  %v527_v39 = vshrl.u32 %v872_v27, 16  ;;  %v902_v57 = vld [vmem:[%s799_s12 + $0xa8] sm:$0xf]  ;;  %v726_v3 = vld [vmem:[%s799_s12 + $0xac] sm:$0x1] }
  0x26   : > { %v362_v38 = vrot.slane %v360_v31, 5  ;;  %v525_v42 = vsel %vm815_vm2, %v520_v29, %v853_v6  ;;  %v194_v44 = vrot.slane %v193_v34, 4  ;;  %v530_v45 = vshll.u32 %v872_v27, 16  ;;  %v717_v60 = vld [vmem:[%s799_s12 + $0xe8] sm:$0xf] }
  0x27   : > { %v618_v41 = vmax.bf16 %v511_v4, %v482_v32  ;;  %v449_v47 = vmax.bf16 %v355_v22, %v313_v37  ;;  %v529_v50 = vrot.slane %v527_v39, 4  ;;  %v536_v51 = vshll.u32 %v749_v36, 16  ;;  %v913_v7 = vld [vmem:[%s799_s12 + $0x20] sm:$0xf]  ;;  %v750_v14 = vld [vmem:[%s799_s12 + $0x24] sm:$0x1] }
  0x28   : > { %v363_v49 = vor.u32 %v362_v38, %v359_v13  ;;  %v199_v53 = vsel %vm815_vm2, %v194_v44, %v198_v30  ;;  %v368_v54 = vrot.slane %v366_v35, 5  ;;  %v532_v55 = vrot.slane %v530_v45, 5  ;;  %v921_v22 = vld [vmem:[%s799_s12 + $0x20] sm:$0xf]  ;;  %v151_v29 = vld [vmem:[%s799_s12 + $0x24] sm:$0x1] }
  0x29   : > { %627 = vst.msk [vmem:[%s880_s16] sm:$0xf] %vm626_vm3, %v618_v41  ;;  %v201_v56 = vshrl.u32 %v885_v40, 16  ;;  %v466_v58 = vmax.bf16 %v830_v43, %v449_v47  ;;  %v280_v59 = vmax.bf16 %v199_v53, %v141_v33  ;;  %v142_v62 = vmax.bf16 %v892_v46, %v885_v40  ;;  %v741_v30 = vld [vmem:[%s799_s12 + $0x60] sm:$0xf] }
  0x2a   : > { %v364_v61 = vrot.slane %v363_v49, 4  ;;  %v533_v63 = vor.u32 %v532_v55, %v529_v50  ;;  %v204_v1 = vshll.u32 %v885_v40, 16  ;;  %v210_v2 = vshll.u32 %v150_v52, 16  ;;  %v935_v38 = vld [vmem:[%s799_s12 + $0xb0] sm:$0xf] }
  0x2b   : > { %v203_v0 = vrot.slane %v201_v56, 4  ;;  %v483_v4 = vmax.bf16 %v740_v48, %v466_v58  ;;  %v297_v5 = vmax.bf16 %v857_v8, %v280_v59  ;;  %v538_v6 = vrot.slane %v536_v51, 5  ;;  %v718_v40 = vld [vmem:[%s799_s12 + $0xf0] sm:$0xf]  ;;  %v727_v48 = vld [vmem:[%s799_s12 + $0xb4] sm:$0x1] }
  0x2c   : > { %v371_v43 = vshrl.u32 %v902_v57, 16  ;;  %v369_v9 = vsel %vm815_vm2, %v364_v61, %v368_v54  ;;  %v534_v10 = vrot.slane %v533_v63, 4  ;;  %v206_v11 = vrot.slane %v204_v1, 5  ;;  %v943_v49 = vld [vmem:[%s799_s12 + $0x28] sm:$0xf] }
  0x2d   : > { %v374_v12 = vshll.u32 %v902_v57, 16  ;;  %v619_v15 = vmax.bf16 %v525_v42, %v483_v4  ;;  %v314_v16 = vmax.bf16 %v717_v60, %v297_v5  ;;  %v380_v17 = vshll.u32 %v726_v3, 16  ;;  %v703_v51 = vld [vmem:[%s799_s12 + $0x68] sm:$0xf]  ;;  %v751_v63 = vld [vmem:[%s799_s12 + $0x2c] sm:$0x1] }
  0x2e   : > { %v373_v8 = vrot.slane %v371_v43, 4  ;;  %v207_v18 = vor.u32 %v206_v11, %v203_v0  ;;  %v212_v19 = vrot.slane %v210_v2, 5  ;;  %v541_v21 = vshrl.u32 %v913_v7, 16  ;;  %v127_v4 = vld [vmem:[%s799_s12 + $0x28] sm:$0xf] }
  0x2f   : > { %v376_v20 = vrot.slane %v374_v12, 5  ;;  %628 = vst.msk [vmem:[%s880_s16 + $0x4] sm:$0xf] %vm626_vm3, %v619_v15  ;;  %v450_v24 = vmax.bf16 %v369_v9, %v314_v16  ;;  %v539_v25 = vsel %vm815_vm2, %v534_v10, %v538_v6  ;;  %v544_v26 = vshll.u32 %v913_v7, 16  ;;  %v704_v5 = vld [vmem:[%s799_s12 + $0x70] sm:$0xf] }
  0x30   : > { %v550_v28 = vshll.u32 %v750_v14, 16  ;;  %v208_v31 = vrot.slane %v207_v18, 4  ;;  %v382_v34 = vrot.slane %v380_v17, 5  ;;  %v543_v13 = vrot.slane %v541_v21, 4  ;;  %v152_v16 = vld [vmem:[%s799_s12 + $0x2c] sm:$0x1] }
  0x31   : > { %v377_v32 = vor.u32 %v376_v20, %v373_v8  ;;  %v467_v35 = vmax.bf16 %v872_v27, %v450_v24  ;;  %v546_v36 = vrot.slane %v544_v26, 5  ;;  %v215_v33 = vshrl.u32 %v921_v22, 16  ;;  %v964_v8 = vld [vmem:[%s799_s12 + $0xb8] sm:$0xf]  ;;  %v742_v17 = vld [vmem:[%s799_s12 + $0x68] sm:$0xf] }
  0x32   : > { %v931_v37 = vrot.slane %v550_v28, 5  ;;  %v213_v39 = vsel %vm815_vm2, %v208_v31, %v212_v19  ;;  %v218_v42 = vshll.u32 %v921_v22, 16  ;;  %v224_v44 = vshll.u32 %v151_v29, 16 }
  0x33   : > { %v378_v41 = vrot.slane %v377_v32, 4  ;;  %v484_v45 = vmax.bf16 %v741_v30, %v467_v35  ;;  %v281_v46 = vmax.bf16 %v213_v39, %v142_v62  ;;  %v547_v47 = vor.u32 %v546_v36, %v543_v13  ;;  %v728_v32 = vld [vmem:[%s799_s12 + $0xbc] sm:$0x1] }
  0x34   : > { %v217_v27 = vrot.slane %v215_v33, 4  ;;  %v220_v52 = vrot.slane %v218_v42, 5  ;;  %v226_v53 = vrot.slane %v224_v44, 5  ;;  %v385_v54 = vshrl.u32 %v935_v38, 16  ;;  %v752_v42 = vld [vmem:[%s799_s12 + $0x34] sm:$0x1] }
  0x35   : > { %v383_v50 = vsel %vm815_vm2, %v378_v41, %v382_v34  ;;  %v620_v55 = vmax.bf16 %v539_v25, %v484_v45  ;;  %v298_v56 = vmax.bf16 %v902_v57, %v281_v46  ;;  %v548_v58 = vrot.slane %v547_v47, 4  ;;  %v719_v25 = vld [vmem:[%s799_s12 + $0xf8] sm:$0xf] }
  0x36   : > { %v388_v59 = vshll.u32 %v935_v38, 16  ;;  %v221_v60 = vor.u32 %v220_v52, %v217_v27  ;;  %v387_v61 = vrot.slane %v385_v54, 4  ;;  %v394_v62 = vshll.u32 %v727_v48, 16 }
  0x37   : > { %v555_v0 = vshrl.u32 %v943_v49, 16  ;;  %629 = vst.msk [vmem:[%s880_s16 + $0x8] sm:$0xf] %vm626_vm3, %v620_v55  ;;  %v315_v1 = vmax.bf16 %v718_v40, %v298_v56  ;;  %v143_v2 = vmax.bf16 %v703_v51, %v921_v22  ;;  %v558_v57 = vshll.u32 %v943_v49, 16  ;;  %v984_v51 = vld [vmem:[%s799_s12 + $0x30] sm:$0xf] }
  0x38   : > { %v390_v3 = vrot.slane %v388_v59, 5  ;;  %v553_v6 = vsel %vm815_vm2, %v548_v58, %v931_v37  ;;  %v222_v43 = vrot.slane %v221_v60, 4  ;;  %v396_v9 = vrot.slane %v394_v62, 5  ;;  %v153_v55 = vld [vmem:[%s799_s12 + $0x34] sm:$0x1] }
  0x39   : > { %v557_v10 = vrot.slane %v555_v0, 4  ;;  %v451_v11 = vmax.bf16 %v383_v50, %v315_v1  ;;  %v560_v14 = vrot.slane %v558_v57, 5  ;;  %v564_v15 = vshll.u32 %v751_v63, 16  ;;  %v743_v56 = vld [vmem:[%s799_s12 + $0x70] sm:$0xf] }
  0x3a   : > { %v391_v12 = vor.u32 %v390_v3, %v387_v61  ;;  %v227_v18 = vsel %vm815_vm2, %v222_v43, %v226_v53  ;;  %v144_v19 = vmax.bf16 %v704_v5, %v127_v4  ;;  %v229_v20 = vshrl.u32 %v127_v4, 16  ;;  %v993_v62 = vld [vmem:[%s799_s12 + $0xc0] sm:$0xf] }
  0x3b   : > { %v232_v21 = vshll.u32 %v127_v4, 16  ;;  %v468_v22 = vmax.bf16 %v913_v7, %v451_v11  ;;  %v282_v24 = vmax.bf16 %v227_v18, %v143_v2  ;;  %v561_v28 = vor.u32 %v560_v14, %v557_v10  ;;  %v977_v7 = vld [vmem:[%s799_s12 + $0x30] sm:$0xf]  ;;  %v720_v3 = vld [vmem:[%s799_s12 + $0x100] sm:$0xf] }
  0x3c   : > { %v392_v26 = vrot.slane %v391_v12, 4  ;;  %v231_v29 = vrot.slane %v229_v20, 4  ;;  %v238_v31 = vshll.u32 %v152_v16, 16  ;;  %v399_v34 = vshrl.u32 %v964_v8, 16  ;;  %v1005_v12 = vld [vmem:[%s799_s12 + $0x38] sm:$0xf] }
  0x3d   : > { %v234_v30 = vrot.slane %v232_v21, 5  ;;  %v485_v13 = vmax.bf16 %v742_v17, %v468_v22  ;;  %v299_v35 = vmax.bf16 %v935_v38, %v282_v24  ;;  %v566_v37 = vrot.slane %v564_v15, 5  ;;  %v705_v17 = vld [vmem:[%s799_s12 + $0x78] sm:$0xf]  ;;  %v753_v22 = vld [vmem:[%s799_s12 + $0x3c] sm:$0x1] }
  0x3e   : > { %v397_v36 = vsel %vm815_vm2, %v392_v26, %v396_v9  ;;  %v240_v39 = vrot.slane %v238_v31, 5  ;;  %v401_v40 = vrot.slane %v399_v34, 4  ;;  %v402_v41 = vshll.u32 %v964_v8, 16  ;;  %v744_v24 = vld [vmem:[%s799_s12 + $0x78] sm:$0xf] }
  0x3f   : > { %v235_v33 = vor.u32 %v234_v30, %v231_v29  ;;  %v621_v44 = vmax.bf16 %v553_v6, %v485_v13  ;;  %v316_v45 = vmax.bf16 %v719_v25, %v299_v35  ;;  %v562_v46 = vrot.slane %v561_v28, 4  ;;  %v129_v13 = vld [vmem:[%s799_s12 + $0x38] sm:$0xf]  ;;  %v154_v35 = vld [vmem:[%s799_s12 + $0x3c] sm:$0x1] }
  0x40   : > { %v408_v38 = vshll.u32 %v728_v32, 16  ;;  %v404_v27 = vrot.slane %v402_v41, 5  ;;  %v569_v48 = vshrl.u32 %v977_v7, 16  ;;  %v572_v50 = vshll.u32 %v977_v7, 16 }
  0x41   : > { %v236_v47 = vrot.slane %v235_v33, 4  ;;  %630 = vst.msk [vmem:[%s880_s16 + $0xc] sm:$0xf] %vm626_vm3, %v621_v44  ;;  %v452_v52 = vmax.bf16 %v397_v36, %v316_v45  ;;  %v578_v54 = vshll.u32 %v752_v42, 16  ;;  %v567_v0 = vsel %vm815_vm2, %v562_v46, %v566_v37  ;;  %v714_v46 = vld [vmem:[%s799_s12 + $0xc8] sm:$0xf] }
  0x42   : > { %v410_v53 = vrot.slane %v408_v38, 5  ;;  %v405_v59 = vor.u32 %v404_v27, %v401_v40  ;;  %v571_v60 = vrot.slane %v569_v48, 4  ;;  %v574_v61 = vrot.slane %v572_v50, 5  ;;  %v706_v40 = vld [vmem:[%s799_s12 + $0x80] sm:$0xf] }
  0x43   : > { %v241_v58 = vsel %vm815_vm2, %v236_v47, %v240_v39  ;;  %v469_v63 = vmax.bf16 %v943_v49, %v452_v52  ;;  %v243_v2 = vshrl.u32 %v984_v51, 16  ;;  %v246_v5 = vshll.u32 %v984_v51, 16  ;;  %v729_v49 = vld [vmem:[%s799_s12 + $0xc4] sm:$0x1]  ;;  %v721_v52 = vld [vmem:[%s799_s12 + $0x108] sm:$0xf] }
  0x44   : > { %v283_v1 = vmax.bf16 %v241_v58, %v144_v19  ;;  %v406_v57 = vrot.slane %v405_v59, 4  ;;  %v575_v4 = vor.u32 %v574_v61, %v571_v60  ;;  %v252_v6 = vshll.u32 %v153_v55, 16  ;;  %v730_v55 = vld [vmem:[%s799_s12 + $0xcc] sm:$0x1]  ;;  %v738_v60 = vld [vmem:[%s799_s12 + $0x40] sm:$0xf] }
  0x45   : > { %v486_v43 = vmax.bf16 %v743_v56, %v469_v63  ;;  %v245_v10 = vrot.slane %v243_v2, 4  ;;  %v413_v11 = vshrl.u32 %v993_v62, 16  ;;  %v580_v16 = vrot.slane %v578_v54, 5  ;;  %v754_v2 = vld [vmem:[%s799_s12 + $0x44] sm:$0x1] }
  0x46   : > { %v300_v9 = vmax.bf16 %v964_v8, %v283_v1  ;;  %v411_v14 = vsel %vm815_vm2, %v406_v57, %v410_v53  ;;  %v576_v15 = vrot.slane %v575_v4, 4  ;;  %v248_v18 = vrot.slane %v246_v5, 5 }
  0x47   : > { %v622_v19 = vmax.bf16 %v567_v0, %v486_v43  ;;  %v415_v21 = vrot.slane %v413_v11, 4  ;;  %v416_v8 = vshll.u32 %v993_v62, 16  ;;  %v254_v26 = vrot.slane %v252_v6, 5 }
  0x48   : > { %v317_v20 = vmax.bf16 %v720_v3, %v300_v9  ;;  %v249_v25 = vor.u32 %v248_v18, %v245_v10  ;;  %v422_v28 = vshll.u32 %v729_v49, 16  ;;  %v583_v29 = vshrl.u32 %v1005_v12, 16  ;;  %v745_v18 = vld [vmem:[%s799_s12 + $0x80] sm:$0xf] }
  0x49   : > { %631 = vst.msk [vmem:[%s880_s16 + $0x10] sm:$0xf] %vm626_vm3, %v622_v19  ;;  %v145_v31 = vmax.bf16 %v705_v17, %v984_v51  ;;  %v418_v32 = vrot.slane %v416_v8, 5  ;;  %v586_v34 = vshll.u32 %v1005_v12, 16  ;;  %v581_v36 = vsel %vm815_vm2, %v576_v15, %v580_v16 }
  0x4a   : > { %v453_v30 = vmax.bf16 %v411_v14, %v317_v20  ;;  %v250_v37 = vrot.slane %v249_v25, 4  ;;  %v585_v33 = vrot.slane %v583_v29, 4  ;;  %v592_v39 = vshll.u32 %v753_v22, 16 }
  0x4b   : > { %v419_v42 = vor.u32 %v418_v32, %v415_v21  ;;  %v424_v44 = vrot.slane %v422_v28, 5  ;;  %v588_v45 = vrot.slane %v586_v34, 5  ;;  %v257_v47 = vshrl.u32 %v129_v13, 16  ;;  %v722_v28 = vld [vmem:[%s799_s12 + $0x110] sm:$0xf] }
  0x4c   : > { %v470_v41 = vmax.bf16 %v977_v7, %v453_v30  ;;  %v255_v38 = vsel %vm815_vm2, %v250_v37, %v254_v26  ;;  %v260_v27 = vshll.u32 %v129_v13, 16  ;;  %v266_v48 = vshll.u32 %v154_v35, 16  ;;  %v746_v37 = vld [vmem:[%s799_s12 + $0x88] sm:$0xf] }
  0x4d   : > { %v284_v51 = vmax.bf16 %v255_v38, %v145_v31  ;;  %v420_v53 = vrot.slane %v419_v42, 4  ;;  %v146_v54 = vmax.bf16 %v706_v40, %v129_v13  ;;  %v589_v7 = vor.u32 %v588_v45, %v585_v33 }
  0x4e   : > { %v487_v50 = vmax.bf16 %v744_v24, %v470_v41  ;;  %v259_v56 = vrot.slane %v257_v47, 4  ;;  %v262_v58 = vrot.slane %v260_v27, 5  ;;  %v427_v59 = vshrl.u32 %v714_v46, 16 }
  0x4f   : > { %v301_v63 = vmax.bf16 %v993_v62, %v284_v51  ;;  %v425_v0 = vsel %vm815_vm2, %v420_v53, %v424_v44  ;;  %v268_v1 = vrot.slane %v266_v48, 5  ;;  %v430_v4 = vshll.u32 %v714_v46, 16 }
  0x50   : > { %v623_v61 = vmax.bf16 %v581_v36, %v487_v50  ;;  %v263_v3 = vor.u32 %v262_v58, %v259_v56  ;;  %v429_v57 = vrot.slane %v427_v59, 4  ;;  %v436_v5 = vshll.u32 %v730_v55, 16 }
  0x51   : > { %v318_v6 = vmax.bf16 %v721_v52, %v301_v63  ;;  %v594_v43 = vrot.slane %v592_v39, 5  ;;  %v597_v9 = vshrl.u32 %v738_v60, 16  ;;  %v600_v10 = vshll.u32 %v738_v60, 16 }
  0x52   : > { %632 = vst.msk [vmem:[%s880_s16 + $0x14] sm:$0xf] %vm626_vm3, %v623_v61  ;;  %v590_v49 = vrot.slane %v589_v7, 4  ;;  %v264_v11 = vrot.slane %v263_v3, 4  ;;  %v432_v62 = vrot.slane %v430_v4, 5  ;;  %v606_v14 = vshll.u32 %v754_v2, 16 }
  0x53   : > { %v454_v15 = vmax.bf16 %v425_v0, %v318_v6  ;;  %v599_v16 = vrot.slane %v597_v9, 4  ;;  %v602_v17 = vrot.slane %v600_v10, 5  ;;  %v438_v21 = vrot.slane %v436_v5, 5 }
  0x54   : > { %v269_v19 = vsel %vm815_vm2, %v264_v11, %v268_v1  ;;  %v433_v20 = vor.u32 %v432_v62, %v429_v57  ;;  %v608_v25 = vrot.slane %v606_v14, 5  ;;  %v595_v26 = vsel %vm815_vm2, %v590_v49, %v594_v43 }
  0x55   : > { %v471_v8 = vmax.bf16 %v1005_v12, %v454_v15  ;;  %v285_v22 = vmax.bf16 %v269_v19, %v146_v54  ;;  %v603_v24 = vor.u32 %v602_v17, %v599_v16 }
  0x56   : > { %v434_v29 = vrot.slane %v433_v20, 4 }
  0x57   : > { %v488_v30 = vmax.bf16 %v745_v18, %v471_v8  ;;  %v302_v31 = vmax.bf16 %v714_v46, %v285_v22  ;;  %v604_v32 = vrot.slane %v603_v24, 4 }
  0x58   : > { %v439_v34 = vsel %vm815_vm2, %v434_v29, %v438_v21 }
  0x59   : > { %v624_v13 = vmax.bf16 %v595_v26, %v488_v30  ;;  %v319_v35 = vmax.bf16 %v722_v28, %v302_v31  ;;  %v609_v12 = vsel %vm815_vm2, %v604_v32, %v608_v25 }
  0x5b   : > { %633 = vst.msk [vmem:[%s880_s16 + $0x18] sm:$0xf] %vm626_vm3, %v624_v13  ;;  %v455_v36 = vmax.bf16 %v439_v34, %v319_v35 }
  0x5d   : > { %v472_v33 = vmax.bf16 %v738_v60, %v455_v36 }
  0x5f   : > { %v489_v39 = vmax.bf16 %v746_v37, %v472_v33 }
  0x61   : > { %v625_v40 = vmax.bf16 %v609_v12, %v489_v39 }
  0x63   : > { %634 = vst.msk [vmem:[%s880_s16 + $0x1c] sm:$0xf] %vm626_vm3, %v625_v40 }
  0x64 PF: > { %s11_s6 = sadd.s32 1, %s773_s6  }
  0x65   : > { %p8_p5 = scmp.ge.s32.totalorder %s11_s6, 4  }
  0x67   :  { %10 = sbr.rel (!%p8_p5) target bundleno = 1 (0x1), region = 59 }

// kernel: _lambda_.16
= control target key start
LH: loop header
LB: loop body
LE: loop exit
PB: predicated region body
PF: predicated region fallthrough
CT: control target
= control target key end

     0   :  { %s1416_s12 = smov 0   ;;  %s1636_s0 = inlined_call_operand.vmem [shape: bf16[2,10,10,64], index: 0, kind: input, shape index: {}]   ;;  %s1637_s1 = inlined_call_operand.vmem [shape: bf16[9,64,64], index: 1, kind: input, shape index: {}]   ;;  %s1638_s2 = inlined_call_operand.vmem [shape: f32[1,64], index: 2, kind: input, shape index: {}]   ;;  %s1639_s3 = inlined_call_operand.vmem [shape: bf16[2,8,8,64], index: 3, kind: output, shape index: {}]  }
   0x1 LB: > { %s1023_s13 = sadd.s32 4294967295, %s1388_s12   ;;  %p1027_p0 = scmp.ge.s32.totalorder %s1388_s12, 1  ;;  %s1388_s12 = sphi %s1416_s12, %s13_s12  }
   0x2   : > { %p137_p1 = scmp.lt.s32.totalorder %s1388_s12, 3 }
   0x4   : > { %p138_p2 = pnand %p1027_p0, %p137_p1 }
   0x5   : > { %p161_p3 = scmp.lt.s32.totalorder (!%p138_p2), %s1023_s13, 1  ;;  %s1434_s22 = smov (!%p138_p2), 0  }
   0x6   : > { %141 = sbr.rel (%p138_p2) target bundleno = 319 (0x13f), region = 32 }
   0xd   : > { %s1641_s13 = smov (!%p161_p3, %s1023_s13), 1 }
   0xe   : > { %s1317_s14 = smul.u32 80, %s1641_s13  ;;  %s1162_s15 = sshll.u32 %s1641_s13, 5 }
   0xf   : > { %s1427_s18 = scalar_lea.vmem %s1639_s3, %s1162_s15 }
  0x10   : > { %s1432_s21 = scalar_lea.vmem %s1636_s0, %s1317_s14 }
  0x11 LB: >> { %v1336_v0 = vld [vmem:[%s1637_s1 + $0x20] sm:$0xff]   ;;  %v1394_v1 = vmov 0.0   ;;  %v1338_v3 = vld [vmem:[%s1637_s1 + $0x28] sm:$0xff]   ;;  %vm1395_vm0 = vmmov 0   ;;  %s1163_s29 = sshll.u32 %s1392_s22, 3  ;;  %v1340_v5 = vld [vmem:[%s1637_s1 + $0x30] sm:$0xff]   ;;  %s1392_s22 = sphi %s1434_s22, %s177_s22  }
  0x12   : >> { %1209 = vmatprep.subr.bf16.mxu0 %v1394_v1  ;;  %1221 = vmatprep.subr.bf16.mxu1 %v1394_v1  ;;  %v1337_v2 = vld [vmem:[%s1637_s1] sm:$0xff]   ;;  %v1339_v4 = vld [vmem:[%s1637_s1 + $0x8] sm:$0xff]   ;;  %s1461_s5 = scalar_lea.vmem %s1432_s21, %s1163_s29  ;;  %v1341_v6 = vld [vmem:[%s1637_s1 + $0x10] sm:$0xff]   ;;  %vm236_vm1 = vcmask 523264   ;;  %s1159_s4 = sshll.u32 %s1392_s22, 2  ;;  %vm951_vm2 = vcmask 519168  }
  0x13   : >> { %1210 = vmatpush3.bf16.msra.mxu0 %v1336_v0  ;;  %1217 = vmatprep.mubr.msk.bf16.mxu0 %vm1395_vm0, %v1394_v1  ;;  %v181_v7 = vld [vmem:[%s1461_s5] sm:$0xf]  ;;  %v190_v8 = vld [vmem:[%s1461_s5 + $0x4] sm:$0x1]  ;;  %v1342_v10 = vld [vmem:[%s1637_s1 + $0x38] sm:$0xff]   ;;  %s950_s6 = scalar_lea.vmem %s1427_s18, %s1159_s4  ;;  %s177_s22 = sadd.s32 1, %s1392_s22  }
  0x14   : >> { %1222 = vmatpush3.bf16.msra.mxu1 %v1337_v2  ;;  %1211 = vmatprep.subr.bf16.mxu0 %v1394_v1  ;;  %v1041_v9 = vcombine.low %v181_v7, %v190_v8  ;;  %v1343_v11 = vld [vmem:[%s1637_s1 + $0x18] sm:$0xff]   ;;  %v1345_v15 = vld [vmem:[%s1637_s1 + $0x40] sm:$0xff]   ;;  %v1347_v18 = vld [vmem:[%s1637_s1 + $0x48] sm:$0xff]   ;;  %p174_p4 = scmp.ge.s32.totalorder %s177_s22, 8  }
  0x15   : >> { %1223 = vmatprep.subr.bf16.mxu1 %v1394_v1  ;;  %1229 = vmatprep.mubr.msk.bf16.mxu1 %vm1395_vm0, %v1394_v1  ;;  %v1346_v17 = vld [vmem:[%s1637_s1 + $0x60] sm:$0xff]   ;;  %v1348_v19 = vld [vmem:[%s1637_s1 + $0x68] sm:$0xff]   ;;  %v1349_v21 = vld [vmem:[%s1637_s1 + $0x50] sm:$0xff]  }
  0x16   : >> { %v206_v12 = vshrl.u32 %v1041_v9, 16  ;;  %v208_v13 = vshll.u32 %v1041_v9, 16  ;;  %v347_v20 = vld [vmem:[%s1461_s5] sm:$0xe]  ;;  %v1350_v22 = vld [vmem:[%s1637_s1 + $0x70] sm:$0xff]   ;;  %v1351_v24 = vld [vmem:[%s1637_s1 + $0x58] sm:$0xff]  }
  0x17   : >> { %1212 = vmatpush3.bf16.msra.mxu0 %v1338_v3  ;;  %v1060_v23 = vcombine.low %v347_v20, %v190_v8  ;;  %v1352_v25 = vld [vmem:[%s1637_s1 + $0x78] sm:$0xff]   ;;  %v1354_v27 = vld [vmem:[%s1637_s1 + $0x80] sm:$0xff]   ;;  %v1067_v28 = vld [vmem:[%s1461_s5 + $0x8] sm:$0xf] }
  0x18   : >> { %1224 = vmatpush3.bf16.msra.mxu1 %v1339_v4  ;;  %1213 = vmatprep.subr.bf16.mxu0 %v1394_v1  ;;  %v210_v14 = vrot.slane %v208_v13, 1  ;;  %v1355_v29 = vld [vmem:[%s1637_s1 + $0xa0] sm:$0xff]   ;;  %v1081_v30 = vld [vmem:[%s1461_s5 + $0x8] sm:$0xf]  ;;  %v1082_v31 = vld [vmem:[%s1461_s5 + $0xc] sm:$0x1] }
  0x19   : >> { %1225 = vmatprep.subr.bf16.mxu1 %v1394_v1  ;;  %v360_v26 = vrot.slane %v1060_v23, 1  ;;  %v1091_v32 = vcombine.low %v1081_v30, %v1082_v31  ;;  %v1356_v33 = vld [vmem:[%s1637_s1 + $0x88] sm:$0xff]   ;;  %v1358_v36 = vld [vmem:[%s1637_s1 + $0x90] sm:$0xff]   ;;  %v1360_v41 = vld [vmem:[%s1637_s1 + $0x98] sm:$0xff]  }
  0x1a   : >> { %v211_v16 = vor.u32 %v210_v14, %v206_v12  ;;  %v1357_v34 = vld [vmem:[%s1637_s1 + $0xa8] sm:$0xff]   ;;  %v1359_v37 = vld [vmem:[%s1637_s1 + $0xb0] sm:$0xff]   ;;  %v1361_v43 = vld [vmem:[%s1637_s1 + $0xb8] sm:$0xff]  }
  0x1b   : >> { %1214 = vmatpush3.bf16.msra.mxu0 %v1340_v5  ;;  %v530_v35 = vshll.u32 %v1091_v32, 16  ;;  %v1097_v38 = vld [vmem:[%s1461_s5 + $0x8] sm:$0xe]  ;;  %v528_v39 = vshrl.u32 %v1091_v32, 16  ;;  %v1363_v45 = vld [vmem:[%s1637_s1 + $0xc0] sm:$0xff]   ;;  %v1368_v53 = vld [vmem:[%s1637_s1 + $0xd0] sm:$0xff]  }
  0x1c   : >> { %1226 = vmatpush3.bf16.msra.mxu1 %v1341_v6  ;;  %1215 = vmatprep.subr.bf16.mxu0 %v1394_v1  ;;  %v1106_v42 = vcombine.low %v1097_v38, %v1082_v31  ;;  %v1365_v47 = vld [vmem:[%s1637_s1 + $0xe0] sm:$0xff]   ;;  %v1127_v48 = vld [vmem:[%s1461_s5 + $0x10] sm:$0xf]  ;;  %v1128_v49 = vld [vmem:[%s1461_s5 + $0x14] sm:$0x1] }
  0x1d   : >> { %1227 = vmatprep.subr.bf16.mxu1 %v1394_v1  ;;  %v532_v40 = vrot.slane %v530_v35, 1  ;;  %v1366_v50 = vld [vmem:[%s1637_s1 + $0xc8] sm:$0xff]   ;;  %v1137_v51 = vcombine.low %v1127_v48, %v1128_v49  ;;  %v1369_v55 = vld [vmem:[%s1637_s1 + $0xf0] sm:$0xff]   ;;  %v1370_v56 = vld [vmem:[%s1637_s1 + $0xd8] sm:$0xff]  }
  0x1e   : >> { %v615_v46 = vrot.slane %v1106_v42, 1  ;;  %v1367_v52 = vld [vmem:[%s1637_s1 + $0xe8] sm:$0xff]   ;;  %v1371_v59 = vld [vmem:[%s1637_s1 + $0xf8] sm:$0xff]   ;;  %v1113_v60 = vld [vmem:[%s1461_s5 + $0x10] sm:$0xf] }
  0x1f   : >> { %1216 = vmatpush3.bf16.msra.mxu0 %v1342_v10  ;;  %v533_v44 = vor.u32 %v532_v40, %v528_v39  ;;  %v785_v54 = vshll.u32 %v1137_v51, 16  ;;  %v783_v57 = vshrl.u32 %v1137_v51, 16  ;;  %v1372_v61 = vld [vmem:[%s1637_s1 + $0x100] sm:$0xff]   ;;  %v1374_v63 = vld [vmem:[%s1637_s1 + $0x108] sm:$0xff]   ;;  %v1375_v0 = vld [vmem:[%s1637_s1 + $0x110] sm:$0xff]  }
  0x20   : >> { %1228 = vmatpush3.bf16.msra.mxu1 %v1343_v11  ;;  %1233 = vmatprep.subr.bf16.mxu0 %v1394_v1  ;;  %v1143_v2 = vld [vmem:[%s1461_s5 + $0x10] sm:$0xe]  ;;  %v1376_v4 = vld [vmem:[%s1637_s1 + $0x118] sm:$0xff]  }
  0x21   : >> { %1245 = vmatprep.subr.bf16.mxu1 %v1394_v1  ;;  %v787_v58 = vrot.slane %v785_v54, 1  ;;  %v1152_v3 = vcombine.low %v1143_v2, %v1128_v49 }
  0x22   : >> { %1218 = vmatmul.mubr.msk.bf16.vlgmr.msra.gmra.mrb[0].mxu0 %vm236_vm1, %v211_v16 }
  0x23   : >> { %1230 = vmatmul.mubr.msk.bf16.vlgmr.msra.gmra.mrb[0].mxu1 %vm236_vm1, %v181_v7  ;;  %1234 = vmatpush3.bf16.msra.mxu0 %v1345_v15  ;;  %v788_v62 = vor.u32 %v787_v58, %v783_v57  ;;  %v870_v5 = vrot.slane %v1152_v3, 1 }
  0x24   : >> { %1246 = vmatpush3.bf16.msra.mxu1 %v1346_v17  ;;  %1235 = vmatprep.subr.bf16.mxu0 %v1394_v1 }
  0x25   : >> { %1247 = vmatprep.subr.bf16.mxu1 %v1394_v1  ;;  %1241 = vmatprep.mubr.msk.bf16.mxu0 %vm1395_vm0, %v1394_v1 }
  0x26   : >> { %1253 = vmatprep.mubr.msk.bf16.mxu1 %vm1395_vm0, %v1394_v1 }
  0x27   : >> { %1236 = vmatpush3.bf16.msra.mxu0 %v1347_v18 }
  0x28   : >> { %1248 = vmatpush3.bf16.msra.mxu1 %v1348_v19  ;;  %1237 = vmatprep.subr.bf16.mxu0 %v1394_v1 }
  0x29   : >> { %1249 = vmatprep.subr.bf16.mxu1 %v1394_v1 }
  0x2b   : >> { %1238 = vmatpush3.bf16.msra.mxu0 %v1349_v21 }
  0x2c   : >> { %1250 = vmatpush3.bf16.msra.mxu1 %v1350_v22  ;;  %1239 = vmatprep.subr.bf16.mxu0 %v1394_v1 }
  0x2d   : >> { %1251 = vmatprep.subr.bf16.mxu1 %v1394_v1 }
  0x2f   : >> { %1240 = vmatpush3.bf16.msra.mxu0 %v1351_v24 }
  0x30   : >> { %1252 = vmatpush3.bf16.msra.mxu1 %v1352_v25  ;;  %1257 = vmatprep.subr.bf16.mxu0 %v1394_v1 }
  0x31   : >> { %1269 = vmatprep.subr.bf16.mxu1 %v1394_v1 }
  0x32   : >> { %1242 = vmatmul.mubr.msk.bf16.vlgmr.msra.gmra.mrb[4].mxu0 %vm236_vm1, %v360_v26 }
  0x33   : >> { %1258 = vmatpush3.bf16.msra.mxu0 %v1354_v27  ;;  %1254 = vmatmul.mubr.msk.bf16.vlgmr.msra.gmra.mrb[4].mxu1 %vm236_vm1, %v1067_v28 }
  0x34   : >> { %1270 = vmatpush3.bf16.msra.mxu1 %v1355_v29  ;;  %1259 = vmatprep.subr.bf16.mxu0 %v1394_v1 }
  0x35   : >> { %1271 = vmatprep.subr.bf16.mxu1 %v1394_v1  ;;  %1265 = vmatprep.mubr.msk.bf16.mxu0 %vm1395_vm0, %v1394_v1 }
  0x36   : >> { %1277 = vmatprep.mubr.msk.bf16.mxu1 %vm1395_vm0, %v1394_v1 }
  0x37   : >> { %1260 = vmatpush3.bf16.msra.mxu0 %v1356_v33 }
  0x38   : >> { %1272 = vmatpush3.bf16.msra.mxu1 %v1357_v34  ;;  %1261 = vmatprep.subr.bf16.mxu0 %v1394_v1 }
  0x39   : >> { %1273 = vmatprep.subr.bf16.mxu1 %v1394_v1 }
  0x3b   : >> { %1262 = vmatpush3.bf16.msra.mxu0 %v1358_v36 }
  0x3c   : >> { %1274 = vmatpush3.bf16.msra.mxu1 %v1359_v37  ;;  %1263 = vmatprep.subr.bf16.mxu0 %v1394_v1 }
  0x3d   : >> { %1275 = vmatprep.subr.bf16.mxu1 %v1394_v1 }
  0x3f   : >> { %1264 = vmatpush3.bf16.msra.mxu0 %v1360_v41 }
  0x40   : >> { %1276 = vmatpush3.bf16.msra.mxu1 %v1361_v43  ;;  %1281 = vmatprep.subr.bf16.mxu0 %v1394_v1 }
  0x41   : >> { %1293 = vmatprep.subr.bf16.mxu1 %v1394_v1 }
  0x42   : >> { %1266 = vmatmul.mubr.msk.bf16.vlgmr.msra.gmra.mrb[8].mxu0 %vm236_vm1, %v533_v44 }
  0x43   : >> { %1282 = vmatpush3.bf16.msra.mxu0 %v1363_v45  ;;  %1278 = vmatmul.mubr.msk.bf16.vlgmr.msra.gmra.mrb[8].mxu1 %vm236_vm1, %v615_v46  ;;  %v1158_v45 = vld [vmem:[%s1638_s2] ss:$0 sm:$0xff] }
  0x44   : >> { %1294 = vmatpush3.bf16.msra.mxu1 %v1365_v47  ;;  %1283 = vmatprep.subr.bf16.mxu0 %v1394_v1 }
  0x45   : >> { %1295 = vmatprep.subr.bf16.mxu1 %v1394_v1  ;;  %1289 = vmatprep.mubr.msk.bf16.mxu0 %vm1395_vm0, %v1394_v1 }
  0x46   : >> { %1301 = vmatprep.mubr.msk.bf16.mxu1 %vm1395_vm0, %v1394_v1 }
  0x47   : >> { %1284 = vmatpush3.bf16.msra.mxu0 %v1366_v50 }
  0x48   : >> { %1296 = vmatpush3.bf16.msra.mxu1 %v1367_v52  ;;  %1285 = vmatprep.subr.bf16.mxu0 %v1394_v1 }
  0x49   : >> { %1297 = vmatprep.subr.bf16.mxu1 %v1394_v1 }
  0x4b   : >> { %1286 = vmatpush3.bf16.msra.mxu0 %v1368_v53 }
  0x4c   : >> { %1298 = vmatpush3.bf16.msra.mxu1 %v1369_v55  ;;  %1287 = vmatprep.subr.bf16.mxu0 %v1394_v1 }
  0x4d   : >> { %1299 = vmatprep.subr.bf16.mxu1 %v1394_v1 }
  0x4f   : >> { %1288 = vmatpush3.bf16.msra.mxu0 %v1370_v56 }
  0x50   : >> { %1300 = vmatpush3.bf16.msra.mxu1 %v1371_v59  ;;  %1305 = vmatprep.subr.bf16.mxu0 %v1394_v1 }
  0x52   : >> { %1290 = vmatmul.mubr.msk.bf16.vlgmr.msra.gmra.mrb[12].mxu0 %vm236_vm1, %v1113_v60 }
  0x53   : >> { %1306 = vmatpush3.bf16.msra.mxu0 %v1372_v61  ;;  %1302 = vmatmul.mubr.msk.bf16.vlgmr.msra.gmra.mrb[12].mxu1 %vm236_vm1, %v788_v62 }
  0x54   : >> { %1307 = vmatprep.subr.bf16.mxu0 %v1394_v1  ;;  %1313 = vmatprep.mubr.msk.bf16.mxu0 %vm1395_vm0, %v1394_v1 }
  0x57   : >> { %1308 = vmatpush3.bf16.msra.mxu0 %v1374_v63 }
  0x58   : >> { %1309 = vmatprep.subr.bf16.mxu0 %v1394_v1 }
  0x5b   : >> { %1310 = vmatpush3.bf16.msra.mxu0 %v1375_v0 }
  0x5c   : >> { %1311 = vmatprep.subr.bf16.mxu0 %v1394_v1 }
  0x5f   : >> { %1312 = vmatpush3.bf16.msra.mxu0 %v1376_v4 }
  0x62   : >> { %1314 = vmatmul.mubr.msk.bf16.vlgmr.msra.gmra.mrb[16].mxu0 %vm236_vm1, %v870_v5 }
  0xf5   : >> { %v274_v6 = vpop.f32.mrb[0].mxu0 }
  0xf6   : >> { %v1219_v7 = vpop.f32.mrb[1].mxu0  ;;  %v341_v8 = vpop.f32.mrb[0].mxu1 }
  0xf7   : >> { %v342_v9 = vadd.f32 %v341_v8, %v274_v6  ;;  %v277_v10 = vpop.f32.mrb[2].mxu0  ;;  %v1231_v11 = vpop.f32.mrb[1].mxu1 }
  0xf8   : >> { %v1220_v12 = vpop.f32.mrb[3].mxu0  ;;  %v344_v13 = vpop.f32.mrb[2].mxu1 }
  0xf9   : >> { %v1232_v14 = vpop.f32.mrb[3].mxu1 }
 0x105   : >> { %v422_v15 = vpop.f32.mrb[4].mxu0 }
 0x106   : >> { %v428_v16 = vadd.f32 %v422_v15, %v342_v9  ;;  %v1243_v17 = vpop.f32.mrb[5].mxu0  ;;  %v504_v18 = vpop.f32.mrb[4].mxu1 }
 0x107   : >> { %v425_v19 = vpop.f32.mrb[6].mxu0  ;;  %v1255_v20 = vpop.f32.mrb[5].mxu1 }
 0x108   : >> { %v510_v1 = vadd.f32 %v504_v18, %v428_v16  ;;  %v1244_v21 = vpop.f32.mrb[7].mxu0  ;;  %v507_v22 = vpop.f32.mrb[6].mxu1 }
 0x109   : >> { %v1256_v23 = vpop.f32.mrb[7].mxu1 }
 0x115   : >> { %v595_v24 = vpop.f32.mrb[8].mxu0 }
 0x116   : >> { %v601_v25 = vadd.f32 %v595_v24, %v510_v1  ;;  %v1267_v26 = vpop.f32.mrb[9].mxu0  ;;  %v677_v27 = vpop.f32.mrb[8].mxu1 }
 0x117   : >> { %v598_v28 = vpop.f32.mrb[10].mxu0  ;;  %v1279_v29 = vpop.f32.mrb[9].mxu1 }
 0x118   : >> { %v683_v30 = vadd.f32 %v677_v27, %v601_v25  ;;  %v1268_v31 = vpop.f32.mrb[11].mxu0  ;;  %v680_v32 = vpop.f32.mrb[10].mxu1 }
 0x119   : >> { %v1280_v33 = vpop.f32.mrb[11].mxu1 }
 0x125   : >> { %v759_v34 = vpop.f32.mrb[12].mxu0 }
 0x126   : >> { %v765_v35 = vadd.f32 %v759_v34, %v683_v30  ;;  %v1291_v36 = vpop.f32.mrb[13].mxu0  ;;  %v850_v37 = vpop.f32.mrb[12].mxu1 }
 0x127   : >> { %v762_v38 = vpop.f32.mrb[14].mxu0  ;;  %v1303_v39 = vpop.f32.mrb[13].mxu1 }
 0x128   : >> { %v856_v40 = vadd.f32 %v850_v37, %v765_v35  ;;  %v1292_v41 = vpop.f32.mrb[15].mxu0  ;;  %v853_v42 = vpop.f32.mrb[14].mxu1 }
 0x129   : >> { %v1304_v43 = vpop.f32.mrb[15].mxu1 }
 0x135   : >> { %v932_v44 = vpop.f32.mrb[16].mxu0 }
 0x136   : >> { %v938_v46 = vadd.f32 %v932_v44, %v856_v40  ;;  %v1315_v47 = vpop.f32.mrb[17].mxu0 }
 0x137   : >> { %v935_v48 = vpop.f32.mrb[18].mxu0 }
 0x138   : >> { %v946_v49 = vadd.f32 %v1158_v45, %v938_v46  ;;  %v1316_v50 = vpop.f32.mrb[19].mxu0  ;;  %176 = sbr.rel (!%p174_p4) target bundleno = 17 (0x11), region = 81 }
 0x13a   : >> { %v947_v51 = vmax.f32 %v946_v49, 0.0 }
 0x13c   : >> { %v948_v52 = vpack.c.bf16 %v947_v51, %v947_v51 }
 0x13e   : >> { %952 = vst.msk [vmem:[%s950_s6] sm:$0xf] %vm951_vm2, %v948_v52 }
 0x13f PF: > { %s13_s12 = sadd.s32 1, %s1388_s12  }
 0x140   : > { %p10_p5 = scmp.ge.s32.totalorder %s13_s12, 4  }
 0x142   :  { %12 = sbr.rel (!%p10_p5) target bundleno = 1 (0x1), region = 92 }

// kernel: _lambda_.14
= control target key start
LH: loop header
LB: loop body
LE: loop exit
PB: predicated region body
PF: predicated region fallthrough
CT: control target
= control target key end

     0   :  { %s4318_s12 = smov 0   ;;  %s4904_s0 = inlined_call_operand.vmem [shape: bf16[8,19,19,8], index: 0, kind: input, shape index: {}]   ;;  %s4905_s1 = inlined_call_operand.vmem [shape: bf16[49,8,64], index: 1, kind: input, shape index: {}]   ;;  %s4906_s2 = inlined_call_operand.vmem [shape: f32[1,64], index: 2, kind: input, shape index: {}]   ;;  %s4907_s3 = inlined_call_operand.vmem [shape: bf16[2,16,16,64], index: 3, kind: output, shape index: {}]  }
   0x1 LB: > { %s3530_s13 = sadd.s32 4294967295, %s4290_s12   ;;  %p3534_p0 = scmp.ge.s32.totalorder %s4290_s12, 1  ;;  %s4290_s12 = sphi %s4318_s12, %s13_s12  }
   0x2   : > { %p139_p1 = scmp.lt.s32.totalorder %s4290_s12, 3 }
   0x4   : > { %p140_p2 = pnand %p3534_p0, %p139_p1 }
   0x5   : > { %s3535_s14 = sshll.u32 (!%p140_p2), %s3530_s13, 2  ;;  %p171_p3 = scmp.lt.s32.totalorder (!%p140_p2), %s3530_s13, 1 }
   0x6   : > { %143 = sbr.rel (%p140_p2) target bundleno = 440 (0x1b8), region = 32  ;;  %p165_p4 = scmp.lt.s32.totalorder (!%p140_p2), %s3535_s14, 7 }
   0x7   : > { %s4336_s23 = smov (!%p140_p2), 0  }
   0xd   : > { %s4909_s13 = smov (!%p171_p3, %s3530_s13), 1  ;;  %s4911_s14 = smov (!%p165_p4, %s3535_s14), 7 }
   0xe   : > { %s3801_s15 = sshll.u32 %s4909_s13, 7  ;;  %s4198_s16 = smul.u32 228, %s4911_s14 }
   0xf   : > { %s4329_s19 = scalar_lea.vmem %s4907_s3, %s3801_s15 }
  0x10   : > { %s4334_s22 = scalar_lea.vmem %s4904_s0, %s4198_s16 }
  0x11 LB: >> { %v3543_v0 = vld [vmem:[%s4905_s1 + $0x4] sm:$0xf]  ;;  %vm205_vm0 = vcmask 1043456   ;;  %v188_v1 = vld [vmem:[%s4905_s1] sm:$0xf]  ;;  %v4296_v2 = vmov 0.0   ;;  %s4294_s23 = sphi %s4336_s23, %s182_s23  }
  0x12   : >> { %3904 = vmatprep.subr.bf16.mxu0 %v4296_v2  ;;  %v207_v3 = vsel %vm205_vm0, %v3543_v0, 0  ;;  %3910 = vmatprep.subr.bf16.mxu1 %v4296_v2  ;;  %v259_v4 = vsel %vm205_vm0, %v188_v1, 0  ;;  %s3802_s28 = smul.u32 12, %s4294_s23  ;;  %v3548_v5 = vld [vmem:[%s4905_s1 + $0x8] sm:$0xf]  ;;  %vm4297_vm1 = vmmov 0  }
  0x13   : >> { %3905 = vmatpush3.bf16.msra.mxu0 %v207_v3  ;;  %3911 = vmatpush3.bf16.msra.mxu1 %v259_v4  ;;  %v3555_v6 = vld [vmem:[%s4905_s1 + $0xc] sm:$0xf]  ;;  %vm201_vm2 = vcmask 64512   ;;  %v332_v8 = vsel %vm205_vm0, %v3548_v5, 0  ;;  %vm315_vm3 = vsmask.f32 7424 }
  0x14   : >> { %3906 = vmatprep.mubr.msk.bf16.mxu0 %vm4297_vm1, %v4296_v2  ;;  %3912 = vmatprep.mubr.msk.bf16.mxu1 %vm4297_vm1, %v4296_v2  ;;  %s4364_s6 = scalar_lea.vmem %s4334_s22, %s3802_s28  ;;  %v406_v10 = vsel %vm205_vm0, %v3555_v6, 0  ;;  %v3559_v25 = vld [vmem:[%s4905_s1 + $0x10] sm:$0xf]  ;;  %v3563_v29 = vld [vmem:[%s4905_s1 + $0x14] sm:$0xf]  ;;  %vm457_vm4 = vcmask 1046528  }
  0x15   : >> { %3916 = vmatprep.subr.bf16.mxu0 %v4296_v2  ;;  %3922 = vmatprep.subr.bf16.mxu1 %v4296_v2  ;;  %v4217_v7 = vld [vmem:[%s4364_s6 + $0xe4] sm:$0xff]   ;;  %v302_v11 = vld [vmem:[%s4364_s6] sm:$0xf]  ;;  %v4222_v22 = vld [vmem:[%s4364_s6 + $0xec] ss:$0 sps:$4 sm:$0x11]  }
  0x16   : >> { %v4218_v9 = vld [vmem:[%s4364_s6] sm:$0xff]   ;;  %3907 = vmatmul.mubr.msk.bf16.vlgmr.msra.gmra.mrb[0].mxu0 %vm201_vm2, %v4217_v7  ;;  %v4220_v14 = vld [vmem:[%s4364_s6 + $0x8] ss:$0 sps:$4 sm:$0x11]   ;;  %v398_v28 = vshll.u32 %v4222_v22, 16  ;;  %v465_v35 = vsel %vm205_vm0, %v3559_v25, 0 }
  0x17   : >> { %v303_v12 = vld [vmem:[%s4364_s6 + $0x4] sm:$0xf]  ;;  %3913 = vmatmul.mubr.msk.bf16.vlgmr.msra.gmra.mrb[0].mxu1 %vm201_vm2, %v4218_v9  ;;  %3917 = vmatpush3.bf16.msra.mxu0 %v332_v8  ;;  %v3553_v16 = vld [vmem:[%s4364_s6 + $0xe8] sm:$0xf]  ;;  %v451_v17 = vld [vmem:[%s4364_s6] sm:$0xe] }
  0x18   : >> { %v3549_v13 = vcombine.low %v302_v11, %v303_v12  ;;  %v3552_v15 = vld [vmem:[%s4364_s6 + $0xe4] sm:$0xf]  ;;  %3923 = vmatpush3.bf16.msra.mxu1 %v406_v10  ;;  %3918 = vmatprep.mubr.msk.bf16.mxu0 %vm4297_vm1, %v4296_v2  ;;  %v324_v20 = vshll.u32 %v4220_v14, 16  ;;  %v3560_v30 = vcombine.low %v451_v17, %v303_v12  ;;  %v4225_v34 = vld [vmem:[%s4364_s6 + $0x8] ss:$0 sps:$4 sm:$0x33]  }
  0x19   : >> { %3928 = vmatprep.subr.bf16.mxu0 %v4296_v2  ;;  %3924 = vmatprep.mubr.msk.bf16.mxu1 %vm4297_vm1, %v4296_v2  ;;  %v3556_v21 = vcombine.low %v3552_v15, %v3553_v16  ;;  %v3562_v31 = vld [vmem:[%s4364_s6 + $0xe4] sm:$0xe]  ;;  %v400_v36 = vrot.slane %v398_v28, 1  ;;  %v523_v40 = vsel %vm205_vm0, %v3563_v29, 0  ;;  %v459_v42 = vrot.slane %v4220_v14, 1  ;;  %v4226_v11 = vld [vmem:[%s4364_s6 + $0x1c8] sm:$0xff]  }
  0x1a   : >> { %v317_v18 = vshrl.u32 %v3549_v13, 16  ;;  %v319_v19 = vshll.u32 %v3549_v13, 16  ;;  %3934 = vmatprep.subr.bf16.mxu1 %v4296_v2  ;;  %v326_v24 = vrot.slane %v324_v20, 1  ;;  %v3564_v39 = vcombine.low %v3562_v31, %v3553_v16  ;;  %v3566_v48 = vld [vmem:[%s4905_s1 + $0x18] sm:$0xf]  ;;  %s3805_s10 = sshll.u32 %s4294_s23, 3 }
  0x1b   : >> { %v391_v26 = vshrl.u32 %v3556_v21, 16  ;;  %v393_v27 = vshll.u32 %v3556_v21, 16  ;;  %v458_v41 = vrot.slane %v3560_v30, 1  ;;  %v576_v43 = vshrl.u32 %v3560_v30, 16  ;;  %v3572_v52 = vld [vmem:[%s4905_s1 + $0x1c] sm:$0xf]  ;;  %s3413_s11 = scalar_lea.vmem %s4329_s19, %s3805_s10 }
  0x1c   : >> { %v321_v23 = vrot.slane %v319_v19, 1  ;;  %v579_v45 = vshll.u32 %v3560_v30, 16  ;;  %v584_v46 = vshrl.u32 %v4225_v34, 16  ;;  %v587_v47 = vshll.u32 %v4225_v34, 16  ;;  %v3581_v53 = vld [vmem:[%s4364_s6 + $0x1c8] sm:$0xf] }
  0x1d   : >> { %v395_v33 = vrot.slane %v393_v27, 1  ;;  %v516_v49 = vrot.slane %v3564_v39, 1  ;;  %v517_v50 = vrot.slane %v4222_v22, 1  ;;  %v460_v51 = vsel %vm457_vm4, %v458_v41, %v459_v42  ;;  %v3582_v54 = vld [vmem:[%s4364_s6 + $0x1cc] sm:$0xf]  ;;  %s182_s23 = sadd.s32 1, %s4294_s23  }
  0x1e   : >> { %v322_v32 = vor.u32 %v321_v23, %v317_v18  ;;  %v578_v55 = vrot.slane %v576_v43, 1  ;;  %v581_v56 = vrot.slane %v579_v45, 2  ;;  %v586_v57 = vrot.slane %v584_v46, 1  ;;  %v3588_v1 = vld [vmem:[%s4364_s6 + $0x2ac] sm:$0xf]  ;;  %p179_p5 = scmp.ge.s32.totalorder %s182_s23, 16  }
  0x1f   : >> { %v396_v38 = vor.u32 %v395_v33, %v391_v26  ;;  %v589_v58 = vrot.slane %v587_v47, 2  ;;  %v596_v59 = vsel %vm205_vm0, %v3566_v48, 0  ;;  %v518_v60 = vsel %vm457_vm4, %v516_v49, %v517_v50  ;;  %v4425_v3 = vld [vmem:[%s4364_s6 + $0x2b0] sm:$0xf]  ;;  %v3578_v4 = vld [vmem:[%s4905_s1 + $0x20] sm:$0xf] }
  0x20   : >> { %v327_v37 = vsel %vm315_vm3, %v322_v32, %v326_v24  ;;  %v3585_v61 = vcombine.low %v3581_v53, %v3582_v54  ;;  %v657_v62 = vsel %vm205_vm0, %v3572_v52, 0  ;;  %v582_v63 = vor.u32 %v581_v56, %v578_v55  ;;  %v4229_v5 = vld [vmem:[%s4364_s6 + $0x1d0] ss:$0 sps:$4 sm:$0x11]   ;;  %v3584_v8 = vld [vmem:[%s4905_s1 + $0x24] sm:$0xf] }
  0x21   : >> { %3919 = vmatmul.mubr.msk.bf16.vlgmr.msra.gmra.mrb[4].mxu0 %vm201_vm2, %v327_v37  ;;  %v401_v44 = vsel %vm315_vm3, %v396_v38, %v400_v36  ;;  %v590_v0 = vor.u32 %v589_v58, %v586_v57  ;;  %vm574_vm5 = vsmask.f32 6400  ;;  %v3592_v9 = vcombine.low %v3588_v1, %v4425_v3  ;;  %v4446_v16 = vld [vmem:[%s4364_s6 + $0x2b4] ss:$0 sps:$4 sm:$0x11]   ;;  %v4227_v22 = vld [vmem:[%s4364_s6 + $0x2ac] sm:$0xff]  }
  0x22   : >> { %3929 = vmatpush3.bf16.msra.mxu0 %v465_v35  ;;  %3930 = vmatprep.mubr.msk.bf16.mxu0 %vm4297_vm1, %v4296_v2  ;;  %v779_v6 = vshll.u32 %v3585_v61, 16  ;;  %v718_v10 = vsel %vm205_vm0, %v3578_v4, 0  ;;  %v777_v12 = vshrl.u32 %v3585_v61, 16  ;;  %v784_v14 = vshll.u32 %v4229_v5, 16  ;;  %v3591_v18 = vld [vmem:[%s4905_s1 + $0x28] sm:$0xf] }
  0x23   : >> { %3925 = vmatmul.mubr.msk.bf16.vlgmr.msra.gmra.mrb[4].mxu1 %vm201_vm2, %v401_v44  ;;  %3940 = vmatprep.subr.bf16.mxu0 %v4296_v2  ;;  %v591_v7 = vsel %vm574_vm5, %v582_v63, %v590_v0  ;;  %v792_v15 = vsel %vm205_vm0, %v3584_v8, 0  ;;  %v853_v17 = vshll.u32 %v3592_v9, 16  ;;  %v3595_v21 = vld [vmem:[%s4364_s6 + $0x1c8] sm:$0xe]  ;;  %v3596_v23 = vld [vmem:[%s4905_s1 + $0x2c] sm:$0xf] }
  0x24   : >> { %3935 = vmatpush3.bf16.msra.mxu1 %v523_v40  ;;  %3936 = vmatprep.mubr.msk.bf16.mxu1 %vm4297_vm1, %v4296_v2  ;;  %v781_v13 = vrot.slane %v779_v6, 1  ;;  %v786_v20 = vrot.slane %v784_v14, 1  ;;  %v851_v24 = vshrl.u32 %v3592_v9, 16  ;;  %v858_v26 = vshll.u32 %v4446_v16, 16  ;;  %v3600_v34 = vld [vmem:[%s4905_s1 + $0x30] sm:$0xf] }
  0x25   : >> { %3946 = vmatprep.subr.bf16.mxu1 %v4296_v2  ;;  %v855_v25 = vrot.slane %v853_v17, 1  ;;  %v866_v27 = vsel %vm205_vm0, %v3591_v18, 0  ;;  %v3597_v28 = vcombine.low %v3595_v21, %v3582_v54  ;;  %v4234_v30 = vld [vmem:[%s4364_s6 + $0x1d0] ss:$0 sps:$4 sm:$0x33]   ;;  %v924_v31 = vsel %vm205_vm0, %v3596_v23, 0 }
  0x26   : >> { %v782_v19 = vor.u32 %v781_v13, %v777_v12  ;;  %v860_v33 = vrot.slane %v858_v26, 1  ;;  %v3599_v35 = vld [vmem:[%s4364_s6 + $0x2ac] sm:$0xe]  ;;  %v918_v37 = vrot.slane %v4229_v5, 1  ;;  %v1042_v40 = vshrl.u32 %v4234_v30, 16 }
  0x27   : >> { %v856_v32 = vor.u32 %v855_v25, %v851_v24  ;;  %v917_v36 = vrot.slane %v3597_v28, 1  ;;  %v1034_v38 = vshrl.u32 %v3597_v28, 16  ;;  %v1037_v39 = vshll.u32 %v3597_v28, 16  ;;  %v3604_v43 = vld [vmem:[%s4905_s1 + $0x34] sm:$0xf] }
  0x28   : >> { %v787_v29 = vsel %vm315_vm3, %v782_v19, %v786_v20  ;;  %v1045_v41 = vshll.u32 %v4234_v30, 16  ;;  %v3601_v44 = vcombine.low %v3599_v35, %v4425_v3  ;;  %v982_v45 = vsel %vm205_vm0, %v3600_v34, 0  ;;  %v3618_v54 = vld [vmem:[%s4364_s6 + $0xc] sm:$0xf]  ;;  %v3619_v55 = vld [vmem:[%s4364_s6 + $0x10] sm:$0xf] }
  0x29   : >> { %3931 = vmatmul.mubr.msk.bf16.vlgmr.msra.gmra.mrb[8].mxu0 %vm201_vm2, %v460_v51  ;;  %v861_v42 = vsel %vm315_vm3, %v856_v32, %v860_v33  ;;  %v919_v46 = vsel %vm457_vm4, %v917_v36, %v918_v37  ;;  %v1036_v47 = vrot.slane %v1034_v38, 1  ;;  %v1039_v48 = vrot.slane %v1037_v39, 2  ;;  %v3609_v56 = vld [vmem:[%s4905_s1 + $0x38] sm:$0xf]  ;;  %v3632_v23 = vld [vmem:[%s4364_s6 + $0xc] sm:$0xe] }
  0x2a   : >> { %3941 = vmatpush3.bf16.msra.mxu0 %v596_v59  ;;  %3942 = vmatprep.mubr.msk.bf16.mxu0 %vm4297_vm1, %v4296_v2  ;;  %v1044_v49 = vrot.slane %v1042_v40, 1  ;;  %v1047_v50 = vrot.slane %v1045_v41, 2  ;;  %v1054_v51 = vsel %vm205_vm0, %v3604_v43, 0  ;;  %v975_v52 = vrot.slane %v3601_v44, 1  ;;  %v3625_v59 = vld [vmem:[%s4364_s6 + $0xf0] sm:$0xf] }
  0x2b   : >> { %3937 = vmatmul.mubr.msk.bf16.vlgmr.msra.gmra.mrb[8].mxu1 %vm201_vm2, %v518_v60  ;;  %3952 = vmatprep.subr.bf16.mxu0 %v4296_v2  ;;  %v976_v53 = vrot.slane %v4446_v16, 1  ;;  %v1040_v57 = vor.u32 %v1039_v48, %v1036_v47  ;;  %v4502_v60 = vld [vmem:[%s4364_s6 + $0xf4] sm:$0xf]  ;;  %v3622_v63 = vcombine.low %v3618_v54, %v3619_v55  ;;  %v1116_v0 = vsel %vm205_vm0, %v3609_v56, 0  ;;  %v3633_v24 = vld [vmem:[%s4905_s1 + $0x48] sm:$0xf] }
  0x2c   : >> { %3947 = vmatpush3.bf16.msra.mxu1 %v657_v62  ;;  %3948 = vmatprep.mubr.msk.bf16.mxu1 %vm4297_vm1, %v4296_v2  ;;  %v1048_v58 = vor.u32 %v1047_v50, %v1044_v49  ;;  %v3615_v62 = vld [vmem:[%s4905_s1 + $0x3c] sm:$0xf]  ;;  %v3629_v3 = vcombine.low %v3625_v59, %v4502_v60  ;;  %v4238_v5 = vld [vmem:[%s4364_s6 + $0x14] ss:$0 sps:$4 sm:$0x11]   ;;  %v1383_v32 = vsel %vm205_vm0, %v3633_v24, 0 }
  0x2d   : >> { %3958 = vmatprep.subr.bf16.mxu1 %v4296_v2  ;;  %v977_v61 = vsel %vm457_vm4, %v975_v52, %v976_v53  ;;  %v1177_v4 = vsel %vm205_vm0, %v3615_v62, 0  ;;  %v1238_v6 = vshll.u32 %v3622_v63, 16  ;;  %v4524_v8 = vld [vmem:[%s4364_s6 + $0xf8] ss:$0 sps:$4 sm:$0x11]   ;;  %v1236_v12 = vshrl.u32 %v3622_v63, 16 }
  0x2e   : >> { %v1049_v1 = vsel %vm574_vm5, %v1040_v57, %v1048_v58  ;;  %v1312_v9 = vshll.u32 %v3629_v3, 16  ;;  %v1243_v14 = vshll.u32 %v4238_v5, 16  ;;  %v4236_v16 = vld [vmem:[%s4364_s6 + $0xf0] sm:$0xff]   ;;  %v1310_v17 = vshrl.u32 %v3629_v3, 16  ;;  %v3637_v30 = vld [vmem:[%s4905_s1 + $0x4c] sm:$0xf] }
  0x2f   : >> { %v1240_v13 = vrot.slane %v1238_v6, 1  ;;  %v1317_v19 = vshll.u32 %v4524_v8, 16  ;;  %v3636_v28 = vld [vmem:[%s4364_s6 + $0xf0] sm:$0xe]  ;;  %v1441_v35 = vsel %vm205_vm0, %v3637_v30, 0  ;;  %v1377_v37 = vrot.slane %v4238_v5, 1 }
  0x30   : >> { %v1314_v18 = vrot.slane %v1312_v9, 1  ;;  %v3638_v34 = vcombine.low %v3636_v28, %v4502_v60  ;;  %v1435_v44 = vrot.slane %v4524_v8, 1  ;;  %v3656_v47 = vld [vmem:[%s4364_s6 + $0x1d4] sm:$0xf]  ;;  %v3657_v48 = vld [vmem:[%s4364_s6 + $0x1d8] sm:$0xf] }
  0x31   : >> { %3943 = vmatmul.mubr.msk.bf16.vlgmr.msra.gmra.mrb[12].mxu0 %vm201_vm2, %v591_v7  ;;  %v3621_v7 = vld [vmem:[%s4905_s1 + $0x40] sm:$0xf]  ;;  %v1241_v21 = vor.u32 %v1240_v13, %v1236_v12  ;;  %v1319_v26 = vrot.slane %v1317_v19, 1  ;;  %v3663_v59 = vld [vmem:[%s4364_s6 + $0x2b8] sm:$0xf]  ;;  %vm3414_vm6 = vcmask 519168  }
  0x32   : >> { %3953 = vmatpush3.bf16.msra.mxu0 %v718_v10  ;;  %3954 = vmatprep.mubr.msk.bf16.mxu0 %vm4297_vm1, %v4296_v2  ;;  %v4235_v10 = vld [vmem:[%s4364_s6 + $0xc] sm:$0xff]   ;;  %v1315_v25 = vor.u32 %v1314_v18, %v1310_v17  ;;  %v1434_v43 = vrot.slane %v3638_v34, 1  ;;  %v4585_v60 = vld [vmem:[%s4364_s6 + $0x2bc] sm:$0xf]  ;;  %v4244_v5 = vld [vmem:[%s4364_s6 + $0x1d4] sm:$0xff]  }
  0x33   : >> { %3949 = vmatmul.mubr.msk.bf16.vlgmr.msra.gmra.mrb[12].mxu1 %vm201_vm2, %v4226_v11  ;;  %3964 = vmatprep.subr.bf16.mxu0 %v4296_v2  ;;  %v3628_v11 = vld [vmem:[%s4905_s1 + $0x44] sm:$0xf]  ;;  %v4247_v62 = vld [vmem:[%s4364_s6 + $0x1dc] ss:$0 sps:$4 sm:$0x11]   ;;  %v3667_v3 = vcombine.low %v3663_v59, %v4585_v60 }
  0x34   : >> { %3959 = vmatpush3.bf16.msra.mxu1 %v792_v15  ;;  %3960 = vmatprep.mubr.msk.bf16.mxu1 %vm4297_vm1, %v4296_v2  ;;  %v1251_v15 = vsel %vm205_vm0, %v3621_v7, 0  ;;  %v1325_v20 = vsel %vm205_vm0, %v3628_v11, 0  ;;  %v1320_v33 = vsel %vm315_vm3, %v1315_v25, %v1319_v26  ;;  %v1436_v54 = vsel %vm457_vm4, %v1434_v43, %v1435_v44  ;;  %v3666_v12 = vld [vmem:[%s4905_s1 + $0x60] sm:$0xf]  ;;  %v3671_v17 = vld [vmem:[%s4905_s1 + $0x64] sm:$0xf] }
  0x35   : >> { %3970 = vmatprep.subr.bf16.mxu1 %v4296_v2  ;;  %v1701_v8 = vshll.u32 %v4247_v62, 16  ;;  %v1770_v11 = vshll.u32 %v3667_v3, 16  ;;  %v1768_v18 = vshrl.u32 %v3667_v3, 16  ;;  %v4252_v24 = vld [vmem:[%s4364_s6 + $0x1dc] ss:$0 sps:$4 sm:$0x33]  }
  0x36   : >> { %v1841_v25 = vsel %vm205_vm0, %v3671_v17, 0  ;;  %v3674_v30 = vld [vmem:[%s4364_s6 + $0x2b8] sm:$0xe]  ;;  %v1959_v34 = vshrl.u32 %v4252_v24, 16 }
  0x37   : >> { %v1772_v19 = vrot.slane %v1770_v11, 1  ;;  %v3707_v17 = vld [vmem:[%s4364_s6 + $0x18] sm:$0xe] }
  0x38   : >> { %v1961_v43 = vrot.slane %v1959_v34, 1 }
  0x39   : >> { %3955 = vmatmul.mubr.msk.bf16.vlgmr.msra.gmra.mrb[16].mxu0 %vm201_vm2, %v4227_v22  ;;  %v1245_v22 = vrot.slane %v1243_v14, 1  ;;  %v1703_v14 = vrot.slane %v1701_v8, 1  ;;  %v1773_v26 = vor.u32 %v1772_v19, %v1768_v18  ;;  %v3708_v18 = vld [vmem:[%s4905_s1 + $0x80] sm:$0xf] }
  0x3a   : >> { %3965 = vmatpush3.bf16.msra.mxu0 %v866_v27  ;;  %3966 = vmatprep.mubr.msk.bf16.mxu0 %vm4297_vm1, %v4296_v2  ;;  %v3634_v27 = vcombine.low %v3632_v23, %v3619_v55  ;;  %v3660_v55 = vcombine.low %v3656_v47, %v3657_v48 }
  0x3b   : >> { %3961 = vmatmul.mubr.msk.bf16.vlgmr.msra.gmra.mrb[16].mxu1 %vm201_vm2, %v787_v29  ;;  %3976 = vmatprep.subr.bf16.mxu0 %v4296_v2  ;;  %v1246_v29 = vsel %vm315_vm3, %v1241_v21, %v1245_v22  ;;  %v1783_v21 = vsel %vm205_vm0, %v3666_v12, 0 }
  0x3c   : >> { %3971 = vmatpush3.bf16.msra.mxu1 %v924_v31  ;;  %3972 = vmatprep.mubr.msk.bf16.mxu1 %vm4297_vm1, %v4296_v2  ;;  %v4243_v31 = vld [vmem:[%s4364_s6 + $0x14] ss:$0 sps:$4 sm:$0x33]   ;;  %v1376_v36 = vrot.slane %v3634_v27, 1  ;;  %v1493_v38 = vshrl.u32 %v3634_v27, 16  ;;  %v1496_v39 = vshll.u32 %v3634_v27, 16 }
  0x3d   : >> { %3982 = vmatprep.subr.bf16.mxu1 %v4296_v2  ;;  %v1501_v40 = vshrl.u32 %v4243_v31, 16  ;;  %v1504_v41 = vshll.u32 %v4243_v31, 16  ;;  %v1696_v63 = vshll.u32 %v3660_v55, 16  ;;  %v1694_v6 = vshrl.u32 %v3660_v55, 16  ;;  %v3675_v31 = vld [vmem:[%s4905_s1 + $0x68] sm:$0xf] }
  0x3e   : >> { %v1495_v49 = vrot.slane %v1493_v38, 1  ;;  %v1498_v50 = vrot.slane %v1496_v39, 2  ;;  %v3676_v38 = vcombine.low %v3674_v30, %v4585_v60  ;;  %v1899_v39 = vsel %vm205_vm0, %v3675_v31, 0 }
  0x3f   : >> { %v1506_v52 = vrot.slane %v1504_v41, 2  ;;  %v1698_v7 = vrot.slane %v1696_v63, 1 }
  0x40   : >> { %v1499_v57 = vor.u32 %v1498_v50, %v1495_v49  ;;  %v3694_v49 = vld [vmem:[%s4364_s6 + $0x1c] sm:$0xf]  ;;  %v3684_v50 = vld [vmem:[%s4905_s1 + $0x70] sm:$0xf] }
  0x41   : >> { %3967 = vmatmul.mubr.msk.bf16.vlgmr.msra.gmra.mrb[20].mxu0 %vm201_vm2, %v861_v42  ;;  %v3641_v42 = vld [vmem:[%s4905_s1 + $0x50] sm:$0xf]  ;;  %v1699_v13 = vor.u32 %v1698_v7, %v1694_v6 }
  0x42   : >> { %3977 = vmatpush3.bf16.msra.mxu0 %v982_v45  ;;  %3978 = vmatprep.mubr.msk.bf16.mxu0 %vm4297_vm1, %v4296_v2  ;;  %v1378_v45 = vsel %vm457_vm4, %v1376_v36, %v1377_v37  ;;  %v1513_v53 = vsel %vm205_vm0, %v3641_v42, 0  ;;  %v3679_v37 = vld [vmem:[%s4905_s1 + $0x6c] sm:$0xf] }
  0x43   : >> { %3973 = vmatmul.mubr.msk.bf16.vlgmr.msra.gmra.mrb[20].mxu1 %vm201_vm2, %v919_v46  ;;  %3988 = vmatprep.subr.bf16.mxu0 %v4296_v2  ;;  %v3647_v46 = vld [vmem:[%s4905_s1 + $0x54] sm:$0xf]  ;;  %v1704_v23 = vsel %vm315_vm3, %v1699_v13, %v1703_v14 }
  0x44   : >> { %3983 = vmatpush3.bf16.msra.mxu1 %v1054_v51  ;;  %3984 = vmatprep.mubr.msk.bf16.mxu1 %vm4297_vm1, %v4296_v2  ;;  %v1503_v51 = vrot.slane %v1501_v40, 1  ;;  %v1574_v56 = vsel %vm205_vm0, %v3647_v46, 0  ;;  %v1892_v46 = vrot.slane %v3676_v38, 1 }
  0x45   : >> { %3994 = vmatprep.subr.bf16.mxu1 %v4296_v2 }
  0x46   : >> { %v1507_v58 = vor.u32 %v1506_v52, %v1503_v51 }
  0x49   : >> { %3979 = vmatmul.mubr.msk.bf16.vlgmr.msra.gmra.mrb[24].mxu0 %vm201_vm2, %v977_v61  ;;  %v3653_v61 = vld [vmem:[%s4905_s1 + $0x58] sm:$0xf] }
  0x4a   : >> { %3989 = vmatpush3.bf16.msra.mxu0 %v1116_v0  ;;  %3990 = vmatprep.mubr.msk.bf16.mxu0 %vm4297_vm1, %v4296_v2  ;;  %v1508_v0 = vsel %vm574_vm5, %v1499_v57, %v1507_v58  ;;  %v2033_v58 = vsel %vm205_vm0, %v3684_v50, 0 }
  0x4b   : >> { %3985 = vmatmul.mubr.msk.bf16.vlgmr.msra.gmra.mrb[24].mxu1 %vm201_vm2, %v1049_v1  ;;  %4000 = vmatprep.subr.bf16.mxu0 %v4296_v2  ;;  %v3659_v1 = vld [vmem:[%s4905_s1 + $0x5c] sm:$0xf] }
  0x4c   : >> { %3995 = vmatpush3.bf16.msra.mxu1 %v1177_v4  ;;  %3996 = vmatprep.mubr.msk.bf16.mxu1 %vm4297_vm1, %v4296_v2  ;;  %v1635_v4 = vsel %vm205_vm0, %v3653_v61, 0  ;;  %v1709_v9 = vsel %vm205_vm0, %v3659_v1, 0  ;;  %v4684_v1 = vld [vmem:[%s4364_s6 + $0x104] ss:$0 sps:$4 sm:$0x11]  }
  0x4d   : >> { %4006 = vmatprep.subr.bf16.mxu1 %v4296_v2  ;;  %v2234_v13 = vshll.u32 %v4684_v1, 16  ;;  %v2352_v38 = vrot.slane %v4684_v1, 1 }
  0x51   : >> { %3991 = vmatmul.mubr.msk.bf16.vlgmr.msra.gmra.mrb[28].mxu0 %vm201_vm2, %v4235_v10  ;;  %v4606_v10 = vld [vmem:[%s4364_s6 + $0x2c0] ss:$0 sps:$4 sm:$0x11]  }
  0x52   : >> { %4001 = vmatpush3.bf16.msra.mxu0 %v1251_v15  ;;  %4002 = vmatprep.mubr.msk.bf16.mxu0 %vm4297_vm1, %v4296_v2  ;;  %v3670_v15 = vld [vmem:[%s4364_s6 + $0x1d4] sm:$0xe]  ;;  %v1893_v47 = vrot.slane %v4606_v10, 1 }
  0x53   : >> { %3997 = vmatmul.mubr.msk.bf16.vlgmr.msra.gmra.mrb[28].mxu1 %vm201_vm2, %v4236_v16  ;;  %4012 = vmatprep.subr.bf16.mxu0 %v4296_v2  ;;  %v4245_v16 = vld [vmem:[%s4364_s6 + $0x2b8] sm:$0xff]   ;;  %v3672_v22 = vcombine.low %v3670_v15, %v3657_v48 }
  0x54   : >> { %4007 = vmatpush3.bf16.msra.mxu1 %v1325_v20  ;;  %4008 = vmatprep.mubr.msk.bf16.mxu1 %vm4297_vm1, %v4296_v2  ;;  %v1775_v20 = vshll.u32 %v4606_v10, 16  ;;  %v3693_v48 = vld [vmem:[%s4364_s6 + $0x18] sm:$0xf]  ;;  %v1894_v55 = vsel %vm457_vm4, %v1892_v46, %v1893_v47  ;;  %v4254_v10 = vld [vmem:[%s4364_s6 + $0xfc] sm:$0xff]  }
  0x55   : >> { %4018 = vmatprep.subr.bf16.mxu1 %v4296_v2  ;;  %v1834_v28 = vrot.slane %v3672_v22, 1  ;;  %v3697_v57 = vcombine.low %v3693_v48, %v3694_v49 }
  0x56   : >> { %v1777_v27 = vrot.slane %v1775_v20, 1  ;;  %v2236_v20 = vrot.slane %v2234_v13, 1 }
  0x57   : >> { %v2155_v63 = vshll.u32 %v3697_v57, 16  ;;  %v2153_v6 = vshrl.u32 %v3697_v57, 16 }
  0x58   : >> { %v1778_v36 = vsel %vm315_vm3, %v1773_v26, %v1777_v27  ;;  %v2300_v26 = vsel %vm205_vm0, %v3708_v18, 0  ;;  %v4270_v18 = vld [vmem:[%s4364_s6 + $0x1e8] ss:$0 sps:$4 sm:$0x33]  }
  0x59   : >> { %4003 = vmatmul.mubr.msk.bf16.vlgmr.msra.gmra.mrb[32].mxu0 %vm201_vm2, %v1246_v29  ;;  %v1835_v29 = vrot.slane %v4247_v62, 1  ;;  %v4256_v62 = vld [vmem:[%s4364_s6 + $0x20] ss:$0 sps:$4 sm:$0x11]   ;;  %v2157_v7 = vrot.slane %v2155_v63, 1 }
  0x5a   : >> { %4013 = vmatpush3.bf16.msra.mxu0 %v1383_v32  ;;  %4014 = vmatprep.mubr.msk.bf16.mxu0 %vm4297_vm1, %v4296_v2  ;;  %v1951_v32 = vshrl.u32 %v3672_v22, 16  ;;  %v2160_v8 = vshll.u32 %v4256_v62, 16  ;;  %v2294_v31 = vrot.slane %v4256_v62, 1  ;;  %v4262_v62 = vld [vmem:[%s4364_s6 + $0x1e0] sm:$0xff]  }
  0x5b   : >> { %4009 = vmatmul.mubr.msk.bf16.vlgmr.msra.gmra.mrb[32].mxu1 %vm201_vm2, %v1320_v33  ;;  %4024 = vmatprep.subr.bf16.mxu0 %v4296_v2  ;;  %v1954_v33 = vshll.u32 %v3672_v22, 16  ;;  %v1836_v40 = vsel %vm457_vm4, %v1834_v28, %v1835_v29  ;;  %v2158_v15 = vor.u32 %v2157_v7, %v2153_v6  ;;  %v3711_v22 = vld [vmem:[%s4364_s6 + $0xfc] sm:$0xe]  ;;  %v3741_v6 = vld [vmem:[%s4905_s1 + $0x98] sm:$0xf] }
  0x5c   : >> { %4019 = vmatpush3.bf16.msra.mxu1 %v1441_v35  ;;  %4020 = vmatprep.mubr.msk.bf16.mxu1 %vm4297_vm1, %v4296_v2  ;;  %v1962_v35 = vshll.u32 %v4252_v24, 16  ;;  %v1953_v41 = vrot.slane %v1951_v32, 1  ;;  %v3712_v24 = vld [vmem:[%s4905_s1 + $0x84] sm:$0xf] }
  0x5d   : >> { %4030 = vmatprep.subr.bf16.mxu1 %v4296_v2  ;;  %v1956_v42 = vrot.slane %v1954_v33, 2  ;;  %v2358_v29 = vsel %vm205_vm0, %v3712_v24, 0  ;;  %v3749_v24 = vld [vmem:[%s4364_s6 + $0x2c4] sm:$0xe] }
  0x5e   : >> { %v1964_v44 = vrot.slane %v1962_v35, 2 }
  0x5f   : >> { %v1957_v51 = vor.u32 %v1956_v42, %v1953_v41  ;;  %v3732_v41 = vld [vmem:[%s4364_s6 + $0x1e4] sm:$0xf]  ;;  %v3722_v42 = vld [vmem:[%s4905_s1 + $0x8c] sm:$0xf] }
  0x60   : >> { %v1965_v52 = vor.u32 %v1964_v44, %v1961_v43  ;;  %v2491_v50 = vsel %vm205_vm0, %v3722_v42, 0  ;;  %v3768_v42 = vld [vmem:[%s4364_s6 + $0x24] sm:$0xf] }
  0x61   : >> { %4015 = vmatmul.mubr.msk.bf16.vlgmr.msra.gmra.mrb[36].mxu0 %vm201_vm2, %v1378_v45  ;;  %v1971_v45 = vsel %vm205_vm0, %v3679_v37, 0 }
  0x62   : >> { %4025 = vmatpush3.bf16.msra.mxu0 %v1513_v53  ;;  %4026 = vmatprep.mubr.msk.bf16.mxu0 %vm4297_vm1, %v4296_v2  ;;  %v3700_v53 = vld [vmem:[%s4364_s6 + $0xfc] sm:$0xf]  ;;  %v1966_v59 = vsel %vm574_vm5, %v1957_v51, %v1965_v52 }
  0x63   : >> { %4021 = vmatmul.mubr.msk.bf16.vlgmr.msra.gmra.mrb[36].mxu1 %vm201_vm2, %v1436_v54  ;;  %4036 = vmatprep.subr.bf16.mxu0 %v4296_v2  ;;  %v4662_v54 = vld [vmem:[%s4364_s6 + $0x100] sm:$0xf] }
  0x64   : >> { %4031 = vmatpush3.bf16.msra.mxu1 %v1574_v56  ;;  %4032 = vmatprep.mubr.msk.bf16.mxu1 %vm4297_vm1, %v4296_v2  ;;  %v3690_v56 = vld [vmem:[%s4905_s1 + $0x74] sm:$0xf]  ;;  %v3704_v60 = vcombine.low %v3700_v53, %v4662_v54  ;;  %v3713_v28 = vcombine.low %v3711_v22, %v4662_v54  ;;  %v3738_v53 = vld [vmem:[%s4364_s6 + $0x2c4] sm:$0xf]  ;;  %v4745_v54 = vld [vmem:[%s4364_s6 + $0x2c8] sm:$0xf] }
  0x65   : >> { %4042 = vmatprep.subr.bf16.mxu1 %v4296_v2  ;;  %v2094_v61 = vsel %vm205_vm0, %v3690_v56, 0  ;;  %v4265_v56 = vld [vmem:[%s4364_s6 + $0x1e8] ss:$0 sps:$4 sm:$0x11]  }
  0x66   : >> { %v2229_v3 = vshll.u32 %v3704_v60, 16  ;;  %v2227_v11 = vshrl.u32 %v3704_v60, 16  ;;  %v2351_v37 = vrot.slane %v3713_v28, 1  ;;  %v3742_v60 = vcombine.low %v3738_v53, %v4745_v54 }
  0x67   : >> { %v2618_v1 = vshll.u32 %v4265_v56, 16  ;;  %v2876_v28 = vshrl.u32 %v4270_v18, 16 }
  0x68   : >> { %v2231_v12 = vrot.slane %v2229_v3, 1  ;;  %v2353_v48 = vsel %vm457_vm4, %v2351_v37, %v2352_v38 }
  0x69   : >> { %4027 = vmatmul.mubr.msk.bf16.vlgmr.msra.gmra.mrb[40].mxu0 %vm201_vm2, %v1508_v0  ;;  %v3696_v0 = vld [vmem:[%s4905_s1 + $0x78] sm:$0xf]  ;;  %v2878_v37 = vrot.slane %v2876_v28, 1 }
  0x6a   : >> { %4037 = vmatpush3.bf16.msra.mxu0 %v1635_v4  ;;  %4038 = vmatprep.mubr.msk.bf16.mxu0 %vm4297_vm1, %v4296_v2  ;;  %v4253_v4 = vld [vmem:[%s4364_s6 + $0x18] sm:$0xff]   ;;  %v2232_v19 = vor.u32 %v2231_v12, %v2227_v11  ;;  %v2685_v12 = vshrl.u32 %v3742_v60, 16 }
  0x6b   : >> { %4033 = vmatmul.mubr.msk.bf16.vlgmr.msra.gmra.mrb[40].mxu1 %vm201_vm2, %v4244_v5  ;;  %4048 = vmatprep.subr.bf16.mxu0 %v4296_v2  ;;  %v3703_v5 = vld [vmem:[%s4905_s1 + $0x7c] sm:$0xf] }
  0x6c   : >> { %4043 = vmatpush3.bf16.msra.mxu1 %v1709_v9  ;;  %4044 = vmatprep.mubr.msk.bf16.mxu1 %vm4297_vm1, %v4296_v2  ;;  %v2168_v9 = vsel %vm205_vm0, %v3696_v0, 0  ;;  %v2242_v14 = vsel %vm205_vm0, %v3703_v5, 0  ;;  %v2237_v27 = vsel %vm315_vm3, %v2232_v19, %v2236_v20  ;;  %v2687_v5 = vshll.u32 %v3742_v60, 16  ;;  %v3746_v11 = vld [vmem:[%s4905_s1 + $0x9c] sm:$0xf] }
  0x6d   : >> { %4054 = vmatprep.subr.bf16.mxu1 %v4296_v2  ;;  %v2758_v19 = vsel %vm205_vm0, %v3746_v11, 0  ;;  %v3782_v11 = vld [vmem:[%s4364_s6 + $0x24] sm:$0xe] }
  0x6e   : >> { %v2689_v13 = vrot.slane %v2687_v5, 1 }
  0x70   : >> { %v2690_v20 = vor.u32 %v2689_v13, %v2685_v12  ;;  %v3783_v12 = vld [vmem:[%s4905_s1 + $0xb8] sm:$0xf] }
  0x71   : >> { %4039 = vmatmul.mubr.msk.bf16.vlgmr.msra.gmra.mrb[44].mxu0 %vm201_vm2, %v4245_v16  ;;  %v2162_v16 = vrot.slane %v2160_v8, 1  ;;  %v2620_v8 = vrot.slane %v2618_v1, 1 }
  0x72   : >> { %4049 = vmatpush3.bf16.msra.mxu0 %v1783_v21  ;;  %4050 = vmatprep.mubr.msk.bf16.mxu0 %vm4297_vm1, %v4296_v2  ;;  %v3709_v21 = vcombine.low %v3707_v17, %v3694_v49 }
  0x73   : >> { %4045 = vmatmul.mubr.msk.bf16.vlgmr.msra.gmra.mrb[44].mxu1 %vm201_vm2, %v1704_v23  ;;  %4060 = vmatprep.subr.bf16.mxu0 %v4296_v2  ;;  %v2163_v23 = vsel %vm315_vm3, %v2158_v15, %v2162_v16  ;;  %v2700_v15 = vsel %vm205_vm0, %v3741_v6, 0 }
  0x74   : >> { %4055 = vmatpush3.bf16.msra.mxu1 %v1841_v25  ;;  %4056 = vmatprep.mubr.msk.bf16.mxu1 %vm4297_vm1, %v4296_v2  ;;  %v4261_v25 = vld [vmem:[%s4364_s6 + $0x20] ss:$0 sps:$4 sm:$0x33]   ;;  %v2293_v30 = vrot.slane %v3709_v21, 1  ;;  %v2410_v32 = vshrl.u32 %v3709_v21, 16  ;;  %v2413_v33 = vshll.u32 %v3709_v21, 16 }
  0x75   : >> { %4066 = vmatprep.subr.bf16.mxu1 %v4296_v2  ;;  %v2418_v34 = vshrl.u32 %v4261_v25, 16  ;;  %v2421_v35 = vshll.u32 %v4261_v25, 16  ;;  %v3750_v25 = vld [vmem:[%s4905_s1 + $0xa0] sm:$0xf] }
  0x76   : >> { %v2412_v43 = vrot.slane %v2410_v32, 1  ;;  %v2415_v44 = vrot.slane %v2413_v33, 2  ;;  %v3751_v32 = vcombine.low %v3749_v24, %v4745_v54  ;;  %v2816_v33 = vsel %vm205_vm0, %v3750_v25, 0 }
  0x77   : >> { %v2423_v46 = vrot.slane %v2421_v35, 2 }
  0x78   : >> { %v2416_v51 = vor.u32 %v2415_v44, %v2412_v43  ;;  %v3769_v43 = vld [vmem:[%s4364_s6 + $0x28] sm:$0xf] }
  0x79   : >> { %4051 = vmatmul.mubr.msk.bf16.vlgmr.msra.gmra.mrb[48].mxu0 %vm201_vm2, %v1778_v36  ;;  %v3716_v36 = vld [vmem:[%s4905_s1 + $0x88] sm:$0xf] }
  0x7a   : >> { %4061 = vmatpush3.bf16.msra.mxu0 %v1899_v39  ;;  %4062 = vmatprep.mubr.msk.bf16.mxu0 %vm4297_vm1, %v4296_v2  ;;  %v2295_v39 = vsel %vm457_vm4, %v2293_v30, %v2294_v31  ;;  %v2430_v47 = vsel %vm205_vm0, %v3716_v36, 0  ;;  %v3754_v31 = vld [vmem:[%s4905_s1 + $0xa4] sm:$0xf]  ;;  %v3759_v44 = vld [vmem:[%s4905_s1 + $0xa8] sm:$0xf] }
  0x7b   : >> { %4057 = vmatmul.mubr.msk.bf16.vlgmr.msra.gmra.mrb[48].mxu1 %vm201_vm2, %v1836_v40  ;;  %4072 = vmatprep.subr.bf16.mxu0 %v4296_v2  ;;  %v3731_v40 = vld [vmem:[%s4364_s6 + $0x1e0] sm:$0xf] }
  0x7c   : >> { %4067 = vmatpush3.bf16.msra.mxu1 %v1971_v45  ;;  %4068 = vmatprep.mubr.msk.bf16.mxu1 %vm4297_vm1, %v4296_v2  ;;  %v2420_v45 = vrot.slane %v2418_v34, 1  ;;  %v3735_v49 = vcombine.low %v3731_v40, %v3732_v41  ;;  %v2809_v40 = vrot.slane %v3751_v32, 1 }
  0x7d   : >> { %4078 = vmatprep.subr.bf16.mxu1 %v4296_v2 }
  0x7e   : >> { %v2424_v52 = vor.u32 %v2423_v46, %v2420_v45  ;;  %v2613_v57 = vshll.u32 %v3735_v49, 16  ;;  %v2611_v63 = vshrl.u32 %v3735_v49, 16 }
  0x80   : >> { %v2615_v0 = vrot.slane %v2613_v57, 1 }
  0x81   : >> { %4063 = vmatmul.mubr.msk.bf16.vlgmr.msra.gmra.mrb[52].mxu0 %vm201_vm2, %v1894_v55  ;;  %v3728_v55 = vld [vmem:[%s4905_s1 + $0x90] sm:$0xf] }
  0x82   : >> { %4073 = vmatpush3.bf16.msra.mxu0 %v2033_v58  ;;  %4074 = vmatprep.mubr.msk.bf16.mxu0 %vm4297_vm1, %v4296_v2  ;;  %v2425_v58 = vsel %vm574_vm5, %v2416_v51, %v2424_v52  ;;  %v2616_v7 = vor.u32 %v2615_v0, %v2611_v63  ;;  %v3772_v51 = vcombine.low %v3768_v42, %v3769_v43  ;;  %v2950_v52 = vsel %vm205_vm0, %v3759_v44, 0 }
  0x83   : >> { %4069 = vmatmul.mubr.msk.bf16.vlgmr.msra.gmra.mrb[52].mxu1 %vm201_vm2, %v1966_v59  ;;  %4084 = vmatprep.subr.bf16.mxu0 %v4296_v2  ;;  %v3734_v59 = vld [vmem:[%s4905_s1 + $0x94] sm:$0xf] }
  0x84   : >> { %4079 = vmatpush3.bf16.msra.mxu1 %v2094_v61  ;;  %4080 = vmatprep.mubr.msk.bf16.mxu1 %vm4297_vm1, %v4296_v2  ;;  %v2552_v61 = vsel %vm205_vm0, %v3728_v55, 0  ;;  %v2626_v3 = vsel %vm205_vm0, %v3734_v59, 0  ;;  %v2621_v17 = vsel %vm315_vm3, %v2616_v7, %v2620_v8  ;;  %v3072_v57 = vshll.u32 %v3772_v51, 16  ;;  %v4276_v59 = vld [vmem:[%s4364_s6 + $0x110] ss:$0 sps:$4 sm:$0x11]  }
  0x85   : >> { %4090 = vmatprep.subr.bf16.mxu1 %v4296_v2  ;;  %v3070_v63 = vshrl.u32 %v3772_v51, 16  ;;  %v3151_v7 = vshll.u32 %v4276_v59, 16  ;;  %v3269_v32 = vrot.slane %v4276_v59, 1 }
  0x86   : >> { %v3074_v0 = vrot.slane %v3072_v57, 1 }
  0x89   : >> { %4075 = vmatmul.mubr.msk.bf16.vlgmr.msra.gmra.mrb[56].mxu0 %vm201_vm2, %v4253_v4  ;;  %v4766_v4 = vld [vmem:[%s4364_s6 + $0x2cc] ss:$0 sps:$4 sm:$0x11]  }
  0x8a   : >> { %4085 = vmatpush3.bf16.msra.mxu0 %v2168_v9  ;;  %4086 = vmatprep.mubr.msk.bf16.mxu0 %vm4297_vm1, %v4296_v2  ;;  %v3745_v9 = vld [vmem:[%s4364_s6 + $0x1e0] sm:$0xe] }
  0x8b   : >> { %4081 = vmatmul.mubr.msk.bf16.vlgmr.msra.gmra.mrb[56].mxu1 %vm201_vm2, %v4254_v10  ;;  %4096 = vmatprep.subr.bf16.mxu0 %v4296_v2  ;;  %v4263_v10 = vld [vmem:[%s4364_s6 + $0x2c4] sm:$0xff]   ;;  %v3747_v16 = vcombine.low %v3745_v9, %v3732_v41  ;;  %v2810_v41 = vrot.slane %v4766_v4, 1  ;;  %v3075_v9 = vor.u32 %v3074_v0, %v3070_v63 }
  0x8c   : >> { %4091 = vmatpush3.bf16.msra.mxu1 %v2242_v14  ;;  %4092 = vmatprep.mubr.msk.bf16.mxu1 %vm4297_vm1, %v4296_v2  ;;  %v2692_v14 = vshll.u32 %v4766_v4, 16  ;;  %v4272_v4 = vld [vmem:[%s4364_s6 + $0x108] sm:$0xff]  }
  0x8d   : >> { %4102 = vmatprep.subr.bf16.mxu1 %v4296_v2  ;;  %v2751_v22 = vrot.slane %v3747_v16, 1  ;;  %v2811_v49 = vsel %vm457_vm4, %v2809_v40, %v2810_v41 }
  0x8e   : >> { %v2694_v21 = vrot.slane %v2692_v14, 1  ;;  %v3153_v14 = vrot.slane %v3151_v7, 1 }
  0x90   : >> { %v2695_v30 = vsel %vm315_vm3, %v2690_v20, %v2694_v21  ;;  %v3217_v20 = vsel %vm205_vm0, %v3783_v12, 0 }
  0x91   : >> { %4087 = vmatmul.mubr.msk.bf16.vlgmr.msra.gmra.mrb[60].mxu0 %vm201_vm2, %v2163_v23  ;;  %v2752_v23 = vrot.slane %v4265_v56, 1  ;;  %v4274_v56 = vld [vmem:[%s4364_s6 + $0x2c] ss:$0 sps:$4 sm:$0x11]  }
  0x92   : >> { %4097 = vmatpush3.bf16.msra.mxu0 %v2300_v26  ;;  %4098 = vmatprep.mubr.msk.bf16.mxu0 %vm4297_vm1, %v4296_v2  ;;  %v2868_v26 = vshrl.u32 %v3747_v16, 16  ;;  %v3077_v1 = vshll.u32 %v4274_v56, 16  ;;  %v3211_v25 = vrot.slane %v4274_v56, 1 }
  0x93   : >> { %4093 = vmatmul.mubr.msk.bf16.vlgmr.msra.gmra.mrb[60].mxu1 %vm201_vm2, %v2237_v27  ;;  %4108 = vmatprep.subr.bf16.mxu0 %v4296_v2  ;;  %v2871_v27 = vshll.u32 %v3747_v16, 16  ;;  %v2753_v34 = vsel %vm457_vm4, %v2751_v22, %v2752_v23  ;;  %v3786_v16 = vld [vmem:[%s4364_s6 + $0x108] sm:$0xe] }
  0x94   : >> { %4103 = vmatpush3.bf16.msra.mxu1 %v2358_v29  ;;  %4104 = vmatprep.mubr.msk.bf16.mxu1 %vm4297_vm1, %v4296_v2  ;;  %v2879_v29 = vshll.u32 %v4270_v18, 16  ;;  %v2870_v35 = vrot.slane %v2868_v26, 1  ;;  %v3787_v18 = vld [vmem:[%s4905_s1 + $0xbc] sm:$0xf] }
  0x95   : >> { %4114 = vmatprep.subr.bf16.mxu1 %v4296_v2  ;;  %v2873_v36 = vrot.slane %v2871_v27, 2  ;;  %v3275_v23 = vsel %vm205_vm0, %v3787_v18, 0 }
  0x96   : >> { %v2881_v38 = vrot.slane %v2879_v29, 2 }
  0x97   : >> { %v2874_v45 = vor.u32 %v2873_v36, %v2870_v35 }
  0x98   : >> { %v2882_v46 = vor.u32 %v2881_v38, %v2878_v37 }
  0x99   : >> { %4099 = vmatmul.mubr.msk.bf16.vlgmr.msra.gmra.mrb[64].mxu0 %vm201_vm2, %v2295_v39  ;;  %v2888_v39 = vsel %vm205_vm0, %v3754_v31, 0 }
  0x9a   : >> { %4109 = vmatpush3.bf16.msra.mxu0 %v2430_v47  ;;  %4110 = vmatprep.mubr.msk.bf16.mxu0 %vm4297_vm1, %v4296_v2  ;;  %v3775_v47 = vld [vmem:[%s4364_s6 + $0x108] sm:$0xf]  ;;  %v2883_v53 = vsel %vm574_vm5, %v2874_v45, %v2882_v46 }
  0x9b   : >> { %4105 = vmatmul.mubr.msk.bf16.vlgmr.msra.gmra.mrb[64].mxu1 %vm201_vm2, %v2353_v48  ;;  %4120 = vmatprep.subr.bf16.mxu0 %v4296_v2  ;;  %v4822_v48 = vld [vmem:[%s4364_s6 + $0x10c] sm:$0xf] }
  0x9c   : >> { %4115 = vmatpush3.bf16.msra.mxu1 %v2491_v50  ;;  %4116 = vmatprep.mubr.msk.bf16.mxu1 %vm4297_vm1, %v4296_v2  ;;  %v3765_v50 = vld [vmem:[%s4905_s1 + $0xac] sm:$0xf]  ;;  %v3779_v54 = vcombine.low %v3775_v47, %v4822_v48  ;;  %v3788_v22 = vcombine.low %v3786_v16, %v4822_v48 }
  0x9d   : >> { %4126 = vmatprep.subr.bf16.mxu1 %v4296_v2  ;;  %v3011_v55 = vsel %vm205_vm0, %v3765_v50, 0 }
  0x9e   : >> { %v3146_v60 = vshll.u32 %v3779_v54, 16  ;;  %v3144_v5 = vshrl.u32 %v3779_v54, 16  ;;  %v3268_v31 = vrot.slane %v3788_v22, 1 }
  0xa0   : >> { %v3148_v6 = vrot.slane %v3146_v60, 1 }
  0xa1   : >> { %4111 = vmatmul.mubr.msk.bf16.vlgmr.msra.gmra.mrb[68].mxu0 %vm201_vm2, %v2425_v58  ;;  %v3771_v58 = vld [vmem:[%s4905_s1 + $0xb0] sm:$0xf] }
  0xa2   : >> { %4121 = vmatpush3.bf16.msra.mxu0 %v2552_v61  ;;  %4122 = vmatprep.mubr.msk.bf16.mxu0 %vm4297_vm1, %v4296_v2  ;;  %v4271_v61 = vld [vmem:[%s4364_s6 + $0x24] sm:$0xff]   ;;  %v3149_v13 = vor.u32 %v3148_v6, %v3144_v5 }
  0xa3   : >> { %4117 = vmatmul.mubr.msk.bf16.vlgmr.msra.gmra.mrb[68].mxu1 %vm201_vm2, %v4262_v62  ;;  %4132 = vmatprep.subr.bf16.mxu0 %v4296_v2  ;;  %v3778_v62 = vld [vmem:[%s4905_s1 + $0xb4] sm:$0xf] }
  0xa4   : >> { %4127 = vmatpush3.bf16.msra.mxu1 %v2626_v3  ;;  %4128 = vmatprep.mubr.msk.bf16.mxu1 %vm4297_vm1, %v4296_v2  ;;  %v3085_v3 = vsel %vm205_vm0, %v3771_v58, 0  ;;  %v3159_v8 = vsel %vm205_vm0, %v3778_v62, 0  ;;  %v3154_v21 = vsel %vm315_vm3, %v3149_v13, %v3153_v14 }
  0xa5   : >> { %4138 = vmatprep.subr.bf16.mxu1 %v4296_v2 }
  0xa9   : >> { %4123 = vmatmul.mubr.msk.bf16.vlgmr.msra.gmra.mrb[72].mxu0 %vm201_vm2, %v4263_v10  ;;  %v3079_v10 = vrot.slane %v3077_v1, 1 }
  0xaa   : >> { %4133 = vmatpush3.bf16.msra.mxu0 %v2700_v15  ;;  %4134 = vmatprep.mubr.msk.bf16.mxu0 %vm4297_vm1, %v4296_v2  ;;  %v3784_v15 = vcombine.low %v3782_v11, %v3769_v43 }
  0xab   : >> { %4129 = vmatmul.mubr.msk.bf16.vlgmr.msra.gmra.mrb[72].mxu1 %vm201_vm2, %v2621_v17  ;;  %4144 = vmatprep.subr.bf16.mxu0 %v4296_v2  ;;  %v3080_v17 = vsel %vm315_vm3, %v3075_v9, %v3079_v10 }
  0xac   : >> { %4139 = vmatpush3.bf16.msra.mxu1 %v2758_v19  ;;  %4140 = vmatprep.mubr.msk.bf16.mxu1 %vm4297_vm1, %v4296_v2  ;;  %v4279_v19 = vld [vmem:[%s4364_s6 + $0x2c] ss:$0 sps:$4 sm:$0x33]   ;;  %v3210_v24 = vrot.slane %v3784_v15, 1  ;;  %v3327_v26 = vshrl.u32 %v3784_v15, 16  ;;  %v3330_v27 = vshll.u32 %v3784_v15, 16 }
  0xad   : >> { %4150 = vmatprep.subr.bf16.mxu1 %v4296_v2  ;;  %v3335_v28 = vshrl.u32 %v4279_v19, 16  ;;  %v3338_v29 = vshll.u32 %v4279_v19, 16 }
  0xae   : >> { %v3332_v35 = vrot.slane %v3330_v27, 2 }
  0xaf   : >> { %v3337_v36 = vrot.slane %v3335_v28, 1  ;;  %v3340_v37 = vrot.slane %v3338_v29, 2 }
  0xb1   : >> { %4135 = vmatmul.mubr.msk.bf16.vlgmr.msra.gmra.mrb[76].mxu0 %vm201_vm2, %v2695_v30  ;;  %v3791_v30 = vld [vmem:[%s4905_s1 + $0xc0] sm:$0xf]  ;;  %v3341_v41 = vor.u32 %v3340_v37, %v3337_v36 }
  0xb2   : >> { %4145 = vmatpush3.bf16.msra.mxu0 %v2816_v33  ;;  %4146 = vmatprep.mubr.msk.bf16.mxu0 %vm4297_vm1, %v4296_v2  ;;  %v3212_v33 = vsel %vm457_vm4, %v3210_v24, %v3211_v25  ;;  %v3347_v38 = vsel %vm205_vm0, %v3791_v30, 0 }
  0xb3   : >> { %4141 = vmatmul.mubr.msk.bf16.vlgmr.msra.gmra.mrb[76].mxu1 %vm201_vm2, %v2753_v34  ;;  %4156 = vmatprep.subr.bf16.mxu0 %v4296_v2  ;;  %v3329_v34 = vrot.slane %v3327_v26, 1 }
  0xb4   : >> { %4151 = vmatpush3.bf16.msra.mxu1 %v2888_v39  ;;  %4152 = vmatprep.mubr.msk.bf16.mxu1 %vm4297_vm1, %v4296_v2  ;;  %v3270_v39 = vsel %vm457_vm4, %v3268_v31, %v3269_v32 }
  0xb5   : >> { %4162 = vmatprep.subr.bf16.mxu1 %v4296_v2  ;;  %v3333_v40 = vor.u32 %v3332_v35, %v3329_v34 }
  0xb7   : >> { %v3342_v42 = vsel %vm574_vm5, %v3333_v40, %v3341_v41 }
  0xb9   : >> { %4147 = vmatmul.mubr.msk.bf16.vlgmr.msra.gmra.mrb[80].mxu0 %vm201_vm2, %v2811_v49 }
  0xba   : >> { %4157 = vmatpush3.bf16.msra.mxu0 %v2950_v52  ;;  %4158 = vmatprep.mubr.msk.bf16.mxu0 %vm4297_vm1, %v4296_v2 }
  0xbb   : >> { %4153 = vmatmul.mubr.msk.bf16.vlgmr.msra.gmra.mrb[80].mxu1 %vm201_vm2, %v2883_v53  ;;  %4168 = vmatprep.subr.bf16.mxu0 %v4296_v2 }
  0xbc   : >> { %4163 = vmatpush3.bf16.msra.mxu1 %v3011_v55  ;;  %4164 = vmatprep.mubr.msk.bf16.mxu1 %vm4297_vm1, %v4296_v2 }
  0xbd   : >> { %4174 = vmatprep.subr.bf16.mxu1 %v4296_v2 }
  0xc1   : >> { %4159 = vmatmul.mubr.msk.bf16.vlgmr.msra.gmra.mrb[84].mxu0 %vm201_vm2, %v4271_v61 }
  0xc2   : >> { %4169 = vmatpush3.bf16.msra.mxu0 %v3085_v3  ;;  %4170 = vmatprep.mubr.msk.bf16.mxu0 %vm4297_vm1, %v4296_v2 }
  0xc3   : >> { %4165 = vmatmul.mubr.msk.bf16.vlgmr.msra.gmra.mrb[84].mxu1 %vm201_vm2, %v4272_v4  ;;  %4180 = vmatprep.subr.bf16.mxu0 %v4296_v2 }
  0xc4   : >> { %4175 = vmatpush3.bf16.msra.mxu1 %v3159_v8  ;;  %4176 = vmatprep.mubr.msk.bf16.mxu1 %vm4297_vm1, %v4296_v2 }
  0xc5   : >> { %4186 = vmatprep.subr.bf16.mxu1 %v4296_v2 }
  0xc9   : >> { %4171 = vmatmul.mubr.msk.bf16.vlgmr.msra.gmra.mrb[88].mxu0 %vm201_vm2, %v3080_v17 }
  0xca   : >> { %4181 = vmatpush3.bf16.msra.mxu0 %v3217_v20  ;;  %4182 = vmatprep.mubr.msk.bf16.mxu0 %vm4297_vm1, %v4296_v2 }
  0xcb   : >> { %4177 = vmatmul.mubr.msk.bf16.vlgmr.msra.gmra.mrb[88].mxu1 %vm201_vm2, %v3154_v21  ;;  %4192 = vmatprep.subr.bf16.mxu0 %v4296_v2 }
  0xcc   : >> { %4187 = vmatpush3.bf16.msra.mxu1 %v3275_v23  ;;  %4188 = vmatprep.mubr.msk.bf16.mxu1 %vm4297_vm1, %v4296_v2 }
  0xd1   : >> { %4183 = vmatmul.mubr.msk.bf16.vlgmr.msra.gmra.mrb[92].mxu0 %vm201_vm2, %v3212_v33 }
  0xd2   : >> { %4193 = vmatpush3.bf16.msra.mxu0 %v3347_v38  ;;  %4194 = vmatprep.mubr.msk.bf16.mxu0 %vm4297_vm1, %v4296_v2 }
  0xd3   : >> { %4189 = vmatmul.mubr.msk.bf16.vlgmr.msra.gmra.mrb[92].mxu1 %vm201_vm2, %v3270_v39 }
  0xd9   : >> { %4195 = vmatmul.mubr.msk.bf16.vlgmr.msra.gmra.mrb[96].mxu0 %vm201_vm2, %v3342_v42 }
  0xe9   : >> { %v243_v43 = vpop.f32.mrb[0].mxu0 }
  0xea   : >> { %v295_v44 = vpop.f32.mrb[0].mxu1  ;;  %v3908_v45 = vpop.f32.mrb[1].mxu0 }
  0xeb   : >> { %v296_v46 = vadd.f32 %v295_v44, %v243_v43  ;;  %v3914_v47 = vpop.f32.mrb[1].mxu1  ;;  %v246_v48 = vpop.f32.mrb[2].mxu0 }
  0xec   : >> { %v298_v49 = vpop.f32.mrb[2].mxu1  ;;  %v3909_v50 = vpop.f32.mrb[3].mxu0 }
  0xed   : >> { %v299_v51 = vadd.f32 %v298_v49, %v246_v48  ;;  %v3915_v52 = vpop.f32.mrb[3].mxu1 }
  0xf4   : >> { %v368_v53 = vpop.f32.mrb[4].mxu0 }
  0xf5   : >> { %v375_v2 = vadd.f32 %v368_v53, %v296_v46  ;;  %v3920_v54 = vpop.f32.mrb[5].mxu0 }
  0xf6   : >> { %v371_v55 = vpop.f32.mrb[6].mxu0  ;;  %v442_v56 = vpop.f32.mrb[4].mxu1 }
  0xf7   : >> { %v376_v57 = vadd.f32 %v371_v55, %v299_v51  ;;  %v449_v58 = vadd.f32 %v442_v56, %v375_v2  ;;  %v3921_v59 = vpop.f32.mrb[7].mxu0  ;;  %v3926_v60 = vpop.f32.mrb[5].mxu1 }
  0xf8   : >> { %v445_v61 = vpop.f32.mrb[6].mxu1 }
  0xf9   : >> { %v450_v62 = vadd.f32 %v445_v61, %v376_v57  ;;  %v3927_v63 = vpop.f32.mrb[7].mxu1 }
  0xfc   : >> { %v501_v0 = vpop.f32.mrb[8].mxu0 }
  0xfd   : >> { %v508_v1 = vadd.f32 %v501_v0, %v449_v58  ;;  %v3932_v3 = vpop.f32.mrb[9].mxu0 }
  0xfe   : >> { %v504_v4 = vpop.f32.mrb[10].mxu0  ;;  %v559_v5 = vpop.f32.mrb[8].mxu1 }
  0xff   : >> { %v509_v6 = vadd.f32 %v504_v4, %v450_v62  ;;  %v566_v7 = vadd.f32 %v559_v5, %v508_v1  ;;  %v3933_v8 = vpop.f32.mrb[11].mxu0  ;;  %v3938_v9 = vpop.f32.mrb[9].mxu1 }
 0x100   : >> { %v562_v10 = vpop.f32.mrb[10].mxu1 }
 0x101   : >> { %v567_v11 = vadd.f32 %v562_v10, %v509_v6  ;;  %v3939_v12 = vpop.f32.mrb[11].mxu1 }
 0x104   : >> { %v632_v13 = vpop.f32.mrb[12].mxu0 }
 0x105   : >> { %v639_v14 = vadd.f32 %v632_v13, %v566_v7  ;;  %v3944_v15 = vpop.f32.mrb[13].mxu0 }
 0x106   : >> { %v635_v16 = vpop.f32.mrb[14].mxu0  ;;  %v693_v17 = vpop.f32.mrb[12].mxu1 }
 0x107   : >> { %v640_v18 = vadd.f32 %v635_v16, %v567_v11  ;;  %v700_v19 = vadd.f32 %v693_v17, %v639_v14  ;;  %v3945_v20 = vpop.f32.mrb[15].mxu0  ;;  %v3950_v21 = vpop.f32.mrb[13].mxu1 }
 0x108   : >> { %v696_v22 = vpop.f32.mrb[14].mxu1 }
 0x109   : >> { %v701_v23 = vadd.f32 %v696_v22, %v640_v18  ;;  %v3951_v24 = vpop.f32.mrb[15].mxu1 }
 0x10c   : >> { %v754_v25 = vpop.f32.mrb[16].mxu0 }
 0x10d   : >> { %v761_v26 = vadd.f32 %v754_v25, %v700_v19  ;;  %v3956_v27 = vpop.f32.mrb[17].mxu0 }
 0x10e   : >> { %v757_v28 = vpop.f32.mrb[18].mxu0  ;;  %v828_v29 = vpop.f32.mrb[16].mxu1 }
 0x10f   : >> { %v762_v30 = vadd.f32 %v757_v28, %v701_v23  ;;  %v835_v31 = vadd.f32 %v828_v29, %v761_v26  ;;  %v3957_v32 = vpop.f32.mrb[19].mxu0  ;;  %v3962_v33 = vpop.f32.mrb[17].mxu1 }
 0x110   : >> { %v831_v34 = vpop.f32.mrb[18].mxu1 }
 0x111   : >> { %v836_v35 = vadd.f32 %v831_v34, %v762_v30  ;;  %v3963_v36 = vpop.f32.mrb[19].mxu1 }
 0x114   : >> { %v902_v37 = vpop.f32.mrb[20].mxu0 }
 0x115   : >> { %v909_v38 = vadd.f32 %v902_v37, %v835_v31  ;;  %v3968_v39 = vpop.f32.mrb[21].mxu0 }
 0x116   : >> { %v905_v40 = vpop.f32.mrb[22].mxu0  ;;  %v960_v41 = vpop.f32.mrb[20].mxu1 }
 0x117   : >> { %v910_v42 = vadd.f32 %v905_v40, %v836_v35  ;;  %v967_v43 = vadd.f32 %v960_v41, %v909_v38  ;;  %v3969_v44 = vpop.f32.mrb[23].mxu0  ;;  %v3974_v45 = vpop.f32.mrb[21].mxu1 }
 0x118   : >> { %v963_v46 = vpop.f32.mrb[22].mxu1 }
 0x119   : >> { %v968_v47 = vadd.f32 %v963_v46, %v910_v42  ;;  %v3975_v48 = vpop.f32.mrb[23].mxu1 }
 0x11c   : >> { %v1018_v49 = vpop.f32.mrb[24].mxu0 }
 0x11d   : >> { %v1025_v50 = vadd.f32 %v1018_v49, %v967_v43  ;;  %v3980_v51 = vpop.f32.mrb[25].mxu0 }
 0x11e   : >> { %v1021_v52 = vpop.f32.mrb[26].mxu0  ;;  %v1090_v53 = vpop.f32.mrb[24].mxu1 }
 0x11f   : >> { %v1026_v2 = vadd.f32 %v1021_v52, %v968_v47  ;;  %v1097_v54 = vadd.f32 %v1090_v53, %v1025_v50  ;;  %v3981_v55 = vpop.f32.mrb[27].mxu0  ;;  %v3986_v56 = vpop.f32.mrb[25].mxu1 }
 0x120   : >> { %v1093_v57 = vpop.f32.mrb[26].mxu1 }
 0x121   : >> { %v1098_v58 = vadd.f32 %v1093_v57, %v1026_v2  ;;  %v3987_v59 = vpop.f32.mrb[27].mxu1 }
 0x124   : >> { %v1152_v60 = vpop.f32.mrb[28].mxu0 }
 0x125   : >> { %v1159_v61 = vadd.f32 %v1152_v60, %v1097_v54  ;;  %v3992_v62 = vpop.f32.mrb[29].mxu0 }
 0x126   : >> { %v1155_v63 = vpop.f32.mrb[30].mxu0  ;;  %v1213_v0 = vpop.f32.mrb[28].mxu1 }
 0x127   : >> { %v1160_v1 = vadd.f32 %v1155_v63, %v1098_v58  ;;  %v1220_v3 = vadd.f32 %v1213_v0, %v1159_v61  ;;  %v3993_v4 = vpop.f32.mrb[31].mxu0  ;;  %v3998_v5 = vpop.f32.mrb[29].mxu1 }
 0x128   : >> { %v1216_v6 = vpop.f32.mrb[30].mxu1 }
 0x129   : >> { %v1221_v7 = vadd.f32 %v1216_v6, %v1160_v1  ;;  %v3999_v8 = vpop.f32.mrb[31].mxu1 }
 0x12c   : >> { %v1287_v9 = vpop.f32.mrb[32].mxu0 }
 0x12d   : >> { %v1294_v10 = vadd.f32 %v1287_v9, %v1220_v3  ;;  %v4004_v11 = vpop.f32.mrb[33].mxu0 }
 0x12e   : >> { %v1290_v12 = vpop.f32.mrb[34].mxu0  ;;  %v1361_v13 = vpop.f32.mrb[32].mxu1 }
 0x12f   : >> { %v1295_v14 = vadd.f32 %v1290_v12, %v1221_v7  ;;  %v1368_v15 = vadd.f32 %v1361_v13, %v1294_v10  ;;  %v4005_v16 = vpop.f32.mrb[35].mxu0  ;;  %v4010_v17 = vpop.f32.mrb[33].mxu1 }
 0x130   : >> { %v1364_v18 = vpop.f32.mrb[34].mxu1 }
 0x131   : >> { %v1369_v19 = vadd.f32 %v1364_v18, %v1295_v14  ;;  %v4011_v20 = vpop.f32.mrb[35].mxu1 }
 0x134   : >> { %v1419_v21 = vpop.f32.mrb[36].mxu0 }
 0x135   : >> { %v1426_v22 = vadd.f32 %v1419_v21, %v1368_v15  ;;  %v4016_v23 = vpop.f32.mrb[37].mxu0 }
 0x136   : >> { %v1422_v24 = vpop.f32.mrb[38].mxu0  ;;  %v1477_v25 = vpop.f32.mrb[36].mxu1 }
 0x137   : >> { %v1427_v26 = vadd.f32 %v1422_v24, %v1369_v19  ;;  %v1484_v27 = vadd.f32 %v1477_v25, %v1426_v22  ;;  %v4017_v28 = vpop.f32.mrb[39].mxu0  ;;  %v4022_v29 = vpop.f32.mrb[37].mxu1 }
 0x138   : >> { %v1480_v30 = vpop.f32.mrb[38].mxu1 }
 0x139   : >> { %v1485_v31 = vadd.f32 %v1480_v30, %v1427_v26  ;;  %v4023_v32 = vpop.f32.mrb[39].mxu1 }
 0x13c   : >> { %v1549_v33 = vpop.f32.mrb[40].mxu0 }
 0x13d   : >> { %v1556_v34 = vadd.f32 %v1549_v33, %v1484_v27  ;;  %v4028_v35 = vpop.f32.mrb[41].mxu0 }
 0x13e   : >> { %v1552_v36 = vpop.f32.mrb[42].mxu0  ;;  %v1610_v37 = vpop.f32.mrb[40].mxu1 }
 0x13f   : >> { %v1557_v38 = vadd.f32 %v1552_v36, %v1485_v31  ;;  %v1617_v39 = vadd.f32 %v1610_v37, %v1556_v34  ;;  %v4029_v40 = vpop.f32.mrb[43].mxu0  ;;  %v4034_v41 = vpop.f32.mrb[41].mxu1 }
 0x140   : >> { %v1613_v42 = vpop.f32.mrb[42].mxu1 }
 0x141   : >> { %v1618_v43 = vadd.f32 %v1613_v42, %v1557_v38  ;;  %v4035_v44 = vpop.f32.mrb[43].mxu1 }
 0x144   : >> { %v1671_v45 = vpop.f32.mrb[44].mxu0 }
 0x145   : >> { %v1678_v46 = vadd.f32 %v1671_v45, %v1617_v39  ;;  %v4040_v47 = vpop.f32.mrb[45].mxu0 }
 0x146   : >> { %v1674_v48 = vpop.f32.mrb[46].mxu0  ;;  %v1745_v49 = vpop.f32.mrb[44].mxu1 }
 0x147   : >> { %v1679_v50 = vadd.f32 %v1674_v48, %v1618_v43  ;;  %v1752_v51 = vadd.f32 %v1745_v49, %v1678_v46  ;;  %v4041_v52 = vpop.f32.mrb[47].mxu0  ;;  %v4046_v53 = vpop.f32.mrb[45].mxu1 }
 0x148   : >> { %v1748_v2 = vpop.f32.mrb[46].mxu1 }
 0x149   : >> { %v1753_v54 = vadd.f32 %v1748_v2, %v1679_v50  ;;  %v4047_v55 = vpop.f32.mrb[47].mxu1 }
 0x14c   : >> { %v1819_v56 = vpop.f32.mrb[48].mxu0 }
 0x14d   : >> { %v1826_v57 = vadd.f32 %v1819_v56, %v1752_v51  ;;  %v4052_v58 = vpop.f32.mrb[49].mxu0 }
 0x14e   : >> { %v1822_v59 = vpop.f32.mrb[50].mxu0  ;;  %v1877_v60 = vpop.f32.mrb[48].mxu1 }
 0x14f   : >> { %v1827_v61 = vadd.f32 %v1822_v59, %v1753_v54  ;;  %v1884_v62 = vadd.f32 %v1877_v60, %v1826_v57  ;;  %v4053_v63 = vpop.f32.mrb[51].mxu0  ;;  %v4058_v0 = vpop.f32.mrb[49].mxu1 }
 0x150   : >> { %v1880_v1 = vpop.f32.mrb[50].mxu1 }
 0x151   : >> { %v1885_v3 = vadd.f32 %v1880_v1, %v1827_v61  ;;  %v4059_v4 = vpop.f32.mrb[51].mxu1 }
 0x154   : >> { %v1935_v5 = vpop.f32.mrb[52].mxu0 }
 0x155   : >> { %v1942_v6 = vadd.f32 %v1935_v5, %v1884_v62  ;;  %v4064_v7 = vpop.f32.mrb[53].mxu0 }
 0x156   : >> { %v1938_v8 = vpop.f32.mrb[54].mxu0  ;;  %v2007_v9 = vpop.f32.mrb[52].mxu1 }
 0x157   : >> { %v1943_v10 = vadd.f32 %v1938_v8, %v1885_v3  ;;  %v2014_v11 = vadd.f32 %v2007_v9, %v1942_v6  ;;  %v4065_v12 = vpop.f32.mrb[55].mxu0  ;;  %v4070_v13 = vpop.f32.mrb[53].mxu1 }
 0x158   : >> { %v2010_v14 = vpop.f32.mrb[54].mxu1 }
 0x159   : >> { %v2015_v15 = vadd.f32 %v2010_v14, %v1943_v10  ;;  %v4071_v16 = vpop.f32.mrb[55].mxu1 }
 0x15c   : >> { %v2069_v17 = vpop.f32.mrb[56].mxu0 }
 0x15d   : >> { %v2076_v18 = vadd.f32 %v2069_v17, %v2014_v11  ;;  %v4076_v19 = vpop.f32.mrb[57].mxu0 }
 0x15e   : >> { %v2072_v20 = vpop.f32.mrb[58].mxu0  ;;  %v2130_v21 = vpop.f32.mrb[56].mxu1 }
 0x15f   : >> { %v2077_v22 = vadd.f32 %v2072_v20, %v2015_v15  ;;  %v2137_v23 = vadd.f32 %v2130_v21, %v2076_v18  ;;  %v4077_v24 = vpop.f32.mrb[59].mxu0  ;;  %v4082_v25 = vpop.f32.mrb[57].mxu1 }
 0x160   : >> { %v2133_v26 = vpop.f32.mrb[58].mxu1 }
 0x161   : >> { %v2138_v27 = vadd.f32 %v2133_v26, %v2077_v22  ;;  %v4083_v28 = vpop.f32.mrb[59].mxu1 }
 0x164   : >> { %v2204_v29 = vpop.f32.mrb[60].mxu0 }
 0x165   : >> { %v2211_v30 = vadd.f32 %v2204_v29, %v2137_v23  ;;  %v4088_v31 = vpop.f32.mrb[61].mxu0 }
 0x166   : >> { %v2207_v32 = vpop.f32.mrb[62].mxu0  ;;  %v2278_v33 = vpop.f32.mrb[60].mxu1 }
 0x167   : >> { %v2212_v34 = vadd.f32 %v2207_v32, %v2138_v27  ;;  %v2285_v35 = vadd.f32 %v2278_v33, %v2211_v30  ;;  %v4089_v36 = vpop.f32.mrb[63].mxu0  ;;  %v4094_v37 = vpop.f32.mrb[61].mxu1 }
 0x168   : >> { %v2281_v38 = vpop.f32.mrb[62].mxu1 }
 0x169   : >> { %v2286_v39 = vadd.f32 %v2281_v38, %v2212_v34  ;;  %v4095_v40 = vpop.f32.mrb[63].mxu1 }
 0x16c   : >> { %v2336_v41 = vpop.f32.mrb[64].mxu0 }
 0x16d   : >> { %v2343_v42 = vadd.f32 %v2336_v41, %v2285_v35  ;;  %v4100_v43 = vpop.f32.mrb[65].mxu0 }
 0x16e   : >> { %v2339_v44 = vpop.f32.mrb[66].mxu0  ;;  %v2394_v45 = vpop.f32.mrb[64].mxu1 }
 0x16f   : >> { %v2344_v46 = vadd.f32 %v2339_v44, %v2286_v39  ;;  %v2401_v47 = vadd.f32 %v2394_v45, %v2343_v42  ;;  %v4101_v48 = vpop.f32.mrb[67].mxu0  ;;  %v4106_v49 = vpop.f32.mrb[65].mxu1 }
 0x170   : >> { %v2397_v50 = vpop.f32.mrb[66].mxu1 }
 0x171   : >> { %v2402_v51 = vadd.f32 %v2397_v50, %v2344_v46  ;;  %v4107_v52 = vpop.f32.mrb[67].mxu1 }
 0x174   : >> { %v2466_v53 = vpop.f32.mrb[68].mxu0 }
 0x175   : >> { %v2473_v2 = vadd.f32 %v2466_v53, %v2401_v47  ;;  %v4112_v54 = vpop.f32.mrb[69].mxu0 }
 0x176   : >> { %v2469_v55 = vpop.f32.mrb[70].mxu0  ;;  %v2527_v56 = vpop.f32.mrb[68].mxu1 }
 0x177   : >> { %v2474_v57 = vadd.f32 %v2469_v55, %v2402_v51  ;;  %v2534_v58 = vadd.f32 %v2527_v56, %v2473_v2  ;;  %v4113_v59 = vpop.f32.mrb[71].mxu0  ;;  %v4118_v60 = vpop.f32.mrb[69].mxu1 }
 0x178   : >> { %v2530_v61 = vpop.f32.mrb[70].mxu1 }
 0x179   : >> { %v2535_v62 = vadd.f32 %v2530_v61, %v2474_v57  ;;  %v4119_v63 = vpop.f32.mrb[71].mxu1 }
 0x17c   : >> { %v2588_v0 = vpop.f32.mrb[72].mxu0 }
 0x17d   : >> { %v2595_v1 = vadd.f32 %v2588_v0, %v2534_v58  ;;  %v4124_v3 = vpop.f32.mrb[73].mxu0 }
 0x17e   : >> { %v2591_v4 = vpop.f32.mrb[74].mxu0  ;;  %v2662_v5 = vpop.f32.mrb[72].mxu1 }
 0x17f   : >> { %v2596_v6 = vadd.f32 %v2591_v4, %v2535_v62  ;;  %v2669_v7 = vadd.f32 %v2662_v5, %v2595_v1  ;;  %v4125_v8 = vpop.f32.mrb[75].mxu0  ;;  %v4130_v9 = vpop.f32.mrb[73].mxu1 }
 0x180   : >> { %v2665_v10 = vpop.f32.mrb[74].mxu1 }
 0x181   : >> { %v2670_v11 = vadd.f32 %v2665_v10, %v2596_v6  ;;  %v4131_v12 = vpop.f32.mrb[75].mxu1  ;;  %v3794_v10 = vld [vmem:[%s4906_s2] ss:$0 sm:$0xff] }
 0x184   : >> { %v2736_v13 = vpop.f32.mrb[76].mxu0 }
 0x185   : >> { %v2743_v14 = vadd.f32 %v2736_v13, %v2669_v7  ;;  %v4136_v15 = vpop.f32.mrb[77].mxu0 }
 0x186   : >> { %v2739_v16 = vpop.f32.mrb[78].mxu0  ;;  %v2794_v17 = vpop.f32.mrb[76].mxu1 }
 0x187   : >> { %v2744_v18 = vadd.f32 %v2739_v16, %v2670_v11  ;;  %v2801_v19 = vadd.f32 %v2794_v17, %v2743_v14  ;;  %v4137_v20 = vpop.f32.mrb[79].mxu0  ;;  %v4142_v21 = vpop.f32.mrb[77].mxu1 }
 0x188   : >> { %v2797_v22 = vpop.f32.mrb[78].mxu1 }
 0x189   : >> { %v2802_v23 = vadd.f32 %v2797_v22, %v2744_v18  ;;  %v4143_v24 = vpop.f32.mrb[79].mxu1 }
 0x18c   : >> { %v2852_v25 = vpop.f32.mrb[80].mxu0 }
 0x18d   : >> { %v2859_v26 = vadd.f32 %v2852_v25, %v2801_v19  ;;  %v4148_v27 = vpop.f32.mrb[81].mxu0 }
 0x18e   : >> { %v2855_v28 = vpop.f32.mrb[82].mxu0  ;;  %v2924_v29 = vpop.f32.mrb[80].mxu1 }
 0x18f   : >> { %v2860_v30 = vadd.f32 %v2855_v28, %v2802_v23  ;;  %v2931_v31 = vadd.f32 %v2924_v29, %v2859_v26  ;;  %v4149_v32 = vpop.f32.mrb[83].mxu0  ;;  %v4154_v33 = vpop.f32.mrb[81].mxu1 }
 0x190   : >> { %v2927_v34 = vpop.f32.mrb[82].mxu1 }
 0x191   : >> { %v2932_v35 = vadd.f32 %v2927_v34, %v2860_v30  ;;  %v4155_v36 = vpop.f32.mrb[83].mxu1 }
 0x194   : >> { %v2986_v37 = vpop.f32.mrb[84].mxu0 }
 0x195   : >> { %v2993_v38 = vadd.f32 %v2986_v37, %v2931_v31  ;;  %v4160_v39 = vpop.f32.mrb[85].mxu0 }
 0x196   : >> { %v2989_v40 = vpop.f32.mrb[86].mxu0  ;;  %v3047_v41 = vpop.f32.mrb[84].mxu1 }
 0x197   : >> { %v2994_v42 = vadd.f32 %v2989_v40, %v2932_v35  ;;  %v3054_v43 = vadd.f32 %v3047_v41, %v2993_v38  ;;  %v4161_v44 = vpop.f32.mrb[87].mxu0  ;;  %v4166_v45 = vpop.f32.mrb[85].mxu1 }
 0x198   : >> { %v3050_v46 = vpop.f32.mrb[86].mxu1 }
 0x199   : >> { %v3055_v47 = vadd.f32 %v3050_v46, %v2994_v42  ;;  %v4167_v48 = vpop.f32.mrb[87].mxu1 }
 0x19c   : >> { %v3121_v49 = vpop.f32.mrb[88].mxu0 }
 0x19d   : >> { %v3128_v50 = vadd.f32 %v3121_v49, %v3054_v43  ;;  %v4172_v51 = vpop.f32.mrb[89].mxu0 }
 0x19e   : >> { %v3124_v52 = vpop.f32.mrb[90].mxu0  ;;  %v3195_v53 = vpop.f32.mrb[88].mxu1 }
 0x19f   : >> { %v3129_v2 = vadd.f32 %v3124_v52, %v3055_v47  ;;  %v3202_v54 = vadd.f32 %v3195_v53, %v3128_v50  ;;  %v4173_v55 = vpop.f32.mrb[91].mxu0  ;;  %v4178_v56 = vpop.f32.mrb[89].mxu1 }
 0x1a0   : >> { %v3198_v57 = vpop.f32.mrb[90].mxu1 }
 0x1a1   : >> { %v3203_v58 = vadd.f32 %v3198_v57, %v3129_v2  ;;  %v4179_v59 = vpop.f32.mrb[91].mxu1 }
 0x1a4   : >> { %v3253_v60 = vpop.f32.mrb[92].mxu0 }
 0x1a5   : >> { %v3260_v61 = vadd.f32 %v3253_v60, %v3202_v54  ;;  %v4184_v62 = vpop.f32.mrb[93].mxu0 }
 0x1a6   : >> { %v3256_v63 = vpop.f32.mrb[94].mxu0  ;;  %v3311_v0 = vpop.f32.mrb[92].mxu1 }
 0x1a7   : >> { %v3261_v1 = vadd.f32 %v3256_v63, %v3203_v58  ;;  %v3318_v3 = vadd.f32 %v3311_v0, %v3260_v61  ;;  %v4185_v4 = vpop.f32.mrb[95].mxu0  ;;  %v4190_v5 = vpop.f32.mrb[93].mxu1 }
 0x1a8   : >> { %v3314_v6 = vpop.f32.mrb[94].mxu1 }
 0x1a9   : >> { %v3319_v7 = vadd.f32 %v3314_v6, %v3261_v1  ;;  %v4191_v8 = vpop.f32.mrb[95].mxu1 }
 0x1ac   : >> { %v3383_v9 = vpop.f32.mrb[96].mxu0 }
 0x1ad   : >> { %v3390_v11 = vadd.f32 %v3383_v9, %v3318_v3  ;;  %v4196_v12 = vpop.f32.mrb[97].mxu0 }
 0x1ae   : >> { %v3386_v13 = vpop.f32.mrb[98].mxu0 }
 0x1af   : >> { %v3399_v14 = vadd.f32 %v3794_v10, %v3390_v11  ;;  %v3391_v15 = vadd.f32 %v3386_v13, %v3319_v7  ;;  %v4197_v16 = vpop.f32.mrb[99].mxu0 }
 0x1b1   : >> { %v3401_v17 = vmax.f32 %v3399_v14, 0.0  ;;  %v3400_v18 = vadd.f32 %v3794_v10, %v3391_v15  ;;  %181 = sbr.rel (!%p179_p5) target bundleno = 17 (0x11), region = 132 }
 0x1b3   : >> { %v3803_v19 = vpack.c.bf16 %v3401_v17, %v3401_v17  ;;  %v3402_v20 = vmax.f32 %v3400_v18, 0.0 }
 0x1b5   : >> { %3415 = vst.msk [vmem:[%s3413_s11] sm:$0xf] %vm3414_vm6, %v3803_v19  ;;  %v3804_v21 = vpack.c.bf16 %v3402_v20, %v3402_v20 }
 0x1b7   : >> { %3416 = vst.msk [vmem:[%s3413_s11 + $0x4] sm:$0xf] %vm3414_vm6, %v3804_v21 }
 0x1b8 PF: > { %s13_s12 = sadd.s32 1, %s4290_s12  }
 0x1b9   : > { %p10_p6 = scmp.ge.s32.totalorder %s13_s12, 4  }
 0x1bb   :  { %12 = sbr.rel (!%p10_p6) target bundleno = 1 (0x1), region = 143 }

// kernel: _lambda_.17
= control target key start
LH: loop header
LB: loop body
LE: loop exit
PB: predicated region body
PF: predicated region fallthrough
CT: control target
= control target key end

     0   :  { %s1491_s15 = smov 0   ;;  %s1717_s0 = inlined_call_operand.vmem [shape: bf16[2,10,10,64], index: 0, kind: input, shape index: {}]   ;;  %s1718_s1 = inlined_call_operand.vmem [shape: bf16[9,64,64], index: 1, kind: input, shape index: {}]   ;;  %s1719_s2 = inlined_call_operand.vmem [shape: f32[1,64], index: 2, kind: input, shape index: {}]   ;;  %s1720_s3 = inlined_call_operand.vmem [shape: bf16[2,8,8,64], index: 3, kind: input, shape index: {}]   ;;  %s1721_s4 = inlined_call_operand.vmem [shape: bf16[2,8,8,64], index: 4, kind: output, shape index: {}]  }
   0x1 LB: > { %s1089_s16 = sadd.s32 4294967295, %s1458_s15   ;;  %p1093_p0 = scmp.ge.s32.totalorder %s1458_s15, 1  ;;  %s1458_s15 = sphi %s1491_s15, %s14_s15  }
   0x2   : > { %p172_p1 = scmp.lt.s32.totalorder %s1458_s15, 3 }
   0x4   : > { %p173_p2 = pnand %p1093_p0, %p172_p1 }
   0x5   : > { %p203_p3 = scmp.lt.s32.totalorder (!%p173_p2), %s1089_s16, 1  ;;  %s1514_s28 = smov (!%p173_p2), 0  }
   0x6   : > { %176 = sbr.rel (%p173_p2) target bundleno = 321 (0x141), region = 36 }
   0xd   : > { %s1723_s16 = smov (!%p203_p3, %s1089_s16), 1 }
   0xe   : > { %s1387_s17 = smul.u32 80, %s1723_s16  ;;  %s1231_s18 = sshll.u32 %s1723_s16, 5 }
   0xf   : > { %s1502_s21 = scalar_lea.vmem %s1720_s3, %s1231_s18  ;;  %s1507_s24 = scalar_lea.vmem %s1721_s4, %s1231_s18 }
  0x10   : > { %s1512_s27 = scalar_lea.vmem %s1717_s0, %s1387_s17 }
  0x11 LB: >> { %v1406_v0 = vld [vmem:[%s1718_s1 + $0x20] sm:$0xff]   ;;  %v1464_v1 = vmov 0.0   ;;  %v1408_v3 = vld [vmem:[%s1718_s1 + $0x28] sm:$0xff]   ;;  %vm1465_vm0 = vmmov 0   ;;  %s1233_s9 = sshll.u32 %s1462_s28, 3  ;;  %v1410_v5 = vld [vmem:[%s1718_s1 + $0x30] sm:$0xff]   ;;  %s1462_s28 = sphi %s1514_s28, %s224_s28  }
  0x12   : >> { %1279 = vmatprep.subr.bf16.mxu0 %v1464_v1  ;;  %1291 = vmatprep.subr.bf16.mxu1 %v1464_v1  ;;  %v1407_v2 = vld [vmem:[%s1718_s1] sm:$0xff]   ;;  %v1409_v4 = vld [vmem:[%s1718_s1 + $0x8] sm:$0xff]   ;;  %s1541_s12 = scalar_lea.vmem %s1512_s27, %s1233_s9  ;;  %v1411_v6 = vld [vmem:[%s1718_s1 + $0x10] sm:$0xff]   ;;  %vm283_vm1 = vcmask 523264   ;;  %vm1003_vm2 = vcmask 519168  }
  0x13   : >> { %1280 = vmatpush3.bf16.msra.mxu0 %v1406_v0  ;;  %1287 = vmatprep.mubr.msk.bf16.mxu0 %vm1465_vm0, %v1464_v1  ;;  %v228_v7 = vld [vmem:[%s1541_s12] sm:$0xf]  ;;  %v237_v8 = vld [vmem:[%s1541_s12 + $0x4] sm:$0x1]  ;;  %v1412_v10 = vld [vmem:[%s1718_s1 + $0x38] sm:$0xff]  }
  0x14   : >> { %1292 = vmatpush3.bf16.msra.mxu1 %v1407_v2  ;;  %1281 = vmatprep.subr.bf16.mxu0 %v1464_v1  ;;  %v1109_v9 = vcombine.low %v228_v7, %v237_v8  ;;  %v1413_v11 = vld [vmem:[%s1718_s1 + $0x18] sm:$0xff]   ;;  %v1415_v15 = vld [vmem:[%s1718_s1 + $0x40] sm:$0xff]   ;;  %v1417_v18 = vld [vmem:[%s1718_s1 + $0x48] sm:$0xff]  }
  0x15   : >> { %1293 = vmatprep.subr.bf16.mxu1 %v1464_v1  ;;  %1299 = vmatprep.mubr.msk.bf16.mxu1 %vm1465_vm0, %v1464_v1  ;;  %v1416_v17 = vld [vmem:[%s1718_s1 + $0x60] sm:$0xff]   ;;  %v1418_v19 = vld [vmem:[%s1718_s1 + $0x68] sm:$0xff]   ;;  %v1419_v21 = vld [vmem:[%s1718_s1 + $0x50] sm:$0xff]  }
  0x16   : >> { %v253_v12 = vshrl.u32 %v1109_v9, 16  ;;  %v255_v13 = vshll.u32 %v1109_v9, 16  ;;  %v394_v20 = vld [vmem:[%s1541_s12] sm:$0xe]  ;;  %v1420_v22 = vld [vmem:[%s1718_s1 + $0x70] sm:$0xff]   ;;  %v1421_v24 = vld [vmem:[%s1718_s1 + $0x58] sm:$0xff]  }
  0x17   : >> { %1282 = vmatpush3.bf16.msra.mxu0 %v1408_v3  ;;  %v1128_v23 = vcombine.low %v394_v20, %v237_v8  ;;  %v1422_v25 = vld [vmem:[%s1718_s1 + $0x78] sm:$0xff]   ;;  %v1424_v27 = vld [vmem:[%s1718_s1 + $0x80] sm:$0xff]   ;;  %v1135_v28 = vld [vmem:[%s1541_s12 + $0x8] sm:$0xf] }
  0x18   : >> { %1294 = vmatpush3.bf16.msra.mxu1 %v1409_v4  ;;  %1283 = vmatprep.subr.bf16.mxu0 %v1464_v1  ;;  %v257_v14 = vrot.slane %v255_v13, 1  ;;  %v1425_v29 = vld [vmem:[%s1718_s1 + $0xa0] sm:$0xff]   ;;  %v1149_v30 = vld [vmem:[%s1541_s12 + $0x8] sm:$0xf]  ;;  %v1150_v31 = vld [vmem:[%s1541_s12 + $0xc] sm:$0x1] }
  0x19   : >> { %1295 = vmatprep.subr.bf16.mxu1 %v1464_v1  ;;  %v407_v26 = vrot.slane %v1128_v23, 1  ;;  %v1159_v32 = vcombine.low %v1149_v30, %v1150_v31  ;;  %v1426_v33 = vld [vmem:[%s1718_s1 + $0x88] sm:$0xff]   ;;  %v1428_v36 = vld [vmem:[%s1718_s1 + $0x90] sm:$0xff]   ;;  %v1430_v41 = vld [vmem:[%s1718_s1 + $0x98] sm:$0xff]  }
  0x1a   : >> { %v258_v16 = vor.u32 %v257_v14, %v253_v12  ;;  %v1427_v34 = vld [vmem:[%s1718_s1 + $0xa8] sm:$0xff]   ;;  %v1429_v37 = vld [vmem:[%s1718_s1 + $0xb0] sm:$0xff]   ;;  %v1431_v43 = vld [vmem:[%s1718_s1 + $0xb8] sm:$0xff]  }
  0x1b   : >> { %1284 = vmatpush3.bf16.msra.mxu0 %v1410_v5  ;;  %v577_v35 = vshll.u32 %v1159_v32, 16  ;;  %v1165_v38 = vld [vmem:[%s1541_s12 + $0x8] sm:$0xe]  ;;  %v575_v39 = vshrl.u32 %v1159_v32, 16  ;;  %v1433_v45 = vld [vmem:[%s1718_s1 + $0xc0] sm:$0xff]   ;;  %v1438_v53 = vld [vmem:[%s1718_s1 + $0xd0] sm:$0xff]  }
  0x1c   : >> { %1296 = vmatpush3.bf16.msra.mxu1 %v1411_v6  ;;  %1285 = vmatprep.subr.bf16.mxu0 %v1464_v1  ;;  %v1174_v42 = vcombine.low %v1165_v38, %v1150_v31  ;;  %v1435_v47 = vld [vmem:[%s1718_s1 + $0xe0] sm:$0xff]   ;;  %v1195_v48 = vld [vmem:[%s1541_s12 + $0x10] sm:$0xf]  ;;  %v1196_v49 = vld [vmem:[%s1541_s12 + $0x14] sm:$0x1] }
  0x1d   : >> { %1297 = vmatprep.subr.bf16.mxu1 %v1464_v1  ;;  %v579_v40 = vrot.slane %v577_v35, 1  ;;  %v1436_v50 = vld [vmem:[%s1718_s1 + $0xc8] sm:$0xff]   ;;  %v1205_v51 = vcombine.low %v1195_v48, %v1196_v49  ;;  %v1439_v55 = vld [vmem:[%s1718_s1 + $0xf0] sm:$0xff]   ;;  %v1440_v56 = vld [vmem:[%s1718_s1 + $0xd8] sm:$0xff]  }
  0x1e   : >> { %v662_v46 = vrot.slane %v1174_v42, 1  ;;  %v1437_v52 = vld [vmem:[%s1718_s1 + $0xe8] sm:$0xff]   ;;  %v1441_v59 = vld [vmem:[%s1718_s1 + $0xf8] sm:$0xff]   ;;  %v1181_v60 = vld [vmem:[%s1541_s12 + $0x10] sm:$0xf] }
  0x1f   : >> { %1286 = vmatpush3.bf16.msra.mxu0 %v1412_v10  ;;  %v580_v44 = vor.u32 %v579_v40, %v575_v39  ;;  %v832_v54 = vshll.u32 %v1205_v51, 16  ;;  %v830_v57 = vshrl.u32 %v1205_v51, 16  ;;  %v1442_v61 = vld [vmem:[%s1718_s1 + $0x100] sm:$0xff]   ;;  %v1444_v63 = vld [vmem:[%s1718_s1 + $0x108] sm:$0xff]   ;;  %v1445_v0 = vld [vmem:[%s1718_s1 + $0x110] sm:$0xff]  }
  0x20   : >> { %1298 = vmatpush3.bf16.msra.mxu1 %v1413_v11  ;;  %1303 = vmatprep.subr.bf16.mxu0 %v1464_v1  ;;  %v1211_v2 = vld [vmem:[%s1541_s12 + $0x10] sm:$0xe]  ;;  %v1446_v4 = vld [vmem:[%s1718_s1 + $0x118] sm:$0xff]   ;;  %s1227_s12 = sshll.u32 %s1462_s28, 2  ;;  %s224_s28 = sadd.s32 1, %s1462_s28  }
  0x21   : >> { %1315 = vmatprep.subr.bf16.mxu1 %v1464_v1  ;;  %v834_v58 = vrot.slane %v832_v54, 1  ;;  %v1220_v3 = vcombine.low %v1211_v2, %v1196_v49  ;;  %s995_s18 = scalar_lea.vmem %s1502_s21, %s1227_s12  ;;  %s1002_s22 = scalar_lea.vmem %s1507_s24, %s1227_s12 }
  0x22   : >> { %1288 = vmatmul.mubr.msk.bf16.vlgmr.msra.gmra.mrb[0].mxu0 %vm283_vm1, %v258_v16  ;;  %p221_p4 = scmp.ge.s32.totalorder %s224_s28, 8  }
  0x23   : >> { %1300 = vmatmul.mubr.msk.bf16.vlgmr.msra.gmra.mrb[0].mxu1 %vm283_vm1, %v228_v7  ;;  %1304 = vmatpush3.bf16.msra.mxu0 %v1415_v15  ;;  %v835_v62 = vor.u32 %v834_v58, %v830_v57  ;;  %v917_v5 = vrot.slane %v1220_v3, 1 }
  0x24   : >> { %1316 = vmatpush3.bf16.msra.mxu1 %v1416_v17  ;;  %1305 = vmatprep.subr.bf16.mxu0 %v1464_v1 }
  0x25   : >> { %1317 = vmatprep.subr.bf16.mxu1 %v1464_v1  ;;  %1311 = vmatprep.mubr.msk.bf16.mxu0 %vm1465_vm0, %v1464_v1 }
  0x26   : >> { %1323 = vmatprep.mubr.msk.bf16.mxu1 %vm1465_vm0, %v1464_v1 }
  0x27   : >> { %1306 = vmatpush3.bf16.msra.mxu0 %v1417_v18 }
  0x28   : >> { %1318 = vmatpush3.bf16.msra.mxu1 %v1418_v19  ;;  %1307 = vmatprep.subr.bf16.mxu0 %v1464_v1 }
  0x29   : >> { %1319 = vmatprep.subr.bf16.mxu1 %v1464_v1 }
  0x2b   : >> { %1308 = vmatpush3.bf16.msra.mxu0 %v1419_v21 }
  0x2c   : >> { %1320 = vmatpush3.bf16.msra.mxu1 %v1420_v22  ;;  %1309 = vmatprep.subr.bf16.mxu0 %v1464_v1 }
  0x2d   : >> { %1321 = vmatprep.subr.bf16.mxu1 %v1464_v1 }
  0x2f   : >> { %1310 = vmatpush3.bf16.msra.mxu0 %v1421_v24 }
  0x30   : >> { %1322 = vmatpush3.bf16.msra.mxu1 %v1422_v25  ;;  %1327 = vmatprep.subr.bf16.mxu0 %v1464_v1 }
  0x31   : >> { %1339 = vmatprep.subr.bf16.mxu1 %v1464_v1 }
  0x32   : >> { %1312 = vmatmul.mubr.msk.bf16.vlgmr.msra.gmra.mrb[4].mxu0 %vm283_vm1, %v407_v26 }
  0x33   : >> { %1328 = vmatpush3.bf16.msra.mxu0 %v1424_v27  ;;  %1324 = vmatmul.mubr.msk.bf16.vlgmr.msra.gmra.mrb[4].mxu1 %vm283_vm1, %v1135_v28 }
  0x34   : >> { %1340 = vmatpush3.bf16.msra.mxu1 %v1425_v29  ;;  %1329 = vmatprep.subr.bf16.mxu0 %v1464_v1 }
  0x35   : >> { %1341 = vmatprep.subr.bf16.mxu1 %v1464_v1  ;;  %1335 = vmatprep.mubr.msk.bf16.mxu0 %vm1465_vm0, %v1464_v1 }
  0x36   : >> { %1347 = vmatprep.mubr.msk.bf16.mxu1 %vm1465_vm0, %v1464_v1 }
  0x37   : >> { %1330 = vmatpush3.bf16.msra.mxu0 %v1426_v33 }
  0x38   : >> { %1342 = vmatpush3.bf16.msra.mxu1 %v1427_v34  ;;  %1331 = vmatprep.subr.bf16.mxu0 %v1464_v1 }
  0x39   : >> { %1343 = vmatprep.subr.bf16.mxu1 %v1464_v1 }
  0x3b   : >> { %1332 = vmatpush3.bf16.msra.mxu0 %v1428_v36 }
  0x3c   : >> { %1344 = vmatpush3.bf16.msra.mxu1 %v1429_v37  ;;  %1333 = vmatprep.subr.bf16.mxu0 %v1464_v1 }
  0x3d   : >> { %1345 = vmatprep.subr.bf16.mxu1 %v1464_v1 }
  0x3f   : >> { %1334 = vmatpush3.bf16.msra.mxu0 %v1430_v41 }
  0x40   : >> { %1346 = vmatpush3.bf16.msra.mxu1 %v1431_v43  ;;  %1351 = vmatprep.subr.bf16.mxu0 %v1464_v1 }
  0x41   : >> { %1363 = vmatprep.subr.bf16.mxu1 %v1464_v1 }
  0x42   : >> { %1336 = vmatmul.mubr.msk.bf16.vlgmr.msra.gmra.mrb[8].mxu0 %vm283_vm1, %v580_v44  ;;  %v996_v44 = vld [vmem:[%s995_s18] sm:$0xf] }
  0x43   : >> { %1352 = vmatpush3.bf16.msra.mxu0 %v1433_v45  ;;  %1348 = vmatmul.mubr.msk.bf16.vlgmr.msra.gmra.mrb[8].mxu1 %vm283_vm1, %v662_v46  ;;  %v1226_v46 = vld [vmem:[%s1719_s2] ss:$0 sm:$0xff]  ;;  %v997_v48 = vunpack.c.l.bf16 %v996_v44 }
  0x44   : >> { %1364 = vmatpush3.bf16.msra.mxu1 %v1435_v47  ;;  %1353 = vmatprep.subr.bf16.mxu0 %v1464_v1 }
  0x45   : >> { %1365 = vmatprep.subr.bf16.mxu1 %v1464_v1  ;;  %1359 = vmatprep.mubr.msk.bf16.mxu0 %vm1465_vm0, %v1464_v1 }
  0x46   : >> { %1371 = vmatprep.mubr.msk.bf16.mxu1 %vm1465_vm0, %v1464_v1 }
  0x47   : >> { %1354 = vmatpush3.bf16.msra.mxu0 %v1436_v50 }
  0x48   : >> { %1366 = vmatpush3.bf16.msra.mxu1 %v1437_v52  ;;  %1355 = vmatprep.subr.bf16.mxu0 %v1464_v1 }
  0x49   : >> { %1367 = vmatprep.subr.bf16.mxu1 %v1464_v1 }
  0x4b   : >> { %1356 = vmatpush3.bf16.msra.mxu0 %v1438_v53 }
  0x4c   : >> { %1368 = vmatpush3.bf16.msra.mxu1 %v1439_v55  ;;  %1357 = vmatprep.subr.bf16.mxu0 %v1464_v1 }
  0x4d   : >> { %1369 = vmatprep.subr.bf16.mxu1 %v1464_v1 }
  0x4f   : >> { %1358 = vmatpush3.bf16.msra.mxu0 %v1440_v56 }
  0x50   : >> { %1370 = vmatpush3.bf16.msra.mxu1 %v1441_v59  ;;  %1375 = vmatprep.subr.bf16.mxu0 %v1464_v1 }
  0x52   : >> { %1360 = vmatmul.mubr.msk.bf16.vlgmr.msra.gmra.mrb[12].mxu0 %vm283_vm1, %v1181_v60 }
  0x53   : >> { %1376 = vmatpush3.bf16.msra.mxu0 %v1442_v61  ;;  %1372 = vmatmul.mubr.msk.bf16.vlgmr.msra.gmra.mrb[12].mxu1 %vm283_vm1, %v835_v62 }
  0x54   : >> { %1377 = vmatprep.subr.bf16.mxu0 %v1464_v1  ;;  %1383 = vmatprep.mubr.msk.bf16.mxu0 %vm1465_vm0, %v1464_v1 }
  0x57   : >> { %1378 = vmatpush3.bf16.msra.mxu0 %v1444_v63 }
  0x58   : >> { %1379 = vmatprep.subr.bf16.mxu0 %v1464_v1 }
  0x5b   : >> { %1380 = vmatpush3.bf16.msra.mxu0 %v1445_v0 }
  0x5c   : >> { %1381 = vmatprep.subr.bf16.mxu0 %v1464_v1 }
  0x5f   : >> { %1382 = vmatpush3.bf16.msra.mxu0 %v1446_v4 }
  0x62   : >> { %1384 = vmatmul.mubr.msk.bf16.vlgmr.msra.gmra.mrb[16].mxu0 %vm283_vm1, %v917_v5 }
  0xf5   : >> { %v321_v6 = vpop.f32.mrb[0].mxu0 }
  0xf6   : >> { %v1289_v7 = vpop.f32.mrb[1].mxu0  ;;  %v388_v8 = vpop.f32.mrb[0].mxu1 }
  0xf7   : >> { %v389_v9 = vadd.f32 %v388_v8, %v321_v6  ;;  %v324_v10 = vpop.f32.mrb[2].mxu0  ;;  %v1301_v11 = vpop.f32.mrb[1].mxu1 }
  0xf8   : >> { %v1290_v12 = vpop.f32.mrb[3].mxu0  ;;  %v391_v13 = vpop.f32.mrb[2].mxu1 }
  0xf9   : >> { %v1302_v14 = vpop.f32.mrb[3].mxu1 }
 0x105   : >> { %v469_v15 = vpop.f32.mrb[4].mxu0 }
 0x106   : >> { %v475_v16 = vadd.f32 %v469_v15, %v389_v9  ;;  %v1313_v17 = vpop.f32.mrb[5].mxu0  ;;  %v551_v18 = vpop.f32.mrb[4].mxu1 }
 0x107   : >> { %v472_v19 = vpop.f32.mrb[6].mxu0  ;;  %v1325_v20 = vpop.f32.mrb[5].mxu1 }
 0x108   : >> { %v557_v1 = vadd.f32 %v551_v18, %v475_v16  ;;  %v1314_v21 = vpop.f32.mrb[7].mxu0  ;;  %v554_v22 = vpop.f32.mrb[6].mxu1 }
 0x109   : >> { %v1326_v23 = vpop.f32.mrb[7].mxu1 }
 0x115   : >> { %v642_v24 = vpop.f32.mrb[8].mxu0 }
 0x116   : >> { %v648_v25 = vadd.f32 %v642_v24, %v557_v1  ;;  %v1337_v26 = vpop.f32.mrb[9].mxu0  ;;  %v724_v27 = vpop.f32.mrb[8].mxu1 }
 0x117   : >> { %v645_v28 = vpop.f32.mrb[10].mxu0  ;;  %v1349_v29 = vpop.f32.mrb[9].mxu1 }
 0x118   : >> { %v730_v30 = vadd.f32 %v724_v27, %v648_v25  ;;  %v1338_v31 = vpop.f32.mrb[11].mxu0  ;;  %v727_v32 = vpop.f32.mrb[10].mxu1 }
 0x119   : >> { %v1350_v33 = vpop.f32.mrb[11].mxu1 }
 0x125   : >> { %v806_v34 = vpop.f32.mrb[12].mxu0 }
 0x126   : >> { %v812_v35 = vadd.f32 %v806_v34, %v730_v30  ;;  %v1361_v36 = vpop.f32.mrb[13].mxu0  ;;  %v897_v37 = vpop.f32.mrb[12].mxu1 }
 0x127   : >> { %v809_v38 = vpop.f32.mrb[14].mxu0  ;;  %v1373_v39 = vpop.f32.mrb[13].mxu1 }
 0x128   : >> { %v903_v40 = vadd.f32 %v897_v37, %v812_v35  ;;  %v1362_v41 = vpop.f32.mrb[15].mxu0  ;;  %v900_v42 = vpop.f32.mrb[14].mxu1 }
 0x129   : >> { %v1374_v43 = vpop.f32.mrb[15].mxu1 }
 0x135   : >> { %v979_v45 = vpop.f32.mrb[16].mxu0 }
 0x136   : >> { %v985_v47 = vadd.f32 %v979_v45, %v903_v40  ;;  %v1385_v49 = vpop.f32.mrb[17].mxu0 }
 0x137   : >> { %v982_v50 = vpop.f32.mrb[18].mxu0 }
 0x138   : >> { %v993_v51 = vadd.f32 %v1226_v46, %v985_v47  ;;  %v1386_v52 = vpop.f32.mrb[19].mxu0 }
 0x13a   : >> { %v998_v53 = vadd.f32 %v997_v48, %v993_v51  ;;  %223 = sbr.rel (!%p221_p4) target bundleno = 17 (0x11), region = 89 }
 0x13c   : >> { %v999_v54 = vmax.f32 %v998_v53, 0.0 }
 0x13e   : >> { %v1000_v55 = vpack.c.bf16 %v999_v54, %v999_v54 }
 0x140   : >> { %1004 = vst.msk [vmem:[%s1002_s22] sm:$0xf] %vm1003_vm2, %v1000_v55 }
 0x141 PF: > { %s14_s15 = sadd.s32 1, %s1458_s15  }
 0x142   : > { %p11_p5 = scmp.ge.s32.totalorder %s14_s15, 4  }
 0x144   :  { %13 = sbr.rel (!%p11_p5) target bundleno = 1 (0x1), region = 100 }

// kernel: _lambda_.18
= control target key start
LH: loop header
LB: loop body
LE: loop exit
PB: predicated region body
PF: predicated region fallthrough
CT: control target
= control target key end

     0   :  { %s436_s12 = smov 0   ;;  %s483_s0 = inlined_call_operand.vmem [shape: bf16[8,4,4,64], index: 0, kind: input, shape index: {}]   ;;  %s484_s1 = inlined_call_operand.vmem [shape: bf16[1,64,128], index: 1, kind: input, shape index: {}]   ;;  %s485_s2 = inlined_call_operand.vmem [shape: f32[1,128], index: 2, kind: input, shape index: {}]   ;;  %s486_s3 = inlined_call_operand.vmem [shape: bf16[2,4,4,128], index: 3, kind: output, shape index: {}]  }
   0x1 LB: > { %s337_s13 = sadd.s32 4294967295, %s408_s12   ;;  %p341_p0 = scmp.ge.s32.totalorder %s408_s12, 1  ;;  %s408_s12 = sphi %s436_s12, %s13_s12  }
   0x2   : > { %p139_p1 = scmp.lt.s32.totalorder %s408_s12, 3 }
   0x4   : > { %p140_p2 = pnand %p341_p0, %p139_p1 }
   0x5   : > { %s342_s14 = sshll.u32 (!%p140_p2), %s337_s13, 2  ;;  %p171_p3 = scmp.lt.s32.totalorder (!%p140_p2), %s337_s13, 1 }
   0x6   : > { %143 = sbr.rel (%p140_p2) target bundleno = 250 (0xfa), region = 32  ;;  %p165_p4 = scmp.lt.s32.totalorder (!%p140_p2), %s342_s14, 7 }
   0x7   : > { %s454_s23 = smov (!%p140_p2), 0  }
   0xd   : > { %s488_s13 = smov (!%p171_p3, %s337_s13), 1  ;;  %s490_s14 = smov (!%p165_p4, %s342_s14), 7 }
   0xe   : > { %s358_s15 = sshll.u32 %s488_s13, 3  ;;  %s357_s16 = sshll.u32 %s490_s14, 3 }
   0xf   : > { %s447_s19 = scalar_lea.vmem %s486_s3, %s358_s15  ;;  %s452_s22 = scalar_lea.vmem %s483_s0, %s357_s16 }
  0x10 LB: >> { %v394_v0 = vld [vmem:[%s484_s1] sm:$0xff]   ;;  %v414_v1 = vmov 0.0   ;;  %v395_v2 = vld [vmem:[%s484_s1 + $0x8] sm:$0xff]   ;;  %vm415_vm0 = vmmov 0   ;;  %v396_v3 = vld [vmem:[%s484_s1 + $0x10] sm:$0xff]   ;;  %s347_s30 = sshll.u32 %s412_s23, 1  ;;  %s412_s23 = sphi %s454_s23, %s182_s23  }
  0x11   : >> { %364 = vmatprep.subr.bf16.mxu0 %v414_v1  ;;  %372 = vmatprep.mubr.msk.bf16.mxu0 %vm415_vm0, %v414_v1  ;;  %v397_v4 = vld [vmem:[%s484_s1 + $0x18] sm:$0xff]   ;;  %s184_s6 = scalar_lea.vmem %s452_s22, %s347_s30  ;;  %vm225_vm1 = vcmask 523264   ;;  %v348_v6 = vld [vmem:[%s485_s2] ss:$0 sm:$0xff]  ;;  %s271_s9 = scalar_lea.vmem %s447_s19, %s347_s30 }
  0x12   : >> { %365 = vmatpush3.bf16.msra.mxu0 %v394_v0  ;;  %v185_v5 = vld [vmem:[%s184_s6] sm:$0x3]  ;;  %s182_s23 = sadd.s32 1, %s412_s23  }
  0x13   : >> { %366 = vmatprep.subr.bf16.mxu0 %v414_v1  ;;  %p179_p5 = scmp.ge.s32.totalorder %s182_s23, 4  }
  0x16   : >> { %367 = vmatpush3.bf16.msra.mxu0 %v395_v2 }
  0x17   : >> { %368 = vmatprep.subr.bf16.mxu0 %v414_v1 }
  0x1a   : >> { %369 = vmatpush3.bf16.msra.mxu0 %v396_v3 }
  0x1b   : >> { %370 = vmatprep.subr.bf16.mxu0 %v414_v1 }
  0x1e   : >> { %371 = vmatpush3.bf16.msra.mxu0 %v397_v4 }
  0x21   : >> { %373 = vmatmul.mubr.msk.bf16.vlgmr.msra.gmra.mrb[0].mxu0 %vm225_vm1, %v185_v5 }
  0xf3   : > { %181 = sbr.rel (!%p179_p5) target bundleno = 16 (0x10), region = 71 }
  0xf4   : >> { %v263_v7 = vpop.f32.mrb[0].mxu0 }
  0xf5   : >> { %v264_v8 = vadd.f32 %v348_v6, %v263_v7  ;;  %v374_v9 = vpop.f32.mrb[1].mxu0 }
  0xf6   : >> { %v266_v10 = vpop.f32.mrb[2].mxu0 }
  0xf7   : >> { %v269_v11 = vpack.c.bf16 %v264_v8, %v264_v8  ;;  %v375_v12 = vpop.f32.mrb[3].mxu0 }
  0xf9   : >> { %272 = vst [vmem:[%s271_s9] sm:$0x3] %v269_v11 }
  0xfa PF: > { %s13_s12 = sadd.s32 1, %s408_s12  }
  0xfb   : > { %p10_p6 = scmp.ge.s32.totalorder %s13_s12, 4  }
  0xfd   :  { %12 = sbr.rel (!%p10_p6) target bundleno = 1 (0x1), region = 82 }

// kernel: _lambda_.19
= control target key start
LH: loop header
LB: loop body
LE: loop exit
PB: predicated region body
PF: predicated region fallthrough
CT: control target
= control target key end

     0   :  { %s1410_s12 = smov 0   ;;  %s1628_s0 = inlined_call_operand.vmem [shape: bf16[8,5,5,64], index: 0, kind: input, shape index: {}]   ;;  %s1629_s1 = inlined_call_operand.vmem [shape: bf16[9,64,128], index: 1, kind: input, shape index: {}]   ;;  %s1630_s2 = inlined_call_operand.vmem [shape: f32[1,128], index: 2, kind: input, shape index: {}]   ;;  %s1631_s3 = inlined_call_operand.vmem [shape: bf16[2,4,4,128], index: 3, kind: output, shape index: {}]  }
   0x1 LB: > { %s1022_s13 = sadd.s32 4294967295, %s1382_s12   ;;  %p1026_p0 = scmp.ge.s32.totalorder %s1382_s12, 1  ;;  %s1382_s12 = sphi %s1410_s12, %s13_s12  }
   0x2   : > { %p139_p1 = scmp.lt.s32.totalorder %s1382_s12, 3 }
   0x4   : > { %p140_p2 = pnand %p1026_p0, %p139_p1 }
   0x5   : > { %s1027_s14 = sshll.u32 (!%p140_p2), %s1022_s13, 2  ;;  %p171_p3 = scmp.lt.s32.totalorder (!%p140_p2), %s1022_s13, 1 }
   0x6   : > { %143 = sbr.rel (%p140_p2) target bundleno = 319 (0x13f), region = 32  ;;  %p165_p4 = scmp.lt.s32.totalorder (!%p140_p2), %s1027_s14, 7 }
   0x7   : > { %s1428_s23 = smov (!%p140_p2), 0  }
   0xd   : > { %s1633_s13 = smov (!%p171_p3, %s1022_s13), 1  ;;  %s1635_s14 = smov (!%p165_p4, %s1027_s14), 7 }
   0xe   : > { %s1160_s15 = sshll.u32 %s1633_s13, 3  ;;  %s1314_s16 = smul.u32 20, %s1635_s14 }
   0xf   : > { %s1421_s19 = scalar_lea.vmem %s1631_s3, %s1160_s15 }
  0x10   : > { %s1426_s22 = scalar_lea.vmem %s1628_s0, %s1314_s16 }
  0x11 LB: >> { %v1333_v0 = vld [vmem:[%s1629_s1 + $0x20] sm:$0xff]   ;;  %v1388_v1 = vmov 0.0   ;;  %v1335_v3 = vld [vmem:[%s1629_s1 + $0x28] sm:$0xff]   ;;  %vm1389_vm0 = vmmov 0   ;;  %v1337_v5 = vld [vmem:[%s1629_s1 + $0x30] sm:$0xff]   ;;  %s1031_s7 = sshll.u32 %s1386_s23, 2  ;;  %s1386_s23 = sphi %s1428_s23, %s182_s23  }
  0x12   : >> { %1206 = vmatprep.subr.bf16.mxu0 %v1388_v1  ;;  %1218 = vmatprep.subr.bf16.mxu1 %v1388_v1  ;;  %v1334_v2 = vld [vmem:[%s1629_s1] sm:$0xff]   ;;  %v1336_v4 = vld [vmem:[%s1629_s1 + $0x8] sm:$0xff]   ;;  %v1338_v6 = vld [vmem:[%s1629_s1 + $0x10] sm:$0xff]   ;;  %s1463_s10 = scalar_lea.vmem %s1426_s22, %s1031_s7  ;;  %vm231_vm1 = vcmask 523264   ;;  %s1157_s5 = sshll.u32 %s1386_s23, 1 }
  0x13   : >> { %1207 = vmatpush3.bf16.msra.mxu0 %v1333_v0  ;;  %1214 = vmatprep.mubr.msk.bf16.mxu0 %vm1389_vm0, %v1388_v1  ;;  %v1339_v7 = vld [vmem:[%s1629_s1 + $0x38] sm:$0xff]   ;;  %v1033_v9 = vld [vmem:[%s1463_s10 + $0x14] sm:$0x3]  ;;  %v185_v10 = vld [vmem:[%s1463_s10] sm:$0x3]  ;;  %s941_s6 = scalar_lea.vmem %s1421_s19, %s1157_s5  ;;  %s182_s23 = sadd.s32 1, %s1386_s23  }
  0x14   : >> { %1219 = vmatpush3.bf16.msra.mxu1 %v1334_v2  ;;  %1208 = vmatprep.subr.bf16.mxu0 %v1388_v1  ;;  %v1340_v8 = vld [vmem:[%s1629_s1 + $0x18] sm:$0xff]   ;;  %v1341_v11 = vld [vmem:[%s1629_s1 + $0x40] sm:$0xff]   ;;  %v1343_v14 = vld [vmem:[%s1629_s1 + $0x48] sm:$0xff]   ;;  %p179_p5 = scmp.ge.s32.totalorder %s182_s23, 4  }
  0x15   : >> { %1220 = vmatprep.subr.bf16.mxu1 %v1388_v1  ;;  %1226 = vmatprep.mubr.msk.bf16.mxu1 %vm1389_vm0, %v1388_v1  ;;  %v1342_v12 = vld [vmem:[%s1629_s1 + $0x60] sm:$0xff]   ;;  %v1344_v15 = vld [vmem:[%s1629_s1 + $0x68] sm:$0xff]   ;;  %v1345_v17 = vld [vmem:[%s1629_s1 + $0x50] sm:$0xff]  }
  0x16   : >> { %v1349_v13 = vld [vmem:[%s1463_s10] ss:$0 sps:$4 sm:$0x77]   ;;  %v1346_v18 = vld [vmem:[%s1629_s1 + $0x70] sm:$0xff]   ;;  %v1347_v21 = vld [vmem:[%s1629_s1 + $0x58] sm:$0xff]  }
  0x17   : >> { %1209 = vmatpush3.bf16.msra.mxu0 %v1335_v3  ;;  %v358_v16 = vshll.u32 %v1349_v13, 16  ;;  %v356_v19 = vshrl.u32 %v1349_v13, 16  ;;  %v1348_v22 = vld [vmem:[%s1629_s1 + $0x78] sm:$0xff]   ;;  %v1350_v24 = vld [vmem:[%s1629_s1 + $0x80] sm:$0xff]   ;;  %v1067_v25 = vld [vmem:[%s1463_s10 + $0x28] sm:$0x3] }
  0x18   : >> { %1221 = vmatpush3.bf16.msra.mxu1 %v1336_v4  ;;  %1210 = vmatprep.subr.bf16.mxu0 %v1388_v1  ;;  %v1351_v26 = vld [vmem:[%s1629_s1 + $0xa0] sm:$0xff]   ;;  %v1352_v27 = vld [vmem:[%s1629_s1 + $0x88] sm:$0xff]   ;;  %v1354_v30 = vld [vmem:[%s1629_s1 + $0x90] sm:$0xff]  }
  0x19   : >> { %1222 = vmatprep.subr.bf16.mxu1 %v1388_v1  ;;  %v360_v20 = vrot.slane %v358_v16, 1  ;;  %v1359_v28 = vld [vmem:[%s1463_s10 + $0x28] ss:$0 sps:$4 sm:$0x77]   ;;  %v1355_v32 = vld [vmem:[%s1629_s1 + $0xb0] sm:$0xff]   ;;  %v1356_v33 = vld [vmem:[%s1629_s1 + $0x98] sm:$0xff]  }
  0x1a   : >> { %v1353_v29 = vld [vmem:[%s1629_s1 + $0xa8] sm:$0xff]   ;;  %v608_v31 = vshll.u32 %v1359_v28, 16  ;;  %v606_v34 = vshrl.u32 %v1359_v28, 16  ;;  %v1357_v36 = vld [vmem:[%s1629_s1 + $0xb8] sm:$0xff]   ;;  %v1358_v38 = vld [vmem:[%s1629_s1 + $0xc0] sm:$0xff]  }
  0x1b   : >> { %1211 = vmatpush3.bf16.msra.mxu0 %v1337_v5  ;;  %v361_v23 = vor.u32 %v360_v20, %v356_v19  ;;  %v1082_v37 = vld [vmem:[%s1463_s10 + $0x3c] sm:$0x3]  ;;  %v1360_v40 = vld [vmem:[%s1629_s1 + $0xe0] sm:$0xff]   ;;  %v1361_v41 = vld [vmem:[%s1629_s1 + $0xc8] sm:$0xff]  }
  0x1c   : >> { %1223 = vmatpush3.bf16.msra.mxu1 %v1338_v6  ;;  %1212 = vmatprep.subr.bf16.mxu0 %v1388_v1  ;;  %v610_v35 = vrot.slane %v608_v31, 1  ;;  %v1362_v42 = vld [vmem:[%s1629_s1 + $0xe8] sm:$0xff]   ;;  %v1363_v43 = vld [vmem:[%s1629_s1 + $0xd0] sm:$0xff]   ;;  %v1365_v45 = vld [vmem:[%s1629_s1 + $0xd8] sm:$0xff]  }
  0x1d   : >> { %1224 = vmatprep.subr.bf16.mxu1 %v1388_v1  ;;  %v1364_v44 = vld [vmem:[%s1629_s1 + $0xf0] sm:$0xff]   ;;  %v1366_v46 = vld [vmem:[%s1629_s1 + $0xf8] sm:$0xff]   ;;  %v1112_v47 = vld [vmem:[%s1463_s10 + $0x4] sm:$0x3] }
  0x1e   : >> { %v611_v39 = vor.u32 %v610_v35, %v606_v34  ;;  %v1367_v48 = vld [vmem:[%s1629_s1 + $0x100] sm:$0xff]   ;;  %v1127_v49 = vld [vmem:[%s1463_s10 + $0x18] sm:$0x3]  ;;  %v1368_v51 = vld [vmem:[%s1629_s1 + $0x108] sm:$0xff]  }
  0x1f   : >> { %1213 = vmatpush3.bf16.msra.mxu0 %v1339_v7  ;;  %v1371_v50 = vld [vmem:[%s1463_s10 + $0x4] ss:$0 sps:$4 sm:$0x77]   ;;  %v1369_v53 = vld [vmem:[%s1629_s1 + $0x110] sm:$0xff]   ;;  %v1370_v56 = vld [vmem:[%s1629_s1 + $0x118] sm:$0xff]  }
  0x20   : >> { %1225 = vmatpush3.bf16.msra.mxu1 %v1340_v8  ;;  %1230 = vmatprep.subr.bf16.mxu0 %v1388_v1  ;;  %v858_v52 = vshll.u32 %v1371_v50, 16  ;;  %v856_v54 = vshrl.u32 %v1371_v50, 16  ;;  %v1156_v34 = vld [vmem:[%s1630_s2] ss:$0 sm:$0xff] }
  0x21   : >> { %1242 = vmatprep.subr.bf16.mxu1 %v1388_v1 }
  0x22   : >> { %1215 = vmatmul.mubr.msk.bf16.vlgmr.msra.gmra.mrb[0].mxu0 %vm231_vm1, %v1033_v9  ;;  %v860_v55 = vrot.slane %v858_v52, 1 }
  0x23   : >> { %1227 = vmatmul.mubr.msk.bf16.vlgmr.msra.gmra.mrb[0].mxu1 %vm231_vm1, %v185_v10  ;;  %1231 = vmatpush3.bf16.msra.mxu0 %v1341_v11 }
  0x24   : >> { %1243 = vmatpush3.bf16.msra.mxu1 %v1342_v12  ;;  %1232 = vmatprep.subr.bf16.mxu0 %v1388_v1  ;;  %v861_v57 = vor.u32 %v860_v55, %v856_v54 }
  0x25   : >> { %1244 = vmatprep.subr.bf16.mxu1 %v1388_v1  ;;  %1238 = vmatprep.mubr.msk.bf16.mxu0 %vm1389_vm0, %v1388_v1 }
  0x26   : >> { %1250 = vmatprep.mubr.msk.bf16.mxu1 %vm1389_vm0, %v1388_v1 }
  0x27   : >> { %1233 = vmatpush3.bf16.msra.mxu0 %v1343_v14 }
  0x28   : >> { %1245 = vmatpush3.bf16.msra.mxu1 %v1344_v15  ;;  %1234 = vmatprep.subr.bf16.mxu0 %v1388_v1 }
  0x29   : >> { %1246 = vmatprep.subr.bf16.mxu1 %v1388_v1 }
  0x2b   : >> { %1235 = vmatpush3.bf16.msra.mxu0 %v1345_v17 }
  0x2c   : >> { %1247 = vmatpush3.bf16.msra.mxu1 %v1346_v18  ;;  %1236 = vmatprep.subr.bf16.mxu0 %v1388_v1 }
  0x2d   : >> { %1248 = vmatprep.subr.bf16.mxu1 %v1388_v1 }
  0x2f   : >> { %1237 = vmatpush3.bf16.msra.mxu0 %v1347_v21 }
  0x30   : >> { %1249 = vmatpush3.bf16.msra.mxu1 %v1348_v22  ;;  %1254 = vmatprep.subr.bf16.mxu0 %v1388_v1 }
  0x31   : >> { %1266 = vmatprep.subr.bf16.mxu1 %v1388_v1 }
  0x32   : >> { %1239 = vmatmul.mubr.msk.bf16.vlgmr.msra.gmra.mrb[4].mxu0 %vm231_vm1, %v361_v23 }
  0x33   : >> { %1255 = vmatpush3.bf16.msra.mxu0 %v1350_v24  ;;  %1251 = vmatmul.mubr.msk.bf16.vlgmr.msra.gmra.mrb[4].mxu1 %vm231_vm1, %v1067_v25 }
  0x34   : >> { %1267 = vmatpush3.bf16.msra.mxu1 %v1351_v26  ;;  %1256 = vmatprep.subr.bf16.mxu0 %v1388_v1 }
  0x35   : >> { %1268 = vmatprep.subr.bf16.mxu1 %v1388_v1  ;;  %1262 = vmatprep.mubr.msk.bf16.mxu0 %vm1389_vm0, %v1388_v1 }
  0x36   : >> { %1274 = vmatprep.mubr.msk.bf16.mxu1 %vm1389_vm0, %v1388_v1 }
  0x37   : >> { %1257 = vmatpush3.bf16.msra.mxu0 %v1352_v27 }
  0x38   : >> { %1269 = vmatpush3.bf16.msra.mxu1 %v1353_v29  ;;  %1258 = vmatprep.subr.bf16.mxu0 %v1388_v1 }
  0x39   : >> { %1270 = vmatprep.subr.bf16.mxu1 %v1388_v1 }
  0x3b   : >> { %1259 = vmatpush3.bf16.msra.mxu0 %v1354_v30 }
  0x3c   : >> { %1271 = vmatpush3.bf16.msra.mxu1 %v1355_v32  ;;  %1260 = vmatprep.subr.bf16.mxu0 %v1388_v1 }
  0x3d   : >> { %1272 = vmatprep.subr.bf16.mxu1 %v1388_v1 }
  0x3f   : >> { %1261 = vmatpush3.bf16.msra.mxu0 %v1356_v33 }
  0x40   : >> { %1273 = vmatpush3.bf16.msra.mxu1 %v1357_v36  ;;  %1278 = vmatprep.subr.bf16.mxu0 %v1388_v1 }
  0x41   : >> { %1290 = vmatprep.subr.bf16.mxu1 %v1388_v1 }
  0x42   : >> { %1263 = vmatmul.mubr.msk.bf16.vlgmr.msra.gmra.mrb[8].mxu0 %vm231_vm1, %v1082_v37 }
  0x43   : >> { %1279 = vmatpush3.bf16.msra.mxu0 %v1358_v38  ;;  %1275 = vmatmul.mubr.msk.bf16.vlgmr.msra.gmra.mrb[8].mxu1 %vm231_vm1, %v611_v39 }
  0x44   : >> { %1291 = vmatpush3.bf16.msra.mxu1 %v1360_v40  ;;  %1280 = vmatprep.subr.bf16.mxu0 %v1388_v1 }
  0x45   : >> { %1292 = vmatprep.subr.bf16.mxu1 %v1388_v1  ;;  %1286 = vmatprep.mubr.msk.bf16.mxu0 %vm1389_vm0, %v1388_v1 }
  0x46   : >> { %1298 = vmatprep.mubr.msk.bf16.mxu1 %vm1389_vm0, %v1388_v1 }
  0x47   : >> { %1281 = vmatpush3.bf16.msra.mxu0 %v1361_v41 }
  0x48   : >> { %1293 = vmatpush3.bf16.msra.mxu1 %v1362_v42  ;;  %1282 = vmatprep.subr.bf16.mxu0 %v1388_v1 }
  0x49   : >> { %1294 = vmatprep.subr.bf16.mxu1 %v1388_v1 }
  0x4b   : >> { %1283 = vmatpush3.bf16.msra.mxu0 %v1363_v43 }
  0x4c   : >> { %1295 = vmatpush3.bf16.msra.mxu1 %v1364_v44  ;;  %1284 = vmatprep.subr.bf16.mxu0 %v1388_v1 }
  0x4d   : >> { %1296 = vmatprep.subr.bf16.mxu1 %v1388_v1 }
  0x4f   : >> { %1285 = vmatpush3.bf16.msra.mxu0 %v1365_v45 }
  0x50   : >> { %1297 = vmatpush3.bf16.msra.mxu1 %v1366_v46  ;;  %1302 = vmatprep.subr.bf16.mxu0 %v1388_v1 }
  0x52   : >> { %1287 = vmatmul.mubr.msk.bf16.vlgmr.msra.gmra.mrb[12].mxu0 %vm231_vm1, %v1112_v47 }
  0x53   : >> { %1303 = vmatpush3.bf16.msra.mxu0 %v1367_v48  ;;  %1299 = vmatmul.mubr.msk.bf16.vlgmr.msra.gmra.mrb[12].mxu1 %vm231_vm1, %v1127_v49 }
  0x54   : >> { %1304 = vmatprep.subr.bf16.mxu0 %v1388_v1  ;;  %1310 = vmatprep.mubr.msk.bf16.mxu0 %vm1389_vm0, %v1388_v1 }
  0x57   : >> { %1305 = vmatpush3.bf16.msra.mxu0 %v1368_v51 }
  0x58   : >> { %1306 = vmatprep.subr.bf16.mxu0 %v1388_v1 }
  0x5b   : >> { %1307 = vmatpush3.bf16.msra.mxu0 %v1369_v53 }
  0x5c   : >> { %1308 = vmatprep.subr.bf16.mxu0 %v1388_v1 }
  0x5f   : >> { %1309 = vmatpush3.bf16.msra.mxu0 %v1370_v56 }
  0x62   : >> { %1311 = vmatmul.mubr.msk.bf16.vlgmr.msra.gmra.mrb[16].mxu0 %vm231_vm1, %v861_v57 }
  0xf5   : >> { %v269_v58 = vpop.f32.mrb[0].mxu0 }
  0xf6   : >> { %v1216_v59 = vpop.f32.mrb[1].mxu0  ;;  %v336_v60 = vpop.f32.mrb[0].mxu1 }
  0xf7   : >> { %v337_v61 = vadd.f32 %v336_v60, %v269_v58  ;;  %v272_v62 = vpop.f32.mrb[2].mxu0  ;;  %v1228_v63 = vpop.f32.mrb[1].mxu1 }
  0xf8   : >> { %v1217_v0 = vpop.f32.mrb[3].mxu0  ;;  %v339_v2 = vpop.f32.mrb[2].mxu1 }
  0xf9   : >> { %v1229_v3 = vpop.f32.mrb[3].mxu1 }
 0x105   : >> { %v423_v4 = vpop.f32.mrb[4].mxu0 }
 0x106   : >> { %v429_v5 = vadd.f32 %v423_v4, %v337_v61  ;;  %v1240_v6 = vpop.f32.mrb[5].mxu0  ;;  %v504_v7 = vpop.f32.mrb[4].mxu1 }
 0x107   : >> { %v426_v8 = vpop.f32.mrb[6].mxu0  ;;  %v1252_v9 = vpop.f32.mrb[5].mxu1 }
 0x108   : >> { %v510_v1 = vadd.f32 %v504_v7, %v429_v5  ;;  %v1241_v10 = vpop.f32.mrb[7].mxu0  ;;  %v507_v11 = vpop.f32.mrb[6].mxu1 }
 0x109   : >> { %v1253_v12 = vpop.f32.mrb[7].mxu1 }
 0x115   : >> { %v585_v13 = vpop.f32.mrb[8].mxu0 }
 0x116   : >> { %v591_v14 = vadd.f32 %v585_v13, %v510_v1  ;;  %v1264_v15 = vpop.f32.mrb[9].mxu0  ;;  %v673_v16 = vpop.f32.mrb[8].mxu1 }
 0x117   : >> { %v588_v17 = vpop.f32.mrb[10].mxu0  ;;  %v1276_v18 = vpop.f32.mrb[9].mxu1 }
 0x118   : >> { %v679_v19 = vadd.f32 %v673_v16, %v591_v14  ;;  %v1265_v20 = vpop.f32.mrb[11].mxu0  ;;  %v676_v21 = vpop.f32.mrb[10].mxu1 }
 0x119   : >> { %v1277_v22 = vpop.f32.mrb[11].mxu1 }
 0x125   : >> { %v754_v23 = vpop.f32.mrb[12].mxu0 }
 0x126   : >> { %v760_v24 = vadd.f32 %v754_v23, %v679_v19  ;;  %v1288_v25 = vpop.f32.mrb[13].mxu0  ;;  %v835_v26 = vpop.f32.mrb[12].mxu1 }
 0x127   : >> { %v757_v27 = vpop.f32.mrb[14].mxu0  ;;  %v1300_v28 = vpop.f32.mrb[13].mxu1 }
 0x128   : >> { %v841_v29 = vadd.f32 %v835_v26, %v760_v24  ;;  %v1289_v30 = vpop.f32.mrb[15].mxu0  ;;  %v838_v31 = vpop.f32.mrb[14].mxu1 }
 0x129   : >> { %v1301_v32 = vpop.f32.mrb[15].mxu1 }
 0x135   : >> { %v923_v33 = vpop.f32.mrb[16].mxu0 }
 0x136   : >> { %v929_v35 = vadd.f32 %v923_v33, %v841_v29  ;;  %v1312_v36 = vpop.f32.mrb[17].mxu0 }
 0x137   : >> { %v926_v37 = vpop.f32.mrb[18].mxu0 }
 0x138   : >> { %v937_v38 = vadd.f32 %v1156_v34, %v929_v35  ;;  %v1313_v39 = vpop.f32.mrb[19].mxu0  ;;  %181 = sbr.rel (!%p179_p5) target bundleno = 17 (0x11), region = 84 }
 0x13a   : >> { %v938_v40 = vmax.f32 %v937_v38, 0.0 }
 0x13c   : >> { %v939_v41 = vpack.c.bf16 %v938_v40, %v938_v40 }
 0x13e   : >> { %942 = vst [vmem:[%s941_s6] sm:$0x3] %v939_v41 }
 0x13f PF: > { %s13_s12 = sadd.s32 1, %s1382_s12  }
 0x140   : > { %p10_p6 = scmp.ge.s32.totalorder %s13_s12, 4  }
 0x142   :  { %12 = sbr.rel (!%p10_p6) target bundleno = 1 (0x1), region = 95 }

// kernel: _lambda_.20
= control target key start
LH: loop header
LB: loop body
LE: loop exit
PB: predicated region body
PF: predicated region fallthrough
CT: control target
= control target key end

     0   :  { %s1976_s15 = smov 0   ;;  %s2335_s0 = inlined_call_operand.vmem [shape: bf16[2,6,6,128], index: 0, kind: input, shape index: {}]   ;;  %s2336_s1 = inlined_call_operand.vmem [shape: bf16[9,128,128], index: 1, kind: input, shape index: {}]   ;;  %s2337_s2 = inlined_call_operand.vmem [shape: f32[1,128], index: 2, kind: input, shape index: {}]   ;;  %s2338_s3 = inlined_call_operand.vmem [shape: bf16[2,4,4,128], index: 3, kind: input, shape index: {}]   ;;  %s2339_s4 = inlined_call_operand.vmem [shape: bf16[2,4,4,128], index: 4, kind: output, shape index: {}]  }
   0x1 LB: > { %s1343_s16 = sadd.s32 4294967295, %s1943_s15   ;;  %p1347_p0 = scmp.ge.s32.totalorder %s1943_s15, 1  ;;  %s1943_s15 = sphi %s1976_s15, %s14_s15  }
   0x2   : > { %p172_p1 = scmp.lt.s32.totalorder %s1943_s15, 3 }
   0x4   : > { %p173_p2 = pnand %p1347_p0, %p172_p1 }
   0x5   : > { %p203_p3 = scmp.lt.s32.totalorder (!%p173_p2), %s1343_s16, 1  ;;  %s1999_s28 = smov (!%p173_p2), 0  }
   0x6   : > { %176 = sbr.rel (%p173_p2) target bundleno = 401 (0x191), region = 36 }
   0xd   : > { %s2341_s16 = smov (!%p203_p3, %s1343_s16), 1 }
   0xe   : > { %s1836_s17 = smul.u32 24, %s2341_s16  ;;  %s1573_s18 = sshll.u32 %s2341_s16, 3 }
   0xf   : > { %s1987_s21 = scalar_lea.vmem %s2338_s3, %s1573_s18  ;;  %s1992_s24 = scalar_lea.vmem %s2339_s4, %s1573_s18 }
  0x10   : > { %s1997_s27 = scalar_lea.vmem %s2335_s0, %s1836_s17 }
  0x11 LB: >> { %v1855_v0 = vld [vmem:[%s2336_s1 + $0x40] sm:$0xff]   ;;  %v1949_v1 = vmov 0.0   ;;  %v1857_v3 = vld [vmem:[%s2336_s1 + $0x48] sm:$0xff]   ;;  %vm1950_vm0 = vmmov 0   ;;  %v1859_v5 = vld [vmem:[%s2336_s1 + $0x50] sm:$0xff]   ;;  %s1353_s18 = sshll.u32 %s1947_s28, 2  ;;  %s1947_s28 = sphi %s1999_s28, %s224_s28  }
  0x12   : >> { %1656 = vmatprep.subr.bf16.mxu0 %v1949_v1  ;;  %1676 = vmatprep.subr.bf16.mxu1 %v1949_v1  ;;  %v1856_v2 = vld [vmem:[%s2336_s1] sm:$0xff]   ;;  %v1858_v4 = vld [vmem:[%s2336_s1 + $0x8] sm:$0xff]   ;;  %v1860_v6 = vld [vmem:[%s2336_s1 + $0x10] sm:$0xff]   ;;  %s2042_s22 = scalar_lea.vmem %s1997_s27, %s1353_s18 }
  0x13   : >> { %1657 = vmatpush3.bf16.msra.mxu0 %v1855_v0  ;;  %1672 = vmatprep.mubr.msk.bf16.mxu0 %vm1950_vm0, %v1949_v1  ;;  %v1861_v7 = vld [vmem:[%s2336_s1 + $0x58] sm:$0xff]   ;;  %v1863_v9 = vld [vmem:[%s2336_s1 + $0x60] sm:$0xff]   ;;  %v1865_v12 = vld [vmem:[%s2336_s1 + $0x68] sm:$0xff]  }
  0x14   : >> { %1677 = vmatpush3.bf16.msra.mxu1 %v1856_v2  ;;  %1658 = vmatprep.subr.bf16.mxu0 %v1949_v1  ;;  %v1862_v8 = vld [vmem:[%s2336_s1 + $0x18] sm:$0xff]   ;;  %v1864_v10 = vld [vmem:[%s2336_s1 + $0x20] sm:$0xff]   ;;  %v1866_v13 = vld [vmem:[%s2336_s1 + $0x28] sm:$0xff]  }
  0x15   : >> { %1678 = vmatprep.subr.bf16.mxu1 %v1949_v1  ;;  %1692 = vmatprep.mubr.msk.bf16.mxu1 %vm1950_vm0, %v1949_v1  ;;  %v1871_v11 = vld [vmem:[%s2042_s22] ss:$0 sps:$4 sm:$0x77]   ;;  %v1867_v15 = vld [vmem:[%s2336_s1 + $0x70] sm:$0xff]   ;;  %v1869_v19 = vld [vmem:[%s2336_s1 + $0x78] sm:$0xff]  }
  0x16   : >> { %v268_v14 = vshll.u32 %v1871_v11, 16  ;;  %v1868_v16 = vld [vmem:[%s2336_s1 + $0x30] sm:$0xff]   ;;  %v266_v17 = vshrl.u32 %v1871_v11, 16  ;;  %v1870_v20 = vld [vmem:[%s2336_s1 + $0x38] sm:$0xff]   ;;  %v1872_v22 = vld [vmem:[%s2336_s1 + $0x80] sm:$0xff]  }
  0x17   : >> { %1659 = vmatpush3.bf16.msra.mxu0 %v1857_v3  ;;  %v227_v23 = vld [vmem:[%s2042_s22] sm:$0x3]  ;;  %v1874_v25 = vld [vmem:[%s2336_s1 + $0x88] sm:$0xff]   ;;  %v1876_v27 = vld [vmem:[%s2336_s1 + $0x90] sm:$0xff]  }
  0x18   : >> { %1679 = vmatpush3.bf16.msra.mxu1 %v1858_v4  ;;  %1660 = vmatprep.subr.bf16.mxu0 %v1949_v1  ;;  %v270_v18 = vrot.slane %v268_v14, 1  ;;  %v1873_v24 = vld [vmem:[%s2336_s1 + $0xc0] sm:$0xff]   ;;  %v1875_v26 = vld [vmem:[%s2336_s1 + $0xc8] sm:$0xff]   ;;  %v1877_v28 = vld [vmem:[%s2336_s1 + $0xd0] sm:$0xff]  }
  0x19   : >> { %1680 = vmatprep.subr.bf16.mxu1 %v1949_v1  ;;  %v1878_v29 = vld [vmem:[%s2336_s1 + $0x98] sm:$0xff]   ;;  %v1880_v31 = vld [vmem:[%s2336_s1 + $0xa0] sm:$0xff]   ;;  %v1882_v33 = vld [vmem:[%s2336_s1 + $0xa8] sm:$0xff]  }
  0x1a   : >> { %v271_v21 = vor.u32 %v270_v18, %v266_v17  ;;  %v1879_v30 = vld [vmem:[%s2336_s1 + $0xd8] sm:$0xff]   ;;  %v1881_v32 = vld [vmem:[%s2336_s1 + $0xe0] sm:$0xff]   ;;  %v1883_v34 = vld [vmem:[%s2336_s1 + $0xe8] sm:$0xff]  }
  0x1b   : >> { %1661 = vmatpush3.bf16.msra.mxu0 %v1859_v5  ;;  %v1884_v35 = vld [vmem:[%s2336_s1 + $0xb0] sm:$0xff]   ;;  %v1888_v37 = vld [vmem:[%s2042_s22] ss:$0 sps:$4 sm:$0x66]   ;;  %v1886_v38 = vld [vmem:[%s2336_s1 + $0xb8] sm:$0xff]  }
  0x1c   : >> { %1681 = vmatpush3.bf16.msra.mxu1 %v1860_v6  ;;  %1662 = vmatprep.subr.bf16.mxu0 %v1949_v1  ;;  %v1885_v36 = vld [vmem:[%s2336_s1 + $0xf0] sm:$0xff]   ;;  %v1887_v39 = vld [vmem:[%s2336_s1 + $0xf8] sm:$0xff]   ;;  %v470_v40 = vrot.slane %v1888_v37, 1  ;;  %v1889_v41 = vld [vmem:[%s2336_s1 + $0x100] sm:$0xff]  }
  0x1d   : >> { %1682 = vmatprep.subr.bf16.mxu1 %v1949_v1  ;;  %v1413_v42 = vld [vmem:[%s2042_s22 + $0x4] sm:$0x3]  ;;  %v1891_v44 = vld [vmem:[%s2336_s1 + $0x108] sm:$0xff]   ;;  %v1893_v46 = vld [vmem:[%s2336_s1 + $0x110] sm:$0xff]  }
  0x1e   : >> { %v1890_v43 = vld [vmem:[%s2336_s1 + $0x140] sm:$0xff]   ;;  %v1892_v45 = vld [vmem:[%s2336_s1 + $0x148] sm:$0xff]   ;;  %v1894_v47 = vld [vmem:[%s2336_s1 + $0x150] sm:$0xff]  }
  0x1f   : >> { %1663 = vmatpush3.bf16.msra.mxu0 %v1861_v7  ;;  %v1895_v48 = vld [vmem:[%s2336_s1 + $0x118] sm:$0xff]   ;;  %v1897_v50 = vld [vmem:[%s2336_s1 + $0x120] sm:$0xff]   ;;  %v1899_v53 = vld [vmem:[%s2336_s1 + $0x128] sm:$0xff]  }
  0x20   : >> { %1683 = vmatpush3.bf16.msra.mxu1 %v1862_v8  ;;  %1664 = vmatprep.subr.bf16.mxu0 %v1949_v1  ;;  %v1896_v49 = vld [vmem:[%s2336_s1 + $0x158] sm:$0xff]   ;;  %v1898_v51 = vld [vmem:[%s2336_s1 + $0x160] sm:$0xff]   ;;  %v1900_v54 = vld [vmem:[%s2336_s1 + $0x168] sm:$0xff]  }
  0x21   : >> { %1684 = vmatprep.subr.bf16.mxu1 %v1949_v1  ;;  %v1905_v52 = vld [vmem:[%s2042_s22 + $0x4] ss:$0 sps:$4 sm:$0x77]   ;;  %v1901_v56 = vld [vmem:[%s2336_s1 + $0x130] sm:$0xff]   ;;  %v1903_v60 = vld [vmem:[%s2336_s1 + $0x138] sm:$0xff]  }
  0x22   : >> { %v695_v55 = vshll.u32 %v1905_v52, 16  ;;  %v1902_v57 = vld [vmem:[%s2336_s1 + $0x170] sm:$0xff]   ;;  %v693_v58 = vshrl.u32 %v1905_v52, 16  ;;  %v1907_v61 = vld [vmem:[%s2042_s22 + $0x4] ss:$0 sps:$4 sm:$0x66]  }
  0x23   : >> { %1665 = vmatpush3.bf16.msra.mxu0 %v1863_v9  ;;  %v1904_v62 = vld [vmem:[%s2336_s1 + $0x178] sm:$0xff]   ;;  %v1906_v0 = vld [vmem:[%s2336_s1 + $0x180] sm:$0xff]   ;;  %v810_v2 = vrot.slane %v1907_v61, 1  ;;  %v1909_v4 = vld [vmem:[%s2336_s1 + $0x188] sm:$0xff]  }
  0x24   : >> { %1685 = vmatpush3.bf16.msra.mxu1 %v1864_v10  ;;  %1666 = vmatprep.subr.bf16.mxu0 %v1949_v1  ;;  %v697_v59 = vrot.slane %v695_v55, 1  ;;  %v1908_v3 = vld [vmem:[%s2336_s1 + $0x1c0] sm:$0xff]   ;;  %v1910_v5 = vld [vmem:[%s2336_s1 + $0x1c8] sm:$0xff]   ;;  %v1911_v6 = vld [vmem:[%s2336_s1 + $0x190] sm:$0xff]  }
  0x25   : >> { %1686 = vmatprep.subr.bf16.mxu1 %v1949_v1  ;;  %v1912_v7 = vld [vmem:[%s2336_s1 + $0x1d0] sm:$0xff]   ;;  %v1913_v8 = vld [vmem:[%s2336_s1 + $0x198] sm:$0xff]   ;;  %v1915_v10 = vld [vmem:[%s2336_s1 + $0x1a0] sm:$0xff]  }
  0x26   : >> { %v698_v63 = vor.u32 %v697_v59, %v693_v58  ;;  %v1914_v9 = vld [vmem:[%s2336_s1 + $0x1d8] sm:$0xff]   ;;  %v1916_v11 = vld [vmem:[%s2336_s1 + $0x1e0] sm:$0xff]   ;;  %v1918_v14 = vld [vmem:[%s2336_s1 + $0x1e8] sm:$0xff]  }
  0x27   : >> { %1667 = vmatpush3.bf16.msra.mxu0 %v1865_v12  ;;  %v1917_v12 = vld [vmem:[%s2336_s1 + $0x1a8] sm:$0xff]   ;;  %v1920_v17 = vld [vmem:[%s2336_s1 + $0x1f0] sm:$0xff]   ;;  %v1921_v18 = vld [vmem:[%s2336_s1 + $0x1b8] sm:$0xff]  }
  0x28   : >> { %1687 = vmatpush3.bf16.msra.mxu1 %v1866_v13  ;;  %1668 = vmatprep.subr.bf16.mxu0 %v1949_v1  ;;  %v1924_v13 = vld [vmem:[%s2042_s22 + $0x8] ss:$0 sps:$4 sm:$0x77]  }
  0x29   : >> { %1688 = vmatprep.subr.bf16.mxu1 %v1949_v1 }
  0x2b   : >> { %1669 = vmatpush3.bf16.msra.mxu0 %v1867_v15  ;;  %v1919_v15 = vld [vmem:[%s2336_s1 + $0x1b0] sm:$0xff]  }
  0x2c   : >> { %1689 = vmatpush3.bf16.msra.mxu1 %v1868_v16  ;;  %1670 = vmatprep.subr.bf16.mxu0 %v1949_v1  ;;  %v1035_v16 = vshll.u32 %v1924_v13, 16 }
  0x2d   : >> { %1690 = vmatprep.subr.bf16.mxu1 %v1949_v1 }
  0x2f   : >> { %1671 = vmatpush3.bf16.msra.mxu0 %v1869_v19  ;;  %v1033_v19 = vshrl.u32 %v1924_v13, 16 }
  0x30   : >> { %1691 = vmatpush3.bf16.msra.mxu1 %v1870_v20  ;;  %1696 = vmatprep.subr.bf16.mxu0 %v1949_v1  ;;  %v1037_v20 = vrot.slane %v1035_v16, 1 }
  0x31   : >> { %1716 = vmatprep.subr.bf16.mxu1 %v1949_v1 }
  0x32   : >> { %1673 = vmatmul.mubr.bf16.vlgmr.msra.gmra.mrb[0].mxu0 %v271_v21  ;;  %v1922_v21 = vld [vmem:[%s2336_s1 + $0x1f8] sm:$0xff]  }
  0x33   : >> { %1693 = vmatmul.mubr.bf16.vlgmr.msra.gmra.mrb[0].mxu1 %v227_v23  ;;  %1697 = vmatpush3.bf16.msra.mxu0 %v1872_v22  ;;  %v1491_v22 = vld [vmem:[%s2042_s22 + $0x8] sm:$0x3]  ;;  %v1923_v23 = vld [vmem:[%s2336_s1 + $0x200] sm:$0xff]  }
  0x34   : >> { %1717 = vmatpush3.bf16.msra.mxu1 %v1873_v24  ;;  %1698 = vmatprep.subr.bf16.mxu0 %v1949_v1  ;;  %v1038_v24 = vor.u32 %v1037_v20, %v1033_v19 }
  0x35   : >> { %1718 = vmatprep.subr.bf16.mxu1 %v1949_v1  ;;  %1712 = vmatprep.mubr.msk.bf16.mxu0 %vm1950_vm0, %v1949_v1 }
  0x36   : >> { %1732 = vmatprep.mubr.msk.bf16.mxu1 %vm1950_vm0, %v1949_v1 }
  0x37   : >> { %1699 = vmatpush3.bf16.msra.mxu0 %v1874_v25  ;;  %v1925_v25 = vld [vmem:[%s2336_s1 + $0x208] sm:$0xff]  }
  0x38   : >> { %1719 = vmatpush3.bf16.msra.mxu1 %v1875_v26  ;;  %1700 = vmatprep.subr.bf16.mxu0 %v1949_v1  ;;  %v1926_v26 = vld [vmem:[%s2336_s1 + $0x210] sm:$0xff]  }
  0x39   : >> { %1720 = vmatprep.subr.bf16.mxu1 %v1949_v1 }
  0x3b   : >> { %1701 = vmatpush3.bf16.msra.mxu0 %v1876_v27  ;;  %v1927_v27 = vld [vmem:[%s2336_s1 + $0x218] sm:$0xff]  }
  0x3c   : >> { %1721 = vmatpush3.bf16.msra.mxu1 %v1877_v28  ;;  %1702 = vmatprep.subr.bf16.mxu0 %v1949_v1  ;;  %v1928_v28 = vld [vmem:[%s2336_s1 + $0x220] sm:$0xff]  }
  0x3d   : >> { %1722 = vmatprep.subr.bf16.mxu1 %v1949_v1 }
  0x3f   : >> { %1703 = vmatpush3.bf16.msra.mxu0 %v1878_v29  ;;  %v1929_v29 = vld [vmem:[%s2336_s1 + $0x228] sm:$0xff]  }
  0x40   : >> { %1723 = vmatpush3.bf16.msra.mxu1 %v1879_v30  ;;  %1704 = vmatprep.subr.bf16.mxu0 %v1949_v1  ;;  %v1930_v30 = vld [vmem:[%s2336_s1 + $0x230] sm:$0xff]  }
  0x41   : >> { %1724 = vmatprep.subr.bf16.mxu1 %v1949_v1 }
  0x43   : >> { %1705 = vmatpush3.bf16.msra.mxu0 %v1880_v31  ;;  %v1932_v31 = vld [vmem:[%s2042_s22 + $0x8] ss:$0 sps:$4 sm:$0x66]   ;;  %s1569_s22 = sshll.u32 %s1947_s28, 1  ;;  %s224_s28 = sadd.s32 1, %s1947_s28  }
  0x44   : >> { %1725 = vmatpush3.bf16.msra.mxu1 %v1881_v32  ;;  %1706 = vmatprep.subr.bf16.mxu0 %v1949_v1  ;;  %v1931_v32 = vld [vmem:[%s2336_s1 + $0x238] sm:$0xff]   ;;  %s1250_s8 = scalar_lea.vmem %s1987_s21, %s1569_s22  ;;  %s1257_s11 = scalar_lea.vmem %s1992_s24, %s1569_s22 }
  0x45   : >> { %1726 = vmatprep.subr.bf16.mxu1 %v1949_v1  ;;  %p221_p4 = scmp.ge.s32.totalorder %s224_s28, 4  }
  0x47   : >> { %1707 = vmatpush3.bf16.msra.mxu0 %v1882_v33  ;;  %v1150_v33 = vrot.slane %v1932_v31, 1 }
  0x48   : >> { %1727 = vmatpush3.bf16.msra.mxu1 %v1883_v34  ;;  %1708 = vmatprep.subr.bf16.mxu0 %v1949_v1 }
  0x49   : >> { %1728 = vmatprep.subr.bf16.mxu1 %v1949_v1 }
  0x4b   : >> { %1709 = vmatpush3.bf16.msra.mxu0 %v1884_v35 }
  0x4c   : >> { %1729 = vmatpush3.bf16.msra.mxu1 %v1885_v36  ;;  %1710 = vmatprep.subr.bf16.mxu0 %v1949_v1 }
  0x4d   : >> { %1730 = vmatprep.subr.bf16.mxu1 %v1949_v1 }
  0x4f   : >> { %1711 = vmatpush3.bf16.msra.mxu0 %v1886_v38 }
  0x50   : >> { %1731 = vmatpush3.bf16.msra.mxu1 %v1887_v39  ;;  %1736 = vmatprep.subr.bf16.mxu0 %v1949_v1 }
  0x51   : >> { %1756 = vmatprep.subr.bf16.mxu1 %v1949_v1 }
  0x52   : >> { %1713 = vmatmul.mubr.bf16.vlgmr.msra.gmra.mrb[4].mxu0 %v470_v40 }
  0x53   : >> { %1737 = vmatpush3.bf16.msra.mxu0 %v1889_v41  ;;  %1733 = vmatmul.mubr.bf16.vlgmr.msra.gmra.mrb[4].mxu1 %v1413_v42 }
  0x54   : >> { %1757 = vmatpush3.bf16.msra.mxu1 %v1890_v43  ;;  %1738 = vmatprep.subr.bf16.mxu0 %v1949_v1 }
  0x55   : >> { %1758 = vmatprep.subr.bf16.mxu1 %v1949_v1  ;;  %1752 = vmatprep.mubr.msk.bf16.mxu0 %vm1950_vm0, %v1949_v1 }
  0x56   : >> { %1772 = vmatprep.mubr.msk.bf16.mxu1 %vm1950_vm0, %v1949_v1 }
  0x57   : >> { %1739 = vmatpush3.bf16.msra.mxu0 %v1891_v44 }
  0x58   : >> { %1759 = vmatpush3.bf16.msra.mxu1 %v1892_v45  ;;  %1740 = vmatprep.subr.bf16.mxu0 %v1949_v1 }
  0x59   : >> { %1760 = vmatprep.subr.bf16.mxu1 %v1949_v1 }
  0x5b   : >> { %1741 = vmatpush3.bf16.msra.mxu0 %v1893_v46 }
  0x5c   : >> { %1761 = vmatpush3.bf16.msra.mxu1 %v1894_v47  ;;  %1742 = vmatprep.subr.bf16.mxu0 %v1949_v1 }
  0x5d   : >> { %1762 = vmatprep.subr.bf16.mxu1 %v1949_v1 }
  0x5f   : >> { %1743 = vmatpush3.bf16.msra.mxu0 %v1895_v48 }
  0x60   : >> { %1763 = vmatpush3.bf16.msra.mxu1 %v1896_v49  ;;  %1744 = vmatprep.subr.bf16.mxu0 %v1949_v1 }
  0x61   : >> { %1764 = vmatprep.subr.bf16.mxu1 %v1949_v1 }
  0x63   : >> { %1745 = vmatpush3.bf16.msra.mxu0 %v1897_v50 }
  0x64   : >> { %1765 = vmatpush3.bf16.msra.mxu1 %v1898_v51  ;;  %1746 = vmatprep.subr.bf16.mxu0 %v1949_v1 }
  0x65   : >> { %1766 = vmatprep.subr.bf16.mxu1 %v1949_v1 }
  0x67   : >> { %1747 = vmatpush3.bf16.msra.mxu0 %v1899_v53 }
  0x68   : >> { %1767 = vmatpush3.bf16.msra.mxu1 %v1900_v54  ;;  %1748 = vmatprep.subr.bf16.mxu0 %v1949_v1 }
  0x69   : >> { %1768 = vmatprep.subr.bf16.mxu1 %v1949_v1 }
  0x6b   : >> { %1749 = vmatpush3.bf16.msra.mxu0 %v1901_v56 }
  0x6c   : >> { %1769 = vmatpush3.bf16.msra.mxu1 %v1902_v57  ;;  %1750 = vmatprep.subr.bf16.mxu0 %v1949_v1 }
  0x6d   : >> { %1770 = vmatprep.subr.bf16.mxu1 %v1949_v1 }
  0x6f   : >> { %1751 = vmatpush3.bf16.msra.mxu0 %v1903_v60 }
  0x70   : >> { %1771 = vmatpush3.bf16.msra.mxu1 %v1904_v62  ;;  %1776 = vmatprep.subr.bf16.mxu0 %v1949_v1 }
  0x71   : >> { %1796 = vmatprep.subr.bf16.mxu1 %v1949_v1 }
  0x72   : >> { %1753 = vmatmul.mubr.bf16.vlgmr.msra.gmra.mrb[8].mxu0 %v698_v63 }
  0x73   : >> { %1777 = vmatpush3.bf16.msra.mxu0 %v1906_v0  ;;  %1773 = vmatmul.mubr.bf16.vlgmr.msra.gmra.mrb[8].mxu1 %v810_v2 }
  0x74   : >> { %1797 = vmatpush3.bf16.msra.mxu1 %v1908_v3  ;;  %1778 = vmatprep.subr.bf16.mxu0 %v1949_v1 }
  0x75   : >> { %1798 = vmatprep.subr.bf16.mxu1 %v1949_v1  ;;  %1792 = vmatprep.mubr.msk.bf16.mxu0 %vm1950_vm0, %v1949_v1 }
  0x76   : >> { %1812 = vmatprep.mubr.msk.bf16.mxu1 %vm1950_vm0, %v1949_v1 }
  0x77   : >> { %1779 = vmatpush3.bf16.msra.mxu0 %v1909_v4 }
  0x78   : >> { %1799 = vmatpush3.bf16.msra.mxu1 %v1910_v5  ;;  %1780 = vmatprep.subr.bf16.mxu0 %v1949_v1 }
  0x79   : >> { %1800 = vmatprep.subr.bf16.mxu1 %v1949_v1 }
  0x7b   : >> { %1781 = vmatpush3.bf16.msra.mxu0 %v1911_v6 }
  0x7c   : >> { %1801 = vmatpush3.bf16.msra.mxu1 %v1912_v7  ;;  %1782 = vmatprep.subr.bf16.mxu0 %v1949_v1 }
  0x7d   : >> { %1802 = vmatprep.subr.bf16.mxu1 %v1949_v1 }
  0x7f   : >> { %1783 = vmatpush3.bf16.msra.mxu0 %v1913_v8 }
  0x80   : >> { %1803 = vmatpush3.bf16.msra.mxu1 %v1914_v9  ;;  %1784 = vmatprep.subr.bf16.mxu0 %v1949_v1  ;;  %v1251_v9 = vld [vmem:[%s1250_s8] sm:$0x3] }
  0x81   : >> { %1804 = vmatprep.subr.bf16.mxu1 %v1949_v1  ;;  %v1252_v13 = vunpack.c.l.bf16 %v1251_v9 }
  0x83   : >> { %1785 = vmatpush3.bf16.msra.mxu0 %v1915_v10 }
  0x84   : >> { %1805 = vmatpush3.bf16.msra.mxu1 %v1916_v11  ;;  %1786 = vmatprep.subr.bf16.mxu0 %v1949_v1  ;;  %v1568_v11 = vld [vmem:[%s2337_s2] ss:$0 sm:$0xff] }
  0x85   : >> { %1806 = vmatprep.subr.bf16.mxu1 %v1949_v1 }
  0x87   : >> { %1787 = vmatpush3.bf16.msra.mxu0 %v1917_v12 }
  0x88   : >> { %1807 = vmatpush3.bf16.msra.mxu1 %v1918_v14  ;;  %1788 = vmatprep.subr.bf16.mxu0 %v1949_v1 }
  0x89   : >> { %1808 = vmatprep.subr.bf16.mxu1 %v1949_v1 }
  0x8b   : >> { %1789 = vmatpush3.bf16.msra.mxu0 %v1919_v15 }
  0x8c   : >> { %1809 = vmatpush3.bf16.msra.mxu1 %v1920_v17  ;;  %1790 = vmatprep.subr.bf16.mxu0 %v1949_v1 }
  0x8d   : >> { %1810 = vmatprep.subr.bf16.mxu1 %v1949_v1 }
  0x8f   : >> { %1791 = vmatpush3.bf16.msra.mxu0 %v1921_v18 }
  0x90   : >> { %1811 = vmatpush3.bf16.msra.mxu1 %v1922_v21  ;;  %1816 = vmatprep.subr.bf16.mxu0 %v1949_v1 }
  0x92   : >> { %1793 = vmatmul.mubr.bf16.vlgmr.msra.gmra.mrb[12].mxu0 %v1491_v22 }
  0x93   : >> { %1817 = vmatpush3.bf16.msra.mxu0 %v1923_v23  ;;  %1813 = vmatmul.mubr.bf16.vlgmr.msra.gmra.mrb[12].mxu1 %v1038_v24 }
  0x94   : >> { %1818 = vmatprep.subr.bf16.mxu0 %v1949_v1  ;;  %1832 = vmatprep.mubr.msk.bf16.mxu0 %vm1950_vm0, %v1949_v1 }
  0x97   : >> { %1819 = vmatpush3.bf16.msra.mxu0 %v1925_v25 }
  0x98   : >> { %1820 = vmatprep.subr.bf16.mxu0 %v1949_v1 }
  0x9b   : >> { %1821 = vmatpush3.bf16.msra.mxu0 %v1926_v26 }
  0x9c   : >> { %1822 = vmatprep.subr.bf16.mxu0 %v1949_v1 }
  0x9f   : >> { %1823 = vmatpush3.bf16.msra.mxu0 %v1927_v27 }
  0xa0   : >> { %1824 = vmatprep.subr.bf16.mxu0 %v1949_v1 }
  0xa3   : >> { %1825 = vmatpush3.bf16.msra.mxu0 %v1928_v28 }
  0xa4   : >> { %1826 = vmatprep.subr.bf16.mxu0 %v1949_v1 }
  0xa7   : >> { %1827 = vmatpush3.bf16.msra.mxu0 %v1929_v29 }
  0xa8   : >> { %1828 = vmatprep.subr.bf16.mxu0 %v1949_v1 }
  0xab   : >> { %1829 = vmatpush3.bf16.msra.mxu0 %v1930_v30 }
  0xac   : >> { %1830 = vmatprep.subr.bf16.mxu0 %v1949_v1 }
  0xaf   : >> { %1831 = vmatpush3.bf16.msra.mxu0 %v1931_v32 }
  0xb2   : >> { %1833 = vmatmul.mubr.bf16.vlgmr.msra.gmra.mrb[16].mxu0 %v1150_v33 }
 0x105   : >> { %v355_v34 = vpop.f32.mrb[0].mxu0 }
 0x106   : >> { %v1674_v35 = vpop.f32.mrb[1].mxu0  ;;  %v443_v36 = vpop.f32.mrb[0].mxu1 }
 0x107   : >> { %v444_v37 = vadd.f32 %v443_v36, %v355_v34  ;;  %v358_v38 = vpop.f32.mrb[2].mxu0  ;;  %v1694_v39 = vpop.f32.mrb[1].mxu1 }
 0x108   : >> { %v1675_v40 = vpop.f32.mrb[3].mxu0  ;;  %v446_v41 = vpop.f32.mrb[2].mxu1 }
 0x109   : >> { %v1695_v42 = vpop.f32.mrb[3].mxu1 }
 0x125   : >> { %v554_v43 = vpop.f32.mrb[4].mxu0 }
 0x126   : >> { %v560_v44 = vadd.f32 %v554_v43, %v444_v37  ;;  %v1714_v45 = vpop.f32.mrb[5].mxu0  ;;  %v664_v46 = vpop.f32.mrb[4].mxu1 }
 0x127   : >> { %v557_v47 = vpop.f32.mrb[6].mxu0  ;;  %v1734_v48 = vpop.f32.mrb[5].mxu1 }
 0x128   : >> { %v670_v49 = vadd.f32 %v664_v46, %v560_v44  ;;  %v1715_v1 = vpop.f32.mrb[7].mxu0  ;;  %v667_v50 = vpop.f32.mrb[6].mxu1 }
 0x129   : >> { %v1735_v51 = vpop.f32.mrb[7].mxu1 }
 0x145   : >> { %v782_v52 = vpop.f32.mrb[8].mxu0 }
 0x146   : >> { %v788_v53 = vadd.f32 %v782_v52, %v670_v49  ;;  %v1754_v54 = vpop.f32.mrb[9].mxu0  ;;  %v894_v55 = vpop.f32.mrb[8].mxu1 }
 0x147   : >> { %v785_v56 = vpop.f32.mrb[10].mxu0  ;;  %v1774_v57 = vpop.f32.mrb[9].mxu1 }
 0x148   : >> { %v900_v58 = vadd.f32 %v894_v55, %v788_v53  ;;  %v1755_v59 = vpop.f32.mrb[11].mxu0  ;;  %v897_v60 = vpop.f32.mrb[10].mxu1 }
 0x149   : >> { %v1775_v61 = vpop.f32.mrb[11].mxu1 }
 0x165   : >> { %v1004_v62 = vpop.f32.mrb[12].mxu0 }
 0x166   : >> { %v1010_v63 = vadd.f32 %v1004_v62, %v900_v58  ;;  %v1794_v0 = vpop.f32.mrb[13].mxu0  ;;  %v1122_v2 = vpop.f32.mrb[12].mxu1 }
 0x167   : >> { %v1007_v3 = vpop.f32.mrb[14].mxu0  ;;  %v1814_v4 = vpop.f32.mrb[13].mxu1 }
 0x168   : >> { %v1128_v5 = vadd.f32 %v1122_v2, %v1010_v63  ;;  %v1795_v6 = vpop.f32.mrb[15].mxu0  ;;  %v1125_v7 = vpop.f32.mrb[14].mxu1 }
 0x169   : >> { %v1815_v8 = vpop.f32.mrb[15].mxu1 }
 0x185   : >> { %v1234_v10 = vpop.f32.mrb[16].mxu0 }
 0x186   : >> { %v1240_v12 = vadd.f32 %v1234_v10, %v1128_v5  ;;  %v1834_v14 = vpop.f32.mrb[17].mxu0 }
 0x187   : >> { %v1237_v15 = vpop.f32.mrb[18].mxu0 }
 0x188   : >> { %v1248_v16 = vadd.f32 %v1568_v11, %v1240_v12  ;;  %v1835_v17 = vpop.f32.mrb[19].mxu0 }
 0x18a   : >> { %v1253_v18 = vadd.f32 %v1252_v13, %v1248_v16  ;;  %223 = sbr.rel (!%p221_p4) target bundleno = 17 (0x11), region = 89 }
 0x18c   : >> { %v1254_v19 = vmax.f32 %v1253_v18, 0.0 }
 0x18e   : >> { %v1255_v20 = vpack.c.bf16 %v1254_v19, %v1254_v19 }
 0x190   : >> { %1258 = vst [vmem:[%s1257_s11] sm:$0x3] %v1255_v20 }
 0x191 PF: > { %s14_s15 = sadd.s32 1, %s1943_s15  }
 0x192   : > { %p11_p5 = scmp.ge.s32.totalorder %s14_s15, 4  }
 0x194   :  { %13 = sbr.rel (!%p11_p5) target bundleno = 1 (0x1), region = 100 }

// kernel: _lambda_.21
= control target key start
LH: loop header
LB: loop body
LE: loop exit
PB: predicated region body
PF: predicated region fallthrough
CT: control target
= control target key end

     0   :  { %s466_s12 = smov 0   ;;  %s526_s0 = inlined_call_operand.vmem [shape: bf16[8,2,2,128], index: 0, kind: input, shape index: {}]   ;;  %s527_s1 = inlined_call_operand.vmem [shape: bf16[1,128,128], index: 1, kind: input, shape index: {}]   ;;  %s528_s2 = inlined_call_operand.vmem [shape: f32[1,128], index: 2, kind: input, shape index: {}]   ;;  %s529_s3 = inlined_call_operand.vmem [shape: bf16[2,2,2,128], index: 3, kind: output, shape index: {}]  }
   0x1 LB: > { %s354_s13 = sadd.s32 4294967295, %s438_s12   ;;  %p358_p0 = scmp.ge.s32.totalorder %s438_s12, 1  ;;  %s438_s12 = sphi %s466_s12, %s13_s12  }
   0x2   : > { %p138_p1 = scmp.lt.s32.totalorder %s438_s12, 3 }
   0x4   : > { %p139_p2 = pnand %p358_p0, %p138_p1 }
   0x5   : > { %s359_s14 = sshll.u32 (!%p139_p2), %s354_s13, 2  ;;  %p167_p3 = scmp.lt.s32.totalorder (!%p139_p2), %s354_s13, 1 }
   0x6   : > { %142 = sbr.rel (%p139_p2) target bundleno = 266 (0x10a), region = 32  ;;  %p162_p4 = scmp.lt.s32.totalorder (!%p139_p2), %s359_s14, 7 }
   0x7   : > { %s484_s23 = smov (!%p139_p2), 0  }
   0xd   : > { %s531_s13 = smov (!%p167_p3, %s354_s13), 1  ;;  %s533_s14 = smov (!%p162_p4, %s359_s14), 7 }
   0xe   : > { %s361_s15 = sshll.u32 %s531_s13, 1  ;;  %s360_s16 = sshll.u32 %s533_s14, 1 }
   0xf   : > { %s477_s19 = scalar_lea.vmem %s529_s3, %s361_s15  ;;  %s482_s22 = scalar_lea.vmem %s526_s0, %s360_s16 }
  0x10 LB: >> { %v420_v0 = vld [vmem:[%s527_s1] sm:$0xff]   ;;  %v444_v1 = vmov 0.0   ;;  %v421_v2 = vld [vmem:[%s527_s1 + $0x8] sm:$0xff]   ;;  %vm445_vm0 = vmmov 0   ;;  %v422_v3 = vld [vmem:[%s527_s1 + $0x10] sm:$0xff]   ;;  %s178_s14 = scalar_lea.vmem %s482_s22, %s442_s23  ;;  %s292_s17 = scalar_lea.vmem %s477_s19, %s442_s23  ;;  %s442_s23 = sphi %s484_s23, %s177_s23  }
  0x11   : >> { %382 = vmatprep.subr.bf16.mxu0 %v444_v1  ;;  %398 = vmatprep.mubr.msk.bf16.mxu0 %vm445_vm0, %v444_v1  ;;  %v423_v4 = vld [vmem:[%s527_s1 + $0x18] sm:$0xff]   ;;  %v424_v5 = vld [vmem:[%s527_s1 + $0x20] sm:$0xff]   ;;  %v425_v6 = vld [vmem:[%s527_s1 + $0x28] sm:$0xff]   ;;  %s177_s23 = sadd.s32 1, %s442_s23  }
  0x12   : >> { %383 = vmatpush3.bf16.msra.mxu0 %v420_v0  ;;  %v426_v7 = vld [vmem:[%s527_s1 + $0x30] sm:$0xff]   ;;  %v427_v8 = vld [vmem:[%s527_s1 + $0x38] sm:$0xff]   ;;  %v179_v9 = vld [vmem:[%s178_s14] sm:$0x1]  ;;  %p174_p5 = scmp.ge.s32.totalorder %s177_s23, 2  }
  0x13   : >> { %384 = vmatprep.subr.bf16.mxu0 %v444_v1  ;;  %v362_v10 = vld [vmem:[%s528_s2] ss:$0 sm:$0xff] }
  0x16   : >> { %385 = vmatpush3.bf16.msra.mxu0 %v421_v2 }
  0x17   : >> { %386 = vmatprep.subr.bf16.mxu0 %v444_v1 }
  0x1a   : >> { %387 = vmatpush3.bf16.msra.mxu0 %v422_v3 }
  0x1b   : >> { %388 = vmatprep.subr.bf16.mxu0 %v444_v1 }
  0x1e   : >> { %389 = vmatpush3.bf16.msra.mxu0 %v423_v4 }
  0x1f   : >> { %390 = vmatprep.subr.bf16.mxu0 %v444_v1 }
  0x22   : >> { %391 = vmatpush3.bf16.msra.mxu0 %v424_v5 }
  0x23   : >> { %392 = vmatprep.subr.bf16.mxu0 %v444_v1 }
  0x26   : >> { %393 = vmatpush3.bf16.msra.mxu0 %v425_v6 }
  0x27   : >> { %394 = vmatprep.subr.bf16.mxu0 %v444_v1 }
  0x2a   : >> { %395 = vmatpush3.bf16.msra.mxu0 %v426_v7 }
  0x2b   : >> { %396 = vmatprep.subr.bf16.mxu0 %v444_v1 }
  0x2e   : >> { %397 = vmatpush3.bf16.msra.mxu0 %v427_v8 }
  0x31   : >> { %399 = vmatmul.mubr.bf16.vlgmr.msra.gmra.mrb[0].mxu0 %v179_v9 }
 0x103   : > { %176 = sbr.rel (!%p174_p5) target bundleno = 16 (0x10), region = 71 }
 0x104   : >> { %v285_v11 = vpop.f32.mrb[0].mxu0 }
 0x105   : >> { %v286_v12 = vadd.f32 %v362_v10, %v285_v11  ;;  %v400_v13 = vpop.f32.mrb[1].mxu0 }
 0x106   : >> { %v288_v14 = vpop.f32.mrb[2].mxu0 }
 0x107   : >> { %v291_v15 = vpack.c.bf16 %v286_v12, %v286_v12  ;;  %v401_v16 = vpop.f32.mrb[3].mxu0 }
 0x109   : >> { %293 = vst [vmem:[%s292_s17] sm:$0x1] %v291_v15 }
 0x10a PF: > { %s13_s12 = sadd.s32 1, %s438_s12  }
 0x10b   : > { %p10_p6 = scmp.ge.s32.totalorder %s13_s12, 4  }
 0x10d   :  { %12 = sbr.rel (!%p10_p6) target bundleno = 1 (0x1), region = 82 }

// kernel: _lambda_.22
= control target key start
LH: loop header
LB: loop body
LE: loop exit
PB: predicated region body
PF: predicated region fallthrough
CT: control target
= control target key end

     0   :  { %s1911_s12 = smov 0   ;;  %s2264_s0 = inlined_call_operand.vmem [shape: bf16[8,3,3,128], index: 0, kind: input, shape index: {}]   ;;  %s2265_s1 = inlined_call_operand.vmem [shape: bf16[9,128,128], index: 1, kind: input, shape index: {}]   ;;  %s2266_s2 = inlined_call_operand.vmem [shape: f32[1,128], index: 2, kind: input, shape index: {}]   ;;  %s2267_s3 = inlined_call_operand.vmem [shape: bf16[2,2,2,128], index: 3, kind: output, shape index: {}]  }
   0x1 LB: > { %s1294_s13 = sadd.s32 4294967295, %s1883_s12   ;;  %p1298_p0 = scmp.ge.s32.totalorder %s1883_s12, 1  ;;  %s1883_s12 = sphi %s1911_s12, %s13_s12  }
   0x2   : > { %p139_p1 = scmp.lt.s32.totalorder %s1883_s12, 3 }
   0x4   : > { %p140_p2 = pnand %p1298_p0, %p139_p1 }
   0x5   : > { %s1299_s14 = sshll.u32 (!%p140_p2), %s1294_s13, 2  ;;  %p170_p3 = scmp.lt.s32.totalorder (!%p140_p2), %s1294_s13, 1 }
   0x6   : > { %143 = sbr.rel (%p140_p2) target bundleno = 399 (0x18f), region = 32  ;;  %p164_p4 = scmp.lt.s32.totalorder (!%p140_p2), %s1299_s14, 7 }
   0x7   : > { %s1929_s23 = smov (!%p140_p2), 0  }
   0xd   : > { %s2269_s13 = smov (!%p170_p3, %s1294_s13), 1  ;;  %s2271_s14 = smov (!%p164_p4, %s1299_s14), 7 }
   0xe   : > { %s1301_s15 = sshll.u32 %s2269_s13, 1  ;;  %s1782_s16 = smul.u32 6, %s2271_s14 }
   0xf   : > { %s1922_s19 = scalar_lea.vmem %s2267_s3, %s1301_s15 }
  0x10   : > { %s1927_s22 = scalar_lea.vmem %s2264_s0, %s1782_s16 }
  0x11 LB: >> { %v1801_v0 = vld [vmem:[%s2265_s1 + $0x40] sm:$0xff]   ;;  %v1889_v1 = vmov 0.0   ;;  %v1803_v3 = vld [vmem:[%s2265_s1 + $0x48] sm:$0xff]   ;;  %vm1890_vm0 = vmmov 0   ;;  %v1805_v5 = vld [vmem:[%s2265_s1 + $0x50] sm:$0xff]   ;;  %s1302_s27 = sshll.u32 %s1887_s23, 1  ;;  %s1216_s11 = scalar_lea.vmem %s1922_s19, %s1887_s23  ;;  %s1887_s23 = sphi %s1929_s23, %s180_s23  }
  0x12   : >> { %1602 = vmatprep.subr.bf16.mxu0 %v1889_v1  ;;  %1622 = vmatprep.subr.bf16.mxu1 %v1889_v1  ;;  %v1802_v2 = vld [vmem:[%s2265_s1] sm:$0xff]   ;;  %v1804_v4 = vld [vmem:[%s2265_s1 + $0x8] sm:$0xff]   ;;  %v1806_v6 = vld [vmem:[%s2265_s1 + $0x10] sm:$0xff]   ;;  %s1996_s30 = scalar_lea.vmem %s1927_s22, %s1302_s27  ;;  %s180_s23 = sadd.s32 1, %s1887_s23  }
  0x13   : >> { %1603 = vmatpush3.bf16.msra.mxu0 %v1801_v0  ;;  %1618 = vmatprep.mubr.msk.bf16.mxu0 %vm1890_vm0, %v1889_v1  ;;  %v1807_v7 = vld [vmem:[%s2265_s1 + $0x58] sm:$0xff]   ;;  %v1809_v9 = vld [vmem:[%s2265_s1 + $0x60] sm:$0xff]   ;;  %v1811_v11 = vld [vmem:[%s2265_s1 + $0x68] sm:$0xff]   ;;  %p177_p5 = scmp.ge.s32.totalorder %s180_s23, 2  }
  0x14   : >> { %1623 = vmatpush3.bf16.msra.mxu1 %v1802_v2  ;;  %1604 = vmatprep.subr.bf16.mxu0 %v1889_v1  ;;  %v1808_v8 = vld [vmem:[%s2265_s1 + $0x18] sm:$0xff]   ;;  %v1810_v10 = vld [vmem:[%s2265_s1 + $0x20] sm:$0xff]   ;;  %v1812_v12 = vld [vmem:[%s2265_s1 + $0x28] sm:$0xff]  }
  0x15   : >> { %1624 = vmatprep.subr.bf16.mxu1 %v1889_v1  ;;  %1638 = vmatprep.mubr.msk.bf16.mxu1 %vm1890_vm0, %v1889_v1  ;;  %v1813_v13 = vld [vmem:[%s2265_s1 + $0x70] sm:$0xff]   ;;  %v1815_v15 = vld [vmem:[%s2265_s1 + $0x78] sm:$0xff]   ;;  %v1304_v17 = vld [vmem:[%s1996_s30 + $0x6] sm:$0x1] }
  0x16   : >> { %v1814_v14 = vld [vmem:[%s2265_s1 + $0x30] sm:$0xff]   ;;  %v1816_v16 = vld [vmem:[%s2265_s1 + $0x38] sm:$0xff]   ;;  %v183_v18 = vld [vmem:[%s1996_s30] sm:$0x1] }
  0x17   : >> { %1605 = vmatpush3.bf16.msra.mxu0 %v1803_v3  ;;  %v1817_v19 = vld [vmem:[%s2265_s1 + $0x80] sm:$0xff]   ;;  %v1819_v21 = vld [vmem:[%s2265_s1 + $0x88] sm:$0xff]   ;;  %v1821_v23 = vld [vmem:[%s2265_s1 + $0x90] sm:$0xff]  }
  0x18   : >> { %1625 = vmatpush3.bf16.msra.mxu1 %v1804_v4  ;;  %1606 = vmatprep.subr.bf16.mxu0 %v1889_v1  ;;  %v1818_v20 = vld [vmem:[%s2265_s1 + $0xc0] sm:$0xff]   ;;  %v1820_v22 = vld [vmem:[%s2265_s1 + $0xc8] sm:$0xff]   ;;  %v1822_v24 = vld [vmem:[%s2265_s1 + $0xd0] sm:$0xff]  }
  0x19   : >> { %1626 = vmatprep.subr.bf16.mxu1 %v1889_v1  ;;  %v1823_v25 = vld [vmem:[%s2265_s1 + $0x98] sm:$0xff]   ;;  %v1825_v27 = vld [vmem:[%s2265_s1 + $0xa0] sm:$0xff]   ;;  %v1827_v30 = vld [vmem:[%s2265_s1 + $0xa8] sm:$0xff]  }
  0x1a   : >> { %v1824_v26 = vld [vmem:[%s2265_s1 + $0xd8] sm:$0xff]   ;;  %v1826_v28 = vld [vmem:[%s2265_s1 + $0xe0] sm:$0xff]   ;;  %v1828_v31 = vld [vmem:[%s2265_s1 + $0xe8] sm:$0xff]  }
  0x1b   : >> { %1607 = vmatpush3.bf16.msra.mxu0 %v1805_v5  ;;  %v1353_v29 = vld.sshfl [vmem:[%s1996_s30] sm:$0x3 pattern:$0x76325410]  ;;  %v1829_v33 = vld [vmem:[%s2265_s1 + $0xb0] sm:$0xff]   ;;  %v1831_v37 = vld [vmem:[%s2265_s1 + $0xb8] sm:$0xff]  }
  0x1c   : >> { %1627 = vmatpush3.bf16.msra.mxu1 %v1806_v6  ;;  %1608 = vmatprep.subr.bf16.mxu0 %v1889_v1  ;;  %v426_v32 = vshll.u32 %v1353_v29, 16  ;;  %v1830_v34 = vld [vmem:[%s2265_s1 + $0xf0] sm:$0xff]   ;;  %v424_v35 = vshrl.u32 %v1353_v29, 16  ;;  %v1832_v38 = vld [vmem:[%s2265_s1 + $0xf8] sm:$0xff]   ;;  %v1833_v40 = vld [vmem:[%s2265_s1 + $0x100] sm:$0xff]  }
  0x1d   : >> { %1628 = vmatprep.subr.bf16.mxu1 %v1889_v1  ;;  %v1363_v41 = vld [vmem:[%s1996_s30 + $0xc] sm:$0x1]  ;;  %v1834_v42 = vld [vmem:[%s2265_s1 + $0x140] sm:$0xff]   ;;  %v1837_v45 = vld [vmem:[%s2265_s1 + $0x110] sm:$0xff]  }
  0x1e   : >> { %v428_v36 = vrot.slane %v426_v32, 1  ;;  %v1835_v43 = vld [vmem:[%s2265_s1 + $0x108] sm:$0xff]   ;;  %v1838_v46 = vld [vmem:[%s2265_s1 + $0x150] sm:$0xff]   ;;  %v1839_v47 = vld [vmem:[%s2265_s1 + $0x118] sm:$0xff]  }
  0x1f   : >> { %1609 = vmatpush3.bf16.msra.mxu0 %v1807_v7  ;;  %v1836_v44 = vld [vmem:[%s2265_s1 + $0x148] sm:$0xff]   ;;  %v1840_v48 = vld [vmem:[%s2265_s1 + $0x158] sm:$0xff]   ;;  %v1841_v49 = vld [vmem:[%s2265_s1 + $0x120] sm:$0xff]  }
  0x20   : >> { %1629 = vmatpush3.bf16.msra.mxu1 %v1808_v8  ;;  %1610 = vmatprep.subr.bf16.mxu0 %v1889_v1  ;;  %v429_v39 = vor.u32 %v428_v36, %v424_v35  ;;  %v1842_v50 = vld [vmem:[%s2265_s1 + $0x160] sm:$0xff]   ;;  %v1843_v51 = vld [vmem:[%s2265_s1 + $0x128] sm:$0xff]   ;;  %v1845_v54 = vld [vmem:[%s2265_s1 + $0x130] sm:$0xff]  }
  0x21   : >> { %1630 = vmatprep.subr.bf16.mxu1 %v1889_v1  ;;  %v1844_v52 = vld [vmem:[%s2265_s1 + $0x168] sm:$0xff]   ;;  %v1846_v56 = vld [vmem:[%s2265_s1 + $0x170] sm:$0xff]   ;;  %v1847_v57 = vld [vmem:[%s2265_s1 + $0x138] sm:$0xff]  }
  0x22   : >> { %v1431_v53 = vld.sshfl [vmem:[%s1996_s30 + $0xc] sm:$0x3 pattern:$0x76325410]  ;;  %v1848_v60 = vld [vmem:[%s2265_s1 + $0x178] sm:$0xff]   ;;  %v1849_v62 = vld [vmem:[%s2265_s1 + $0x180] sm:$0xff]  }
  0x23   : >> { %1611 = vmatpush3.bf16.msra.mxu0 %v1809_v9  ;;  %v769_v55 = vshll.u32 %v1431_v53, 16  ;;  %v767_v58 = vshrl.u32 %v1431_v53, 16  ;;  %v1389_v61 = vld [vmem:[%s1996_s30 + $0x12] sm:$0x1]  ;;  %v1850_v0 = vld [vmem:[%s2265_s1 + $0x1c0] sm:$0xff]   ;;  %v1851_v2 = vld [vmem:[%s2265_s1 + $0x188] sm:$0xff]  }
  0x24   : >> { %1631 = vmatpush3.bf16.msra.mxu1 %v1810_v10  ;;  %1612 = vmatprep.subr.bf16.mxu0 %v1889_v1  ;;  %v1852_v3 = vld [vmem:[%s2265_s1 + $0x1c8] sm:$0xff]   ;;  %v1853_v4 = vld [vmem:[%s2265_s1 + $0x190] sm:$0xff]   ;;  %v1855_v6 = vld [vmem:[%s2265_s1 + $0x198] sm:$0xff]  }
  0x25   : >> { %1632 = vmatprep.subr.bf16.mxu1 %v1889_v1  ;;  %v771_v59 = vrot.slane %v769_v55, 1  ;;  %v1854_v5 = vld [vmem:[%s2265_s1 + $0x1d0] sm:$0xff]   ;;  %v1856_v7 = vld [vmem:[%s2265_s1 + $0x1d8] sm:$0xff]   ;;  %v1857_v8 = vld [vmem:[%s2265_s1 + $0x1a0] sm:$0xff]  }
  0x26   : >> { %v1858_v9 = vld [vmem:[%s2265_s1 + $0x1e0] sm:$0xff]   ;;  %v1859_v10 = vld [vmem:[%s2265_s1 + $0x1a8] sm:$0xff]   ;;  %v1872_v29 = vld [vmem:[%s2265_s1 + $0x238] sm:$0xff]  }
  0x27   : >> { %1613 = vmatpush3.bf16.msra.mxu0 %v1811_v11  ;;  %v772_v63 = vor.u32 %v771_v59, %v767_v58  ;;  %v1860_v11 = vld [vmem:[%s2265_s1 + $0x1e8] sm:$0xff]  }
  0x28   : >> { %1633 = vmatpush3.bf16.msra.mxu1 %v1812_v12  ;;  %1614 = vmatprep.subr.bf16.mxu0 %v1889_v1  ;;  %v1861_v12 = vld [vmem:[%s2265_s1 + $0x1b0] sm:$0xff]  }
  0x29   : >> { %1634 = vmatprep.subr.bf16.mxu1 %v1889_v1 }
  0x2b   : >> { %1615 = vmatpush3.bf16.msra.mxu0 %v1813_v13  ;;  %v1862_v13 = vld [vmem:[%s2265_s1 + $0x1f0] sm:$0xff]  }
  0x2c   : >> { %1635 = vmatpush3.bf16.msra.mxu1 %v1814_v14  ;;  %1616 = vmatprep.subr.bf16.mxu0 %v1889_v1  ;;  %v1863_v14 = vld [vmem:[%s2265_s1 + $0x1b8] sm:$0xff]  }
  0x2d   : >> { %1636 = vmatprep.subr.bf16.mxu1 %v1889_v1 }
  0x2f   : >> { %1617 = vmatpush3.bf16.msra.mxu0 %v1815_v15  ;;  %v1864_v15 = vld [vmem:[%s2265_s1 + $0x1f8] sm:$0xff]  }
  0x30   : >> { %1637 = vmatpush3.bf16.msra.mxu1 %v1816_v16  ;;  %1642 = vmatprep.subr.bf16.mxu0 %v1889_v1  ;;  %v1441_v16 = vld [vmem:[%s1996_s30 + $0x2] sm:$0x1] }
  0x31   : >> { %1662 = vmatprep.subr.bf16.mxu1 %v1889_v1 }
  0x32   : >> { %1619 = vmatmul.mubr.bf16.vlgmr.msra.gmra.mrb[0].mxu0 %v1304_v17  ;;  %v1865_v17 = vld [vmem:[%s2265_s1 + $0x200] sm:$0xff]  }
  0x33   : >> { %1639 = vmatmul.mubr.bf16.vlgmr.msra.gmra.mrb[0].mxu1 %v183_v18  ;;  %1643 = vmatpush3.bf16.msra.mxu0 %v1817_v19  ;;  %v1467_v18 = vld [vmem:[%s1996_s30 + $0x8] sm:$0x1] }
  0x34   : >> { %1663 = vmatpush3.bf16.msra.mxu1 %v1818_v20  ;;  %1644 = vmatprep.subr.bf16.mxu0 %v1889_v1  ;;  %v1866_v19 = vld [vmem:[%s2265_s1 + $0x208] sm:$0xff]   ;;  %v1867_v20 = vld [vmem:[%s2265_s1 + $0x210] sm:$0xff]  }
  0x35   : >> { %1664 = vmatprep.subr.bf16.mxu1 %v1889_v1  ;;  %1658 = vmatprep.mubr.msk.bf16.mxu0 %vm1890_vm0, %v1889_v1 }
  0x36   : >> { %1678 = vmatprep.mubr.msk.bf16.mxu1 %vm1890_vm0, %v1889_v1 }
  0x37   : >> { %1645 = vmatpush3.bf16.msra.mxu0 %v1819_v21  ;;  %v1868_v21 = vld [vmem:[%s2265_s1 + $0x218] sm:$0xff]  }
  0x38   : >> { %1665 = vmatpush3.bf16.msra.mxu1 %v1820_v22  ;;  %1646 = vmatprep.subr.bf16.mxu0 %v1889_v1  ;;  %v1869_v22 = vld [vmem:[%s2265_s1 + $0x220] sm:$0xff]  }
  0x39   : >> { %1666 = vmatprep.subr.bf16.mxu1 %v1889_v1 }
  0x3b   : >> { %1647 = vmatpush3.bf16.msra.mxu0 %v1821_v23  ;;  %v1870_v23 = vld [vmem:[%s2265_s1 + $0x228] sm:$0xff]  }
  0x3c   : >> { %1667 = vmatpush3.bf16.msra.mxu1 %v1822_v24  ;;  %1648 = vmatprep.subr.bf16.mxu0 %v1889_v1  ;;  %v1509_v24 = vld.sshfl [vmem:[%s1996_s30 + $0x2] sm:$0x3 pattern:$0x76325410] }
  0x3d   : >> { %1668 = vmatprep.subr.bf16.mxu1 %v1889_v1 }
  0x3f   : >> { %1649 = vmatpush3.bf16.msra.mxu0 %v1823_v25  ;;  %v1112_v25 = vshll.u32 %v1509_v24, 16 }
  0x40   : >> { %1669 = vmatpush3.bf16.msra.mxu1 %v1824_v26  ;;  %1650 = vmatprep.subr.bf16.mxu0 %v1889_v1  ;;  %v1871_v26 = vld [vmem:[%s2265_s1 + $0x230] sm:$0xff]  }
  0x41   : >> { %1670 = vmatprep.subr.bf16.mxu1 %v1889_v1 }
  0x43   : >> { %1651 = vmatpush3.bf16.msra.mxu0 %v1825_v27  ;;  %v1110_v27 = vshrl.u32 %v1509_v24, 16 }
  0x44   : >> { %1671 = vmatpush3.bf16.msra.mxu1 %v1826_v28  ;;  %1652 = vmatprep.subr.bf16.mxu0 %v1889_v1  ;;  %v1114_v28 = vrot.slane %v1112_v25, 1 }
  0x45   : >> { %1672 = vmatprep.subr.bf16.mxu1 %v1889_v1 }
  0x47   : >> { %1653 = vmatpush3.bf16.msra.mxu0 %v1827_v30  ;;  %v1115_v30 = vor.u32 %v1114_v28, %v1110_v27 }
  0x48   : >> { %1673 = vmatpush3.bf16.msra.mxu1 %v1828_v31  ;;  %1654 = vmatprep.subr.bf16.mxu0 %v1889_v1 }
  0x49   : >> { %1674 = vmatprep.subr.bf16.mxu1 %v1889_v1 }
  0x4b   : >> { %1655 = vmatpush3.bf16.msra.mxu0 %v1829_v33 }
  0x4c   : >> { %1675 = vmatpush3.bf16.msra.mxu1 %v1830_v34  ;;  %1656 = vmatprep.subr.bf16.mxu0 %v1889_v1 }
  0x4d   : >> { %1676 = vmatprep.subr.bf16.mxu1 %v1889_v1 }
  0x4f   : >> { %1657 = vmatpush3.bf16.msra.mxu0 %v1831_v37 }
  0x50   : >> { %1677 = vmatpush3.bf16.msra.mxu1 %v1832_v38  ;;  %1682 = vmatprep.subr.bf16.mxu0 %v1889_v1 }
  0x51   : >> { %1702 = vmatprep.subr.bf16.mxu1 %v1889_v1 }
  0x52   : >> { %1659 = vmatmul.mubr.bf16.vlgmr.msra.gmra.mrb[4].mxu0 %v429_v39 }
  0x53   : >> { %1683 = vmatpush3.bf16.msra.mxu0 %v1833_v40  ;;  %1679 = vmatmul.mubr.bf16.vlgmr.msra.gmra.mrb[4].mxu1 %v1363_v41 }
  0x54   : >> { %1703 = vmatpush3.bf16.msra.mxu1 %v1834_v42  ;;  %1684 = vmatprep.subr.bf16.mxu0 %v1889_v1 }
  0x55   : >> { %1704 = vmatprep.subr.bf16.mxu1 %v1889_v1  ;;  %1698 = vmatprep.mubr.msk.bf16.mxu0 %vm1890_vm0, %v1889_v1 }
  0x56   : >> { %1718 = vmatprep.mubr.msk.bf16.mxu1 %vm1890_vm0, %v1889_v1 }
  0x57   : >> { %1685 = vmatpush3.bf16.msra.mxu0 %v1835_v43 }
  0x58   : >> { %1705 = vmatpush3.bf16.msra.mxu1 %v1836_v44  ;;  %1686 = vmatprep.subr.bf16.mxu0 %v1889_v1 }
  0x59   : >> { %1706 = vmatprep.subr.bf16.mxu1 %v1889_v1 }
  0x5b   : >> { %1687 = vmatpush3.bf16.msra.mxu0 %v1837_v45 }
  0x5c   : >> { %1707 = vmatpush3.bf16.msra.mxu1 %v1838_v46  ;;  %1688 = vmatprep.subr.bf16.mxu0 %v1889_v1 }
  0x5d   : >> { %1708 = vmatprep.subr.bf16.mxu1 %v1889_v1 }
  0x5f   : >> { %1689 = vmatpush3.bf16.msra.mxu0 %v1839_v47 }
  0x60   : >> { %1709 = vmatpush3.bf16.msra.mxu1 %v1840_v48  ;;  %1690 = vmatprep.subr.bf16.mxu0 %v1889_v1 }
  0x61   : >> { %1710 = vmatprep.subr.bf16.mxu1 %v1889_v1 }
  0x63   : >> { %1691 = vmatpush3.bf16.msra.mxu0 %v1841_v49 }
  0x64   : >> { %1711 = vmatpush3.bf16.msra.mxu1 %v1842_v50  ;;  %1692 = vmatprep.subr.bf16.mxu0 %v1889_v1 }
  0x65   : >> { %1712 = vmatprep.subr.bf16.mxu1 %v1889_v1 }
  0x67   : >> { %1693 = vmatpush3.bf16.msra.mxu0 %v1843_v51 }
  0x68   : >> { %1713 = vmatpush3.bf16.msra.mxu1 %v1844_v52  ;;  %1694 = vmatprep.subr.bf16.mxu0 %v1889_v1 }
  0x69   : >> { %1714 = vmatprep.subr.bf16.mxu1 %v1889_v1 }
  0x6b   : >> { %1695 = vmatpush3.bf16.msra.mxu0 %v1845_v54 }
  0x6c   : >> { %1715 = vmatpush3.bf16.msra.mxu1 %v1846_v56  ;;  %1696 = vmatprep.subr.bf16.mxu0 %v1889_v1 }
  0x6d   : >> { %1716 = vmatprep.subr.bf16.mxu1 %v1889_v1 }
  0x6f   : >> { %1697 = vmatpush3.bf16.msra.mxu0 %v1847_v57 }
  0x70   : >> { %1717 = vmatpush3.bf16.msra.mxu1 %v1848_v60  ;;  %1722 = vmatprep.subr.bf16.mxu0 %v1889_v1 }
  0x71   : >> { %1742 = vmatprep.subr.bf16.mxu1 %v1889_v1 }
  0x72   : >> { %1699 = vmatmul.mubr.bf16.vlgmr.msra.gmra.mrb[8].mxu0 %v1389_v61 }
  0x73   : >> { %1723 = vmatpush3.bf16.msra.mxu0 %v1849_v62  ;;  %1719 = vmatmul.mubr.bf16.vlgmr.msra.gmra.mrb[8].mxu1 %v772_v63 }
  0x74   : >> { %1743 = vmatpush3.bf16.msra.mxu1 %v1850_v0  ;;  %1724 = vmatprep.subr.bf16.mxu0 %v1889_v1 }
  0x75   : >> { %1744 = vmatprep.subr.bf16.mxu1 %v1889_v1  ;;  %1738 = vmatprep.mubr.msk.bf16.mxu0 %vm1890_vm0, %v1889_v1 }
  0x76   : >> { %1758 = vmatprep.mubr.msk.bf16.mxu1 %vm1890_vm0, %v1889_v1 }
  0x77   : >> { %1725 = vmatpush3.bf16.msra.mxu0 %v1851_v2 }
  0x78   : >> { %1745 = vmatpush3.bf16.msra.mxu1 %v1852_v3  ;;  %1726 = vmatprep.subr.bf16.mxu0 %v1889_v1 }
  0x79   : >> { %1746 = vmatprep.subr.bf16.mxu1 %v1889_v1 }
  0x7b   : >> { %1727 = vmatpush3.bf16.msra.mxu0 %v1853_v4 }
  0x7c   : >> { %1747 = vmatpush3.bf16.msra.mxu1 %v1854_v5  ;;  %1728 = vmatprep.subr.bf16.mxu0 %v1889_v1 }
  0x7d   : >> { %1748 = vmatprep.subr.bf16.mxu1 %v1889_v1 }
  0x7f   : >> { %1729 = vmatpush3.bf16.msra.mxu0 %v1855_v6 }
  0x80   : >> { %1749 = vmatpush3.bf16.msra.mxu1 %v1856_v7  ;;  %1730 = vmatprep.subr.bf16.mxu0 %v1889_v1  ;;  %v1518_v7 = vld [vmem:[%s2266_s2] ss:$0 sm:$0xff] }
  0x81   : >> { %1750 = vmatprep.subr.bf16.mxu1 %v1889_v1 }
  0x83   : >> { %1731 = vmatpush3.bf16.msra.mxu0 %v1857_v8 }
  0x84   : >> { %1751 = vmatpush3.bf16.msra.mxu1 %v1858_v9  ;;  %1732 = vmatprep.subr.bf16.mxu0 %v1889_v1 }
  0x85   : >> { %1752 = vmatprep.subr.bf16.mxu1 %v1889_v1 }
  0x87   : >> { %1733 = vmatpush3.bf16.msra.mxu0 %v1859_v10 }
  0x88   : >> { %1753 = vmatpush3.bf16.msra.mxu1 %v1860_v11  ;;  %1734 = vmatprep.subr.bf16.mxu0 %v1889_v1 }
  0x89   : >> { %1754 = vmatprep.subr.bf16.mxu1 %v1889_v1 }
  0x8b   : >> { %1735 = vmatpush3.bf16.msra.mxu0 %v1861_v12 }
  0x8c   : >> { %1755 = vmatpush3.bf16.msra.mxu1 %v1862_v13  ;;  %1736 = vmatprep.subr.bf16.mxu0 %v1889_v1 }
  0x8d   : >> { %1756 = vmatprep.subr.bf16.mxu1 %v1889_v1 }
  0x8f   : >> { %1737 = vmatpush3.bf16.msra.mxu0 %v1863_v14 }
  0x90   : >> { %1757 = vmatpush3.bf16.msra.mxu1 %v1864_v15  ;;  %1762 = vmatprep.subr.bf16.mxu0 %v1889_v1 }
  0x92   : >> { %1739 = vmatmul.mubr.bf16.vlgmr.msra.gmra.mrb[12].mxu0 %v1441_v16 }
  0x93   : >> { %1763 = vmatpush3.bf16.msra.mxu0 %v1865_v17  ;;  %1759 = vmatmul.mubr.bf16.vlgmr.msra.gmra.mrb[12].mxu1 %v1467_v18 }
  0x94   : >> { %1764 = vmatprep.subr.bf16.mxu0 %v1889_v1  ;;  %1778 = vmatprep.mubr.msk.bf16.mxu0 %vm1890_vm0, %v1889_v1 }
  0x97   : >> { %1765 = vmatpush3.bf16.msra.mxu0 %v1866_v19 }
  0x98   : >> { %1766 = vmatprep.subr.bf16.mxu0 %v1889_v1 }
  0x9b   : >> { %1767 = vmatpush3.bf16.msra.mxu0 %v1867_v20 }
  0x9c   : >> { %1768 = vmatprep.subr.bf16.mxu0 %v1889_v1 }
  0x9f   : >> { %1769 = vmatpush3.bf16.msra.mxu0 %v1868_v21 }
  0xa0   : >> { %1770 = vmatprep.subr.bf16.mxu0 %v1889_v1 }
  0xa3   : >> { %1771 = vmatpush3.bf16.msra.mxu0 %v1869_v22 }
  0xa4   : >> { %1772 = vmatprep.subr.bf16.mxu0 %v1889_v1 }
  0xa7   : >> { %1773 = vmatpush3.bf16.msra.mxu0 %v1870_v23 }
  0xa8   : >> { %1774 = vmatprep.subr.bf16.mxu0 %v1889_v1 }
  0xab   : >> { %1775 = vmatpush3.bf16.msra.mxu0 %v1871_v26 }
  0xac   : >> { %1776 = vmatprep.subr.bf16.mxu0 %v1889_v1 }
  0xaf   : >> { %1777 = vmatpush3.bf16.msra.mxu0 %v1872_v29 }
  0xb2   : >> { %1779 = vmatmul.mubr.bf16.vlgmr.msra.gmra.mrb[16].mxu0 %v1115_v30 }
 0x105   : >> { %v303_v31 = vpop.f32.mrb[0].mxu0 }
 0x106   : >> { %v1620_v32 = vpop.f32.mrb[1].mxu0  ;;  %v391_v33 = vpop.f32.mrb[0].mxu1 }
 0x107   : >> { %v392_v34 = vadd.f32 %v391_v33, %v303_v31  ;;  %v306_v35 = vpop.f32.mrb[2].mxu0  ;;  %v1640_v36 = vpop.f32.mrb[1].mxu1 }
 0x108   : >> { %v1621_v37 = vpop.f32.mrb[3].mxu0  ;;  %v394_v38 = vpop.f32.mrb[2].mxu1 }
 0x109   : >> { %v1641_v39 = vpop.f32.mrb[3].mxu1 }
 0x125   : >> { %v513_v40 = vpop.f32.mrb[4].mxu0 }
 0x126   : >> { %v519_v41 = vadd.f32 %v513_v40, %v392_v34  ;;  %v1660_v42 = vpop.f32.mrb[5].mxu0  ;;  %v623_v43 = vpop.f32.mrb[4].mxu1 }
 0x127   : >> { %v516_v44 = vpop.f32.mrb[6].mxu0  ;;  %v1680_v45 = vpop.f32.mrb[5].mxu1 }
 0x128   : >> { %v629_v46 = vadd.f32 %v623_v43, %v519_v41  ;;  %v1661_v1 = vpop.f32.mrb[7].mxu0  ;;  %v626_v47 = vpop.f32.mrb[6].mxu1 }
 0x129   : >> { %v1681_v48 = vpop.f32.mrb[7].mxu1 }
 0x145   : >> { %v733_v49 = vpop.f32.mrb[8].mxu0 }
 0x146   : >> { %v739_v50 = vadd.f32 %v733_v49, %v629_v46  ;;  %v1700_v51 = vpop.f32.mrb[9].mxu0  ;;  %v856_v52 = vpop.f32.mrb[8].mxu1 }
 0x147   : >> { %v736_v53 = vpop.f32.mrb[10].mxu0  ;;  %v1720_v54 = vpop.f32.mrb[9].mxu1 }
 0x148   : >> { %v862_v55 = vadd.f32 %v856_v52, %v739_v50  ;;  %v1701_v56 = vpop.f32.mrb[11].mxu0  ;;  %v859_v57 = vpop.f32.mrb[10].mxu1 }
 0x149   : >> { %v1721_v58 = vpop.f32.mrb[11].mxu1 }
 0x165   : >> { %v966_v59 = vpop.f32.mrb[12].mxu0 }
 0x166   : >> { %v972_v60 = vadd.f32 %v966_v59, %v862_v55  ;;  %v1740_v61 = vpop.f32.mrb[13].mxu0  ;;  %v1076_v62 = vpop.f32.mrb[12].mxu1 }
 0x167   : >> { %v969_v63 = vpop.f32.mrb[14].mxu0  ;;  %v1760_v0 = vpop.f32.mrb[13].mxu1 }
 0x168   : >> { %v1082_v2 = vadd.f32 %v1076_v62, %v972_v60  ;;  %v1741_v3 = vpop.f32.mrb[15].mxu0  ;;  %v1079_v4 = vpop.f32.mrb[14].mxu1 }
 0x169   : >> { %v1761_v5 = vpop.f32.mrb[15].mxu1 }
 0x185   : >> { %v1199_v6 = vpop.f32.mrb[16].mxu0 }
 0x186   : >> { %v1205_v8 = vadd.f32 %v1199_v6, %v1082_v2  ;;  %v1780_v9 = vpop.f32.mrb[17].mxu0 }
 0x187   : >> { %v1202_v10 = vpop.f32.mrb[18].mxu0 }
 0x188   : >> { %v1213_v11 = vadd.f32 %v1518_v7, %v1205_v8  ;;  %v1781_v12 = vpop.f32.mrb[19].mxu0  ;;  %179 = sbr.rel (!%p177_p5) target bundleno = 17 (0x11), region = 84 }
 0x18a   : >> { %v1214_v13 = vmax.f32 %v1213_v11, 0.0 }
 0x18c   : >> { %v1215_v14 = vpack.c.bf16 %v1214_v13, %v1214_v13 }
 0x18e   : >> { %1217 = vst [vmem:[%s1216_s11] sm:$0x1] %v1215_v14 }
 0x18f PF: > { %s13_s12 = sadd.s32 1, %s1883_s12  }
 0x190   : > { %p10_p6 = scmp.ge.s32.totalorder %s13_s12, 4  }
 0x192   :  { %12 = sbr.rel (!%p10_p6) target bundleno = 1 (0x1), region = 95 }

// kernel: _lambda_.24
= control target key start
LH: loop header
LB: loop body
LE: loop exit
PB: predicated region body
PF: predicated region fallthrough
CT: control target
= control target key end

     0   :  { %s417_s12 = smov 0   ;;  %s466_s0 = inlined_call_operand.vmem [shape: bf16[8,1,1,128], index: 0, kind: input, shape index: {}]   ;;  %s467_s1 = inlined_call_operand.vmem [shape: bf16[1,128,128], index: 1, kind: input, shape index: {}]   ;;  %s468_s2 = inlined_call_operand.vmem [shape: f32[1,128], index: 2, kind: input, shape index: {}]   ;;  %s469_s3 = inlined_call_operand.vmem [shape: bf16[2,1,1,128], index: 3, kind: output, shape index: {}]  }
   0x1 LB: > { %s423_s13 = sadd.s32 4294967295, %s393_s12   ;;  %p328_p0 = scmp.ge.s32.totalorder %s393_s12, 1  ;;  %s393_s12 = sphi %s417_s12, %s13_s12  }
   0x2   : > { %p137_p1 = scmp.lt.s32.totalorder %s393_s12, 3 }
   0x4   : > { %p138_p2 = pnand %p328_p0, %p137_p1 }
   0x5   : > { %v379_v0 = vld [vmem:[%s467_s1] sm:$0xff] (!%p138_p2)   ;;  %v395_v1 = vmov (!%p138_p2), 0.0   ;;  %v380_v2 = vld [vmem:[%s467_s1 + $0x8] sm:$0xff] (!%p138_p2)   ;;  %vm396_vm0 = vmmov (!%p138_p2), 0   ;;  %v381_v3 = vld [vmem:[%s467_s1 + $0x10] sm:$0xff] (!%p138_p2)   ;;  %s329_s24 = sshll.u32 (!%p138_p2), %s423_s13, 2 }
   0x6   : > { %141 = sbr.rel (%p138_p2) target bundleno = 256 (0x100), region = 32  ;;  %349 = vmatprep.subr.bf16.mxu0 (!%p138_p2), %v395_v1  ;;  %365 = vmatprep.mubr.msk.bf16.mxu0 (!%p138_p2), %vm396_vm0, %v395_v1  ;;  %v382_v4 = vld [vmem:[%s467_s1 + $0x18] sm:$0xff] (!%p138_p2)   ;;  %v383_v5 = vld [vmem:[%s467_s1 + $0x20] sm:$0xff] (!%p138_p2)   ;;  %v384_v6 = vld [vmem:[%s467_s1 + $0x28] sm:$0xff] (!%p138_p2)   ;;  %p159_p3 = scmp.lt.s32.totalorder (!%p138_p2), %s329_s24, 7  ;;  %vm274_vm1 = vcmask (!%p138_p2), 1040384  }
   0x7   : > { %350 = vmatpush3.bf16.msra.mxu0 (!%p138_p2), %v379_v0  ;;  %v385_v7 = vld [vmem:[%s467_s1 + $0x30] sm:$0xff] (!%p138_p2)   ;;  %v386_v8 = vld [vmem:[%s467_s1 + $0x38] sm:$0xff] (!%p138_p2)   ;;  %p163_p4 = scmp.lt.s32.totalorder (!%p138_p2), %s423_s13, 1  ;;  %v184_v10 = vld [vmem:[%s468_s2] sm:$0x1] (!%p138_p2) }
   0x8   : > { %351 = vmatprep.subr.bf16.mxu0 (!%p138_p2), %v395_v1  ;;  %vm275_vm2 = vsmask.f32 (!%p138_p2), 256 }
   0x9   : > { %vm276_vm3 = vmand (!%p138_p2), %vm274_vm1, %vm275_vm2 }
   0xb   : > { %352 = vmatpush3.bf16.msra.mxu0 (!%p138_p2), %v380_v2 }
   0xc   : > { %353 = vmatprep.subr.bf16.mxu0 (!%p138_p2), %v395_v1 }
   0xd   : > { %s471_s24 = smov (!%p159_p3, %s329_s24), 7  ;;  %s473_s13 = smov (!%p163_p4, %s423_s13), 1 }
   0xe   : > { %s161_s6 = scalar_lea.vmem %s466_s0, %s471_s24  ;;  %s165_s11 = scalar_lea.vmem %s469_s3, %s473_s13 }
   0xf   : > { %354 = vmatpush3.bf16.msra.mxu0 %v381_v3  ;;  %v167_v9 = vld [vmem:[%s161_s6] sm:$0x1] }
  0x10   : > { %355 = vmatprep.subr.bf16.mxu0 %v395_v1  ;;  %v277_v14 = vld [vmem:[%s165_s11] sm:$0x1] }
  0x13   : > { %356 = vmatpush3.bf16.msra.mxu0 %v382_v4 }
  0x14   : > { %357 = vmatprep.subr.bf16.mxu0 %v395_v1 }
  0x17   : > { %358 = vmatpush3.bf16.msra.mxu0 %v383_v5 }
  0x18   : > { %359 = vmatprep.subr.bf16.mxu0 %v395_v1 }
  0x1b   : > { %360 = vmatpush3.bf16.msra.mxu0 %v384_v6 }
  0x1c   : > { %361 = vmatprep.subr.bf16.mxu0 %v395_v1 }
  0x1f   : > { %362 = vmatpush3.bf16.msra.mxu0 %v385_v7 }
  0x20   : > { %363 = vmatprep.subr.bf16.mxu0 %v395_v1 }
  0x23   : > { %364 = vmatpush3.bf16.msra.mxu0 %v386_v8 }
  0x26   : > { %366 = vmatmul.mubr.bf16.vlgmr.msra.gmra.mrb[0].mxu0 %v167_v9 }
  0xf9   : > { %v267_v11 = vpop.f32.mrb[0].mxu0 }
  0xfa   : > { %v268_v12 = vadd.f32 %v267_v11, %v184_v10  ;;  %v367_v13 = vpop.f32.mrb[1].mxu0 }
  0xfb   : > { %v270_v15 = vpop.f32.mrb[2].mxu0 }
  0xfc   : > { %v273_v16 = vpack.c.bf16 %v268_v12, %v268_v12  ;;  %v368_v17 = vpop.f32.mrb[3].mxu0 }
  0xfe   : > { %v278_v18 = vsel %vm276_vm3, %v273_v16, %v277_v14 }
  0xff   : > { %279 = vst [vmem:[%s165_s11] sm:$0x1] %v278_v18 }
 0x100 PF: > { %s13_s12 = sadd.s32 1, %s393_s12  }
 0x101   : > { %p10_p5 = scmp.ge.s32.totalorder %s13_s12, 4  }
 0x103   :  { %12 = sbr.rel (!%p10_p5) target bundleno = 1 (0x1), region = 62 }

// kernel: _lambda_.23
= control target key start
LH: loop header
LB: loop body
LE: loop exit
PB: predicated region body
PF: predicated region fallthrough
CT: control target
= control target key end

     0   :  { %s1984_s15 = smov 0   ;;  %s2344_s0 = inlined_call_operand.vmem [shape: bf16[2,4,4,128], index: 0, kind: input, shape index: {}]   ;;  %s2345_s1 = inlined_call_operand.vmem [shape: bf16[9,128,128], index: 1, kind: input, shape index: {}]   ;;  %s2346_s2 = inlined_call_operand.vmem [shape: f32[1,128], index: 2, kind: input, shape index: {}]   ;;  %s2347_s3 = inlined_call_operand.vmem [shape: bf16[2,2,2,128], index: 3, kind: input, shape index: {}]   ;;  %s2348_s4 = inlined_call_operand.vmem [shape: bf16[2,2,2,128], index: 4, kind: output, shape index: {}]  }
   0x1 LB: > { %s1362_s16 = sadd.s32 4294967295, %s1951_s15   ;;  %p1366_p0 = scmp.ge.s32.totalorder %s1951_s15, 1  ;;  %s1951_s15 = sphi %s1984_s15, %s14_s15  }
   0x2   : > { %p171_p1 = scmp.lt.s32.totalorder %s1951_s15, 3 }
   0x4   : > { %p172_p2 = pnand %p1366_p0, %p171_p1 }
   0x5   : > { %p200_p3 = scmp.lt.s32.totalorder (!%p172_p2), %s1362_s16, 1  ;;  %s2007_s28 = smov (!%p172_p2), 0  }
   0x6   : > { %175 = sbr.rel (%p172_p2) target bundleno = 401 (0x191), region = 36 }
   0xd   : > { %s2350_s16 = smov (!%p200_p3, %s1362_s16), 1 }
   0xe   : > { %s1589_s17 = sshll.u32 %s2350_s16, 3  ;;  %s1369_s18 = sshll.u32 %s2350_s16, 1 }
   0xf   : > { %s1995_s21 = scalar_lea.vmem %s2344_s0, %s1589_s17  ;;  %s2000_s24 = scalar_lea.vmem %s2347_s3, %s1369_s18 }
  0x10   : > { %s2005_s27 = scalar_lea.vmem %s2348_s4, %s1369_s18 }
  0x11 LB: >> { %v1869_v0 = vld [vmem:[%s2345_s1 + $0x40] sm:$0xff]   ;;  %v1957_v1 = vmov 0.0   ;;  %v1871_v3 = vld [vmem:[%s2345_s1 + $0x48] sm:$0xff]   ;;  %vm1958_vm0 = vmmov 0   ;;  %v1873_v5 = vld [vmem:[%s2345_s1 + $0x50] sm:$0xff]   ;;  %s1371_s18 = sshll.u32 %s1955_s28, 1  ;;  %s1280_s10 = scalar_lea.vmem %s2005_s27, %s1955_s28  ;;  %s1955_s28 = sphi %s2007_s28, %s219_s28  }
  0x12   : >> { %1671 = vmatprep.subr.bf16.mxu0 %v1957_v1  ;;  %1691 = vmatprep.subr.bf16.mxu1 %v1957_v1  ;;  %v1870_v2 = vld [vmem:[%s2345_s1] sm:$0xff]   ;;  %v1872_v4 = vld [vmem:[%s2345_s1 + $0x8] sm:$0xff]   ;;  %v1874_v6 = vld [vmem:[%s2345_s1 + $0x10] sm:$0xff]   ;;  %s2050_s22 = scalar_lea.vmem %s1995_s21, %s1371_s18 }
  0x13   : >> { %1672 = vmatpush3.bf16.msra.mxu0 %v1869_v0  ;;  %1687 = vmatprep.mubr.msk.bf16.mxu0 %vm1958_vm0, %v1957_v1  ;;  %v1875_v7 = vld [vmem:[%s2345_s1 + $0x58] sm:$0xff]   ;;  %v1877_v9 = vld [vmem:[%s2345_s1 + $0x60] sm:$0xff]   ;;  %v1879_v12 = vld [vmem:[%s2345_s1 + $0x68] sm:$0xff]  }
  0x14   : >> { %1692 = vmatpush3.bf16.msra.mxu1 %v1870_v2  ;;  %1673 = vmatprep.subr.bf16.mxu0 %v1957_v1  ;;  %v1876_v8 = vld [vmem:[%s2345_s1 + $0x18] sm:$0xff]   ;;  %v1878_v10 = vld [vmem:[%s2345_s1 + $0x20] sm:$0xff]   ;;  %v1880_v13 = vld [vmem:[%s2345_s1 + $0x28] sm:$0xff]  }
  0x15   : >> { %1693 = vmatprep.subr.bf16.mxu1 %v1957_v1  ;;  %1707 = vmatprep.mubr.msk.bf16.mxu1 %vm1958_vm0, %v1957_v1  ;;  %v1388_v11 = vld.sshfl [vmem:[%s2050_s22] sm:$0x3 pattern:$0x76325410]  ;;  %v1881_v15 = vld [vmem:[%s2345_s1 + $0x70] sm:$0xff]   ;;  %v1883_v19 = vld [vmem:[%s2345_s1 + $0x78] sm:$0xff]  }
  0x16   : >> { %v268_v14 = vshll.u32 %v1388_v11, 16  ;;  %v1882_v16 = vld [vmem:[%s2345_s1 + $0x30] sm:$0xff]   ;;  %v266_v17 = vshrl.u32 %v1388_v11, 16  ;;  %v1884_v20 = vld [vmem:[%s2345_s1 + $0x38] sm:$0xff]   ;;  %v222_v22 = vld [vmem:[%s2050_s22] sm:$0x1] }
  0x17   : >> { %1674 = vmatpush3.bf16.msra.mxu0 %v1871_v3  ;;  %v1885_v23 = vld [vmem:[%s2345_s1 + $0x80] sm:$0xff]   ;;  %v1887_v25 = vld [vmem:[%s2345_s1 + $0x88] sm:$0xff]   ;;  %v1889_v27 = vld [vmem:[%s2345_s1 + $0x90] sm:$0xff]  }
  0x18   : >> { %1694 = vmatpush3.bf16.msra.mxu1 %v1872_v4  ;;  %1675 = vmatprep.subr.bf16.mxu0 %v1957_v1  ;;  %v270_v18 = vrot.slane %v268_v14, 1  ;;  %v1886_v24 = vld [vmem:[%s2345_s1 + $0xc0] sm:$0xff]   ;;  %v1888_v26 = vld [vmem:[%s2345_s1 + $0xc8] sm:$0xff]   ;;  %v1890_v28 = vld [vmem:[%s2345_s1 + $0xd0] sm:$0xff]  }
  0x19   : >> { %1695 = vmatprep.subr.bf16.mxu1 %v1957_v1  ;;  %v1891_v29 = vld [vmem:[%s2345_s1 + $0x98] sm:$0xff]   ;;  %v1893_v31 = vld [vmem:[%s2345_s1 + $0xa0] sm:$0xff]   ;;  %v1895_v33 = vld [vmem:[%s2345_s1 + $0xa8] sm:$0xff]  }
  0x1a   : >> { %v271_v21 = vor.u32 %v270_v18, %v266_v17  ;;  %v1892_v30 = vld [vmem:[%s2345_s1 + $0xd8] sm:$0xff]   ;;  %v1894_v32 = vld [vmem:[%s2345_s1 + $0xe0] sm:$0xff]   ;;  %v1896_v34 = vld [vmem:[%s2345_s1 + $0xe8] sm:$0xff]  }
  0x1b   : >> { %1676 = vmatpush3.bf16.msra.mxu0 %v1873_v5  ;;  %v1897_v35 = vld [vmem:[%s2345_s1 + $0xb0] sm:$0xff]   ;;  %v1421_v37 = vld.sshfl [vmem:[%s2050_s22] sm:$0x2 pattern:$0x76325410]  ;;  %v1899_v38 = vld [vmem:[%s2345_s1 + $0xb8] sm:$0xff]  }
  0x1c   : >> { %1696 = vmatpush3.bf16.msra.mxu1 %v1874_v6  ;;  %1677 = vmatprep.subr.bf16.mxu0 %v1957_v1  ;;  %v1898_v36 = vld [vmem:[%s2345_s1 + $0xf0] sm:$0xff]   ;;  %v1900_v39 = vld [vmem:[%s2345_s1 + $0xf8] sm:$0xff]   ;;  %v475_v40 = vrot.slane %v1421_v37, 1  ;;  %v1901_v41 = vld [vmem:[%s2345_s1 + $0x100] sm:$0xff]  }
  0x1d   : >> { %1697 = vmatprep.subr.bf16.mxu1 %v1957_v1  ;;  %v1902_v42 = vld [vmem:[%s2345_s1 + $0x140] sm:$0xff]   ;;  %v1903_v44 = vld [vmem:[%s2345_s1 + $0x108] sm:$0xff]   ;;  %v1905_v46 = vld [vmem:[%s2345_s1 + $0x110] sm:$0xff]  }
  0x1e   : >> { %v1431_v43 = vld [vmem:[%s2050_s22 + $0x2] sm:$0x1]  ;;  %v1904_v45 = vld [vmem:[%s2345_s1 + $0x148] sm:$0xff]   ;;  %v1906_v47 = vld [vmem:[%s2345_s1 + $0x150] sm:$0xff]  }
  0x1f   : >> { %1678 = vmatpush3.bf16.msra.mxu0 %v1875_v7  ;;  %v1907_v48 = vld [vmem:[%s2345_s1 + $0x118] sm:$0xff]   ;;  %v1909_v50 = vld [vmem:[%s2345_s1 + $0x120] sm:$0xff]   ;;  %v1911_v52 = vld [vmem:[%s2345_s1 + $0x128] sm:$0xff]  }
  0x20   : >> { %1698 = vmatpush3.bf16.msra.mxu1 %v1876_v8  ;;  %1679 = vmatprep.subr.bf16.mxu0 %v1957_v1  ;;  %v1908_v49 = vld [vmem:[%s2345_s1 + $0x158] sm:$0xff]   ;;  %v1910_v51 = vld [vmem:[%s2345_s1 + $0x160] sm:$0xff]   ;;  %v1912_v54 = vld [vmem:[%s2345_s1 + $0x168] sm:$0xff]  }
  0x21   : >> { %1699 = vmatprep.subr.bf16.mxu1 %v1957_v1  ;;  %v1473_v53 = vld.sshfl [vmem:[%s2050_s22 + $0x2] sm:$0x3 pattern:$0x76325410]  ;;  %v1913_v56 = vld [vmem:[%s2345_s1 + $0x130] sm:$0xff]   ;;  %v1915_v60 = vld [vmem:[%s2345_s1 + $0x138] sm:$0xff]  }
  0x22   : >> { %v705_v55 = vshll.u32 %v1473_v53, 16  ;;  %v1914_v57 = vld [vmem:[%s2345_s1 + $0x170] sm:$0xff]   ;;  %v703_v58 = vshrl.u32 %v1473_v53, 16  ;;  %v1916_v61 = vld [vmem:[%s2345_s1 + $0x178] sm:$0xff]   ;;  %v1917_v0 = vld [vmem:[%s2345_s1 + $0x180] sm:$0xff]  }
  0x23   : >> { %1680 = vmatpush3.bf16.msra.mxu0 %v1877_v9  ;;  %v1499_v62 = vld.sshfl [vmem:[%s2050_s22 + $0x2] sm:$0x2 pattern:$0x76325410]  ;;  %v1919_v4 = vld [vmem:[%s2345_s1 + $0x188] sm:$0xff]   ;;  %v1921_v6 = vld [vmem:[%s2345_s1 + $0x190] sm:$0xff]  }
  0x24   : >> { %1700 = vmatpush3.bf16.msra.mxu1 %v1878_v10  ;;  %1681 = vmatprep.subr.bf16.mxu0 %v1957_v1  ;;  %v707_v59 = vrot.slane %v705_v55, 1  ;;  %v825_v2 = vrot.slane %v1499_v62, 1  ;;  %v1918_v3 = vld [vmem:[%s2345_s1 + $0x1c0] sm:$0xff]   ;;  %v1920_v5 = vld [vmem:[%s2345_s1 + $0x1c8] sm:$0xff]   ;;  %v1922_v7 = vld [vmem:[%s2345_s1 + $0x1d0] sm:$0xff]  }
  0x25   : >> { %1701 = vmatprep.subr.bf16.mxu1 %v1957_v1  ;;  %v1923_v8 = vld [vmem:[%s2345_s1 + $0x198] sm:$0xff]   ;;  %v1925_v10 = vld [vmem:[%s2345_s1 + $0x1a0] sm:$0xff]   ;;  %v1930_v17 = vld [vmem:[%s2345_s1 + $0x1f0] sm:$0xff]  }
  0x26   : >> { %v708_v63 = vor.u32 %v707_v59, %v703_v58  ;;  %v1924_v9 = vld [vmem:[%s2345_s1 + $0x1d8] sm:$0xff]   ;;  %v1926_v11 = vld [vmem:[%s2345_s1 + $0x1e0] sm:$0xff]  }
  0x27   : >> { %1682 = vmatpush3.bf16.msra.mxu0 %v1879_v12  ;;  %v1927_v12 = vld [vmem:[%s2345_s1 + $0x1a8] sm:$0xff]   ;;  %v1551_v14 = vld.sshfl [vmem:[%s2050_s22 + $0x4] sm:$0x3 pattern:$0x76325410]  ;;  %v1931_v18 = vld [vmem:[%s2345_s1 + $0x1b8] sm:$0xff]  }
  0x28   : >> { %1702 = vmatpush3.bf16.msra.mxu1 %v1880_v13  ;;  %1683 = vmatprep.subr.bf16.mxu0 %v1957_v1  ;;  %v1928_v13 = vld [vmem:[%s2345_s1 + $0x1e8] sm:$0xff]  }
  0x29   : >> { %1703 = vmatprep.subr.bf16.mxu1 %v1957_v1 }
  0x2b   : >> { %1684 = vmatpush3.bf16.msra.mxu0 %v1881_v15  ;;  %v1929_v15 = vld [vmem:[%s2345_s1 + $0x1b0] sm:$0xff]  }
  0x2c   : >> { %1704 = vmatpush3.bf16.msra.mxu1 %v1882_v16  ;;  %1685 = vmatprep.subr.bf16.mxu0 %v1957_v1  ;;  %v1055_v16 = vshll.u32 %v1551_v14, 16 }
  0x2d   : >> { %1705 = vmatprep.subr.bf16.mxu1 %v1957_v1 }
  0x2f   : >> { %1686 = vmatpush3.bf16.msra.mxu0 %v1883_v19  ;;  %v1053_v19 = vshrl.u32 %v1551_v14, 16 }
  0x30   : >> { %1706 = vmatpush3.bf16.msra.mxu1 %v1884_v20  ;;  %1711 = vmatprep.subr.bf16.mxu0 %v1957_v1  ;;  %v1057_v20 = vrot.slane %v1055_v16, 1 }
  0x31   : >> { %1731 = vmatprep.subr.bf16.mxu1 %v1957_v1 }
  0x32   : >> { %1688 = vmatmul.mubr.bf16.vlgmr.msra.gmra.mrb[0].mxu0 %v271_v21  ;;  %v1932_v21 = vld [vmem:[%s2345_s1 + $0x1f8] sm:$0xff]  }
  0x33   : >> { %1708 = vmatmul.mubr.bf16.vlgmr.msra.gmra.mrb[0].mxu1 %v222_v22  ;;  %1712 = vmatpush3.bf16.msra.mxu0 %v1885_v23  ;;  %v1509_v22 = vld [vmem:[%s2050_s22 + $0x4] sm:$0x1] }
  0x34   : >> { %1732 = vmatpush3.bf16.msra.mxu1 %v1886_v24  ;;  %1713 = vmatprep.subr.bf16.mxu0 %v1957_v1  ;;  %v1933_v23 = vld [vmem:[%s2345_s1 + $0x200] sm:$0xff]   ;;  %v1058_v24 = vor.u32 %v1057_v20, %v1053_v19 }
  0x35   : >> { %1733 = vmatprep.subr.bf16.mxu1 %v1957_v1  ;;  %1727 = vmatprep.mubr.msk.bf16.mxu0 %vm1958_vm0, %v1957_v1 }
  0x36   : >> { %1747 = vmatprep.mubr.msk.bf16.mxu1 %vm1958_vm0, %v1957_v1 }
  0x37   : >> { %1714 = vmatpush3.bf16.msra.mxu0 %v1887_v25  ;;  %v1934_v25 = vld [vmem:[%s2345_s1 + $0x208] sm:$0xff]  }
  0x38   : >> { %1734 = vmatpush3.bf16.msra.mxu1 %v1888_v26  ;;  %1715 = vmatprep.subr.bf16.mxu0 %v1957_v1  ;;  %v1935_v26 = vld [vmem:[%s2345_s1 + $0x210] sm:$0xff]  }
  0x39   : >> { %1735 = vmatprep.subr.bf16.mxu1 %v1957_v1 }
  0x3b   : >> { %1716 = vmatpush3.bf16.msra.mxu0 %v1889_v27  ;;  %v1936_v27 = vld [vmem:[%s2345_s1 + $0x218] sm:$0xff]  }
  0x3c   : >> { %1736 = vmatpush3.bf16.msra.mxu1 %v1890_v28  ;;  %1717 = vmatprep.subr.bf16.mxu0 %v1957_v1  ;;  %v1937_v28 = vld [vmem:[%s2345_s1 + $0x220] sm:$0xff]  }
  0x3d   : >> { %1737 = vmatprep.subr.bf16.mxu1 %v1957_v1 }
  0x3f   : >> { %1718 = vmatpush3.bf16.msra.mxu0 %v1891_v29  ;;  %v1938_v29 = vld [vmem:[%s2345_s1 + $0x228] sm:$0xff]  }
  0x40   : >> { %1738 = vmatpush3.bf16.msra.mxu1 %v1892_v30  ;;  %1719 = vmatprep.subr.bf16.mxu0 %v1957_v1  ;;  %v1939_v30 = vld [vmem:[%s2345_s1 + $0x230] sm:$0xff]  }
  0x41   : >> { %1739 = vmatprep.subr.bf16.mxu1 %v1957_v1 }
  0x43   : >> { %1720 = vmatpush3.bf16.msra.mxu0 %v1893_v31  ;;  %v1940_v31 = vld [vmem:[%s2345_s1 + $0x238] sm:$0xff]  }
  0x44   : >> { %1740 = vmatpush3.bf16.msra.mxu1 %v1894_v32  ;;  %1721 = vmatprep.subr.bf16.mxu0 %v1957_v1  ;;  %v1577_v32 = vld.sshfl [vmem:[%s2050_s22 + $0x4] sm:$0x2 pattern:$0x76325410]  ;;  %s1274_s22 = scalar_lea.vmem %s2000_s24, %s1955_s28  ;;  %s219_s28 = sadd.s32 1, %s1955_s28  }
  0x45   : >> { %1741 = vmatprep.subr.bf16.mxu1 %v1957_v1  ;;  %p216_p4 = scmp.ge.s32.totalorder %s219_s28, 2  }
  0x47   : >> { %1722 = vmatpush3.bf16.msra.mxu0 %v1895_v33  ;;  %v1175_v33 = vrot.slane %v1577_v32, 1 }
  0x48   : >> { %1742 = vmatpush3.bf16.msra.mxu1 %v1896_v34  ;;  %1723 = vmatprep.subr.bf16.mxu0 %v1957_v1 }
  0x49   : >> { %1743 = vmatprep.subr.bf16.mxu1 %v1957_v1 }
  0x4b   : >> { %1724 = vmatpush3.bf16.msra.mxu0 %v1897_v35 }
  0x4c   : >> { %1744 = vmatpush3.bf16.msra.mxu1 %v1898_v36  ;;  %1725 = vmatprep.subr.bf16.mxu0 %v1957_v1 }
  0x4d   : >> { %1745 = vmatprep.subr.bf16.mxu1 %v1957_v1 }
  0x4f   : >> { %1726 = vmatpush3.bf16.msra.mxu0 %v1899_v38 }
  0x50   : >> { %1746 = vmatpush3.bf16.msra.mxu1 %v1900_v39  ;;  %1751 = vmatprep.subr.bf16.mxu0 %v1957_v1 }
  0x51   : >> { %1771 = vmatprep.subr.bf16.mxu1 %v1957_v1 }
  0x52   : >> { %1728 = vmatmul.mubr.bf16.vlgmr.msra.gmra.mrb[4].mxu0 %v475_v40 }
  0x53   : >> { %1752 = vmatpush3.bf16.msra.mxu0 %v1901_v41  ;;  %1748 = vmatmul.mubr.bf16.vlgmr.msra.gmra.mrb[4].mxu1 %v1431_v43 }
  0x54   : >> { %1772 = vmatpush3.bf16.msra.mxu1 %v1902_v42  ;;  %1753 = vmatprep.subr.bf16.mxu0 %v1957_v1 }
  0x55   : >> { %1773 = vmatprep.subr.bf16.mxu1 %v1957_v1  ;;  %1767 = vmatprep.mubr.msk.bf16.mxu0 %vm1958_vm0, %v1957_v1 }
  0x56   : >> { %1787 = vmatprep.mubr.msk.bf16.mxu1 %vm1958_vm0, %v1957_v1 }
  0x57   : >> { %1754 = vmatpush3.bf16.msra.mxu0 %v1903_v44 }
  0x58   : >> { %1774 = vmatpush3.bf16.msra.mxu1 %v1904_v45  ;;  %1755 = vmatprep.subr.bf16.mxu0 %v1957_v1 }
  0x59   : >> { %1775 = vmatprep.subr.bf16.mxu1 %v1957_v1 }
  0x5b   : >> { %1756 = vmatpush3.bf16.msra.mxu0 %v1905_v46 }
  0x5c   : >> { %1776 = vmatpush3.bf16.msra.mxu1 %v1906_v47  ;;  %1757 = vmatprep.subr.bf16.mxu0 %v1957_v1 }
  0x5d   : >> { %1777 = vmatprep.subr.bf16.mxu1 %v1957_v1 }
  0x5f   : >> { %1758 = vmatpush3.bf16.msra.mxu0 %v1907_v48 }
  0x60   : >> { %1778 = vmatpush3.bf16.msra.mxu1 %v1908_v49  ;;  %1759 = vmatprep.subr.bf16.mxu0 %v1957_v1 }
  0x61   : >> { %1779 = vmatprep.subr.bf16.mxu1 %v1957_v1 }
  0x63   : >> { %1760 = vmatpush3.bf16.msra.mxu0 %v1909_v50 }
  0x64   : >> { %1780 = vmatpush3.bf16.msra.mxu1 %v1910_v51  ;;  %1761 = vmatprep.subr.bf16.mxu0 %v1957_v1 }
  0x65   : >> { %1781 = vmatprep.subr.bf16.mxu1 %v1957_v1 }
  0x67   : >> { %1762 = vmatpush3.bf16.msra.mxu0 %v1911_v52 }
  0x68   : >> { %1782 = vmatpush3.bf16.msra.mxu1 %v1912_v54  ;;  %1763 = vmatprep.subr.bf16.mxu0 %v1957_v1 }
  0x69   : >> { %1783 = vmatprep.subr.bf16.mxu1 %v1957_v1 }
  0x6b   : >> { %1764 = vmatpush3.bf16.msra.mxu0 %v1913_v56 }
  0x6c   : >> { %1784 = vmatpush3.bf16.msra.mxu1 %v1914_v57  ;;  %1765 = vmatprep.subr.bf16.mxu0 %v1957_v1 }
  0x6d   : >> { %1785 = vmatprep.subr.bf16.mxu1 %v1957_v1 }
  0x6f   : >> { %1766 = vmatpush3.bf16.msra.mxu0 %v1915_v60 }
  0x70   : >> { %1786 = vmatpush3.bf16.msra.mxu1 %v1916_v61  ;;  %1791 = vmatprep.subr.bf16.mxu0 %v1957_v1 }
  0x71   : >> { %1811 = vmatprep.subr.bf16.mxu1 %v1957_v1 }
  0x72   : >> { %1768 = vmatmul.mubr.bf16.vlgmr.msra.gmra.mrb[8].mxu0 %v708_v63 }
  0x73   : >> { %1792 = vmatpush3.bf16.msra.mxu0 %v1917_v0  ;;  %1788 = vmatmul.mubr.bf16.vlgmr.msra.gmra.mrb[8].mxu1 %v825_v2 }
  0x74   : >> { %1812 = vmatpush3.bf16.msra.mxu1 %v1918_v3  ;;  %1793 = vmatprep.subr.bf16.mxu0 %v1957_v1 }
  0x75   : >> { %1813 = vmatprep.subr.bf16.mxu1 %v1957_v1  ;;  %1807 = vmatprep.mubr.msk.bf16.mxu0 %vm1958_vm0, %v1957_v1 }
  0x76   : >> { %1827 = vmatprep.mubr.msk.bf16.mxu1 %vm1958_vm0, %v1957_v1 }
  0x77   : >> { %1794 = vmatpush3.bf16.msra.mxu0 %v1919_v4 }
  0x78   : >> { %1814 = vmatpush3.bf16.msra.mxu1 %v1920_v5  ;;  %1795 = vmatprep.subr.bf16.mxu0 %v1957_v1 }
  0x79   : >> { %1815 = vmatprep.subr.bf16.mxu1 %v1957_v1 }
  0x7b   : >> { %1796 = vmatpush3.bf16.msra.mxu0 %v1921_v6 }
  0x7c   : >> { %1816 = vmatpush3.bf16.msra.mxu1 %v1922_v7  ;;  %1797 = vmatprep.subr.bf16.mxu0 %v1957_v1 }
  0x7d   : >> { %1817 = vmatprep.subr.bf16.mxu1 %v1957_v1 }
  0x7f   : >> { %1798 = vmatpush3.bf16.msra.mxu0 %v1923_v8 }
  0x80   : >> { %1818 = vmatpush3.bf16.msra.mxu1 %v1924_v9  ;;  %1799 = vmatprep.subr.bf16.mxu0 %v1957_v1  ;;  %v1275_v9 = vld [vmem:[%s1274_s22] sm:$0x1] }
  0x81   : >> { %1819 = vmatprep.subr.bf16.mxu1 %v1957_v1 }
  0x83   : >> { %1800 = vmatpush3.bf16.msra.mxu0 %v1925_v10 }
  0x84   : >> { %1820 = vmatpush3.bf16.msra.mxu1 %v1926_v11  ;;  %1801 = vmatprep.subr.bf16.mxu0 %v1957_v1  ;;  %v1586_v11 = vld [vmem:[%s2346_s2] ss:$0 sm:$0xff] }
  0x85   : >> { %1821 = vmatprep.subr.bf16.mxu1 %v1957_v1 }
  0x87   : >> { %1802 = vmatpush3.bf16.msra.mxu0 %v1927_v12 }
  0x88   : >> { %1822 = vmatpush3.bf16.msra.mxu1 %v1928_v13  ;;  %1803 = vmatprep.subr.bf16.mxu0 %v1957_v1  ;;  %v1276_v13 = vunpack.c.l.bf16 %v1275_v9 }
  0x89   : >> { %1823 = vmatprep.subr.bf16.mxu1 %v1957_v1 }
  0x8b   : >> { %1804 = vmatpush3.bf16.msra.mxu0 %v1929_v15 }
  0x8c   : >> { %1824 = vmatpush3.bf16.msra.mxu1 %v1930_v17  ;;  %1805 = vmatprep.subr.bf16.mxu0 %v1957_v1 }
  0x8d   : >> { %1825 = vmatprep.subr.bf16.mxu1 %v1957_v1 }
  0x8f   : >> { %1806 = vmatpush3.bf16.msra.mxu0 %v1931_v18 }
  0x90   : >> { %1826 = vmatpush3.bf16.msra.mxu1 %v1932_v21  ;;  %1831 = vmatprep.subr.bf16.mxu0 %v1957_v1 }
  0x92   : >> { %1808 = vmatmul.mubr.bf16.vlgmr.msra.gmra.mrb[12].mxu0 %v1509_v22 }
  0x93   : >> { %1832 = vmatpush3.bf16.msra.mxu0 %v1933_v23  ;;  %1828 = vmatmul.mubr.bf16.vlgmr.msra.gmra.mrb[12].mxu1 %v1058_v24 }
  0x94   : >> { %1833 = vmatprep.subr.bf16.mxu0 %v1957_v1  ;;  %1847 = vmatprep.mubr.msk.bf16.mxu0 %vm1958_vm0, %v1957_v1 }
  0x97   : >> { %1834 = vmatpush3.bf16.msra.mxu0 %v1934_v25 }
  0x98   : >> { %1835 = vmatprep.subr.bf16.mxu0 %v1957_v1 }
  0x9b   : >> { %1836 = vmatpush3.bf16.msra.mxu0 %v1935_v26 }
  0x9c   : >> { %1837 = vmatprep.subr.bf16.mxu0 %v1957_v1 }
  0x9f   : >> { %1838 = vmatpush3.bf16.msra.mxu0 %v1936_v27 }
  0xa0   : >> { %1839 = vmatprep.subr.bf16.mxu0 %v1957_v1 }
  0xa3   : >> { %1840 = vmatpush3.bf16.msra.mxu0 %v1937_v28 }
  0xa4   : >> { %1841 = vmatprep.subr.bf16.mxu0 %v1957_v1 }
  0xa7   : >> { %1842 = vmatpush3.bf16.msra.mxu0 %v1938_v29 }
  0xa8   : >> { %1843 = vmatprep.subr.bf16.mxu0 %v1957_v1 }
  0xab   : >> { %1844 = vmatpush3.bf16.msra.mxu0 %v1939_v30 }
  0xac   : >> { %1845 = vmatprep.subr.bf16.mxu0 %v1957_v1 }
  0xaf   : >> { %1846 = vmatpush3.bf16.msra.mxu0 %v1940_v31 }
  0xb2   : >> { %1848 = vmatmul.mubr.bf16.vlgmr.msra.gmra.mrb[16].mxu0 %v1175_v33 }
 0x105   : >> { %v355_v34 = vpop.f32.mrb[0].mxu0 }
 0x106   : >> { %v1689_v35 = vpop.f32.mrb[1].mxu0  ;;  %v443_v36 = vpop.f32.mrb[0].mxu1 }
 0x107   : >> { %v444_v37 = vadd.f32 %v443_v36, %v355_v34  ;;  %v358_v38 = vpop.f32.mrb[2].mxu0  ;;  %v1709_v39 = vpop.f32.mrb[1].mxu1 }
 0x108   : >> { %v1690_v40 = vpop.f32.mrb[3].mxu0  ;;  %v446_v41 = vpop.f32.mrb[2].mxu1 }
 0x109   : >> { %v1710_v42 = vpop.f32.mrb[3].mxu1 }
 0x125   : >> { %v559_v43 = vpop.f32.mrb[4].mxu0 }
 0x126   : >> { %v565_v44 = vadd.f32 %v559_v43, %v444_v37  ;;  %v1729_v45 = vpop.f32.mrb[5].mxu0  ;;  %v669_v46 = vpop.f32.mrb[4].mxu1 }
 0x127   : >> { %v562_v47 = vpop.f32.mrb[6].mxu0  ;;  %v1749_v48 = vpop.f32.mrb[5].mxu1 }
 0x128   : >> { %v675_v49 = vadd.f32 %v669_v46, %v565_v44  ;;  %v1730_v1 = vpop.f32.mrb[7].mxu0  ;;  %v672_v50 = vpop.f32.mrb[6].mxu1 }
 0x129   : >> { %v1750_v51 = vpop.f32.mrb[7].mxu1 }
 0x145   : >> { %v792_v52 = vpop.f32.mrb[8].mxu0 }
 0x146   : >> { %v798_v53 = vadd.f32 %v792_v52, %v675_v49  ;;  %v1769_v54 = vpop.f32.mrb[9].mxu0  ;;  %v909_v55 = vpop.f32.mrb[8].mxu1 }
 0x147   : >> { %v795_v56 = vpop.f32.mrb[10].mxu0  ;;  %v1789_v57 = vpop.f32.mrb[9].mxu1 }
 0x148   : >> { %v915_v58 = vadd.f32 %v909_v55, %v798_v53  ;;  %v1770_v59 = vpop.f32.mrb[11].mxu0  ;;  %v912_v60 = vpop.f32.mrb[10].mxu1 }
 0x149   : >> { %v1790_v61 = vpop.f32.mrb[11].mxu1 }
 0x165   : >> { %v1019_v62 = vpop.f32.mrb[12].mxu0 }
 0x166   : >> { %v1025_v63 = vadd.f32 %v1019_v62, %v915_v58  ;;  %v1809_v0 = vpop.f32.mrb[13].mxu0  ;;  %v1142_v2 = vpop.f32.mrb[12].mxu1 }
 0x167   : >> { %v1022_v3 = vpop.f32.mrb[14].mxu0  ;;  %v1829_v4 = vpop.f32.mrb[13].mxu1 }
 0x168   : >> { %v1148_v5 = vadd.f32 %v1142_v2, %v1025_v63  ;;  %v1810_v6 = vpop.f32.mrb[15].mxu0  ;;  %v1145_v7 = vpop.f32.mrb[14].mxu1 }
 0x169   : >> { %v1830_v8 = vpop.f32.mrb[15].mxu1 }
 0x185   : >> { %v1259_v10 = vpop.f32.mrb[16].mxu0 }
 0x186   : >> { %v1265_v12 = vadd.f32 %v1259_v10, %v1148_v5  ;;  %v1849_v14 = vpop.f32.mrb[17].mxu0 }
 0x187   : >> { %v1262_v15 = vpop.f32.mrb[18].mxu0 }
 0x188   : >> { %v1273_v16 = vadd.f32 %v1586_v11, %v1265_v12  ;;  %v1850_v17 = vpop.f32.mrb[19].mxu0 }
 0x18a   : >> { %v1277_v18 = vadd.f32 %v1276_v13, %v1273_v16  ;;  %218 = sbr.rel (!%p216_p4) target bundleno = 17 (0x11), region = 89 }
 0x18c   : >> { %v1278_v19 = vmax.f32 %v1277_v18, 0.0 }
 0x18e   : >> { %v1279_v20 = vpack.c.bf16 %v1278_v19, %v1278_v19 }
 0x190   : >> { %1281 = vst [vmem:[%s1280_s10] sm:$0x1] %v1279_v20 }
 0x191 PF: > { %s14_s15 = sadd.s32 1, %s1951_s15  }
 0x192   : > { %p11_p5 = scmp.ge.s32.totalorder %s14_s15, 4  }
 0x194   :  { %13 = sbr.rel (!%p11_p5) target bundleno = 1 (0x1), region = 100 }

// kernel: _lambda_.25
= control target key start
LH: loop header
LB: loop body
LE: loop exit
PB: predicated region body
PF: predicated region fallthrough
CT: control target
= control target key end

     0   :  { %s1835_s12 = smov 0   ;;  %s2189_s0 = inlined_call_operand.vmem [shape: bf16[8,2,2,128], index: 0, kind: input, shape index: {}]   ;;  %s2190_s1 = inlined_call_operand.vmem [shape: bf16[9,128,128], index: 1, kind: input, shape index: {}]   ;;  %s2191_s2 = inlined_call_operand.vmem [shape: f32[1,128], index: 2, kind: input, shape index: {}]   ;;  %s2192_s3 = inlined_call_operand.vmem [shape: bf16[2,1,1,128], index: 3, kind: output, shape index: {}]  }
   0x1 LB: > { %s1841_s13 = sadd.s32 4294967295, %s1810_s12   ;;  %p1250_p0 = scmp.ge.s32.totalorder %s1810_s12, 1  ;;  %s1810_s12 = sphi %s1835_s12, %s13_s12  }
   0x2   : > { %p138_p1 = scmp.lt.s32.totalorder %s1810_s12, 3 }
   0x4   : > { %p139_p2 = pnand %p1250_p0, %p138_p1 }
   0x5   : > { %v1732_v0 = vld [vmem:[%s2190_s1 + $0x40] sm:$0xff] (!%p139_p2)   ;;  %v1812_v1 = vmov (!%p139_p2), 0.0   ;;  %v1734_v3 = vld [vmem:[%s2190_s1 + $0x48] sm:$0xff] (!%p139_p2)   ;;  %vm1813_vm0 = vmmov (!%p139_p2), 0   ;;  %v1736_v5 = vld [vmem:[%s2190_s1 + $0x50] sm:$0xff] (!%p139_p2)   ;;  %s1251_s30 = sshll.u32 (!%p139_p2), %s1841_s13, 2  ;;  %v403_v27 = vlaneseq (!%p139_p2) }
   0x6   : > { %142 = sbr.rel (%p139_p2) target bundleno = 388 (0x184), region = 32  ;;  %1541 = vmatprep.subr.bf16.mxu0 (!%p139_p2), %v1812_v1  ;;  %1561 = vmatprep.subr.bf16.mxu1 (!%p139_p2), %v1812_v1  ;;  %v1733_v2 = vld [vmem:[%s2190_s1] sm:$0xff] (!%p139_p2)   ;;  %v1735_v4 = vld [vmem:[%s2190_s1 + $0x8] sm:$0xff] (!%p139_p2)   ;;  %v1737_v6 = vld [vmem:[%s2190_s1 + $0x10] sm:$0xff] (!%p139_p2)   ;;  %p161_p3 = scmp.lt.s32.totalorder (!%p139_p2), %s1251_s30, 7  ;;  %vm1193_vm1 = vcmask (!%p139_p2), 1040384  }
   0x7   : > { %1542 = vmatpush3.bf16.msra.mxu0 (!%p139_p2), %v1732_v0  ;;  %1557 = vmatprep.mubr.msk.bf16.mxu0 (!%p139_p2), %vm1813_vm0, %v1812_v1  ;;  %v1738_v7 = vld [vmem:[%s2190_s1 + $0x58] sm:$0xff] (!%p139_p2)   ;;  %v1740_v9 = vld [vmem:[%s2190_s1 + $0x60] sm:$0xff] (!%p139_p2)   ;;  %v1742_v11 = vld [vmem:[%s2190_s1 + $0x68] sm:$0xff] (!%p139_p2)   ;;  %v1814_v25 = vmov (!%p139_p2), 1966171168   ;;  %v404_v31 = vshrl.u32 (!%p139_p2), %v403_v27, 7 }
   0x8   : > { %1562 = vmatpush3.bf16.msra.mxu1 (!%p139_p2), %v1733_v2  ;;  %1543 = vmatprep.subr.bf16.mxu0 (!%p139_p2), %v1812_v1  ;;  %v1739_v8 = vld [vmem:[%s2190_s1 + $0x18] sm:$0xff] (!%p139_p2)   ;;  %v1741_v10 = vld [vmem:[%s2190_s1 + $0x20] sm:$0xff] (!%p139_p2)   ;;  %v1743_v12 = vld [vmem:[%s2190_s1 + $0x28] sm:$0xff] (!%p139_p2)   ;;  %v401_v26 = vunpack.c.l.s4 (!%p139_p2), %v1814_v25  ;;  %p166_p4 = scmp.lt.s32.totalorder (!%p139_p2), %s1841_s13, 1  ;;  %vm1194_vm2 = vsmask.f32 (!%p139_p2), 256 }
   0x9   : > { %1563 = vmatprep.subr.bf16.mxu1 (!%p139_p2), %v1812_v1  ;;  %1577 = vmatprep.mubr.msk.bf16.mxu1 (!%p139_p2), %vm1813_vm0, %v1812_v1  ;;  %v1744_v13 = vld [vmem:[%s2190_s1 + $0x70] sm:$0xff] (!%p139_p2)   ;;  %v1746_v15 = vld [vmem:[%s2190_s1 + $0x78] sm:$0xff] (!%p139_p2)   ;;  %v1748_v19 = vld [vmem:[%s2190_s1 + $0x80] sm:$0xff] (!%p139_p2)  }
   0xa   : > { %v1745_v14 = vld [vmem:[%s2190_s1 + $0x30] sm:$0xff] (!%p139_p2)   ;;  %v1747_v16 = vld [vmem:[%s2190_s1 + $0x38] sm:$0xff] (!%p139_p2)   ;;  %v1749_v20 = vld [vmem:[%s2190_s1 + $0xc0] sm:$0xff] (!%p139_p2)   ;;  %v402_v30 = vunpack.c.0.s8 (!%p139_p2), %v401_v26 }
   0xb   : > { %1544 = vmatpush3.bf16.msra.mxu0 (!%p139_p2), %v1734_v3  ;;  %v1750_v21 = vld [vmem:[%s2190_s1 + $0x88] sm:$0xff] (!%p139_p2)   ;;  %v1752_v23 = vld [vmem:[%s2190_s1 + $0x90] sm:$0xff] (!%p139_p2)   ;;  %v1754_v28 = vld [vmem:[%s2190_s1 + $0x98] sm:$0xff] (!%p139_p2)  }
   0xc   : > { %1564 = vmatpush3.bf16.msra.mxu1 (!%p139_p2), %v1735_v4  ;;  %1545 = vmatprep.subr.bf16.mxu0 (!%p139_p2), %v1812_v1  ;;  %v1751_v22 = vld [vmem:[%s2190_s1 + $0xc8] sm:$0xff] (!%p139_p2)   ;;  %v1753_v24 = vld [vmem:[%s2190_s1 + $0xd0] sm:$0xff] (!%p139_p2)   ;;  %v1755_v29 = vld [vmem:[%s2190_s1 + $0xd8] sm:$0xff] (!%p139_p2)   ;;  %v1965_v34 = vsub.s32 (!%p139_p2), %v402_v30, %v404_v31 }
   0xd   : > { %1565 = vmatprep.subr.bf16.mxu1 %v1812_v1  ;;  %s2194_s30 = smov (!%p161_p3, %s1251_s30), 7  ;;  %v1756_v32 = vld [vmem:[%s2190_s1 + $0xa0] sm:$0xff]   ;;  %v1758_v35 = vld [vmem:[%s2190_s1 + $0xa8] sm:$0xff]   ;;  %v1760_v38 = vld [vmem:[%s2190_s1 + $0xb0] sm:$0xff]   ;;  %s2196_s13 = smov (!%p166_p4, %s1841_s13), 1 }
   0xe   : > { %s1252_s16 = sshll.u32 %s2194_s30, 1  ;;  %v1757_v33 = vld [vmem:[%s2190_s1 + $0xe0] sm:$0xff]   ;;  %v1759_v36 = vld [vmem:[%s2190_s1 + $0xe8] sm:$0xff]   ;;  %v1761_v39 = vld [vmem:[%s2190_s1 + $0xf0] sm:$0xff]   ;;  %s168_s20 = scalar_lea.vmem %s2192_s3, %s2196_s13 }
   0xf   : > { %1546 = vmatpush3.bf16.msra.mxu0 %v1736_v5  ;;  %s1909_s21 = scalar_lea.vmem %s2189_s0, %s1252_s16  ;;  %v1762_v41 = vld [vmem:[%s2190_s1 + $0xb8] sm:$0xff]   ;;  %v1764_v44 = vld [vmem:[%s2190_s1 + $0x100] sm:$0xff]   ;;  %v1766_v48 = vld [vmem:[%s2190_s1 + $0x108] sm:$0xff]  }
  0x10   : > { %1566 = vmatpush3.bf16.msra.mxu1 %v1737_v6  ;;  %1547 = vmatprep.subr.bf16.mxu0 %v1812_v1  ;;  %v1253_v17 = vld [vmem:[%s1909_s21 + $0x2] sm:$0x1]  ;;  %v170_v18 = vld [vmem:[%s1909_s21] sm:$0x1]  ;;  %v1763_v42 = vld [vmem:[%s2190_s1 + $0xf8] sm:$0xff]  }
  0x11   : > { %1567 = vmatprep.subr.bf16.mxu1 %v1812_v1  ;;  %v406_v37 = vrot.slane %v170_v18, %v1965_v34  ;;  %v1310_v45 = vld [vmem:[%s1909_s21 + $0x4] sm:$0x1]  ;;  %v2003_v47 = vld [vmem:[%s1909_s21 + $0x1] sm:$0x1]  ;;  %v1767_v50 = vld [vmem:[%s2190_s1 + $0x148] sm:$0xff]  }
  0x12   : > { %v1765_v46 = vld [vmem:[%s2190_s1 + $0x140] sm:$0xff]   ;;  %v1088_v49 = vrot.slane %v2003_v47, %v1965_v34  ;;  %v1768_v52 = vld [vmem:[%s2190_s1 + $0x110] sm:$0xff]   ;;  %v1770_v54 = vld [vmem:[%s2190_s1 + $0x118] sm:$0xff]   ;;  %v747_v60 = vrot.slane %v1310_v45, %v1965_v34 }
  0x13   : > { %1548 = vmatpush3.bf16.msra.mxu0 %v1738_v7  ;;  %v413_v40 = vrot.slane %v406_v37, %v1965_v34  ;;  %v1769_v53 = vld [vmem:[%s2190_s1 + $0x150] sm:$0xff]   ;;  %v1771_v55 = vld [vmem:[%s2190_s1 + $0x158] sm:$0xff]   ;;  %v1772_v56 = vld [vmem:[%s2190_s1 + $0x120] sm:$0xff]  }
  0x14   : > { %1568 = vmatpush3.bf16.msra.mxu1 %v1739_v8  ;;  %1549 = vmatprep.subr.bf16.mxu0 %v1812_v1  ;;  %v2018_v51 = vrot.slane %v1088_v49, %v1965_v34  ;;  %v1773_v57 = vld [vmem:[%s2190_s1 + $0x160] sm:$0xff]   ;;  %v1774_v58 = vld [vmem:[%s2190_s1 + $0x128] sm:$0xff]   ;;  %v1776_v61 = vld [vmem:[%s2190_s1 + $0x130] sm:$0xff]   ;;  %v754_v63 = vrot.slane %v747_v60, %v1965_v34 }
  0x15   : > { %1569 = vmatprep.subr.bf16.mxu1 %v1812_v1  ;;  %v415_v43 = vshrl.u32 %v413_v40, 16  ;;  %v1775_v59 = vld [vmem:[%s2190_s1 + $0x168] sm:$0xff]   ;;  %v1777_v62 = vld [vmem:[%s2190_s1 + $0x170] sm:$0xff]   ;;  %v1778_v0 = vld [vmem:[%s2190_s1 + $0x138] sm:$0xff]  }
  0x16   : > { %v1779_v2 = vld [vmem:[%s2190_s1 + $0x178] sm:$0xff]   ;;  %v756_v3 = vshrl.u32 %v754_v63, 16  ;;  %v1335_v4 = vld [vmem:[%s1909_s21 + $0x6] sm:$0x1]  ;;  %v1782_v7 = vld [vmem:[%s2190_s1 + $0x188] sm:$0xff]   ;;  %v1097_v30 = vshrl.u32 %v2018_v51, 16 }
  0x17   : > { %1550 = vmatpush3.bf16.msra.mxu0 %v1740_v9  ;;  %v1780_v5 = vld [vmem:[%s2190_s1 + $0x180] sm:$0xff]   ;;  %v1783_v8 = vld [vmem:[%s2190_s1 + $0x1c8] sm:$0xff]   ;;  %v1784_v9 = vld [vmem:[%s2190_s1 + $0x190] sm:$0xff]  }
  0x18   : > { %1570 = vmatpush3.bf16.msra.mxu1 %v1741_v10  ;;  %1551 = vmatprep.subr.bf16.mxu0 %v1812_v1  ;;  %v1781_v6 = vld [vmem:[%s2190_s1 + $0x1c0] sm:$0xff]   ;;  %v1785_v10 = vld [vmem:[%s2190_s1 + $0x1d0] sm:$0xff]   ;;  %v1799_v25 = vld [vmem:[%s2190_s1 + $0x218] sm:$0xff]  }
  0x19   : > { %1571 = vmatprep.subr.bf16.mxu1 %v1812_v1  ;;  %v1800_v26 = vld [vmem:[%s2190_s1 + $0x220] sm:$0xff]   ;;  %v1801_v27 = vld [vmem:[%s2190_s1 + $0x228] sm:$0xff]   ;;  %vm1195_vm3 = vmand %vm1193_vm1, %vm1194_vm2 }
  0x1b   : > { %1552 = vmatpush3.bf16.msra.mxu0 %v1742_v11  ;;  %v1786_v11 = vld [vmem:[%s2190_s1 + $0x198] sm:$0xff]  }
  0x1c   : > { %1572 = vmatpush3.bf16.msra.mxu1 %v1743_v12  ;;  %1553 = vmatprep.subr.bf16.mxu0 %v1812_v1  ;;  %v1787_v12 = vld [vmem:[%s2190_s1 + $0x1d8] sm:$0xff]  }
  0x1d   : > { %1573 = vmatprep.subr.bf16.mxu1 %v1812_v1 }
  0x1f   : > { %1554 = vmatpush3.bf16.msra.mxu0 %v1744_v13  ;;  %v1788_v13 = vld [vmem:[%s2190_s1 + $0x1a0] sm:$0xff]  }
  0x20   : > { %1574 = vmatpush3.bf16.msra.mxu1 %v1745_v14  ;;  %1555 = vmatprep.subr.bf16.mxu0 %v1812_v1  ;;  %v1789_v14 = vld [vmem:[%s2190_s1 + $0x1e0] sm:$0xff]  }
  0x21   : > { %1575 = vmatprep.subr.bf16.mxu1 %v1812_v1 }
  0x23   : > { %1556 = vmatpush3.bf16.msra.mxu0 %v1746_v15  ;;  %v1790_v15 = vld [vmem:[%s2190_s1 + $0x1a8] sm:$0xff]  }
  0x24   : > { %1576 = vmatpush3.bf16.msra.mxu1 %v1747_v16  ;;  %1581 = vmatprep.subr.bf16.mxu0 %v1812_v1  ;;  %v1791_v16 = vld [vmem:[%s2190_s1 + $0x1e8] sm:$0xff]  }
  0x25   : > { %1601 = vmatprep.subr.bf16.mxu1 %v1812_v1 }
  0x26   : > { %1558 = vmatmul.mubr.bf16.vlgmr.msra.gmra.mrb[0].mxu0 %v1253_v17  ;;  %v1792_v17 = vld [vmem:[%s2190_s1 + $0x1b0] sm:$0xff]  }
  0x27   : > { %1578 = vmatmul.mubr.bf16.vlgmr.msra.gmra.mrb[0].mxu1 %v170_v18  ;;  %1582 = vmatpush3.bf16.msra.mxu0 %v1748_v19  ;;  %v1793_v18 = vld [vmem:[%s2190_s1 + $0x1f0] sm:$0xff]   ;;  %v1794_v19 = vld [vmem:[%s2190_s1 + $0x1b8] sm:$0xff]  }
  0x28   : > { %1602 = vmatpush3.bf16.msra.mxu1 %v1749_v20  ;;  %1583 = vmatprep.subr.bf16.mxu0 %v1812_v1  ;;  %v1795_v20 = vld [vmem:[%s2190_s1 + $0x1f8] sm:$0xff]  }
  0x29   : > { %1603 = vmatprep.subr.bf16.mxu1 %v1812_v1  ;;  %1597 = vmatprep.mubr.msk.bf16.mxu0 %vm1813_vm0, %v1812_v1 }
  0x2a   : > { %1617 = vmatprep.mubr.msk.bf16.mxu1 %vm1813_vm0, %v1812_v1 }
  0x2b   : > { %1584 = vmatpush3.bf16.msra.mxu0 %v1750_v21  ;;  %v1796_v21 = vld [vmem:[%s2190_s1 + $0x200] sm:$0xff]  }
  0x2c   : > { %1604 = vmatpush3.bf16.msra.mxu1 %v1751_v22  ;;  %1585 = vmatprep.subr.bf16.mxu0 %v1812_v1  ;;  %v1409_v22 = vld [vmem:[%s1909_s21 + $0x3] sm:$0x1] }
  0x2d   : > { %1605 = vmatprep.subr.bf16.mxu1 %v1812_v1 }
  0x2f   : > { %1586 = vmatpush3.bf16.msra.mxu0 %v1752_v23  ;;  %v1797_v23 = vld [vmem:[%s2190_s1 + $0x208] sm:$0xff]  }
  0x30   : > { %1606 = vmatpush3.bf16.msra.mxu1 %v1753_v24  ;;  %1587 = vmatprep.subr.bf16.mxu0 %v1812_v1  ;;  %v1798_v24 = vld [vmem:[%s2190_s1 + $0x210] sm:$0xff]  }
  0x31   : > { %1607 = vmatprep.subr.bf16.mxu1 %v1812_v1 }
  0x33   : > { %1588 = vmatpush3.bf16.msra.mxu0 %v1754_v28  ;;  %v1802_v28 = vld [vmem:[%s2190_s1 + $0x230] sm:$0xff]  }
  0x34   : > { %1608 = vmatpush3.bf16.msra.mxu1 %v1755_v29  ;;  %1589 = vmatprep.subr.bf16.mxu0 %v1812_v1  ;;  %v1803_v29 = vld [vmem:[%s2190_s1 + $0x238] sm:$0xff]  }
  0x35   : > { %1609 = vmatprep.subr.bf16.mxu1 %v1812_v1 }
  0x37   : > { %1590 = vmatpush3.bf16.msra.mxu0 %v1756_v32 }
  0x38   : > { %1610 = vmatpush3.bf16.msra.mxu1 %v1757_v33  ;;  %1591 = vmatprep.subr.bf16.mxu0 %v1812_v1 }
  0x39   : > { %1611 = vmatprep.subr.bf16.mxu1 %v1812_v1 }
  0x3b   : > { %1592 = vmatpush3.bf16.msra.mxu0 %v1758_v35 }
  0x3c   : > { %1612 = vmatpush3.bf16.msra.mxu1 %v1759_v36  ;;  %1593 = vmatprep.subr.bf16.mxu0 %v1812_v1 }
  0x3d   : > { %1613 = vmatprep.subr.bf16.mxu1 %v1812_v1 }
  0x3f   : > { %1594 = vmatpush3.bf16.msra.mxu0 %v1760_v38 }
  0x40   : > { %1614 = vmatpush3.bf16.msra.mxu1 %v1761_v39  ;;  %1595 = vmatprep.subr.bf16.mxu0 %v1812_v1 }
  0x41   : > { %1615 = vmatprep.subr.bf16.mxu1 %v1812_v1 }
  0x43   : > { %1596 = vmatpush3.bf16.msra.mxu0 %v1762_v41 }
  0x44   : > { %1616 = vmatpush3.bf16.msra.mxu1 %v1763_v42  ;;  %1621 = vmatprep.subr.bf16.mxu0 %v1812_v1 }
  0x45   : > { %1641 = vmatprep.subr.bf16.mxu1 %v1812_v1 }
  0x46   : > { %1598 = vmatmul.mubr.bf16.vlgmr.msra.gmra.mrb[4].mxu0 %v415_v43 }
  0x47   : > { %1622 = vmatpush3.bf16.msra.mxu0 %v1764_v44  ;;  %1618 = vmatmul.mubr.bf16.vlgmr.msra.gmra.mrb[4].mxu1 %v1310_v45 }
  0x48   : > { %1642 = vmatpush3.bf16.msra.mxu1 %v1765_v46  ;;  %1623 = vmatprep.subr.bf16.mxu0 %v1812_v1 }
  0x49   : > { %1643 = vmatprep.subr.bf16.mxu1 %v1812_v1  ;;  %1637 = vmatprep.mubr.msk.bf16.mxu0 %vm1813_vm0, %v1812_v1 }
  0x4a   : > { %1657 = vmatprep.mubr.msk.bf16.mxu1 %vm1813_vm0, %v1812_v1 }
  0x4b   : > { %1624 = vmatpush3.bf16.msra.mxu0 %v1766_v48 }
  0x4c   : > { %1644 = vmatpush3.bf16.msra.mxu1 %v1767_v50  ;;  %1625 = vmatprep.subr.bf16.mxu0 %v1812_v1 }
  0x4d   : > { %1645 = vmatprep.subr.bf16.mxu1 %v1812_v1 }
  0x4f   : > { %1626 = vmatpush3.bf16.msra.mxu0 %v1768_v52 }
  0x50   : > { %1646 = vmatpush3.bf16.msra.mxu1 %v1769_v53  ;;  %1627 = vmatprep.subr.bf16.mxu0 %v1812_v1 }
  0x51   : > { %1647 = vmatprep.subr.bf16.mxu1 %v1812_v1 }
  0x53   : > { %1628 = vmatpush3.bf16.msra.mxu0 %v1770_v54 }
  0x54   : > { %1648 = vmatpush3.bf16.msra.mxu1 %v1771_v55  ;;  %1629 = vmatprep.subr.bf16.mxu0 %v1812_v1 }
  0x55   : > { %1649 = vmatprep.subr.bf16.mxu1 %v1812_v1 }
  0x57   : > { %1630 = vmatpush3.bf16.msra.mxu0 %v1772_v56 }
  0x58   : > { %1650 = vmatpush3.bf16.msra.mxu1 %v1773_v57  ;;  %1631 = vmatprep.subr.bf16.mxu0 %v1812_v1 }
  0x59   : > { %1651 = vmatprep.subr.bf16.mxu1 %v1812_v1 }
  0x5b   : > { %1632 = vmatpush3.bf16.msra.mxu0 %v1774_v58 }
  0x5c   : > { %1652 = vmatpush3.bf16.msra.mxu1 %v1775_v59  ;;  %1633 = vmatprep.subr.bf16.mxu0 %v1812_v1 }
  0x5d   : > { %1653 = vmatprep.subr.bf16.mxu1 %v1812_v1 }
  0x5f   : > { %1634 = vmatpush3.bf16.msra.mxu0 %v1776_v61 }
  0x60   : > { %1654 = vmatpush3.bf16.msra.mxu1 %v1777_v62  ;;  %1635 = vmatprep.subr.bf16.mxu0 %v1812_v1 }
  0x61   : > { %1655 = vmatprep.subr.bf16.mxu1 %v1812_v1 }
  0x63   : > { %1636 = vmatpush3.bf16.msra.mxu0 %v1778_v0 }
  0x64   : > { %1656 = vmatpush3.bf16.msra.mxu1 %v1779_v2  ;;  %1661 = vmatprep.subr.bf16.mxu0 %v1812_v1 }
  0x65   : > { %1681 = vmatprep.subr.bf16.mxu1 %v1812_v1 }
  0x66   : > { %1638 = vmatmul.mubr.bf16.vlgmr.msra.gmra.mrb[8].mxu0 %v1335_v4 }
  0x67   : > { %1662 = vmatpush3.bf16.msra.mxu0 %v1780_v5  ;;  %1658 = vmatmul.mubr.bf16.vlgmr.msra.gmra.mrb[8].mxu1 %v756_v3 }
  0x68   : > { %1682 = vmatpush3.bf16.msra.mxu1 %v1781_v6  ;;  %1663 = vmatprep.subr.bf16.mxu0 %v1812_v1 }
  0x69   : > { %1683 = vmatprep.subr.bf16.mxu1 %v1812_v1  ;;  %1677 = vmatprep.mubr.msk.bf16.mxu0 %vm1813_vm0, %v1812_v1 }
  0x6a   : > { %1697 = vmatprep.mubr.msk.bf16.mxu1 %vm1813_vm0, %v1812_v1 }
  0x6b   : > { %1664 = vmatpush3.bf16.msra.mxu0 %v1782_v7  ;;  %v1189_v7 = vld [vmem:[%s2191_s2] sm:$0x1] }
  0x6c   : > { %1684 = vmatpush3.bf16.msra.mxu1 %v1783_v8  ;;  %1665 = vmatprep.subr.bf16.mxu0 %v1812_v1 }
  0x6d   : > { %1685 = vmatprep.subr.bf16.mxu1 %v1812_v1 }
  0x6f   : > { %1666 = vmatpush3.bf16.msra.mxu0 %v1784_v9 }
  0x70   : > { %1686 = vmatpush3.bf16.msra.mxu1 %v1785_v10  ;;  %1667 = vmatprep.subr.bf16.mxu0 %v1812_v1 }
  0x71   : > { %1687 = vmatprep.subr.bf16.mxu1 %v1812_v1 }
  0x73   : > { %1668 = vmatpush3.bf16.msra.mxu0 %v1786_v11 }
  0x74   : > { %1688 = vmatpush3.bf16.msra.mxu1 %v1787_v12  ;;  %1669 = vmatprep.subr.bf16.mxu0 %v1812_v1 }
  0x75   : > { %1689 = vmatprep.subr.bf16.mxu1 %v1812_v1 }
  0x77   : > { %1670 = vmatpush3.bf16.msra.mxu0 %v1788_v13 }
  0x78   : > { %1690 = vmatpush3.bf16.msra.mxu1 %v1789_v14  ;;  %1671 = vmatprep.subr.bf16.mxu0 %v1812_v1  ;;  %v1196_v14 = vld [vmem:[%s168_s20] sm:$0x1] }
  0x79   : > { %1691 = vmatprep.subr.bf16.mxu1 %v1812_v1 }
  0x7b   : > { %1672 = vmatpush3.bf16.msra.mxu0 %v1790_v15 }
  0x7c   : > { %1692 = vmatpush3.bf16.msra.mxu1 %v1791_v16  ;;  %1673 = vmatprep.subr.bf16.mxu0 %v1812_v1 }
  0x7d   : > { %1693 = vmatprep.subr.bf16.mxu1 %v1812_v1 }
  0x7f   : > { %1674 = vmatpush3.bf16.msra.mxu0 %v1792_v17 }
  0x80   : > { %1694 = vmatpush3.bf16.msra.mxu1 %v1793_v18  ;;  %1675 = vmatprep.subr.bf16.mxu0 %v1812_v1 }
  0x81   : > { %1695 = vmatprep.subr.bf16.mxu1 %v1812_v1 }
  0x83   : > { %1676 = vmatpush3.bf16.msra.mxu0 %v1794_v19 }
  0x84   : > { %1696 = vmatpush3.bf16.msra.mxu1 %v1795_v20  ;;  %1701 = vmatprep.subr.bf16.mxu0 %v1812_v1 }
  0x86   : > { %1678 = vmatmul.mubr.bf16.vlgmr.msra.gmra.mrb[12].mxu0 %v2003_v47 }
  0x87   : > { %1702 = vmatpush3.bf16.msra.mxu0 %v1796_v21  ;;  %1698 = vmatmul.mubr.bf16.vlgmr.msra.gmra.mrb[12].mxu1 %v1409_v22 }
  0x88   : > { %1703 = vmatprep.subr.bf16.mxu0 %v1812_v1  ;;  %1717 = vmatprep.mubr.msk.bf16.mxu0 %vm1813_vm0, %v1812_v1 }
  0x8b   : > { %1704 = vmatpush3.bf16.msra.mxu0 %v1797_v23 }
  0x8c   : > { %1705 = vmatprep.subr.bf16.mxu0 %v1812_v1 }
  0x8f   : > { %1706 = vmatpush3.bf16.msra.mxu0 %v1798_v24 }
  0x90   : > { %1707 = vmatprep.subr.bf16.mxu0 %v1812_v1 }
  0x93   : > { %1708 = vmatpush3.bf16.msra.mxu0 %v1799_v25 }
  0x94   : > { %1709 = vmatprep.subr.bf16.mxu0 %v1812_v1 }
  0x97   : > { %1710 = vmatpush3.bf16.msra.mxu0 %v1800_v26 }
  0x98   : > { %1711 = vmatprep.subr.bf16.mxu0 %v1812_v1 }
  0x9b   : > { %1712 = vmatpush3.bf16.msra.mxu0 %v1801_v27 }
  0x9c   : > { %1713 = vmatprep.subr.bf16.mxu0 %v1812_v1 }
  0x9f   : > { %1714 = vmatpush3.bf16.msra.mxu0 %v1802_v28 }
  0xa0   : > { %1715 = vmatprep.subr.bf16.mxu0 %v1812_v1 }
  0xa3   : > { %1716 = vmatpush3.bf16.msra.mxu0 %v1803_v29 }
  0xa6   : > { %1718 = vmatmul.mubr.bf16.vlgmr.msra.gmra.mrb[16].mxu0 %v1097_v30 }
  0xf9   : > { %v288_v31 = vpop.f32.mrb[0].mxu0 }
  0xfa   : > { %v1559_v32 = vpop.f32.mrb[1].mxu0  ;;  %v376_v33 = vpop.f32.mrb[0].mxu1 }
  0xfb   : > { %v377_v34 = vadd.f32 %v376_v33, %v288_v31  ;;  %v291_v35 = vpop.f32.mrb[2].mxu0  ;;  %v1579_v36 = vpop.f32.mrb[1].mxu1 }
  0xfc   : > { %v1560_v37 = vpop.f32.mrb[3].mxu0  ;;  %v379_v38 = vpop.f32.mrb[2].mxu1 }
  0xfd   : > { %v1580_v39 = vpop.f32.mrb[3].mxu1 }
 0x119   : > { %v500_v40 = vpop.f32.mrb[4].mxu0 }
 0x11a   : > { %v506_v41 = vadd.f32 %v500_v40, %v377_v34  ;;  %v1599_v42 = vpop.f32.mrb[5].mxu0  ;;  %v608_v43 = vpop.f32.mrb[4].mxu1 }
 0x11b   : > { %v503_v44 = vpop.f32.mrb[6].mxu0  ;;  %v1619_v45 = vpop.f32.mrb[5].mxu1 }
 0x11c   : > { %v614_v1 = vadd.f32 %v608_v43, %v506_v41  ;;  %v1600_v46 = vpop.f32.mrb[7].mxu0  ;;  %v611_v47 = vpop.f32.mrb[6].mxu1 }
 0x11d   : > { %v1620_v48 = vpop.f32.mrb[7].mxu1 }
 0x139   : > { %v716_v49 = vpop.f32.mrb[8].mxu0 }
 0x13a   : > { %v722_v50 = vadd.f32 %v716_v49, %v614_v1  ;;  %v1639_v51 = vpop.f32.mrb[9].mxu0  ;;  %v841_v52 = vpop.f32.mrb[8].mxu1 }
 0x13b   : > { %v719_v53 = vpop.f32.mrb[10].mxu0  ;;  %v1659_v54 = vpop.f32.mrb[9].mxu1 }
 0x13c   : > { %v847_v55 = vadd.f32 %v841_v52, %v722_v50  ;;  %v1640_v56 = vpop.f32.mrb[11].mxu0  ;;  %v844_v57 = vpop.f32.mrb[10].mxu1 }
 0x13d   : > { %v1660_v58 = vpop.f32.mrb[11].mxu1 }
 0x159   : > { %v949_v59 = vpop.f32.mrb[12].mxu0 }
 0x15a   : > { %v955_v60 = vadd.f32 %v949_v59, %v847_v55  ;;  %v1679_v61 = vpop.f32.mrb[13].mxu0  ;;  %v1057_v62 = vpop.f32.mrb[12].mxu1 }
 0x15b   : > { %v952_v63 = vpop.f32.mrb[14].mxu0  ;;  %v1699_v0 = vpop.f32.mrb[13].mxu1 }
 0x15c   : > { %v1063_v2 = vadd.f32 %v1057_v62, %v955_v60  ;;  %v1680_v3 = vpop.f32.mrb[15].mxu0  ;;  %v1060_v4 = vpop.f32.mrb[14].mxu1 }
 0x15d   : > { %v1700_v5 = vpop.f32.mrb[15].mxu1 }
 0x179   : > { %v1182_v6 = vpop.f32.mrb[16].mxu0 }
 0x17a   : > { %v1188_v8 = vadd.f32 %v1182_v6, %v1063_v2  ;;  %v1719_v9 = vpop.f32.mrb[17].mxu0 }
 0x17b   : > { %v1185_v10 = vpop.f32.mrb[18].mxu0 }
 0x17c   : > { %v1190_v11 = vadd.f32 %v1189_v7, %v1188_v8  ;;  %v1720_v12 = vpop.f32.mrb[19].mxu0 }
 0x17e   : > { %v1191_v13 = vmax.f32 %v1190_v11, 0.0 }
 0x180   : > { %v1192_v15 = vpack.c.bf16 %v1191_v13, %v1191_v13 }
 0x182   : > { %v1197_v16 = vsel %vm1195_vm3, %v1192_v15, %v1196_v14 }
 0x183   : > { %1198 = vst [vmem:[%s168_s20] sm:$0x1] %v1197_v16 }
 0x184 PF: > { %s13_s12 = sadd.s32 1, %s1810_s12  }
 0x185   : > { %p10_p5 = scmp.ge.s32.totalorder %s13_s12, 4  }
 0x187   :  { %12 = sbr.rel (!%p10_p5) target bundleno = 1 (0x1), region = 75 }

// kernel: _lambda_.27
= control target key start
LH: loop header
LB: loop body
LE: loop exit
PB: predicated region body
PF: predicated region fallthrough
CT: control target
= control target key end

     0   :  { %v17_v2 = vlaneseq  ;;  %s97_s0 = inlined_call_operand.vmem [shape: bf16[2,1,128], index: 0, kind: input, shape index: {}]   ;;  %s98_s1 = inlined_call_operand.hbm [shape: f32[2,128], index: 1, kind: output, shape index: {}]  }
   0x1   :  { %v9_v0 = vld [vmem:[%s97_s0] sm:$0x1]  ;;  %v10_v1 = vld [vmem:[%s97_s0 + $0x1] sm:$0x1] }
   0x2   :  { %6 = vsyncpa [#allocation3], 0  ;;  %v11_v3 = vunpack.c.l.bf16 %v9_v0  ;;  %v12_v4 = vunpack.c.l.bf16 %v10_v1  ;;  %v18_v5 = vshrl.u32 %v17_v2, 7  ;;  %s68_s10 = smov [#allocation2]   ;;  %vm25_vm0 = vcmask 1041409  }
   0x3   :  { %s35_s11 = sshll.u32 %s68_s10, 4  ;;  %s36_s11 = int_to_ptr.vmem [resolvable:$true] %s35_s11 }
   0x4   :  { %v19_v6 = vsub.s32 0, %v18_v5  ;;  %s44_s12 = scalar_lea.vmem %s36_s11, 32  ;;  %p49_p1 = scmp.lt.s32.totalorder %s36_s11, %s36_s11 }
   0x5   :  { %p45_p0 = scmp.ne.s32.totalorder %s36_s11, %s44_s12  ;;  %p50_p2 = scmp.lt.s32.totalorder %s44_s12, %s44_s12 }
   0x6   :  { %v20_v7 = vrot.slane %v11_v3, %v19_v6  ;;  %v24_v8 = vrot.slane %v12_v4, %v19_v6 }
   0x7   :  { %p51_p3 = por %p50_p2, %p49_p1 }
   0x8   :  { %v26_v9 = vsel %vm25_vm0, %v24_v8, %v20_v7 }
   0x9   :  { %28 = vst [vmem:[#allocation2] sm:$0x3] %v26_v9  ;;  %p52_p4 = pnand %p51_p3, %p45_p0 }
   0xb   :  { %55 = shalt.err (!%p52_p4)
}
   0xc   :  { %s56_s14 = scalar_lea.hbm %s98_s1, 32 }
   0xd   :  { %p57_p5 = scmp.ne.s32.totalorder %s98_s1, %s56_s14  ;;  %p60_p6 = scmp.lt.u32.totalorder %s56_s14, %s98_s1 }
   0xf   :  { %p62_p7 = pnand %p60_p6, %p57_p5 }
  0x11   :  { %65 = shalt.err (!%p62_p7)
}
  0x12   :  { %38 = dma.vmem_to_hbm [thread:$0]  %s36_s11, 32, %s98_s1, [#allocation3]  }
  0x13   :  { %66 = dma.done.wait [#allocation3], 32  }
  0x14   :  { %67 = vsyncadd [#allocation3], 4294967264 }
  0x15   :  { %42 = vsyncpa [#allocation3], 1 }

// kernel: _lambda_.26
= control target key start
LH: loop header
LB: loop body
LE: loop exit
PB: predicated region body
PF: predicated region fallthrough
CT: control target
= control target key end

     0   :  { %s1899_s15 = smov 0   ;;  %s2257_s0 = inlined_call_operand.vmem [shape: bf16[2,3,3,128], index: 0, kind: input, shape index: {}]   ;;  %s2258_s1 = inlined_call_operand.vmem [shape: bf16[9,128,128], index: 1, kind: input, shape index: {}]   ;;  %s2259_s2 = inlined_call_operand.vmem [shape: f32[1,128], index: 2, kind: input, shape index: {}]   ;;  %s2260_s3 = inlined_call_operand.vmem [shape: bf16[2,1,1,128], index: 3, kind: input, shape index: {}]   ;;  %s2261_s4 = inlined_call_operand.vmem [shape: bf16[2,1,1,128], index: 4, kind: output, shape index: {}]  }
   0x1 LB: > { %s1303_s16 = sadd.s32 4294967295, %s1869_s15   ;;  %p1307_p0 = scmp.ge.s32.totalorder %s1869_s15, 1  ;;  %s1869_s15 = sphi %s1899_s15, %s14_s15  }
   0x2   : > { %p170_p1 = scmp.lt.s32.totalorder %s1869_s15, 3 }
   0x4   : > { %p171_p2 = pnand %p1307_p0, %p170_p1 }
   0x5   : > { %v1791_v0 = vld [vmem:[%s2258_s1 + $0x40] sm:$0xff] (!%p171_p2)   ;;  %v1871_v1 = vmov (!%p171_p2), 0.0   ;;  %v1793_v3 = vld [vmem:[%s2258_s1 + $0x48] sm:$0xff] (!%p171_p2)   ;;  %vm1872_vm0 = vmmov (!%p171_p2), 0   ;;  %v1795_v5 = vld [vmem:[%s2258_s1 + $0x50] sm:$0xff] (!%p171_p2)   ;;  %p197_p3 = scmp.lt.s32.totalorder (!%p171_p2), %s1303_s16, 1  ;;  %v247_v9 = vlaneseq (!%p171_p2) }
   0x6   : > { %174 = sbr.rel (%p171_p2) target bundleno = 390 (0x186), region = 36  ;;  %1599 = vmatprep.subr.bf16.mxu0 (!%p171_p2), %v1871_v1  ;;  %1619 = vmatprep.subr.bf16.mxu1 (!%p171_p2), %v1871_v1  ;;  %v1792_v2 = vld [vmem:[%s2258_s1] sm:$0xff] (!%p171_p2)   ;;  %v1794_v4 = vld [vmem:[%s2258_s1 + $0x8] sm:$0xff] (!%p171_p2)   ;;  %v1796_v6 = vld [vmem:[%s2258_s1 + $0x10] sm:$0xff] (!%p171_p2)   ;;  %v1873_v12 = vmov (!%p171_p2), 1983009808  }
   0x7   : > { %1600 = vmatpush3.bf16.msra.mxu0 (!%p171_p2), %v1791_v0  ;;  %1615 = vmatprep.mubr.msk.bf16.mxu0 (!%p171_p2), %vm1872_vm0, %v1871_v1  ;;  %v1797_v7 = vld [vmem:[%s2258_s1 + $0x58] sm:$0xff] (!%p171_p2)   ;;  %v1799_v10 = vld [vmem:[%s2258_s1 + $0x60] sm:$0xff] (!%p171_p2)   ;;  %v245_v13 = vunpack.c.l.s4 (!%p171_p2), %v1873_v12  ;;  %v248_v14 = vshrl.u32 (!%p171_p2), %v247_v9, 7  ;;  %v1801_v15 = vld [vmem:[%s2258_s1 + $0x68] sm:$0xff] (!%p171_p2)   ;;  %vm1241_vm1 = vcmask (!%p171_p2), 1040384  }
   0x8   : > { %1620 = vmatpush3.bf16.msra.mxu1 (!%p171_p2), %v1792_v2  ;;  %1601 = vmatprep.subr.bf16.mxu0 (!%p171_p2), %v1871_v1  ;;  %v1798_v8 = vld [vmem:[%s2258_s1 + $0x18] sm:$0xff] (!%p171_p2)   ;;  %v1800_v11 = vld [vmem:[%s2258_s1 + $0x20] sm:$0xff] (!%p171_p2)   ;;  %v1802_v16 = vld [vmem:[%s2258_s1 + $0x28] sm:$0xff] (!%p171_p2)   ;;  %vm1242_vm2 = vsmask.f32 (!%p171_p2), 256 }
   0x9   : > { %1621 = vmatprep.subr.bf16.mxu1 (!%p171_p2), %v1871_v1  ;;  %1635 = vmatprep.mubr.msk.bf16.mxu1 (!%p171_p2), %vm1872_vm0, %v1871_v1  ;;  %v246_v17 = vunpack.c.0.s8 (!%p171_p2), %v245_v13  ;;  %v1803_v18 = vld [vmem:[%s2258_s1 + $0x70] sm:$0xff] (!%p171_p2)   ;;  %v1805_v23 = vld [vmem:[%s2258_s1 + $0x78] sm:$0xff] (!%p171_p2)   ;;  %v1807_v26 = vld [vmem:[%s2258_s1 + $0x80] sm:$0xff] (!%p171_p2)  }
   0xa   : > { %v1804_v21 = vld [vmem:[%s2258_s1 + $0x30] sm:$0xff] (!%p171_p2)   ;;  %v1806_v24 = vld [vmem:[%s2258_s1 + $0x38] sm:$0xff] (!%p171_p2)   ;;  %v1808_v27 = vld [vmem:[%s2258_s1 + $0xc0] sm:$0xff] (!%p171_p2)  }
   0xb   : > { %1602 = vmatpush3.bf16.msra.mxu0 (!%p171_p2), %v1793_v3  ;;  %v1974_v19 = vsub.s32 (!%p171_p2), %v246_v17, %v248_v14  ;;  %v1809_v28 = vld [vmem:[%s2258_s1 + $0x88] sm:$0xff] (!%p171_p2)   ;;  %v1811_v30 = vld [vmem:[%s2258_s1 + $0x90] sm:$0xff] (!%p171_p2)   ;;  %v1813_v32 = vld [vmem:[%s2258_s1 + $0x98] sm:$0xff] (!%p171_p2)  }
   0xc   : > { %1622 = vmatpush3.bf16.msra.mxu1 (!%p171_p2), %v1794_v4  ;;  %1603 = vmatprep.subr.bf16.mxu0 (!%p171_p2), %v1871_v1  ;;  %v1810_v29 = vld [vmem:[%s2258_s1 + $0xc8] sm:$0xff] (!%p171_p2)   ;;  %v1812_v31 = vld [vmem:[%s2258_s1 + $0xd0] sm:$0xff] (!%p171_p2)   ;;  %v1814_v33 = vld [vmem:[%s2258_s1 + $0xd8] sm:$0xff] (!%p171_p2)  }
   0xd   : > { %1623 = vmatprep.subr.bf16.mxu1 %v1871_v1  ;;  %s2263_s16 = smov (!%p197_p3, %s1303_s16), 1  ;;  %v1815_v34 = vld [vmem:[%s2258_s1 + $0xa0] sm:$0xff]   ;;  %v1817_v36 = vld [vmem:[%s2258_s1 + $0xa8] sm:$0xff]   ;;  %v1819_v38 = vld [vmem:[%s2258_s1 + $0xb0] sm:$0xff]  }
   0xe   : > { %s1779_s11 = smul.u32 6, %s2263_s16  ;;  %v1816_v35 = vld [vmem:[%s2258_s1 + $0xe0] sm:$0xff]   ;;  %v1818_v37 = vld [vmem:[%s2258_s1 + $0xe8] sm:$0xff]   ;;  %v1820_v39 = vld [vmem:[%s2258_s1 + $0xf0] sm:$0xff]   ;;  %s204_s27 = scalar_lea.vmem %s2260_s3, %s2263_s16 }
   0xf   : > { %1604 = vmatpush3.bf16.msra.mxu0 %v1795_v5  ;;  %v1821_v41 = vld [vmem:[%s2258_s1 + $0xb8] sm:$0xff]   ;;  %v1823_v44 = vld [vmem:[%s2258_s1 + $0x100] sm:$0xff]   ;;  %v1825_v47 = vld [vmem:[%s2258_s1 + $0x108] sm:$0xff]   ;;  %s207_s6 = scalar_lea.vmem %s2261_s4, %s2263_s16 }
  0x10   : > { %1624 = vmatpush3.bf16.msra.mxu1 %v1796_v6  ;;  %1605 = vmatprep.subr.bf16.mxu0 %v1871_v1  ;;  %s1968_s20 = scalar_lea.vmem %s2257_s0, %s1779_s11  ;;  %v1822_v42 = vld [vmem:[%s2258_s1 + $0xf8] sm:$0xff]   ;;  %v1824_v46 = vld [vmem:[%s2258_s1 + $0x140] sm:$0xff]   ;;  %v1826_v49 = vld [vmem:[%s2258_s1 + $0x148] sm:$0xff]  }
  0x11   : > { %1625 = vmatprep.subr.bf16.mxu1 %v1871_v1  ;;  %v209_v20 = vld [vmem:[%s1968_s20] sm:$0x1]  ;;  %v1357_v40 = vld.sshfl [vmem:[%s1968_s20] sm:$0x2 pattern:$0x76325410]  ;;  %vm1243_vm3 = vmand %vm1241_vm1, %vm1242_vm2 }
  0x12   : > { %v250_v22 = vrot.slane %v209_v20, %v1974_v19  ;;  %v457_v43 = vrot.slane %v1357_v40, 1  ;;  %v1366_v45 = vld [vmem:[%s1968_s20 + $0x2] sm:$0x1]  ;;  %v2073_v48 = vld [vmem:[%s1968_s20 + $0x4] sm:$0x1]  ;;  %v1827_v51 = vld [vmem:[%s2258_s1 + $0x110] sm:$0xff]  }
  0x13   : > { %1606 = vmatpush3.bf16.msra.mxu0 %v1797_v7  ;;  %v1023_v50 = vrot.slane %v2073_v48, %v1974_v19  ;;  %v1828_v52 = vld [vmem:[%s2258_s1 + $0x150] sm:$0xff]   ;;  %v1829_v53 = vld [vmem:[%s2258_s1 + $0x118] sm:$0xff]   ;;  %v1831_v55 = vld [vmem:[%s2258_s1 + $0x120] sm:$0xff]   ;;  %v680_v61 = vrot.slane %v1366_v45, %v1974_v19 }
  0x14   : > { %1626 = vmatpush3.bf16.msra.mxu1 %v1798_v8  ;;  %1607 = vmatprep.subr.bf16.mxu0 %v1871_v1  ;;  %v252_v25 = vshrl.u32 %v250_v22, 16  ;;  %v1830_v54 = vld [vmem:[%s2258_s1 + $0x158] sm:$0xff]   ;;  %v1832_v56 = vld [vmem:[%s2258_s1 + $0x160] sm:$0xff]   ;;  %v1833_v57 = vld [vmem:[%s2258_s1 + $0x128] sm:$0xff]  }
  0x15   : > { %1627 = vmatprep.subr.bf16.mxu1 %v1871_v1  ;;  %v1834_v58 = vld [vmem:[%s2258_s1 + $0x168] sm:$0xff]   ;;  %v1835_v59 = vld [vmem:[%s2258_s1 + $0x130] sm:$0xff]   ;;  %v1837_v62 = vld [vmem:[%s2258_s1 + $0x138] sm:$0xff]   ;;  %v682_v2 = vshrl.u32 %v680_v61, 16 }
  0x16   : > { %v1836_v60 = vld [vmem:[%s2258_s1 + $0x170] sm:$0xff]   ;;  %v1838_v63 = vld [vmem:[%s2258_s1 + $0x178] sm:$0xff]   ;;  %v1432_v0 = vld.sshfl [vmem:[%s1968_s20 + $0x2] sm:$0x2 pattern:$0x76325410] }
  0x17   : > { %1608 = vmatpush3.bf16.msra.mxu0 %v1799_v10  ;;  %v1839_v3 = vld [vmem:[%s2258_s1 + $0x180] sm:$0xff]   ;;  %v800_v4 = vrot.slane %v1432_v0, 1  ;;  %v1841_v6 = vld [vmem:[%s2258_s1 + $0x188] sm:$0xff]   ;;  %v1843_v8 = vld [vmem:[%s2258_s1 + $0x190] sm:$0xff]  }
  0x18   : > { %1628 = vmatpush3.bf16.msra.mxu1 %v1800_v11  ;;  %1609 = vmatprep.subr.bf16.mxu0 %v1871_v1  ;;  %v1840_v5 = vld [vmem:[%s2258_s1 + $0x1c0] sm:$0xff]   ;;  %v1842_v7 = vld [vmem:[%s2258_s1 + $0x1c8] sm:$0xff]   ;;  %v1844_v9 = vld [vmem:[%s2258_s1 + $0x1d0] sm:$0xff]  }
  0x19   : > { %1629 = vmatprep.subr.bf16.mxu1 %v1871_v1  ;;  %v1845_v10 = vld [vmem:[%s2258_s1 + $0x198] sm:$0xff]   ;;  %v1847_v12 = vld [vmem:[%s2258_s1 + $0x1a0] sm:$0xff]   ;;  %v1849_v14 = vld [vmem:[%s2258_s1 + $0x1a8] sm:$0xff]  }
  0x1a   : > { %v1846_v11 = vld [vmem:[%s2258_s1 + $0x1d8] sm:$0xff]   ;;  %v1848_v13 = vld [vmem:[%s2258_s1 + $0x1e0] sm:$0xff]   ;;  %v1852_v17 = vld [vmem:[%s2258_s1 + $0x1f0] sm:$0xff]  }
  0x1b   : > { %1610 = vmatpush3.bf16.msra.mxu0 %v1801_v15  ;;  %v1850_v15 = vld [vmem:[%s2258_s1 + $0x1e8] sm:$0xff]   ;;  %v1855_v22 = vld [vmem:[%s2258_s1 + $0x200] sm:$0xff]   ;;  %v1857_v19 = vld [vmem:[%s2258_s1 + $0x210] sm:$0xff]  }
  0x1c   : > { %1630 = vmatpush3.bf16.msra.mxu1 %v1802_v16  ;;  %1611 = vmatprep.subr.bf16.mxu0 %v1871_v1  ;;  %v1851_v16 = vld [vmem:[%s2258_s1 + $0x1b0] sm:$0xff]  }
  0x1d   : > { %1631 = vmatprep.subr.bf16.mxu1 %v1871_v1 }
  0x1f   : > { %1612 = vmatpush3.bf16.msra.mxu0 %v1803_v18  ;;  %v1853_v18 = vld [vmem:[%s2258_s1 + $0x1b8] sm:$0xff]  }
  0x20   : > { %1632 = vmatpush3.bf16.msra.mxu1 %v1804_v21  ;;  %1613 = vmatprep.subr.bf16.mxu0 %v1871_v1  ;;  %v1025_v21 = vshrl.u32 %v1023_v50, 16 }
  0x21   : > { %1633 = vmatprep.subr.bf16.mxu1 %v1871_v1 }
  0x23   : > { %1614 = vmatpush3.bf16.msra.mxu0 %v1805_v23  ;;  %v1856_v23 = vld [vmem:[%s2258_s1 + $0x208] sm:$0xff]  }
  0x24   : > { %1634 = vmatpush3.bf16.msra.mxu1 %v1806_v24  ;;  %1639 = vmatprep.subr.bf16.mxu0 %v1871_v1  ;;  %v1858_v24 = vld [vmem:[%s2258_s1 + $0x218] sm:$0xff]  }
  0x25   : > { %1659 = vmatprep.subr.bf16.mxu1 %v1871_v1 }
  0x26   : > { %1616 = vmatmul.mubr.bf16.vlgmr.msra.gmra.mrb[0].mxu0 %v252_v25  ;;  %v1859_v25 = vld [vmem:[%s2258_s1 + $0x220] sm:$0xff]  }
  0x27   : > { %1636 = vmatmul.mubr.bf16.vlgmr.msra.gmra.mrb[0].mxu1 %v209_v20  ;;  %1640 = vmatpush3.bf16.msra.mxu0 %v1807_v26  ;;  %v1854_v20 = vld [vmem:[%s2258_s1 + $0x1f8] sm:$0xff]   ;;  %v1860_v26 = vld [vmem:[%s2258_s1 + $0x228] sm:$0xff]  }
  0x28   : > { %1660 = vmatpush3.bf16.msra.mxu1 %v1808_v27  ;;  %1641 = vmatprep.subr.bf16.mxu0 %v1871_v1  ;;  %v1861_v27 = vld [vmem:[%s2258_s1 + $0x230] sm:$0xff]  }
  0x29   : > { %1661 = vmatprep.subr.bf16.mxu1 %v1871_v1  ;;  %1655 = vmatprep.mubr.msk.bf16.mxu0 %vm1872_vm0, %v1871_v1 }
  0x2a   : > { %1675 = vmatprep.mubr.msk.bf16.mxu1 %vm1872_vm0, %v1871_v1 }
  0x2b   : > { %1642 = vmatpush3.bf16.msra.mxu0 %v1809_v28  ;;  %v1862_v28 = vld [vmem:[%s2258_s1 + $0x238] sm:$0xff]  }
  0x2c   : > { %1662 = vmatpush3.bf16.msra.mxu1 %v1810_v29  ;;  %1643 = vmatprep.subr.bf16.mxu0 %v1871_v1  ;;  %v1507_v29 = vld.sshfl [vmem:[%s1968_s20 + $0x4] sm:$0x2 pattern:$0x76325410] }
  0x2d   : > { %1663 = vmatprep.subr.bf16.mxu1 %v1871_v1 }
  0x2f   : > { %1644 = vmatpush3.bf16.msra.mxu0 %v1811_v30  ;;  %v1143_v30 = vrot.slane %v1507_v29, 1 }
  0x30   : > { %1664 = vmatpush3.bf16.msra.mxu1 %v1812_v31  ;;  %1645 = vmatprep.subr.bf16.mxu0 %v1871_v1 }
  0x31   : > { %1665 = vmatprep.subr.bf16.mxu1 %v1871_v1 }
  0x33   : > { %1646 = vmatpush3.bf16.msra.mxu0 %v1813_v32 }
  0x34   : > { %1666 = vmatpush3.bf16.msra.mxu1 %v1814_v33  ;;  %1647 = vmatprep.subr.bf16.mxu0 %v1871_v1 }
  0x35   : > { %1667 = vmatprep.subr.bf16.mxu1 %v1871_v1 }
  0x37   : > { %1648 = vmatpush3.bf16.msra.mxu0 %v1815_v34 }
  0x38   : > { %1668 = vmatpush3.bf16.msra.mxu1 %v1816_v35  ;;  %1649 = vmatprep.subr.bf16.mxu0 %v1871_v1 }
  0x39   : > { %1669 = vmatprep.subr.bf16.mxu1 %v1871_v1 }
  0x3b   : > { %1650 = vmatpush3.bf16.msra.mxu0 %v1817_v36 }
  0x3c   : > { %1670 = vmatpush3.bf16.msra.mxu1 %v1818_v37  ;;  %1651 = vmatprep.subr.bf16.mxu0 %v1871_v1 }
  0x3d   : > { %1671 = vmatprep.subr.bf16.mxu1 %v1871_v1 }
  0x3f   : > { %1652 = vmatpush3.bf16.msra.mxu0 %v1819_v38 }
  0x40   : > { %1672 = vmatpush3.bf16.msra.mxu1 %v1820_v39  ;;  %1653 = vmatprep.subr.bf16.mxu0 %v1871_v1 }
  0x41   : > { %1673 = vmatprep.subr.bf16.mxu1 %v1871_v1 }
  0x43   : > { %1654 = vmatpush3.bf16.msra.mxu0 %v1821_v41 }
  0x44   : > { %1674 = vmatpush3.bf16.msra.mxu1 %v1822_v42  ;;  %1679 = vmatprep.subr.bf16.mxu0 %v1871_v1 }
  0x45   : > { %1699 = vmatprep.subr.bf16.mxu1 %v1871_v1 }
  0x46   : > { %1656 = vmatmul.mubr.bf16.vlgmr.msra.gmra.mrb[4].mxu0 %v457_v43 }
  0x47   : > { %1680 = vmatpush3.bf16.msra.mxu0 %v1823_v44  ;;  %1676 = vmatmul.mubr.bf16.vlgmr.msra.gmra.mrb[4].mxu1 %v1366_v45 }
  0x48   : > { %1700 = vmatpush3.bf16.msra.mxu1 %v1824_v46  ;;  %1681 = vmatprep.subr.bf16.mxu0 %v1871_v1 }
  0x49   : > { %1701 = vmatprep.subr.bf16.mxu1 %v1871_v1  ;;  %1695 = vmatprep.mubr.msk.bf16.mxu0 %vm1872_vm0, %v1871_v1 }
  0x4a   : > { %1715 = vmatprep.mubr.msk.bf16.mxu1 %vm1872_vm0, %v1871_v1 }
  0x4b   : > { %1682 = vmatpush3.bf16.msra.mxu0 %v1825_v47 }
  0x4c   : > { %1702 = vmatpush3.bf16.msra.mxu1 %v1826_v49  ;;  %1683 = vmatprep.subr.bf16.mxu0 %v1871_v1 }
  0x4d   : > { %1703 = vmatprep.subr.bf16.mxu1 %v1871_v1 }
  0x4f   : > { %1684 = vmatpush3.bf16.msra.mxu0 %v1827_v51 }
  0x50   : > { %1704 = vmatpush3.bf16.msra.mxu1 %v1828_v52  ;;  %1685 = vmatprep.subr.bf16.mxu0 %v1871_v1 }
  0x51   : > { %1705 = vmatprep.subr.bf16.mxu1 %v1871_v1 }
  0x53   : > { %1686 = vmatpush3.bf16.msra.mxu0 %v1829_v53 }
  0x54   : > { %1706 = vmatpush3.bf16.msra.mxu1 %v1830_v54  ;;  %1687 = vmatprep.subr.bf16.mxu0 %v1871_v1 }
  0x55   : > { %1707 = vmatprep.subr.bf16.mxu1 %v1871_v1 }
  0x57   : > { %1688 = vmatpush3.bf16.msra.mxu0 %v1831_v55 }
  0x58   : > { %1708 = vmatpush3.bf16.msra.mxu1 %v1832_v56  ;;  %1689 = vmatprep.subr.bf16.mxu0 %v1871_v1 }
  0x59   : > { %1709 = vmatprep.subr.bf16.mxu1 %v1871_v1 }
  0x5b   : > { %1690 = vmatpush3.bf16.msra.mxu0 %v1833_v57 }
  0x5c   : > { %1710 = vmatpush3.bf16.msra.mxu1 %v1834_v58  ;;  %1691 = vmatprep.subr.bf16.mxu0 %v1871_v1 }
  0x5d   : > { %1711 = vmatprep.subr.bf16.mxu1 %v1871_v1 }
  0x5f   : > { %1692 = vmatpush3.bf16.msra.mxu0 %v1835_v59 }
  0x60   : > { %1712 = vmatpush3.bf16.msra.mxu1 %v1836_v60  ;;  %1693 = vmatprep.subr.bf16.mxu0 %v1871_v1 }
  0x61   : > { %1713 = vmatprep.subr.bf16.mxu1 %v1871_v1 }
  0x63   : > { %1694 = vmatpush3.bf16.msra.mxu0 %v1837_v62 }
  0x64   : > { %1714 = vmatpush3.bf16.msra.mxu1 %v1838_v63  ;;  %1719 = vmatprep.subr.bf16.mxu0 %v1871_v1 }
  0x65   : > { %1739 = vmatprep.subr.bf16.mxu1 %v1871_v1 }
  0x66   : > { %1696 = vmatmul.mubr.bf16.vlgmr.msra.gmra.mrb[8].mxu0 %v682_v2 }
  0x67   : > { %1720 = vmatpush3.bf16.msra.mxu0 %v1839_v3  ;;  %1716 = vmatmul.mubr.bf16.vlgmr.msra.gmra.mrb[8].mxu1 %v800_v4 }
  0x68   : > { %1740 = vmatpush3.bf16.msra.mxu1 %v1840_v5  ;;  %1721 = vmatprep.subr.bf16.mxu0 %v1871_v1 }
  0x69   : > { %1741 = vmatprep.subr.bf16.mxu1 %v1871_v1  ;;  %1735 = vmatprep.mubr.msk.bf16.mxu0 %vm1872_vm0, %v1871_v1 }
  0x6a   : > { %1755 = vmatprep.mubr.msk.bf16.mxu1 %vm1872_vm0, %v1871_v1 }
  0x6b   : > { %1722 = vmatpush3.bf16.msra.mxu0 %v1841_v6  ;;  %v1236_v6 = vld [vmem:[%s204_s27] sm:$0x1] }
  0x6c   : > { %1742 = vmatpush3.bf16.msra.mxu1 %v1842_v7  ;;  %1723 = vmatprep.subr.bf16.mxu0 %v1871_v1 }
  0x6d   : > { %1743 = vmatprep.subr.bf16.mxu1 %v1871_v1 }
  0x6f   : > { %1724 = vmatpush3.bf16.msra.mxu0 %v1843_v8  ;;  %v1234_v8 = vld [vmem:[%s2259_s2] sm:$0x1] }
  0x70   : > { %1744 = vmatpush3.bf16.msra.mxu1 %v1844_v9  ;;  %1725 = vmatprep.subr.bf16.mxu0 %v1871_v1 }
  0x71   : > { %1745 = vmatprep.subr.bf16.mxu1 %v1871_v1 }
  0x73   : > { %1726 = vmatpush3.bf16.msra.mxu0 %v1845_v10  ;;  %v1237_v10 = vunpack.c.l.bf16 %v1236_v6 }
  0x74   : > { %1746 = vmatpush3.bf16.msra.mxu1 %v1846_v11  ;;  %1727 = vmatprep.subr.bf16.mxu0 %v1871_v1 }
  0x75   : > { %1747 = vmatprep.subr.bf16.mxu1 %v1871_v1 }
  0x77   : > { %1728 = vmatpush3.bf16.msra.mxu0 %v1847_v12 }
  0x78   : > { %1748 = vmatpush3.bf16.msra.mxu1 %v1848_v13  ;;  %1729 = vmatprep.subr.bf16.mxu0 %v1871_v1 }
  0x79   : > { %1749 = vmatprep.subr.bf16.mxu1 %v1871_v1 }
  0x7b   : > { %1730 = vmatpush3.bf16.msra.mxu0 %v1849_v14 }
  0x7c   : > { %1750 = vmatpush3.bf16.msra.mxu1 %v1850_v15  ;;  %1731 = vmatprep.subr.bf16.mxu0 %v1871_v1 }
  0x7d   : > { %1751 = vmatprep.subr.bf16.mxu1 %v1871_v1 }
  0x7f   : > { %1732 = vmatpush3.bf16.msra.mxu0 %v1851_v16 }
  0x80   : > { %1752 = vmatpush3.bf16.msra.mxu1 %v1852_v17  ;;  %1733 = vmatprep.subr.bf16.mxu0 %v1871_v1  ;;  %v1244_v17 = vld [vmem:[%s207_s6] sm:$0x1] }
  0x81   : > { %1753 = vmatprep.subr.bf16.mxu1 %v1871_v1 }
  0x83   : > { %1734 = vmatpush3.bf16.msra.mxu0 %v1853_v18 }
  0x84   : > { %1754 = vmatpush3.bf16.msra.mxu1 %v1854_v20  ;;  %1759 = vmatprep.subr.bf16.mxu0 %v1871_v1 }
  0x86   : > { %1736 = vmatmul.mubr.bf16.vlgmr.msra.gmra.mrb[12].mxu0 %v2073_v48 }
  0x87   : > { %1760 = vmatpush3.bf16.msra.mxu0 %v1855_v22  ;;  %1756 = vmatmul.mubr.bf16.vlgmr.msra.gmra.mrb[12].mxu1 %v1025_v21 }
  0x88   : > { %1761 = vmatprep.subr.bf16.mxu0 %v1871_v1  ;;  %1775 = vmatprep.mubr.msk.bf16.mxu0 %vm1872_vm0, %v1871_v1 }
  0x8b   : > { %1762 = vmatpush3.bf16.msra.mxu0 %v1856_v23 }
  0x8c   : > { %1763 = vmatprep.subr.bf16.mxu0 %v1871_v1 }
  0x8f   : > { %1764 = vmatpush3.bf16.msra.mxu0 %v1857_v19 }
  0x90   : > { %1765 = vmatprep.subr.bf16.mxu0 %v1871_v1 }
  0x93   : > { %1766 = vmatpush3.bf16.msra.mxu0 %v1858_v24 }
  0x94   : > { %1767 = vmatprep.subr.bf16.mxu0 %v1871_v1 }
  0x97   : > { %1768 = vmatpush3.bf16.msra.mxu0 %v1859_v25 }
  0x98   : > { %1769 = vmatprep.subr.bf16.mxu0 %v1871_v1 }
  0x9b   : > { %1770 = vmatpush3.bf16.msra.mxu0 %v1860_v26 }
  0x9c   : > { %1771 = vmatprep.subr.bf16.mxu0 %v1871_v1 }
  0x9f   : > { %1772 = vmatpush3.bf16.msra.mxu0 %v1861_v27 }
  0xa0   : > { %1773 = vmatprep.subr.bf16.mxu0 %v1871_v1 }
  0xa3   : > { %1774 = vmatpush3.bf16.msra.mxu0 %v1862_v28 }
  0xa6   : > { %1776 = vmatmul.mubr.bf16.vlgmr.msra.gmra.mrb[16].mxu0 %v1143_v30 }
  0xf9   : > { %v337_v31 = vpop.f32.mrb[0].mxu0 }
  0xfa   : > { %v1617_v32 = vpop.f32.mrb[1].mxu0  ;;  %v425_v33 = vpop.f32.mrb[0].mxu1 }
  0xfb   : > { %v426_v34 = vadd.f32 %v425_v33, %v337_v31  ;;  %v340_v35 = vpop.f32.mrb[2].mxu0  ;;  %v1637_v36 = vpop.f32.mrb[1].mxu1 }
  0xfc   : > { %v1618_v37 = vpop.f32.mrb[3].mxu0  ;;  %v428_v38 = vpop.f32.mrb[2].mxu1 }
  0xfd   : > { %v1638_v39 = vpop.f32.mrb[3].mxu1 }
 0x119   : > { %v541_v40 = vpop.f32.mrb[4].mxu0 }
 0x11a   : > { %v547_v41 = vadd.f32 %v541_v40, %v426_v34  ;;  %v1657_v42 = vpop.f32.mrb[5].mxu0  ;;  %v649_v43 = vpop.f32.mrb[4].mxu1 }
 0x11b   : > { %v544_v44 = vpop.f32.mrb[6].mxu0  ;;  %v1677_v45 = vpop.f32.mrb[5].mxu1 }
 0x11c   : > { %v655_v46 = vadd.f32 %v649_v43, %v547_v41  ;;  %v1658_v1 = vpop.f32.mrb[7].mxu0  ;;  %v652_v47 = vpop.f32.mrb[6].mxu1 }
 0x11d   : > { %v1678_v48 = vpop.f32.mrb[7].mxu1 }
 0x139   : > { %v767_v49 = vpop.f32.mrb[8].mxu0 }
 0x13a   : > { %v773_v50 = vadd.f32 %v767_v49, %v655_v46  ;;  %v1697_v51 = vpop.f32.mrb[9].mxu0  ;;  %v884_v52 = vpop.f32.mrb[8].mxu1 }
 0x13b   : > { %v770_v53 = vpop.f32.mrb[10].mxu0  ;;  %v1717_v54 = vpop.f32.mrb[9].mxu1 }
 0x13c   : > { %v890_v55 = vadd.f32 %v884_v52, %v773_v50  ;;  %v1698_v56 = vpop.f32.mrb[11].mxu0  ;;  %v887_v57 = vpop.f32.mrb[10].mxu1 }
 0x13d   : > { %v1718_v58 = vpop.f32.mrb[11].mxu1 }
 0x159   : > { %v992_v59 = vpop.f32.mrb[12].mxu0 }
 0x15a   : > { %v998_v60 = vadd.f32 %v992_v59, %v890_v55  ;;  %v1737_v61 = vpop.f32.mrb[13].mxu0  ;;  %v1110_v62 = vpop.f32.mrb[12].mxu1 }
 0x15b   : > { %v995_v63 = vpop.f32.mrb[14].mxu0  ;;  %v1757_v0 = vpop.f32.mrb[13].mxu1 }
 0x15c   : > { %v1116_v2 = vadd.f32 %v1110_v62, %v998_v60  ;;  %v1738_v3 = vpop.f32.mrb[15].mxu0  ;;  %v1113_v4 = vpop.f32.mrb[14].mxu1 }
 0x15d   : > { %v1758_v5 = vpop.f32.mrb[15].mxu1 }
 0x179   : > { %v1227_v7 = vpop.f32.mrb[16].mxu0 }
 0x17a   : > { %v1233_v9 = vadd.f32 %v1227_v7, %v1116_v2  ;;  %v1777_v11 = vpop.f32.mrb[17].mxu0 }
 0x17b   : > { %v1230_v12 = vpop.f32.mrb[18].mxu0 }
 0x17c   : > { %v1235_v13 = vadd.f32 %v1234_v8, %v1233_v9  ;;  %v1778_v14 = vpop.f32.mrb[19].mxu0 }
 0x17e   : > { %v1238_v15 = vadd.f32 %v1237_v10, %v1235_v13 }
 0x180   : > { %v1239_v16 = vmax.f32 %v1238_v15, 0.0 }
 0x182   : > { %v1240_v18 = vpack.c.bf16 %v1239_v16, %v1239_v16 }
 0x184   : > { %v1245_v20 = vsel %vm1243_vm3, %v1240_v18, %v1244_v17 }
 0x185   : > { %1246 = vst [vmem:[%s207_s6] sm:$0x1] %v1245_v20 }
 0x186 PF: > { %s14_s15 = sadd.s32 1, %s1869_s15  }
 0x187   : > { %p11_p4 = scmp.ge.s32.totalorder %s14_s15, 4  }
 0x189   :  { %13 = sbr.rel (!%p11_p4) target bundleno = 1 (0x1), region = 79 }

</bundles_post_ra>
